<compile_context>
chip_gen: v7x
topology: tpu7x:2x2x1
jax: 0.10.0
libtpu: 0.0.40
codegen_flags: <defaults>
</compile_context>

<pallas_src>
import math

import jax
import jax.numpy as jnp
from jax.experimental import pallas as pl
from jax.experimental.pallas import tpu as pltpu

# ----------------------------- model config -----------------------------
HIDDEN = 32
NUM_HEADS = 4
HEAD_DIM = HIDDEN // NUM_HEADS
INTERMEDIATE = 64
NUM_HIDDEN_LAYERS = 3          # public + per-expert layers (HF config value)
NUM_PUBLIC_LAYERS = 2
NUM_GATE_LAYERS = 1
NUM_EXPERT_LAYERS = NUM_HIDDEN_LAYERS - NUM_PUBLIC_LAYERS
NUM_EXPERTS = 2
NUM_LABELS = 3
VOCAB = 64
MAX_POS = 40
TYPE_VOCAB = 1
PAD_ID = 1
LN_EPS = 1e-5
TOTAL_LAYERS = NUM_PUBLIC_LAYERS + NUM_GATE_LAYERS + NUM_EXPERTS * NUM_EXPERT_LAYERS

# Row map of the width-32 per-layer weight slab (mat32[l] has shape (104, 32)).
_R_WO = 0        # rows [0, 32)  : attention output dense weight (H, H)
_R_WF = 32       # rows [32, 96) : FFN output dense weight (I, H)
_R_BO = 96       # attention output dense bias
_R_ALN_G = 97    # attention LayerNorm gamma
_R_ALN_B = 98    # attention LayerNorm beta
_R_BF = 99       # FFN output dense bias
_R_OLN_G = 100   # output LayerNorm gamma
_R_OLN_B = 101   # output LayerNorm beta
_R_EMB_G = 102   # layer 0 only: embedding LayerNorm gamma (pad rows otherwise)
_R_EMB_B = 103   # layer 0 only: embedding LayerNorm beta
_MAT32_ROWS = 104


# ----------------------------- in-kernel helpers -----------------------------
def _ln(x, g, b):
    mean = jnp.mean(x, axis=-1, keepdims=True)
    var = jnp.mean(jnp.square(x - mean), axis=-1, keepdims=True)
    return (x - mean) * jax.lax.rsqrt(var + LN_EPS) * g + b


def _gelu(x):
    # TODO(synk): HF Roberta "gelu" is the exact erf variant; the tanh
    # approximation is used here for guaranteed Mosaic lowering (~1e-3 diff).
    return 0.5 * x * (1.0 + jnp.tanh(0.7978845608028654 * (x + 0.044715 * x * x * x)))


# ----------------------------- the fused kernel -----------------------------
def _fused_moe_kernel(emb_ref, key_add_ref, labels_ref,
                      qkvw_ref, mat32_ref, mat64_ref,
                      cls_dense_ref, gate_out_ref, exp_out_ref,
                      elog_ref, mix_ref, gates_ref, loss_ref):
    t, _ = emb_ref.shape
    bsz = labels_ref.shape[0]
    seq = t // bsz
    f32 = jnp.float32

    def dot(a, b):
        return jnp.dot(a, b, preferred_element_type=f32)

    # --- block-diagonal additive attention mask, built in VMEM (O(T) HBM in) ---
    ri = jax.lax.broadcasted_iota(jnp.int32, (t, t), 0).astype(f32)
    ci = jax.lax.broadcasted_iota(jnp.int32, (t, t), 1).astype(f32)
    inv_s = 1.0 / seq
    same_batch = jnp.floor(ri * inv_s) == jnp.floor(ci * inv_s)
    key_add = jnp.broadcast_to(key_add_ref[...], (t, t))        # hoisted, computed once
    mask = jnp.where(same_batch, key_add, f32(-1e9))

    # --- CLS-row selection matrix (B, T): picks flattened token b*seq ---
    bi = jax.lax.broadcasted_iota(jnp.int32, (bsz, t), 0)
    ti = jax.lax.broadcasted_iota(jnp.int32, (bsz, t), 1)
    sel = jnp.where(ti == bi * seq, f32(1.0), f32(0.0))

    def layer(x, l):
        """One full RobertaLayer: MHA + residual/LN + FFN + residual/LN."""
        ctx_parts = []
        for hd in range(NUM_HEADS):
            qw = qkvw_ref[(l * 3 + 0) * NUM_HEADS + hd]         # (H+1, D) leading-axis block
            kw = qkvw_ref[(l * 3 + 1) * NUM_HEADS + hd]
            vw = qkvw_ref[(l * 3 + 2) * NUM_HEADS + hd]
            qh = dot(x, qw[0:HIDDEN]) + qw[HIDDEN:HIDDEN + 1]   # 1/sqrt(d) folded into qw/qb
            kh = dot(x, kw[0:HIDDEN]) + kw[HIDDEN:HIDDEN + 1]
            vh = dot(x, vw[0:HIDDEN]) + vw[HIDDEN:HIDDEN + 1]
            sc = jax.lax.dot_general(qh, kh, (((1,), (1,)), ((), ())),
                                     preferred_element_type=f32) + mask
            sc = sc - jnp.max(sc, axis=-1, keepdims=True)
            p = jnp.exp(sc)
            p = p * pl.reciprocal(jnp.sum(p, axis=-1, keepdims=True), approx=True)
            ctx_parts.append(dot(p, vh))                         # (T, D)
        ctx = jnp.concatenate(ctx_parts, axis=1)                 # (T, H)

        m32 = mat32_ref[l]                                       # (104, H)
        m64 = mat64_ref[l]                                       # (33, I)
        attn = dot(ctx, m32[_R_WO:_R_WO + HIDDEN]) + m32[_R_BO:_R_BO + 1]
        h1 = _ln(attn + x, m32[_R_ALN_G:_R_ALN_G + 1], m32[_R_ALN_B:_R_ALN_B + 1])
        inter = _gelu(dot(h1, m64[0:HIDDEN]) + m64[HIDDEN:HIDDEN + 1])
        ffn = dot(inter, m32[_R_WF:_R_WF + INTERMEDIATE]) + m32[_R_BF:_R_BF + 1]
        return _ln(ffn + h1, m32[_R_OLN_G:_R_OLN_G + 1], m32[_R_OLN_B:_R_OLN_B + 1])

    # --- embedding LayerNorm (params live in layer 0's pad rows) ---
    m32_0 = mat32_ref[0]
    x = _ln(emb_ref[...], m32_0[_R_EMB_G:_R_EMB_G + 1], m32_0[_R_EMB_B:_R_EMB_B + 1])

    # --- public layers ---
    for l in range(NUM_PUBLIC_LAYERS):
        x = layer(x, l)
    h_pub = x

    # --- gate layers + gate classification head ---
    hg = h_pub
    for l in range(NUM_GATE_LAYERS):
        hg = layer(hg, NUM_PUBLIC_LAYERS + l)
    cls_g = dot(sel, hg)                                         # (B, H)
    gd = cls_dense_ref[0]                                        # (H+1, H)
    g1 = jnp.tanh(dot(cls_g, gd[0:HIDDEN]) + gd[HIDDEN:HIDDEN + 1])
    gw = gate_out_ref[...]                                       # (H+1, E)
    gates = dot(g1, gw[0:HIDDEN]) + gw[HIDDEN:HIDDEN + 1]        # (B, E)
    gates_ref[...] = gates
    gm = jnp.max(gates, axis=-1, keepdims=True)
    ge = jnp.exp(gates - gm)
    gate_prob = ge * pl.reciprocal(jnp.sum(ge, axis=-1, keepdims=True), approx=True)

    # --- one-hot labels: single vectorized compare ---
    lcol = jax.lax.broadcasted_iota(jnp.int32, (bsz, NUM_LABELS), 1)
    onehot = jnp.where(lcol == labels_ref[...], f32(1.0), f32(0.0))

    # --- experts: layers from h_pub, classifier, gate-weighted mix + CE loss ---
    mix = jnp.zeros((bsz, NUM_LABELS), f32)
    wloss = jnp.zeros((bsz, 1), f32)
    for e in range(NUM_EXPERTS):
        he = h_pub
        for k in range(NUM_EXPERT_LAYERS):
            he = layer(he, NUM_PUBLIC_LAYERS + NUM_GATE_LAYERS + e * NUM_EXPERT_LAYERS + k)
        cls_e = dot(sel, he)
        cd = cls_dense_ref[1 + e]                                # (H+1, H)
        z = jnp.tanh(dot(cls_e, cd[0:HIDDEN]) + cd[HIDDEN:HIDDEN + 1])
        ow = exp_out_ref[e]                                      # (H+1, L)
        lg = dot(z, ow[0:HIDDEN]) + ow[HIDDEN:HIDDEN + 1]        # (B, L)
        elog_ref[e] = lg
        m = jnp.max(lg, axis=-1, keepdims=True)
        ex = jnp.exp(lg - m)
        den = jnp.sum(ex, axis=-1, keepdims=True)
        gp = gate_prob[:, e:e + 1]
        mix = mix + gp * (ex * pl.reciprocal(den, approx=True))  # gate-weighted softmax mixture
        lse = jnp.log(den) + m
        picked = jnp.sum(lg * onehot, axis=-1, keepdims=True)
        wloss = wloss + gp * (lse - picked)                      # gate-weighted CE (reduction='none')
    mix_ref[...] = mix
    loss_ref[...] = jnp.sum(wloss, axis=0, keepdims=True) * (1.0 / bsz)


def _fused_call(emb, key_add, labels, packed):
    bsz = labels.shape[0]
    vmem = lambda: pl.BlockSpec(memory_space=pltpu.MemorySpace.VMEM)
    out_shape = (jax.ShapeDtypeStruct((NUM_EXPERTS, bsz, NUM_LABELS), jnp.float32),
                 jax.ShapeDtypeStruct((bsz, NUM_LABELS), jnp.float32),
                 jax.ShapeDtypeStruct((bsz, NUM_EXPERTS), jnp.float32),
                 jax.ShapeDtypeStruct((1, 1), jnp.float32))
    return pl.pallas_call(
        _fused_moe_kernel,
        in_specs=[vmem() for _ in range(9)],
        out_specs=tuple(vmem() for _ in range(4)),
        out_shape=out_shape,
        compiler_params=pltpu.CompilerParams(vmem_limit_bytes=32 * 1024 * 1024),
    )(emb, key_add, labels, packed["qkvw"], packed["mat32"], packed["mat64"],
      packed["cls_dense"], packed["gate_out"], packed["exp_out"])


# ----------------------------- parameter init & packing -----------------------------
def _init_linear(key, fan_in, fan_out):
    kw, kb = jax.random.split(key)
    return (jax.random.normal(kw, (fan_in, fan_out), jnp.float32) * 0.02,
            jax.random.normal(kb, (fan_out,), jnp.float32) * 0.02)


def _init_roberta_layer(key):
    ks = jax.random.split(key, 6)
    p = {}
    p["q_w"], p["q_b"] = _init_linear(ks[0], HIDDEN, HIDDEN)
    p["k_w"], p["k_b"] = _init_linear(ks[1], HIDDEN, HIDDEN)
    p["v_w"], p["v_b"] = _init_linear(ks[2], HIDDEN, HIDDEN)
    p["ao_w"], p["ao_b"] = _init_linear(ks[3], HIDDEN, HIDDEN)
    p["aln_g"] = jnp.ones((HIDDEN,), jnp.float32)
    p["aln_b"] = jnp.zeros((HIDDEN,), jnp.float32)
    p["i_w"], p["i_b"] = _init_linear(ks[4], HIDDEN, INTERMEDIATE)
    p["o_w"], p["o_b"] = _init_linear(ks[5], INTERMEDIATE, HIDDEN)
    p["oln_g"] = jnp.ones((HIDDEN,), jnp.float32)
    p["oln_b"] = jnp.zeros((HIDDEN,), jnp.float32)
    return p


def _init_cls_head(key, in_dim, out_dim):
    k1, k2 = jax.random.split(key)
    d_w, d_b = _init_linear(k1, in_dim, in_dim)
    o_w, o_b = _init_linear(k2, in_dim, out_dim)
    return {"dense_w": d_w, "dense_b": d_b, "out_w": o_w, "out_b": o_b}


def _pack_weights(layers, emb_ln_g, emb_ln_b, gate_cls, expert_cls):
    """Pack all per-layer params into a few VMEM slabs (one DMA each)."""
    scale = 1.0 / math.sqrt(HEAD_DIM)

    # Per-head Q/K/V blocks: (TOTAL_LAYERS*3*NUM_HEADS, H+1, D); last row = bias.
    qkv_blocks = []
    for p in layers:
        for j, (wn, bn) in enumerate((("q_w", "q_b"), ("k_w", "k_b"), ("v_w", "v_b"))):
            w, bias = p[wn], p[bn]
            if j == 0:                      # fold 1/sqrt(head_dim) into the Q projection
                w, bias = w * scale, bias * scale
            for hd in range(NUM_HEADS):
                lo = hd * HEAD_DIM
                qkv_blocks.append(jnp.concatenate(
                    [w[:, lo:lo + HEAD_DIM],
                     bias[lo:lo + HEAD_DIM].reshape(1, HEAD_DIM)], axis=0))
    qkvw = jnp.stack(qkv_blocks)

    m32_list, m64_list = [], []
    for l, p in enumerate(layers):
        tail = (jnp.stack([emb_ln_g, emb_ln_b]) if l == 0
                else jnp.zeros((2, HIDDEN), jnp.float32))
        m32_list.append(jnp.concatenate(
            [p["ao_w"], p["o_w"],
             p["ao_b"].reshape(1, HIDDEN), p["aln_g"].reshape(1, HIDDEN),
             p["aln_b"].reshape(1, HIDDEN), p["o_b"].reshape(1, HIDDEN),
             p["oln_g"].reshape(1, HIDDEN), p["oln_b"].reshape(1, HIDDEN),
             tail], axis=0))                                   # (104, 32)
        m64_list.append(jnp.concatenate(
            [p["i_w"], p["i_b"].reshape(1, INTERMEDIATE)], axis=0))  # (33, 64)
    mat32 = jnp.stack(m32_list)
    mat64 = jnp.stack(m64_list)

    heads = [gate_cls] + list(expert_cls)
    cls_dense = jnp.stack([jnp.concatenate(
        [hd["dense_w"], hd["dense_b"].reshape(1, HIDDEN)], axis=0) for hd in heads])
    gate_out = jnp.concatenate(
        [gate_cls["out_w"], gate_cls["out_b"].reshape(1, NUM_EXPERTS)], axis=0)
    exp_out = jnp.stack([jnp.concatenate(
        [c["out_w"], c["out_b"].reshape(1, NUM_LABELS)], axis=0) for c in expert_cls])
    return {"qkvw": qkvw, "mat32": mat32, "mat64": mat64,
            "cls_dense": cls_dense, "gate_out": gate_out, "exp_out": exp_out}


def init_params(key):
    keys = jax.random.split(key, 8)
    word_emb = jax.random.normal(keys[0], (VOCAB, HIDDEN), jnp.float32) * 0.02
    pos_emb = jax.random.normal(keys[1], (MAX_POS, HIDDEN), jnp.float32) * 0.02
    type_emb = jax.random.normal(keys[2], (TYPE_VOCAB, HIDDEN), jnp.float32) * 0.02
    emb_ln_g = jnp.ones((HIDDEN,), jnp.float32)
    emb_ln_b = jnp.zeros((HIDDEN,), jnp.float32)

    public = [_init_roberta_layer(k) for k in jax.random.split(keys[3], NUM_PUBLIC_LAYERS)]
    gate = [_init_roberta_layer(k) for k in jax.random.split(keys[4], NUM_GATE_LAYERS)]
    experts = [_init_roberta_layer(k)
               for k in jax.random.split(keys[5], NUM_EXPERTS * NUM_EXPERT_LAYERS)]
    # NOTE: original code hard-codes 1024 for the gate classifier (assumes
    # roberta-large hidden_size); here the gate head uses HIDDEN so it runs.
    gate_cls = _init_cls_head(keys[6], HIDDEN, NUM_EXPERTS)
    expert_cls = [_init_cls_head(k, HIDDEN, NUM_LABELS)
                  for k in jax.random.split(keys[7], NUM_EXPERTS)]

    packed = _pack_weights(public + gate + experts, emb_ln_g, emb_ln_b,
                           gate_cls, expert_cls)
    return {"word_emb": word_emb, "pos_emb": pos_emb, "type_emb": type_emb,
            "packed": packed}


# ----------------------------- forward pass -----------------------------
@jax.jit
def forward(params, input_ids, attention_mask, labels):
    bsz, seq = input_ids.shape
    t = bsz * seq

    # RobertaEmbeddings: the table gathers stay in XLA (arbitrary-index gather
    # has no clean BlockSpec form); everything downstream is ONE pallas_call.
    not_pad = (input_ids != PAD_ID).astype(jnp.int32)
    position_ids = jnp.cumsum(not_pad, axis=1) * not_pad + PAD_ID
    token_type_ids = jnp.zeros_like(input_ids)
    emb = (params["word_emb"][input_ids]
           + params["pos_emb"][position_ids]
           + params["type_emb"][token_type_ids]).reshape(t, HIDDEN)

    # Per-key additive mask row (O(T)); the (T,T) block-diagonal mask is built in-kernel.
    key_add = ((1.0 - attention_mask.astype(jnp.float32)) * -10000.0).reshape(1, t)

    expert_logits, final_out_logits, origin_gates, loss = _fused_call(
        emb, key_add, labels.astype(jnp.int32).reshape(bsz, 1), params["packed"])

    final_out = [expert_logits[e][:, None, :] for e in range(NUM_EXPERTS)]  # list of (B,1,L)
    return final_out, loss[0, 0], final_out_logits, origin_gates


if __name__ == "__main__":
    key = jax.random.PRNGKey(0)
    pkey, ikey, lkey = jax.random.split(key, 3)
    params = init_params(pkey)

    B, S = 2, 8
    input_ids = jax.random.randint(ikey, (B, S), 2, VOCAB)
    attention_mask = jnp.ones((B, S), jnp.int32)
    labels = jax.random.randint(lkey, (B,), 0, NUM_LABELS)

    final_out, final_loss, final_out_logits, origin_gates = forward(
        params, input_ids, attention_mask, labels)
    jax.block_until_ready((final_out, final_loss, final_out_logits, origin_gates))
    print("KERNEL_OK")
</pallas_src>

<mosaic_0001>
module attributes {stable_mosaic.version = 11 : i64} {
  func.func @_fused_moe_kernel(%arg0: memref<16x32xf32, #tpu.memory_space<vmem>>, %arg1: memref<1x16xf32, #tpu.memory_space<vmem>>, %arg2: memref<2x1xi32, #tpu.memory_space<vmem>>, %arg3: memref<60x33x8xf32, #tpu.memory_space<vmem>>, %arg4: memref<5x104x32xf32, #tpu.memory_space<vmem>>, %arg5: memref<5x33x64xf32, #tpu.memory_space<vmem>>, %arg6: memref<3x33x32xf32, #tpu.memory_space<vmem>>, %arg7: memref<33x2xf32, #tpu.memory_space<vmem>>, %arg8: memref<2x33x3xf32, #tpu.memory_space<vmem>>, %arg9: memref<2x2x3xf32, #tpu.memory_space<vmem>>, %arg10: memref<2x3xf32, #tpu.memory_space<vmem>>, %arg11: memref<2x2xf32, #tpu.memory_space<vmem>>, %arg12: memref<1x1xf32, #tpu.memory_space<vmem>>) attributes {dimension_semantics = [], scalar_prefetch = 0 : i64, scratch_operands = 0 : i64, tpu.core_type = #tpu.core_type<tc>} {
    %0 = tpu.iota {dimensions = array<i32: 0>} : vector<16x16xi32>
    %1 = arith.sitofp %0 : vector<16x16xi32> to vector<16x16xf32>
    %2 = tpu.iota {dimensions = array<i32: 1>} : vector<16x16xi32>
    %3 = arith.sitofp %2 : vector<16x16xi32> to vector<16x16xf32>
    %cst = arith.constant 1.250000e-01 : f32
    %4 = vector.broadcast %cst : f32 to vector<16x16xf32>
    %5 = arith.mulf %1, %4 : vector<16x16xf32>
    %6 = math.floor %5 : vector<16x16xf32>
    %cst_0 = arith.constant 1.250000e-01 : f32
    %7 = vector.broadcast %cst_0 : f32 to vector<16x16xf32>
    %8 = arith.mulf %3, %7 : vector<16x16xf32>
    %9 = math.floor %8 : vector<16x16xf32>
    %10 = arith.cmpf oeq, %6, %9 : vector<16x16xf32>
    %c0 = arith.constant 0 : index
    %c0_1 = arith.constant 0 : index
    %11 = vector.load %arg1[%c0, %c0_1] : memref<1x16xf32, #tpu.memory_space<vmem>>, vector<1x16xf32>
    %12 = vector.shape_cast %11 : vector<1x16xf32> to vector<1x16xf32>
    %13 = vector.broadcast %12 : vector<1x16xf32> to vector<16x16xf32>
    %cst_2 = arith.constant -1.000000e+09 : f32
    %14 = vector.broadcast %cst_2 : f32 to vector<16x16xf32>
    %15 = arith.select %10, %13, %14 : vector<16x16xi1>, vector<16x16xf32>
    %16 = tpu.iota {dimensions = array<i32: 0>} : vector<2x16xi32>
    %17 = tpu.iota {dimensions = array<i32: 1>} : vector<2x16xi32>
    %c8_i32 = arith.constant 8 : i32
    %18 = vector.broadcast %c8_i32 : i32 to vector<2x16xi32>
    %19 = arith.muli %16, %18 : vector<2x16xi32>
    %20 = arith.cmpi eq, %17, %19 : vector<2x16xi32>
    %cst_3 = arith.constant 1.000000e+00 : f32
    %cst_4 = arith.constant 0.000000e+00 : f32
    %21 = vector.broadcast %cst_3 : f32 to vector<2x16xf32>
    %22 = vector.broadcast %cst_4 : f32 to vector<2x16xf32>
    %23 = arith.select %20, %21, %22 : vector<2x16xi1>, vector<2x16xf32>
    %c0_5 = arith.constant 0 : index
    %c0_6 = arith.constant 0 : index
    %c0_7 = arith.constant 0 : index
    %24 = vector.load %arg4[%c0_5, %c0_6, %c0_7] : memref<5x104x32xf32, #tpu.memory_space<vmem>>, vector<1x104x32xf32>
    %25 = vector.shape_cast %24 : vector<1x104x32xf32> to vector<104x32xf32>
    %c0_8 = arith.constant 0 : index
    %c0_9 = arith.constant 0 : index
    %26 = vector.load %arg0[%c0_8, %c0_9] : memref<16x32xf32, #tpu.memory_space<vmem>>, vector<16x32xf32>
    %27 = vector.extract_strided_slice %25 {offsets = [102, 0], sizes = [1, 32], strides = [1, 1]} : vector<104x32xf32> to vector<1x32xf32>
    %28 = vector.extract_strided_slice %25 {offsets = [103, 0], sizes = [1, 32], strides = [1, 1]} : vector<104x32xf32> to vector<1x32xf32>
    %cst_10 = arith.constant dense<0.000000e+00> : vector<16xf32>
    %29 = vector.multi_reduction <add>, %26, %cst_10 [1] : vector<16x32xf32> to vector<16xf32>
    %30 = vector.shape_cast %29 : vector<16xf32> to vector<16x1xf32>
    %cst_11 = arith.constant 3.200000e+01 : f32
    %31 = vector.broadcast %cst_11 : f32 to vector<16x1xf32>
    %32 = arith.divf %30, %31 : vector<16x1xf32>
    %33 = vector.broadcast %32 : vector<16x1xf32> to vector<16x32xf32>
    %34 = arith.subf %26, %33 : vector<16x32xf32>
    %35 = arith.mulf %34, %34 : vector<16x32xf32>
    %cst_12 = arith.constant dense<0.000000e+00> : vector<16xf32>
    %36 = vector.multi_reduction <add>, %35, %cst_12 [1] : vector<16x32xf32> to vector<16xf32>
    %37 = vector.shape_cast %36 : vector<16xf32> to vector<16x1xf32>
    %cst_13 = arith.constant 3.200000e+01 : f32
    %38 = vector.broadcast %cst_13 : f32 to vector<16x1xf32>
    %39 = arith.divf %37, %38 : vector<16x1xf32>
    %40 = vector.broadcast %32 : vector<16x1xf32> to vector<16x32xf32>
    %41 = arith.subf %26, %40 : vector<16x32xf32>
    %cst_14 = arith.constant 9.99999974E-6 : f32
    %42 = vector.broadcast %cst_14 : f32 to vector<16x1xf32>
    %43 = arith.addf %39, %42 : vector<16x1xf32>
    %44 = math.rsqrt %43 : vector<16x1xf32>
    %45 = vector.broadcast %44 : vector<16x1xf32> to vector<16x32xf32>
    %46 = arith.mulf %41, %45 : vector<16x32xf32>
    %47 = vector.broadcast %27 : vector<1x32xf32> to vector<16x32xf32>
    %48 = arith.mulf %46, %47 : vector<16x32xf32>
    %49 = vector.broadcast %28 : vector<1x32xf32> to vector<16x32xf32>
    %50 = arith.addf %48, %49 : vector<16x32xf32>
    %c0_15 = arith.constant 0 : index
    %c0_16 = arith.constant 0 : index
    %c0_17 = arith.constant 0 : index
    %51 = vector.load %arg3[%c0_15, %c0_16, %c0_17] : memref<60x33x8xf32, #tpu.memory_space<vmem>>, vector<1x33x8xf32>
    %52 = vector.shape_cast %51 : vector<1x33x8xf32> to vector<33x8xf32>
    %c4 = arith.constant 4 : index
    %c0_18 = arith.constant 0 : index
    %c0_19 = arith.constant 0 : index
    %53 = vector.load %arg3[%c4, %c0_18, %c0_19] : memref<60x33x8xf32, #tpu.memory_space<vmem>>, vector<1x33x8xf32>
    %54 = vector.shape_cast %53 : vector<1x33x8xf32> to vector<33x8xf32>
    %c8 = arith.constant 8 : index
    %c0_20 = arith.constant 0 : index
    %c0_21 = arith.constant 0 : index
    %55 = vector.load %arg3[%c8, %c0_20, %c0_21] : memref<60x33x8xf32, #tpu.memory_space<vmem>>, vector<1x33x8xf32>
    %56 = vector.shape_cast %55 : vector<1x33x8xf32> to vector<33x8xf32>
    %57 = vector.extract_strided_slice %52 {offsets = [0, 0], sizes = [32, 8], strides = [1, 1]} : vector<33x8xf32> to vector<32x8xf32>
    %cst_22 = arith.constant dense<0.000000e+00> : vector<16x8xf32>
    %58 = tpu.matmul %50, %57, %cst_22 {dimension_numbers = #tpu.dot_dimension_numbers<[1], [0], [0], [1], [0, 0, 1, 1], [], []>} : vector<16x32xf32>, vector<32x8xf32>, vector<16x8xf32> -> vector<16x8xf32>
    %59 = vector.extract_strided_slice %52 {offsets = [32, 0], sizes = [1, 8], strides = [1, 1]} : vector<33x8xf32> to vector<1x8xf32>
    %60 = vector.broadcast %59 : vector<1x8xf32> to vector<16x8xf32>
    %61 = arith.addf %58, %60 : vector<16x8xf32>
    %62 = vector.extract_strided_slice %54 {offsets = [0, 0], sizes = [32, 8], strides = [1, 1]} : vector<33x8xf32> to vector<32x8xf32>
    %cst_23 = arith.constant dense<0.000000e+00> : vector<16x8xf32>
    %63 = tpu.matmul %50, %62, %cst_23 {dimension_numbers = #tpu.dot_dimension_numbers<[1], [0], [0], [1], [0, 0, 1, 1], [], []>} : vector<16x32xf32>, vector<32x8xf32>, vector<16x8xf32> -> vector<16x8xf32>
    %64 = vector.extract_strided_slice %54 {offsets = [32, 0], sizes = [1, 8], strides = [1, 1]} : vector<33x8xf32> to vector<1x8xf32>
    %65 = vector.broadcast %64 : vector<1x8xf32> to vector<16x8xf32>
    %66 = arith.addf %63, %65 : vector<16x8xf32>
    %67 = vector.extract_strided_slice %56 {offsets = [0, 0], sizes = [32, 8], strides = [1, 1]} : vector<33x8xf32> to vector<32x8xf32>
    %cst_24 = arith.constant dense<0.000000e+00> : vector<16x8xf32>
    %68 = tpu.matmul %50, %67, %cst_24 {dimension_numbers = #tpu.dot_dimension_numbers<[1], [0], [0], [1], [0, 0, 1, 1], [], []>} : vector<16x32xf32>, vector<32x8xf32>, vector<16x8xf32> -> vector<16x8xf32>
    %69 = vector.extract_strided_slice %56 {offsets = [32, 0], sizes = [1, 8], strides = [1, 1]} : vector<33x8xf32> to vector<1x8xf32>
    %70 = vector.broadcast %69 : vector<1x8xf32> to vector<16x8xf32>
    %71 = arith.addf %68, %70 : vector<16x8xf32>
    %cst_25 = arith.constant dense<0.000000e+00> : vector<16x16xf32>
    %72 = tpu.matmul %61, %66, %cst_25 {dimension_numbers = #tpu.dot_dimension_numbers<[1], [1], [0], [0], [0, 0, 1, 0], [], []>} : vector<16x8xf32>, vector<16x8xf32>, vector<16x16xf32> -> vector<16x16xf32>
    %73 = arith.addf %72, %15 : vector<16x16xf32>
    %cst_26 = arith.constant dense<0xFF800000> : vector<16xf32>
    %74 = vector.multi_reduction <maximumf>, %73, %cst_26 [1] : vector<16x16xf32> to vector<16xf32>
    %75 = vector.shape_cast %74 : vector<16xf32> to vector<16x1xf32>
    %76 = vector.broadcast %75 : vector<16x1xf32> to vector<16x16xf32>
    %77 = arith.subf %73, %76 : vector<16x16xf32>
    %78 = math.exp %77 : vector<16x16xf32>
    %cst_27 = arith.constant dense<0.000000e+00> : vector<16xf32>
    %79 = vector.multi_reduction <add>, %78, %cst_27 [1] : vector<16x16xf32> to vector<16xf32>
    %80 = vector.shape_cast %79 : vector<16xf32> to vector<16x1xf32>
    %81 = tpu.reciprocal %80 {approx = true} : vector<16x1xf32> -> vector<16x1xf32>
    %82 = vector.broadcast %81 : vector<16x1xf32> to vector<16x16xf32>
    %83 = arith.mulf %78, %82 : vector<16x16xf32>
    %cst_28 = arith.constant dense<0.000000e+00> : vector<16x8xf32>
    %84 = tpu.matmul %83, %71, %cst_28 {dimension_numbers = #tpu.dot_dimension_numbers<[1], [0], [0], [1], [0, 0, 1, 1], [], []>} : vector<16x16xf32>, vector<16x8xf32>, vector<16x8xf32> -> vector<16x8xf32>
    %c1 = arith.constant 1 : index
    %c0_29 = arith.constant 0 : index
    %c0_30 = arith.constant 0 : index
    %85 = vector.load %arg3[%c1, %c0_29, %c0_30] : memref<60x33x8xf32, #tpu.memory_space<vmem>>, vector<1x33x8xf32>
    %86 = vector.shape_cast %85 : vector<1x33x8xf32> to vector<33x8xf32>
    %c5 = arith.constant 5 : index
    %c0_31 = arith.constant 0 : index
    %c0_32 = arith.constant 0 : index
    %87 = vector.load %arg3[%c5, %c0_31, %c0_32] : memref<60x33x8xf32, #tpu.memory_space<vmem>>, vector<1x33x8xf32>
    %88 = vector.shape_cast %87 : vector<1x33x8xf32> to vector<33x8xf32>
    %c9 = arith.constant 9 : index
    %c0_33 = arith.constant 0 : index
    %c0_34 = arith.constant 0 : index
    %89 = vector.load %arg3[%c9, %c0_33, %c0_34] : memref<60x33x8xf32, #tpu.memory_space<vmem>>, vector<1x33x8xf32>
    %90 = vector.shape_cast %89 : vector<1x33x8xf32> to vector<33x8xf32>
    %91 = vector.extract_strided_slice %86 {offsets = [0, 0], sizes = [32, 8], strides = [1, 1]} : vector<33x8xf32> to vector<32x8xf32>
    %cst_35 = arith.constant dense<0.000000e+00> : vector<16x8xf32>
    %92 = tpu.matmul %50, %91, %cst_35 {dimension_numbers = #tpu.dot_dimension_numbers<[1], [0], [0], [1], [0, 0, 1, 1], [], []>} : vector<16x32xf32>, vector<32x8xf32>, vector<16x8xf32> -> vector<16x8xf32>
    %93 = vector.extract_strided_slice %86 {offsets = [32, 0], sizes = [1, 8], strides = [1, 1]} : vector<33x8xf32> to vector<1x8xf32>
    %94 = vector.broadcast %93 : vector<1x8xf32> to vector<16x8xf32>
    %95 = arith.addf %92, %94 : vector<16x8xf32>
    %96 = vector.extract_strided_slice %88 {offsets = [0, 0], sizes = [32, 8], strides = [1, 1]} : vector<33x8xf32> to vector<32x8xf32>
    %cst_36 = arith.constant dense<0.000000e+00> : vector<16x8xf32>
    %97 = tpu.matmul %50, %96, %cst_36 {dimension_numbers = #tpu.dot_dimension_numbers<[1], [0], [0], [1], [0, 0, 1, 1], [], []>} : vector<16x32xf32>, vector<32x8xf32>, vector<16x8xf32> -> vector<16x8xf32>
    %98 = vector.extract_strided_slice %88 {offsets = [32, 0], sizes = [1, 8], strides = [1, 1]} : vector<33x8xf32> to vector<1x8xf32>
    %99 = vector.broadcast %98 : vector<1x8xf32> to vector<16x8xf32>
    %100 = arith.addf %97, %99 : vector<16x8xf32>
    %101 = vector.extract_strided_slice %90 {offsets = [0, 0], sizes = [32, 8], strides = [1, 1]} : vector<33x8xf32> to vector<32x8xf32>
    %cst_37 = arith.constant dense<0.000000e+00> : vector<16x8xf32>
    %102 = tpu.matmul %50, %101, %cst_37 {dimension_numbers = #tpu.dot_dimension_numbers<[1], [0], [0], [1], [0, 0, 1, 1], [], []>} : vector<16x32xf32>, vector<32x8xf32>, vector<16x8xf32> -> vector<16x8xf32>
    %103 = vector.extract_strided_slice %90 {offsets = [32, 0], sizes = [1, 8], strides = [1, 1]} : vector<33x8xf32> to vector<1x8xf32>
    %104 = vector.broadcast %103 : vector<1x8xf32> to vector<16x8xf32>
    %105 = arith.addf %102, %104 : vector<16x8xf32>
    %cst_38 = arith.constant dense<0.000000e+00> : vector<16x16xf32>
    %106 = tpu.matmul %95, %100, %cst_38 {dimension_numbers = #tpu.dot_dimension_numbers<[1], [1], [0], [0], [0, 0, 1, 0], [], []>} : vector<16x8xf32>, vector<16x8xf32>, vector<16x16xf32> -> vector<16x16xf32>
    %107 = arith.addf %106, %15 : vector<16x16xf32>
    %cst_39 = arith.constant dense<0xFF800000> : vector<16xf32>
    %108 = vector.multi_reduction <maximumf>, %107, %cst_39 [1] : vector<16x16xf32> to vector<16xf32>
    %109 = vector.shape_cast %108 : vector<16xf32> to vector<16x1xf32>
    %110 = vector.broadcast %109 : vector<16x1xf32> to vector<16x16xf32>
    %111 = arith.subf %107, %110 : vector<16x16xf32>
    %112 = math.exp %111 : vector<16x16xf32>
    %cst_40 = arith.constant dense<0.000000e+00> : vector<16xf32>
    %113 = vector.multi_reduction <add>, %112, %cst_40 [1] : vector<16x16xf32> to vector<16xf32>
    %114 = vector.shape_cast %113 : vector<16xf32> to vector<16x1xf32>
    %115 = tpu.reciprocal %114 {approx = true} : vector<16x1xf32> -> vector<16x1xf32>
    %116 = vector.broadcast %115 : vector<16x1xf32> to vector<16x16xf32>
    %117 = arith.mulf %112, %116 : vector<16x16xf32>
    %cst_41 = arith.constant dense<0.000000e+00> : vector<16x8xf32>
    %118 = tpu.matmul %117, %105, %cst_41 {dimension_numbers = #tpu.dot_dimension_numbers<[1], [0], [0], [1], [0, 0, 1, 1], [], []>} : vector<16x16xf32>, vector<16x8xf32>, vector<16x8xf32> -> vector<16x8xf32>
    %c2 = arith.constant 2 : index
    %c0_42 = arith.constant 0 : index
    %c0_43 = arith.constant 0 : index
    %119 = vector.load %arg3[%c2, %c0_42, %c0_43] : memref<60x33x8xf32, #tpu.memory_space<vmem>>, vector<1x33x8xf32>
    %120 = vector.shape_cast %119 : vector<1x33x8xf32> to vector<33x8xf32>
    %c6 = arith.constant 6 : index
    %c0_44 = arith.constant 0 : index
    %c0_45 = arith.constant 0 : index
    %121 = vector.load %arg3[%c6, %c0_44, %c0_45] : memref<60x33x8xf32, #tpu.memory_space<vmem>>, vector<1x33x8xf32>
    %122 = vector.shape_cast %121 : vector<1x33x8xf32> to vector<33x8xf32>
    %c10 = arith.constant 10 : index
    %c0_46 = arith.constant 0 : index
    %c0_47 = arith.constant 0 : index
    %123 = vector.load %arg3[%c10, %c0_46, %c0_47] : memref<60x33x8xf32, #tpu.memory_space<vmem>>, vector<1x33x8xf32>
    %124 = vector.shape_cast %123 : vector<1x33x8xf32> to vector<33x8xf32>
    %125 = vector.extract_strided_slice %120 {offsets = [0, 0], sizes = [32, 8], strides = [1, 1]} : vector<33x8xf32> to vector<32x8xf32>
    %cst_48 = arith.constant dense<0.000000e+00> : vector<16x8xf32>
    %126 = tpu.matmul %50, %125, %cst_48 {dimension_numbers = #tpu.dot_dimension_numbers<[1], [0], [0], [1], [0, 0, 1, 1], [], []>} : vector<16x32xf32>, vector<32x8xf32>, vector<16x8xf32> -> vector<16x8xf32>
    %127 = vector.extract_strided_slice %120 {offsets = [32, 0], sizes = [1, 8], strides = [1, 1]} : vector<33x8xf32> to vector<1x8xf32>
    %128 = vector.broadcast %127 : vector<1x8xf32> to vector<16x8xf32>
    %129 = arith.addf %126, %128 : vector<16x8xf32>
    %130 = vector.extract_strided_slice %122 {offsets = [0, 0], sizes = [32, 8], strides = [1, 1]} : vector<33x8xf32> to vector<32x8xf32>
    %cst_49 = arith.constant dense<0.000000e+00> : vector<16x8xf32>
    %131 = tpu.matmul %50, %130, %cst_49 {dimension_numbers = #tpu.dot_dimension_numbers<[1], [0], [0], [1], [0, 0, 1, 1], [], []>} : vector<16x32xf32>, vector<32x8xf32>, vector<16x8xf32> -> vector<16x8xf32>
    %132 = vector.extract_strided_slice %122 {offsets = [32, 0], sizes = [1, 8], strides = [1, 1]} : vector<33x8xf32> to vector<1x8xf32>
    %133 = vector.broadcast %132 : vector<1x8xf32> to vector<16x8xf32>
    %134 = arith.addf %131, %133 : vector<16x8xf32>
    %135 = vector.extract_strided_slice %124 {offsets = [0, 0], sizes = [32, 8], strides = [1, 1]} : vector<33x8xf32> to vector<32x8xf32>
    %cst_50 = arith.constant dense<0.000000e+00> : vector<16x8xf32>
    %136 = tpu.matmul %50, %135, %cst_50 {dimension_numbers = #tpu.dot_dimension_numbers<[1], [0], [0], [1], [0, 0, 1, 1], [], []>} : vector<16x32xf32>, vector<32x8xf32>, vector<16x8xf32> -> vector<16x8xf32>
    %137 = vector.extract_strided_slice %124 {offsets = [32, 0], sizes = [1, 8], strides = [1, 1]} : vector<33x8xf32> to vector<1x8xf32>
    %138 = vector.broadcast %137 : vector<1x8xf32> to vector<16x8xf32>
    %139 = arith.addf %136, %138 : vector<16x8xf32>
    %cst_51 = arith.constant dense<0.000000e+00> : vector<16x16xf32>
    %140 = tpu.matmul %129, %134, %cst_51 {dimension_numbers = #tpu.dot_dimension_numbers<[1], [1], [0], [0], [0, 0, 1, 0], [], []>} : vector<16x8xf32>, vector<16x8xf32>, vector<16x16xf32> -> vector<16x16xf32>
    %141 = arith.addf %140, %15 : vector<16x16xf32>
    %cst_52 = arith.constant dense<0xFF800000> : vector<16xf32>
    %142 = vector.multi_reduction <maximumf>, %141, %cst_52 [1] : vector<16x16xf32> to vector<16xf32>
    %143 = vector.shape_cast %142 : vector<16xf32> to vector<16x1xf32>
    %144 = vector.broadcast %143 : vector<16x1xf32> to vector<16x16xf32>
    %145 = arith.subf %141, %144 : vector<16x16xf32>
    %146 = math.exp %145 : vector<16x16xf32>
    %cst_53 = arith.constant dense<0.000000e+00> : vector<16xf32>
    %147 = vector.multi_reduction <add>, %146, %cst_53 [1] : vector<16x16xf32> to vector<16xf32>
    %148 = vector.shape_cast %147 : vector<16xf32> to vector<16x1xf32>
    %149 = tpu.reciprocal %148 {approx = true} : vector<16x1xf32> -> vector<16x1xf32>
    %150 = vector.broadcast %149 : vector<16x1xf32> to vector<16x16xf32>
    %151 = arith.mulf %146, %150 : vector<16x16xf32>
    %cst_54 = arith.constant dense<0.000000e+00> : vector<16x8xf32>
    %152 = tpu.matmul %151, %139, %cst_54 {dimension_numbers = #tpu.dot_dimension_numbers<[1], [0], [0], [1], [0, 0, 1, 1], [], []>} : vector<16x16xf32>, vector<16x8xf32>, vector<16x8xf32> -> vector<16x8xf32>
    %c3 = arith.constant 3 : index
    %c0_55 = arith.constant 0 : index
    %c0_56 = arith.constant 0 : index
    %153 = vector.load %arg3[%c3, %c0_55, %c0_56] : memref<60x33x8xf32, #tpu.memory_space<vmem>>, vector<1x33x8xf32>
    %154 = vector.shape_cast %153 : vector<1x33x8xf32> to vector<33x8xf32>
    %c7 = arith.constant 7 : index
    %c0_57 = arith.constant 0 : index
    %c0_58 = arith.constant 0 : index
    %155 = vector.load %arg3[%c7, %c0_57, %c0_58] : memref<60x33x8xf32, #tpu.memory_space<vmem>>, vector<1x33x8xf32>
    %156 = vector.shape_cast %155 : vector<1x33x8xf32> to vector<33x8xf32>
    %c11 = arith.constant 11 : index
    %c0_59 = arith.constant 0 : index
    %c0_60 = arith.constant 0 : index
    %157 = vector.load %arg3[%c11, %c0_59, %c0_60] : memref<60x33x8xf32, #tpu.memory_space<vmem>>, vector<1x33x8xf32>
    %158 = vector.shape_cast %157 : vector<1x33x8xf32> to vector<33x8xf32>
    %159 = vector.extract_strided_slice %154 {offsets = [0, 0], sizes = [32, 8], strides = [1, 1]} : vector<33x8xf32> to vector<32x8xf32>
    %cst_61 = arith.constant dense<0.000000e+00> : vector<16x8xf32>
    %160 = tpu.matmul %50, %159, %cst_61 {dimension_numbers = #tpu.dot_dimension_numbers<[1], [0], [0], [1], [0, 0, 1, 1], [], []>} : vector<16x32xf32>, vector<32x8xf32>, vector<16x8xf32> -> vector<16x8xf32>
    %161 = vector.extract_strided_slice %154 {offsets = [32, 0], sizes = [1, 8], strides = [1, 1]} : vector<33x8xf32> to vector<1x8xf32>
    %162 = vector.broadcast %161 : vector<1x8xf32> to vector<16x8xf32>
    %163 = arith.addf %160, %162 : vector<16x8xf32>
    %164 = vector.extract_strided_slice %156 {offsets = [0, 0], sizes = [32, 8], strides = [1, 1]} : vector<33x8xf32> to vector<32x8xf32>
    %cst_62 = arith.constant dense<0.000000e+00> : vector<16x8xf32>
    %165 = tpu.matmul %50, %164, %cst_62 {dimension_numbers = #tpu.dot_dimension_numbers<[1], [0], [0], [1], [0, 0, 1, 1], [], []>} : vector<16x32xf32>, vector<32x8xf32>, vector<16x8xf32> -> vector<16x8xf32>
    %166 = vector.extract_strided_slice %156 {offsets = [32, 0], sizes = [1, 8], strides = [1, 1]} : vector<33x8xf32> to vector<1x8xf32>
    %167 = vector.broadcast %166 : vector<1x8xf32> to vector<16x8xf32>
    %168 = arith.addf %165, %167 : vector<16x8xf32>
    %169 = vector.extract_strided_slice %158 {offsets = [0, 0], sizes = [32, 8], strides = [1, 1]} : vector<33x8xf32> to vector<32x8xf32>
    %cst_63 = arith.constant dense<0.000000e+00> : vector<16x8xf32>
    %170 = tpu.matmul %50, %169, %cst_63 {dimension_numbers = #tpu.dot_dimension_numbers<[1], [0], [0], [1], [0, 0, 1, 1], [], []>} : vector<16x32xf32>, vector<32x8xf32>, vector<16x8xf32> -> vector<16x8xf32>
    %171 = vector.extract_strided_slice %158 {offsets = [32, 0], sizes = [1, 8], strides = [1, 1]} : vector<33x8xf32> to vector<1x8xf32>
    %172 = vector.broadcast %171 : vector<1x8xf32> to vector<16x8xf32>
    %173 = arith.addf %170, %172 : vector<16x8xf32>
    %cst_64 = arith.constant dense<0.000000e+00> : vector<16x16xf32>
    %174 = tpu.matmul %163, %168, %cst_64 {dimension_numbers = #tpu.dot_dimension_numbers<[1], [1], [0], [0], [0, 0, 1, 0], [], []>} : vector<16x8xf32>, vector<16x8xf32>, vector<16x16xf32> -> vector<16x16xf32>
    %175 = arith.addf %174, %15 : vector<16x16xf32>
    %cst_65 = arith.constant dense<0xFF800000> : vector<16xf32>
    %176 = vector.multi_reduction <maximumf>, %175, %cst_65 [1] : vector<16x16xf32> to vector<16xf32>
    %177 = vector.shape_cast %176 : vector<16xf32> to vector<16x1xf32>
    %178 = vector.broadcast %177 : vector<16x1xf32> to vector<16x16xf32>
    %179 = arith.subf %175, %178 : vector<16x16xf32>
    %180 = math.exp %179 : vector<16x16xf32>
    %cst_66 = arith.constant dense<0.000000e+00> : vector<16xf32>
    %181 = vector.multi_reduction <add>, %180, %cst_66 [1] : vector<16x16xf32> to vector<16xf32>
    %182 = vector.shape_cast %181 : vector<16xf32> to vector<16x1xf32>
    %183 = tpu.reciprocal %182 {approx = true} : vector<16x1xf32> -> vector<16x1xf32>
    %184 = vector.broadcast %183 : vector<16x1xf32> to vector<16x16xf32>
    %185 = arith.mulf %180, %184 : vector<16x16xf32>
    %cst_67 = arith.constant dense<0.000000e+00> : vector<16x8xf32>
    %186 = tpu.matmul %185, %173, %cst_67 {dimension_numbers = #tpu.dot_dimension_numbers<[1], [0], [0], [1], [0, 0, 1, 1], [], []>} : vector<16x16xf32>, vector<16x8xf32>, vector<16x8xf32> -> vector<16x8xf32>
    %187 = tpu.concatenate %84, %118, %152, %186 in 1 : vector<16x8xf32>, vector<16x8xf32>, vector<16x8xf32>, vector<16x8xf32> -> vector<16x32xf32>
    %c0_68 = arith.constant 0 : index
    %c0_69 = arith.constant 0 : index
    %c0_70 = arith.constant 0 : index
    %188 = vector.load %arg4[%c0_68, %c0_69, %c0_70] : memref<5x104x32xf32, #tpu.memory_space<vmem>>, vector<1x104x32xf32>
    %189 = vector.shape_cast %188 : vector<1x104x32xf32> to vector<104x32xf32>
    %c0_71 = arith.constant 0 : index
    %c0_72 = arith.constant 0 : index
    %c0_73 = arith.constant 0 : index
    %190 = vector.load %arg5[%c0_71, %c0_72, %c0_73] : memref<5x33x64xf32, #tpu.memory_space<vmem>>, vector<1x33x64xf32>
    %191 = vector.shape_cast %190 : vector<1x33x64xf32> to vector<33x64xf32>
    %192 = vector.extract_strided_slice %189 {offsets = [0, 0], sizes = [32, 32], strides = [1, 1]} : vector<104x32xf32> to vector<32x32xf32>
    %cst_74 = arith.constant dense<0.000000e+00> : vector<16x32xf32>
    %193 = tpu.matmul %187, %192, %cst_74 {dimension_numbers = #tpu.dot_dimension_numbers<[1], [0], [0], [1], [0, 0, 1, 1], [], []>} : vector<16x32xf32>, vector<32x32xf32>, vector<16x32xf32> -> vector<16x32xf32>
    %194 = vector.extract_strided_slice %189 {offsets = [96, 0], sizes = [1, 32], strides = [1, 1]} : vector<104x32xf32> to vector<1x32xf32>
    %195 = vector.broadcast %194 : vector<1x32xf32> to vector<16x32xf32>
    %196 = arith.addf %193, %195 : vector<16x32xf32>
    %197 = arith.addf %196, %50 : vector<16x32xf32>
    %198 = vector.extract_strided_slice %189 {offsets = [97, 0], sizes = [1, 32], strides = [1, 1]} : vector<104x32xf32> to vector<1x32xf32>
    %199 = vector.extract_strided_slice %189 {offsets = [98, 0], sizes = [1, 32], strides = [1, 1]} : vector<104x32xf32> to vector<1x32xf32>
    %cst_75 = arith.constant dense<0.000000e+00> : vector<16xf32>
    %200 = vector.multi_reduction <add>, %197, %cst_75 [1] : vector<16x32xf32> to vector<16xf32>
    %201 = vector.shape_cast %200 : vector<16xf32> to vector<16x1xf32>
    %cst_76 = arith.constant 3.200000e+01 : f32
    %202 = vector.broadcast %cst_76 : f32 to vector<16x1xf32>
    %203 = arith.divf %201, %202 : vector<16x1xf32>
    %204 = vector.broadcast %203 : vector<16x1xf32> to vector<16x32xf32>
    %205 = arith.subf %197, %204 : vector<16x32xf32>
    %206 = arith.mulf %205, %205 : vector<16x32xf32>
    %cst_77 = arith.constant dense<0.000000e+00> : vector<16xf32>
    %207 = vector.multi_reduction <add>, %206, %cst_77 [1] : vector<16x32xf32> to vector<16xf32>
    %208 = vector.shape_cast %207 : vector<16xf32> to vector<16x1xf32>
    %cst_78 = arith.constant 3.200000e+01 : f32
    %209 = vector.broadcast %cst_78 : f32 to vector<16x1xf32>
    %210 = arith.divf %208, %209 : vector<16x1xf32>
    %211 = vector.broadcast %203 : vector<16x1xf32> to vector<16x32xf32>
    %212 = arith.subf %197, %211 : vector<16x32xf32>
    %cst_79 = arith.constant 9.99999974E-6 : f32
    %213 = vector.broadcast %cst_79 : f32 to vector<16x1xf32>
    %214 = arith.addf %210, %213 : vector<16x1xf32>
    %215 = math.rsqrt %214 : vector<16x1xf32>
    %216 = vector.broadcast %215 : vector<16x1xf32> to vector<16x32xf32>
    %217 = arith.mulf %212, %216 : vector<16x32xf32>
    %218 = vector.broadcast %198 : vector<1x32xf32> to vector<16x32xf32>
    %219 = arith.mulf %217, %218 : vector<16x32xf32>
    %220 = vector.broadcast %199 : vector<1x32xf32> to vector<16x32xf32>
    %221 = arith.addf %219, %220 : vector<16x32xf32>
    %222 = vector.extract_strided_slice %191 {offsets = [0, 0], sizes = [32, 64], strides = [1, 1]} : vector<33x64xf32> to vector<32x64xf32>
    %cst_80 = arith.constant dense<0.000000e+00> : vector<16x64xf32>
    %223 = tpu.matmul %221, %222, %cst_80 {dimension_numbers = #tpu.dot_dimension_numbers<[1], [0], [0], [1], [0, 0, 1, 1], [], []>} : vector<16x32xf32>, vector<32x64xf32>, vector<16x64xf32> -> vector<16x64xf32>
    %224 = vector.extract_strided_slice %191 {offsets = [32, 0], sizes = [1, 64], strides = [1, 1]} : vector<33x64xf32> to vector<1x64xf32>
    %225 = vector.broadcast %224 : vector<1x64xf32> to vector<16x64xf32>
    %226 = arith.addf %223, %225 : vector<16x64xf32>
    %cst_81 = arith.constant 5.000000e-01 : f32
    %227 = vector.broadcast %cst_81 : f32 to vector<16x64xf32>
    %228 = arith.mulf %227, %226 : vector<16x64xf32>
    %cst_82 = arith.constant 4.471500e-02 : f32
    %229 = vector.broadcast %cst_82 : f32 to vector<16x64xf32>
    %230 = arith.mulf %229, %226 : vector<16x64xf32>
    %231 = arith.mulf %230, %226 : vector<16x64xf32>
    %232 = arith.mulf %231, %226 : vector<16x64xf32>
    %233 = arith.addf %226, %232 : vector<16x64xf32>
    %cst_83 = arith.constant 0.797884583 : f32
    %234 = vector.broadcast %cst_83 : f32 to vector<16x64xf32>
    %235 = arith.mulf %234, %233 : vector<16x64xf32>
    %236 = math.tanh %235 : vector<16x64xf32>
    %cst_84 = arith.constant 1.000000e+00 : f32
    %237 = vector.broadcast %cst_84 : f32 to vector<16x64xf32>
    %238 = arith.addf %237, %236 : vector<16x64xf32>
    %239 = arith.mulf %228, %238 : vector<16x64xf32>
    %240 = vector.extract_strided_slice %189 {offsets = [32, 0], sizes = [64, 32], strides = [1, 1]} : vector<104x32xf32> to vector<64x32xf32>
    %cst_85 = arith.constant dense<0.000000e+00> : vector<16x32xf32>
    %241 = tpu.matmul %239, %240, %cst_85 {dimension_numbers = #tpu.dot_dimension_numbers<[1], [0], [0], [1], [0, 0, 1, 1], [], []>} : vector<16x64xf32>, vector<64x32xf32>, vector<16x32xf32> -> vector<16x32xf32>
    %242 = vector.extract_strided_slice %189 {offsets = [99, 0], sizes = [1, 32], strides = [1, 1]} : vector<104x32xf32> to vector<1x32xf32>
    %243 = vector.broadcast %242 : vector<1x32xf32> to vector<16x32xf32>
    %244 = arith.addf %241, %243 : vector<16x32xf32>
    %245 = arith.addf %244, %221 : vector<16x32xf32>
    %246 = vector.extract_strided_slice %189 {offsets = [100, 0], sizes = [1, 32], strides = [1, 1]} : vector<104x32xf32> to vector<1x32xf32>
    %247 = vector.extract_strided_slice %189 {offsets = [101, 0], sizes = [1, 32], strides = [1, 1]} : vector<104x32xf32> to vector<1x32xf32>
    %cst_86 = arith.constant dense<0.000000e+00> : vector<16xf32>
    %248 = vector.multi_reduction <add>, %245, %cst_86 [1] : vector<16x32xf32> to vector<16xf32>
    %249 = vector.shape_cast %248 : vector<16xf32> to vector<16x1xf32>
    %cst_87 = arith.constant 3.200000e+01 : f32
    %250 = vector.broadcast %cst_87 : f32 to vector<16x1xf32>
    %251 = arith.divf %249, %250 : vector<16x1xf32>
    %252 = vector.broadcast %251 : vector<16x1xf32> to vector<16x32xf32>
    %253 = arith.subf %245, %252 : vector<16x32xf32>
    %254 = arith.mulf %253, %253 : vector<16x32xf32>
    %cst_88 = arith.constant dense<0.000000e+00> : vector<16xf32>
    %255 = vector.multi_reduction <add>, %254, %cst_88 [1] : vector<16x32xf32> to vector<16xf32>
    %256 = vector.shape_cast %255 : vector<16xf32> to vector<16x1xf32>
    %cst_89 = arith.constant 3.200000e+01 : f32
    %257 = vector.broadcast %cst_89 : f32 to vector<16x1xf32>
    %258 = arith.divf %256, %257 : vector<16x1xf32>
    %259 = vector.broadcast %251 : vector<16x1xf32> to vector<16x32xf32>
    %260 = arith.subf %245, %259 : vector<16x32xf32>
    %cst_90 = arith.constant 9.99999974E-6 : f32
    %261 = vector.broadcast %cst_90 : f32 to vector<16x1xf32>
    %262 = arith.addf %258, %261 : vector<16x1xf32>
    %263 = math.rsqrt %262 : vector<16x1xf32>
    %264 = vector.broadcast %263 : vector<16x1xf32> to vector<16x32xf32>
    %265 = arith.mulf %260, %264 : vector<16x32xf32>
    %266 = vector.broadcast %246 : vector<1x32xf32> to vector<16x32xf32>
    %267 = arith.mulf %265, %266 : vector<16x32xf32>
    %268 = vector.broadcast %247 : vector<1x32xf32> to vector<16x32xf32>
    %269 = arith.addf %267, %268 : vector<16x32xf32>
    %c12 = arith.constant 12 : index
    %c0_91 = arith.constant 0 : index
    %c0_92 = arith.constant 0 : index
    %270 = vector.load %arg3[%c12, %c0_91, %c0_92] : memref<60x33x8xf32, #tpu.memory_space<vmem>>, vector<1x33x8xf32>
    %271 = vector.shape_cast %270 : vector<1x33x8xf32> to vector<33x8xf32>
    %c16 = arith.constant 16 : index
    %c0_93 = arith.constant 0 : index
    %c0_94 = arith.constant 0 : index
    %272 = vector.load %arg3[%c16, %c0_93, %c0_94] : memref<60x33x8xf32, #tpu.memory_space<vmem>>, vector<1x33x8xf32>
    %273 = vector.shape_cast %272 : vector<1x33x8xf32> to vector<33x8xf32>
    %c20 = arith.constant 20 : index
    %c0_95 = arith.constant 0 : index
    %c0_96 = arith.constant 0 : index
    %274 = vector.load %arg3[%c20, %c0_95, %c0_96] : memref<60x33x8xf32, #tpu.memory_space<vmem>>, vector<1x33x8xf32>
    %275 = vector.shape_cast %274 : vector<1x33x8xf32> to vector<33x8xf32>
    %276 = vector.extract_strided_slice %271 {offsets = [0, 0], sizes = [32, 8], strides = [1, 1]} : vector<33x8xf32> to vector<32x8xf32>
    %cst_97 = arith.constant dense<0.000000e+00> : vector<16x8xf32>
    %277 = tpu.matmul %269, %276, %cst_97 {dimension_numbers = #tpu.dot_dimension_numbers<[1], [0], [0], [1], [0, 0, 1, 1], [], []>} : vector<16x32xf32>, vector<32x8xf32>, vector<16x8xf32> -> vector<16x8xf32>
    %278 = vector.extract_strided_slice %271 {offsets = [32, 0], sizes = [1, 8], strides = [1, 1]} : vector<33x8xf32> to vector<1x8xf32>
    %279 = vector.broadcast %278 : vector<1x8xf32> to vector<16x8xf32>
    %280 = arith.addf %277, %279 : vector<16x8xf32>
    %281 = vector.extract_strided_slice %273 {offsets = [0, 0], sizes = [32, 8], strides = [1, 1]} : vector<33x8xf32> to vector<32x8xf32>
    %cst_98 = arith.constant dense<0.000000e+00> : vector<16x8xf32>
    %282 = tpu.matmul %269, %281, %cst_98 {dimension_numbers = #tpu.dot_dimension_numbers<[1], [0], [0], [1], [0, 0, 1, 1], [], []>} : vector<16x32xf32>, vector<32x8xf32>, vector<16x8xf32> -> vector<16x8xf32>
    %283 = vector.extract_strided_slice %273 {offsets = [32, 0], sizes = [1, 8], strides = [1, 1]} : vector<33x8xf32> to vector<1x8xf32>
    %284 = vector.broadcast %283 : vector<1x8xf32> to vector<16x8xf32>
    %285 = arith.addf %282, %284 : vector<16x8xf32>
    %286 = vector.extract_strided_slice %275 {offsets = [0, 0], sizes = [32, 8], strides = [1, 1]} : vector<33x8xf32> to vector<32x8xf32>
    %cst_99 = arith.constant dense<0.000000e+00> : vector<16x8xf32>
    %287 = tpu.matmul %269, %286, %cst_99 {dimension_numbers = #tpu.dot_dimension_numbers<[1], [0], [0], [1], [0, 0, 1, 1], [], []>} : vector<16x32xf32>, vector<32x8xf32>, vector<16x8xf32> -> vector<16x8xf32>
    %288 = vector.extract_strided_slice %275 {offsets = [32, 0], sizes = [1, 8], strides = [1, 1]} : vector<33x8xf32> to vector<1x8xf32>
    %289 = vector.broadcast %288 : vector<1x8xf32> to vector<16x8xf32>
    %290 = arith.addf %287, %289 : vector<16x8xf32>
    %cst_100 = arith.constant dense<0.000000e+00> : vector<16x16xf32>
    %291 = tpu.matmul %280, %285, %cst_100 {dimension_numbers = #tpu.dot_dimension_numbers<[1], [1], [0], [0], [0, 0, 1, 0], [], []>} : vector<16x8xf32>, vector<16x8xf32>, vector<16x16xf32> -> vector<16x16xf32>
    %292 = arith.addf %291, %15 : vector<16x16xf32>
    %cst_101 = arith.constant dense<0xFF800000> : vector<16xf32>
    %293 = vector.multi_reduction <maximumf>, %292, %cst_101 [1] : vector<16x16xf32> to vector<16xf32>
    %294 = vector.shape_cast %293 : vector<16xf32> to vector<16x1xf32>
    %295 = vector.broadcast %294 : vector<16x1xf32> to vector<16x16xf32>
    %296 = arith.subf %292, %295 : vector<16x16xf32>
    %297 = math.exp %296 : vector<16x16xf32>
    %cst_102 = arith.constant dense<0.000000e+00> : vector<16xf32>
    %298 = vector.multi_reduction <add>, %297, %cst_102 [1] : vector<16x16xf32> to vector<16xf32>
    %299 = vector.shape_cast %298 : vector<16xf32> to vector<16x1xf32>
    %300 = tpu.reciprocal %299 {approx = true} : vector<16x1xf32> -> vector<16x1xf32>
    %301 = vector.broadcast %300 : vector<16x1xf32> to vector<16x16xf32>
    %302 = arith.mulf %297, %301 : vector<16x16xf32>
    %cst_103 = arith.constant dense<0.000000e+00> : vector<16x8xf32>
    %303 = tpu.matmul %302, %290, %cst_103 {dimension_numbers = #tpu.dot_dimension_numbers<[1], [0], [0], [1], [0, 0, 1, 1], [], []>} : vector<16x16xf32>, vector<16x8xf32>, vector<16x8xf32> -> vector<16x8xf32>
    %c13 = arith.constant 13 : index
    %c0_104 = arith.constant 0 : index
    %c0_105 = arith.constant 0 : index
    %304 = vector.load %arg3[%c13, %c0_104, %c0_105] : memref<60x33x8xf32, #tpu.memory_space<vmem>>, vector<1x33x8xf32>
    %305 = vector.shape_cast %304 : vector<1x33x8xf32> to vector<33x8xf32>
    %c17 = arith.constant 17 : index
    %c0_106 = arith.constant 0 : index
    %c0_107 = arith.constant 0 : index
    %306 = vector.load %arg3[%c17, %c0_106, %c0_107] : memref<60x33x8xf32, #tpu.memory_space<vmem>>, vector<1x33x8xf32>
    %307 = vector.shape_cast %306 : vector<1x33x8xf32> to vector<33x8xf32>
    %c21 = arith.constant 21 : index
    %c0_108 = arith.constant 0 : index
    %c0_109 = arith.constant 0 : index
    %308 = vector.load %arg3[%c21, %c0_108, %c0_109] : memref<60x33x8xf32, #tpu.memory_space<vmem>>, vector<1x33x8xf32>
    %309 = vector.shape_cast %308 : vector<1x33x8xf32> to vector<33x8xf32>
    %310 = vector.extract_strided_slice %305 {offsets = [0, 0], sizes = [32, 8], strides = [1, 1]} : vector<33x8xf32> to vector<32x8xf32>
    %cst_110 = arith.constant dense<0.000000e+00> : vector<16x8xf32>
    %311 = tpu.matmul %269, %310, %cst_110 {dimension_numbers = #tpu.dot_dimension_numbers<[1], [0], [0], [1], [0, 0, 1, 1], [], []>} : vector<16x32xf32>, vector<32x8xf32>, vector<16x8xf32> -> vector<16x8xf32>
    %312 = vector.extract_strided_slice %305 {offsets = [32, 0], sizes = [1, 8], strides = [1, 1]} : vector<33x8xf32> to vector<1x8xf32>
    %313 = vector.broadcast %312 : vector<1x8xf32> to vector<16x8xf32>
    %314 = arith.addf %311, %313 : vector<16x8xf32>
    %315 = vector.extract_strided_slice %307 {offsets = [0, 0], sizes = [32, 8], strides = [1, 1]} : vector<33x8xf32> to vector<32x8xf32>
    %cst_111 = arith.constant dense<0.000000e+00> : vector<16x8xf32>
    %316 = tpu.matmul %269, %315, %cst_111 {dimension_numbers = #tpu.dot_dimension_numbers<[1], [0], [0], [1], [0, 0, 1, 1], [], []>} : vector<16x32xf32>, vector<32x8xf32>, vector<16x8xf32> -> vector<16x8xf32>
    %317 = vector.extract_strided_slice %307 {offsets = [32, 0], sizes = [1, 8], strides = [1, 1]} : vector<33x8xf32> to vector<1x8xf32>
    %318 = vector.broadcast %317 : vector<1x8xf32> to vector<16x8xf32>
    %319 = arith.addf %316, %318 : vector<16x8xf32>
    %320 = vector.extract_strided_slice %309 {offsets = [0, 0], sizes = [32, 8], strides = [1, 1]} : vector<33x8xf32> to vector<32x8xf32>
    %cst_112 = arith.constant dense<0.000000e+00> : vector<16x8xf32>
    %321 = tpu.matmul %269, %320, %cst_112 {dimension_numbers = #tpu.dot_dimension_numbers<[1], [0], [0], [1], [0, 0, 1, 1], [], []>} : vector<16x32xf32>, vector<32x8xf32>, vector<16x8xf32> -> vector<16x8xf32>
    %322 = vector.extract_strided_slice %309 {offsets = [32, 0], sizes = [1, 8], strides = [1, 1]} : vector<33x8xf32> to vector<1x8xf32>
    %323 = vector.broadcast %322 : vector<1x8xf32> to vector<16x8xf32>
    %324 = arith.addf %321, %323 : vector<16x8xf32>
    %cst_113 = arith.constant dense<0.000000e+00> : vector<16x16xf32>
    %325 = tpu.matmul %314, %319, %cst_113 {dimension_numbers = #tpu.dot_dimension_numbers<[1], [1], [0], [0], [0, 0, 1, 0], [], []>} : vector<16x8xf32>, vector<16x8xf32>, vector<16x16xf32> -> vector<16x16xf32>
    %326 = arith.addf %325, %15 : vector<16x16xf32>
    %cst_114 = arith.constant dense<0xFF800000> : vector<16xf32>
    %327 = vector.multi_reduction <maximumf>, %326, %cst_114 [1] : vector<16x16xf32> to vector<16xf32>
    %328 = vector.shape_cast %327 : vector<16xf32> to vector<16x1xf32>
    %329 = vector.broadcast %328 : vector<16x1xf32> to vector<16x16xf32>
    %330 = arith.subf %326, %329 : vector<16x16xf32>
    %331 = math.exp %330 : vector<16x16xf32>
    %cst_115 = arith.constant dense<0.000000e+00> : vector<16xf32>
    %332 = vector.multi_reduction <add>, %331, %cst_115 [1] : vector<16x16xf32> to vector<16xf32>
    %333 = vector.shape_cast %332 : vector<16xf32> to vector<16x1xf32>
    %334 = tpu.reciprocal %333 {approx = true} : vector<16x1xf32> -> vector<16x1xf32>
    %335 = vector.broadcast %334 : vector<16x1xf32> to vector<16x16xf32>
    %336 = arith.mulf %331, %335 : vector<16x16xf32>
    %cst_116 = arith.constant dense<0.000000e+00> : vector<16x8xf32>
    %337 = tpu.matmul %336, %324, %cst_116 {dimension_numbers = #tpu.dot_dimension_numbers<[1], [0], [0], [1], [0, 0, 1, 1], [], []>} : vector<16x16xf32>, vector<16x8xf32>, vector<16x8xf32> -> vector<16x8xf32>
    %c14 = arith.constant 14 : index
    %c0_117 = arith.constant 0 : index
    %c0_118 = arith.constant 0 : index
    %338 = vector.load %arg3[%c14, %c0_117, %c0_118] : memref<60x33x8xf32, #tpu.memory_space<vmem>>, vector<1x33x8xf32>
    %339 = vector.shape_cast %338 : vector<1x33x8xf32> to vector<33x8xf32>
    %c18 = arith.constant 18 : index
    %c0_119 = arith.constant 0 : index
    %c0_120 = arith.constant 0 : index
    %340 = vector.load %arg3[%c18, %c0_119, %c0_120] : memref<60x33x8xf32, #tpu.memory_space<vmem>>, vector<1x33x8xf32>
    %341 = vector.shape_cast %340 : vector<1x33x8xf32> to vector<33x8xf32>
    %c22 = arith.constant 22 : index
    %c0_121 = arith.constant 0 : index
    %c0_122 = arith.constant 0 : index
    %342 = vector.load %arg3[%c22, %c0_121, %c0_122] : memref<60x33x8xf32, #tpu.memory_space<vmem>>, vector<1x33x8xf32>
    %343 = vector.shape_cast %342 : vector<1x33x8xf32> to vector<33x8xf32>
    %344 = vector.extract_strided_slice %339 {offsets = [0, 0], sizes = [32, 8], strides = [1, 1]} : vector<33x8xf32> to vector<32x8xf32>
    %cst_123 = arith.constant dense<0.000000e+00> : vector<16x8xf32>
    %345 = tpu.matmul %269, %344, %cst_123 {dimension_numbers = #tpu.dot_dimension_numbers<[1], [0], [0], [1], [0, 0, 1, 1], [], []>} : vector<16x32xf32>, vector<32x8xf32>, vector<16x8xf32> -> vector<16x8xf32>
    %346 = vector.extract_strided_slice %339 {offsets = [32, 0], sizes = [1, 8], strides = [1, 1]} : vector<33x8xf32> to vector<1x8xf32>
    %347 = vector.broadcast %346 : vector<1x8xf32> to vector<16x8xf32>
    %348 = arith.addf %345, %347 : vector<16x8xf32>
    %349 = vector.extract_strided_slice %341 {offsets = [0, 0], sizes = [32, 8], strides = [1, 1]} : vector<33x8xf32> to vector<32x8xf32>
    %cst_124 = arith.constant dense<0.000000e+00> : vector<16x8xf32>
    %350 = tpu.matmul %269, %349, %cst_124 {dimension_numbers = #tpu.dot_dimension_numbers<[1], [0], [0], [1], [0, 0, 1, 1], [], []>} : vector<16x32xf32>, vector<32x8xf32>, vector<16x8xf32> -> vector<16x8xf32>
    %351 = vector.extract_strided_slice %341 {offsets = [32, 0], sizes = [1, 8], strides = [1, 1]} : vector<33x8xf32> to vector<1x8xf32>
    %352 = vector.broadcast %351 : vector<1x8xf32> to vector<16x8xf32>
    %353 = arith.addf %350, %352 : vector<16x8xf32>
    %354 = vector.extract_strided_slice %343 {offsets = [0, 0], sizes = [32, 8], strides = [1, 1]} : vector<33x8xf32> to vector<32x8xf32>
    %cst_125 = arith.constant dense<0.000000e+00> : vector<16x8xf32>
    %355 = tpu.matmul %269, %354, %cst_125 {dimension_numbers = #tpu.dot_dimension_numbers<[1], [0], [0], [1], [0, 0, 1, 1], [], []>} : vector<16x32xf32>, vector<32x8xf32>, vector<16x8xf32> -> vector<16x8xf32>
    %356 = vector.extract_strided_slice %343 {offsets = [32, 0], sizes = [1, 8], strides = [1, 1]} : vector<33x8xf32> to vector<1x8xf32>
    %357 = vector.broadcast %356 : vector<1x8xf32> to vector<16x8xf32>
    %358 = arith.addf %355, %357 : vector<16x8xf32>
    %cst_126 = arith.constant dense<0.000000e+00> : vector<16x16xf32>
    %359 = tpu.matmul %348, %353, %cst_126 {dimension_numbers = #tpu.dot_dimension_numbers<[1], [1], [0], [0], [0, 0, 1, 0], [], []>} : vector<16x8xf32>, vector<16x8xf32>, vector<16x16xf32> -> vector<16x16xf32>
    %360 = arith.addf %359, %15 : vector<16x16xf32>
    %cst_127 = arith.constant dense<0xFF800000> : vector<16xf32>
    %361 = vector.multi_reduction <maximumf>, %360, %cst_127 [1] : vector<16x16xf32> to vector<16xf32>
    %362 = vector.shape_cast %361 : vector<16xf32> to vector<16x1xf32>
    %363 = vector.broadcast %362 : vector<16x1xf32> to vector<16x16xf32>
    %364 = arith.subf %360, %363 : vector<16x16xf32>
    %365 = math.exp %364 : vector<16x16xf32>
    %cst_128 = arith.constant dense<0.000000e+00> : vector<16xf32>
    %366 = vector.multi_reduction <add>, %365, %cst_128 [1] : vector<16x16xf32> to vector<16xf32>
    %367 = vector.shape_cast %366 : vector<16xf32> to vector<16x1xf32>
    %368 = tpu.reciprocal %367 {approx = true} : vector<16x1xf32> -> vector<16x1xf32>
    %369 = vector.broadcast %368 : vector<16x1xf32> to vector<16x16xf32>
    %370 = arith.mulf %365, %369 : vector<16x16xf32>
    %cst_129 = arith.constant dense<0.000000e+00> : vector<16x8xf32>
    %371 = tpu.matmul %370, %358, %cst_129 {dimension_numbers = #tpu.dot_dimension_numbers<[1], [0], [0], [1], [0, 0, 1, 1], [], []>} : vector<16x16xf32>, vector<16x8xf32>, vector<16x8xf32> -> vector<16x8xf32>
    %c15 = arith.constant 15 : index
    %c0_130 = arith.constant 0 : index
    %c0_131 = arith.constant 0 : index
    %372 = vector.load %arg3[%c15, %c0_130, %c0_131] : memref<60x33x8xf32, #tpu.memory_space<vmem>>, vector<1x33x8xf32>
    %373 = vector.shape_cast %372 : vector<1x33x8xf32> to vector<33x8xf32>
    %c19 = arith.constant 19 : index
    %c0_132 = arith.constant 0 : index
    %c0_133 = arith.constant 0 : index
    %374 = vector.load %arg3[%c19, %c0_132, %c0_133] : memref<60x33x8xf32, #tpu.memory_space<vmem>>, vector<1x33x8xf32>
    %375 = vector.shape_cast %374 : vector<1x33x8xf32> to vector<33x8xf32>
    %c23 = arith.constant 23 : index
    %c0_134 = arith.constant 0 : index
    %c0_135 = arith.constant 0 : index
    %376 = vector.load %arg3[%c23, %c0_134, %c0_135] : memref<60x33x8xf32, #tpu.memory_space<vmem>>, vector<1x33x8xf32>
    %377 = vector.shape_cast %376 : vector<1x33x8xf32> to vector<33x8xf32>
    %378 = vector.extract_strided_slice %373 {offsets = [0, 0], sizes = [32, 8], strides = [1, 1]} : vector<33x8xf32> to vector<32x8xf32>
    %cst_136 = arith.constant dense<0.000000e+00> : vector<16x8xf32>
    %379 = tpu.matmul %269, %378, %cst_136 {dimension_numbers = #tpu.dot_dimension_numbers<[1], [0], [0], [1], [0, 0, 1, 1], [], []>} : vector<16x32xf32>, vector<32x8xf32>, vector<16x8xf32> -> vector<16x8xf32>
    %380 = vector.extract_strided_slice %373 {offsets = [32, 0], sizes = [1, 8], strides = [1, 1]} : vector<33x8xf32> to vector<1x8xf32>
    %381 = vector.broadcast %380 : vector<1x8xf32> to vector<16x8xf32>
    %382 = arith.addf %379, %381 : vector<16x8xf32>
    %383 = vector.extract_strided_slice %375 {offsets = [0, 0], sizes = [32, 8], strides = [1, 1]} : vector<33x8xf32> to vector<32x8xf32>
    %cst_137 = arith.constant dense<0.000000e+00> : vector<16x8xf32>
    %384 = tpu.matmul %269, %383, %cst_137 {dimension_numbers = #tpu.dot_dimension_numbers<[1], [0], [0], [1], [0, 0, 1, 1], [], []>} : vector<16x32xf32>, vector<32x8xf32>, vector<16x8xf32> -> vector<16x8xf32>
    %385 = vector.extract_strided_slice %375 {offsets = [32, 0], sizes = [1, 8], strides = [1, 1]} : vector<33x8xf32> to vector<1x8xf32>
    %386 = vector.broadcast %385 : vector<1x8xf32> to vector<16x8xf32>
    %387 = arith.addf %384, %386 : vector<16x8xf32>
    %388 = vector.extract_strided_slice %377 {offsets = [0, 0], sizes = [32, 8], strides = [1, 1]} : vector<33x8xf32> to vector<32x8xf32>
    %cst_138 = arith.constant dense<0.000000e+00> : vector<16x8xf32>
    %389 = tpu.matmul %269, %388, %cst_138 {dimension_numbers = #tpu.dot_dimension_numbers<[1], [0], [0], [1], [0, 0, 1, 1], [], []>} : vector<16x32xf32>, vector<32x8xf32>, vector<16x8xf32> -> vector<16x8xf32>
    %390 = vector.extract_strided_slice %377 {offsets = [32, 0], sizes = [1, 8], strides = [1, 1]} : vector<33x8xf32> to vector<1x8xf32>
    %391 = vector.broadcast %390 : vector<1x8xf32> to vector<16x8xf32>
    %392 = arith.addf %389, %391 : vector<16x8xf32>
    %cst_139 = arith.constant dense<0.000000e+00> : vector<16x16xf32>
    %393 = tpu.matmul %382, %387, %cst_139 {dimension_numbers = #tpu.dot_dimension_numbers<[1], [1], [0], [0], [0, 0, 1, 0], [], []>} : vector<16x8xf32>, vector<16x8xf32>, vector<16x16xf32> -> vector<16x16xf32>
    %394 = arith.addf %393, %15 : vector<16x16xf32>
    %cst_140 = arith.constant dense<0xFF800000> : vector<16xf32>
    %395 = vector.multi_reduction <maximumf>, %394, %cst_140 [1] : vector<16x16xf32> to vector<16xf32>
    %396 = vector.shape_cast %395 : vector<16xf32> to vector<16x1xf32>
    %397 = vector.broadcast %396 : vector<16x1xf32> to vector<16x16xf32>
    %398 = arith.subf %394, %397 : vector<16x16xf32>
    %399 = math.exp %398 : vector<16x16xf32>
    %cst_141 = arith.constant dense<0.000000e+00> : vector<16xf32>
    %400 = vector.multi_reduction <add>, %399, %cst_141 [1] : vector<16x16xf32> to vector<16xf32>
    %401 = vector.shape_cast %400 : vector<16xf32> to vector<16x1xf32>
    %402 = tpu.reciprocal %401 {approx = true} : vector<16x1xf32> -> vector<16x1xf32>
    %403 = vector.broadcast %402 : vector<16x1xf32> to vector<16x16xf32>
    %404 = arith.mulf %399, %403 : vector<16x16xf32>
    %cst_142 = arith.constant dense<0.000000e+00> : vector<16x8xf32>
    %405 = tpu.matmul %404, %392, %cst_142 {dimension_numbers = #tpu.dot_dimension_numbers<[1], [0], [0], [1], [0, 0, 1, 1], [], []>} : vector<16x16xf32>, vector<16x8xf32>, vector<16x8xf32> -> vector<16x8xf32>
    %406 = tpu.concatenate %303, %337, %371, %405 in 1 : vector<16x8xf32>, vector<16x8xf32>, vector<16x8xf32>, vector<16x8xf32> -> vector<16x32xf32>
    %c1_143 = arith.constant 1 : index
    %c0_144 = arith.constant 0 : index
    %c0_145 = arith.constant 0 : index
    %407 = vector.load %arg4[%c1_143, %c0_144, %c0_145] : memref<5x104x32xf32, #tpu.memory_space<vmem>>, vector<1x104x32xf32>
    %408 = vector.shape_cast %407 : vector<1x104x32xf32> to vector<104x32xf32>
    %c1_146 = arith.constant 1 : index
    %c0_147 = arith.constant 0 : index
    %c0_148 = arith.constant 0 : index
    %409 = vector.load %arg5[%c1_146, %c0_147, %c0_148] : memref<5x33x64xf32, #tpu.memory_space<vmem>>, vector<1x33x64xf32>
    %410 = vector.shape_cast %409 : vector<1x33x64xf32> to vector<33x64xf32>
    %411 = vector.extract_strided_slice %408 {offsets = [0, 0], sizes = [32, 32], strides = [1, 1]} : vector<104x32xf32> to vector<32x32xf32>
    %cst_149 = arith.constant dense<0.000000e+00> : vector<16x32xf32>
    %412 = tpu.matmul %406, %411, %cst_149 {dimension_numbers = #tpu.dot_dimension_numbers<[1], [0], [0], [1], [0, 0, 1, 1], [], []>} : vector<16x32xf32>, vector<32x32xf32>, vector<16x32xf32> -> vector<16x32xf32>
    %413 = vector.extract_strided_slice %408 {offsets = [96, 0], sizes = [1, 32], strides = [1, 1]} : vector<104x32xf32> to vector<1x32xf32>
    %414 = vector.broadcast %413 : vector<1x32xf32> to vector<16x32xf32>
    %415 = arith.addf %412, %414 : vector<16x32xf32>
    %416 = arith.addf %415, %269 : vector<16x32xf32>
    %417 = vector.extract_strided_slice %408 {offsets = [97, 0], sizes = [1, 32], strides = [1, 1]} : vector<104x32xf32> to vector<1x32xf32>
    %418 = vector.extract_strided_slice %408 {offsets = [98, 0], sizes = [1, 32], strides = [1, 1]} : vector<104x32xf32> to vector<1x32xf32>
    %cst_150 = arith.constant dense<0.000000e+00> : vector<16xf32>
    %419 = vector.multi_reduction <add>, %416, %cst_150 [1] : vector<16x32xf32> to vector<16xf32>
    %420 = vector.shape_cast %419 : vector<16xf32> to vector<16x1xf32>
    %cst_151 = arith.constant 3.200000e+01 : f32
    %421 = vector.broadcast %cst_151 : f32 to vector<16x1xf32>
    %422 = arith.divf %420, %421 : vector<16x1xf32>
    %423 = vector.broadcast %422 : vector<16x1xf32> to vector<16x32xf32>
    %424 = arith.subf %416, %423 : vector<16x32xf32>
    %425 = arith.mulf %424, %424 : vector<16x32xf32>
    %cst_152 = arith.constant dense<0.000000e+00> : vector<16xf32>
    %426 = vector.multi_reduction <add>, %425, %cst_152 [1] : vector<16x32xf32> to vector<16xf32>
    %427 = vector.shape_cast %426 : vector<16xf32> to vector<16x1xf32>
    %cst_153 = arith.constant 3.200000e+01 : f32
    %428 = vector.broadcast %cst_153 : f32 to vector<16x1xf32>
    %429 = arith.divf %427, %428 : vector<16x1xf32>
    %430 = vector.broadcast %422 : vector<16x1xf32> to vector<16x32xf32>
    %431 = arith.subf %416, %430 : vector<16x32xf32>
    %cst_154 = arith.constant 9.99999974E-6 : f32
    %432 = vector.broadcast %cst_154 : f32 to vector<16x1xf32>
    %433 = arith.addf %429, %432 : vector<16x1xf32>
    %434 = math.rsqrt %433 : vector<16x1xf32>
    %435 = vector.broadcast %434 : vector<16x1xf32> to vector<16x32xf32>
    %436 = arith.mulf %431, %435 : vector<16x32xf32>
    %437 = vector.broadcast %417 : vector<1x32xf32> to vector<16x32xf32>
    %438 = arith.mulf %436, %437 : vector<16x32xf32>
    %439 = vector.broadcast %418 : vector<1x32xf32> to vector<16x32xf32>
    %440 = arith.addf %438, %439 : vector<16x32xf32>
    %441 = vector.extract_strided_slice %410 {offsets = [0, 0], sizes = [32, 64], strides = [1, 1]} : vector<33x64xf32> to vector<32x64xf32>
    %cst_155 = arith.constant dense<0.000000e+00> : vector<16x64xf32>
    %442 = tpu.matmul %440, %441, %cst_155 {dimension_numbers = #tpu.dot_dimension_numbers<[1], [0], [0], [1], [0, 0, 1, 1], [], []>} : vector<16x32xf32>, vector<32x64xf32>, vector<16x64xf32> -> vector<16x64xf32>
    %443 = vector.extract_strided_slice %410 {offsets = [32, 0], sizes = [1, 64], strides = [1, 1]} : vector<33x64xf32> to vector<1x64xf32>
    %444 = vector.broadcast %443 : vector<1x64xf32> to vector<16x64xf32>
    %445 = arith.addf %442, %444 : vector<16x64xf32>
    %cst_156 = arith.constant 5.000000e-01 : f32
    %446 = vector.broadcast %cst_156 : f32 to vector<16x64xf32>
    %447 = arith.mulf %446, %445 : vector<16x64xf32>
    %cst_157 = arith.constant 4.471500e-02 : f32
    %448 = vector.broadcast %cst_157 : f32 to vector<16x64xf32>
    %449 = arith.mulf %448, %445 : vector<16x64xf32>
    %450 = arith.mulf %449, %445 : vector<16x64xf32>
    %451 = arith.mulf %450, %445 : vector<16x64xf32>
    %452 = arith.addf %445, %451 : vector<16x64xf32>
    %cst_158 = arith.constant 0.797884583 : f32
    %453 = vector.broadcast %cst_158 : f32 to vector<16x64xf32>
    %454 = arith.mulf %453, %452 : vector<16x64xf32>
    %455 = math.tanh %454 : vector<16x64xf32>
    %cst_159 = arith.constant 1.000000e+00 : f32
    %456 = vector.broadcast %cst_159 : f32 to vector<16x64xf32>
    %457 = arith.addf %456, %455 : vector<16x64xf32>
    %458 = arith.mulf %447, %457 : vector<16x64xf32>
    %459 = vector.extract_strided_slice %408 {offsets = [32, 0], sizes = [64, 32], strides = [1, 1]} : vector<104x32xf32> to vector<64x32xf32>
    %cst_160 = arith.constant dense<0.000000e+00> : vector<16x32xf32>
    %460 = tpu.matmul %458, %459, %cst_160 {dimension_numbers = #tpu.dot_dimension_numbers<[1], [0], [0], [1], [0, 0, 1, 1], [], []>} : vector<16x64xf32>, vector<64x32xf32>, vector<16x32xf32> -> vector<16x32xf32>
    %461 = vector.extract_strided_slice %408 {offsets = [99, 0], sizes = [1, 32], strides = [1, 1]} : vector<104x32xf32> to vector<1x32xf32>
    %462 = vector.broadcast %461 : vector<1x32xf32> to vector<16x32xf32>
    %463 = arith.addf %460, %462 : vector<16x32xf32>
    %464 = arith.addf %463, %440 : vector<16x32xf32>
    %465 = vector.extract_strided_slice %408 {offsets = [100, 0], sizes = [1, 32], strides = [1, 1]} : vector<104x32xf32> to vector<1x32xf32>
    %466 = vector.extract_strided_slice %408 {offsets = [101, 0], sizes = [1, 32], strides = [1, 1]} : vector<104x32xf32> to vector<1x32xf32>
    %cst_161 = arith.constant dense<0.000000e+00> : vector<16xf32>
    %467 = vector.multi_reduction <add>, %464, %cst_161 [1] : vector<16x32xf32> to vector<16xf32>
    %468 = vector.shape_cast %467 : vector<16xf32> to vector<16x1xf32>
    %cst_162 = arith.constant 3.200000e+01 : f32
    %469 = vector.broadcast %cst_162 : f32 to vector<16x1xf32>
    %470 = arith.divf %468, %469 : vector<16x1xf32>
    %471 = vector.broadcast %470 : vector<16x1xf32> to vector<16x32xf32>
    %472 = arith.subf %464, %471 : vector<16x32xf32>
    %473 = arith.mulf %472, %472 : vector<16x32xf32>
    %cst_163 = arith.constant dense<0.000000e+00> : vector<16xf32>
    %474 = vector.multi_reduction <add>, %473, %cst_163 [1] : vector<16x32xf32> to vector<16xf32>
    %475 = vector.shape_cast %474 : vector<16xf32> to vector<16x1xf32>
    %cst_164 = arith.constant 3.200000e+01 : f32
    %476 = vector.broadcast %cst_164 : f32 to vector<16x1xf32>
    %477 = arith.divf %475, %476 : vector<16x1xf32>
    %478 = vector.broadcast %470 : vector<16x1xf32> to vector<16x32xf32>
    %479 = arith.subf %464, %478 : vector<16x32xf32>
    %cst_165 = arith.constant 9.99999974E-6 : f32
    %480 = vector.broadcast %cst_165 : f32 to vector<16x1xf32>
    %481 = arith.addf %477, %480 : vector<16x1xf32>
    %482 = math.rsqrt %481 : vector<16x1xf32>
    %483 = vector.broadcast %482 : vector<16x1xf32> to vector<16x32xf32>
    %484 = arith.mulf %479, %483 : vector<16x32xf32>
    %485 = vector.broadcast %465 : vector<1x32xf32> to vector<16x32xf32>
    %486 = arith.mulf %484, %485 : vector<16x32xf32>
    %487 = vector.broadcast %466 : vector<1x32xf32> to vector<16x32xf32>
    %488 = arith.addf %486, %487 : vector<16x32xf32>
    %c24 = arith.constant 24 : index
    %c0_166 = arith.constant 0 : index
    %c0_167 = arith.constant 0 : index
    %489 = vector.load %arg3[%c24, %c0_166, %c0_167] : memref<60x33x8xf32, #tpu.memory_space<vmem>>, vector<1x33x8xf32>
    %490 = vector.shape_cast %489 : vector<1x33x8xf32> to vector<33x8xf32>
    %c28 = arith.constant 28 : index
    %c0_168 = arith.constant 0 : index
    %c0_169 = arith.constant 0 : index
    %491 = vector.load %arg3[%c28, %c0_168, %c0_169] : memref<60x33x8xf32, #tpu.memory_space<vmem>>, vector<1x33x8xf32>
    %492 = vector.shape_cast %491 : vector<1x33x8xf32> to vector<33x8xf32>
    %c32 = arith.constant 32 : index
    %c0_170 = arith.constant 0 : index
    %c0_171 = arith.constant 0 : index
    %493 = vector.load %arg3[%c32, %c0_170, %c0_171] : memref<60x33x8xf32, #tpu.memory_space<vmem>>, vector<1x33x8xf32>
    %494 = vector.shape_cast %493 : vector<1x33x8xf32> to vector<33x8xf32>
    %495 = vector.extract_strided_slice %490 {offsets = [0, 0], sizes = [32, 8], strides = [1, 1]} : vector<33x8xf32> to vector<32x8xf32>
    %cst_172 = arith.constant dense<0.000000e+00> : vector<16x8xf32>
    %496 = tpu.matmul %488, %495, %cst_172 {dimension_numbers = #tpu.dot_dimension_numbers<[1], [0], [0], [1], [0, 0, 1, 1], [], []>} : vector<16x32xf32>, vector<32x8xf32>, vector<16x8xf32> -> vector<16x8xf32>
    %497 = vector.extract_strided_slice %490 {offsets = [32, 0], sizes = [1, 8], strides = [1, 1]} : vector<33x8xf32> to vector<1x8xf32>
    %498 = vector.broadcast %497 : vector<1x8xf32> to vector<16x8xf32>
    %499 = arith.addf %496, %498 : vector<16x8xf32>
    %500 = vector.extract_strided_slice %492 {offsets = [0, 0], sizes = [32, 8], strides = [1, 1]} : vector<33x8xf32> to vector<32x8xf32>
    %cst_173 = arith.constant dense<0.000000e+00> : vector<16x8xf32>
    %501 = tpu.matmul %488, %500, %cst_173 {dimension_numbers = #tpu.dot_dimension_numbers<[1], [0], [0], [1], [0, 0, 1, 1], [], []>} : vector<16x32xf32>, vector<32x8xf32>, vector<16x8xf32> -> vector<16x8xf32>
    %502 = vector.extract_strided_slice %492 {offsets = [32, 0], sizes = [1, 8], strides = [1, 1]} : vector<33x8xf32> to vector<1x8xf32>
    %503 = vector.broadcast %502 : vector<1x8xf32> to vector<16x8xf32>
    %504 = arith.addf %501, %503 : vector<16x8xf32>
    %505 = vector.extract_strided_slice %494 {offsets = [0, 0], sizes = [32, 8], strides = [1, 1]} : vector<33x8xf32> to vector<32x8xf32>
    %cst_174 = arith.constant dense<0.000000e+00> : vector<16x8xf32>
    %506 = tpu.matmul %488, %505, %cst_174 {dimension_numbers = #tpu.dot_dimension_numbers<[1], [0], [0], [1], [0, 0, 1, 1], [], []>} : vector<16x32xf32>, vector<32x8xf32>, vector<16x8xf32> -> vector<16x8xf32>
    %507 = vector.extract_strided_slice %494 {offsets = [32, 0], sizes = [1, 8], strides = [1, 1]} : vector<33x8xf32> to vector<1x8xf32>
    %508 = vector.broadcast %507 : vector<1x8xf32> to vector<16x8xf32>
    %509 = arith.addf %506, %508 : vector<16x8xf32>
    %cst_175 = arith.constant dense<0.000000e+00> : vector<16x16xf32>
    %510 = tpu.matmul %499, %504, %cst_175 {dimension_numbers = #tpu.dot_dimension_numbers<[1], [1], [0], [0], [0, 0, 1, 0], [], []>} : vector<16x8xf32>, vector<16x8xf32>, vector<16x16xf32> -> vector<16x16xf32>
    %511 = arith.addf %510, %15 : vector<16x16xf32>
    %cst_176 = arith.constant dense<0xFF800000> : vector<16xf32>
    %512 = vector.multi_reduction <maximumf>, %511, %cst_176 [1] : vector<16x16xf32> to vector<16xf32>
    %513 = vector.shape_cast %512 : vector<16xf32> to vector<16x1xf32>
    %514 = vector.broadcast %513 : vector<16x1xf32> to vector<16x16xf32>
    %515 = arith.subf %511, %514 : vector<16x16xf32>
    %516 = math.exp %515 : vector<16x16xf32>
    %cst_177 = arith.constant dense<0.000000e+00> : vector<16xf32>
    %517 = vector.multi_reduction <add>, %516, %cst_177 [1] : vector<16x16xf32> to vector<16xf32>
    %518 = vector.shape_cast %517 : vector<16xf32> to vector<16x1xf32>
    %519 = tpu.reciprocal %518 {approx = true} : vector<16x1xf32> -> vector<16x1xf32>
    %520 = vector.broadcast %519 : vector<16x1xf32> to vector<16x16xf32>
    %521 = arith.mulf %516, %520 : vector<16x16xf32>
    %cst_178 = arith.constant dense<0.000000e+00> : vector<16x8xf32>
    %522 = tpu.matmul %521, %509, %cst_178 {dimension_numbers = #tpu.dot_dimension_numbers<[1], [0], [0], [1], [0, 0, 1, 1], [], []>} : vector<16x16xf32>, vector<16x8xf32>, vector<16x8xf32> -> vector<16x8xf32>
    %c25 = arith.constant 25 : index
    %c0_179 = arith.constant 0 : index
    %c0_180 = arith.constant 0 : index
    %523 = vector.load %arg3[%c25, %c0_179, %c0_180] : memref<60x33x8xf32, #tpu.memory_space<vmem>>, vector<1x33x8xf32>
    %524 = vector.shape_cast %523 : vector<1x33x8xf32> to vector<33x8xf32>
    %c29 = arith.constant 29 : index
    %c0_181 = arith.constant 0 : index
    %c0_182 = arith.constant 0 : index
    %525 = vector.load %arg3[%c29, %c0_181, %c0_182] : memref<60x33x8xf32, #tpu.memory_space<vmem>>, vector<1x33x8xf32>
    %526 = vector.shape_cast %525 : vector<1x33x8xf32> to vector<33x8xf32>
    %c33 = arith.constant 33 : index
    %c0_183 = arith.constant 0 : index
    %c0_184 = arith.constant 0 : index
    %527 = vector.load %arg3[%c33, %c0_183, %c0_184] : memref<60x33x8xf32, #tpu.memory_space<vmem>>, vector<1x33x8xf32>
    %528 = vector.shape_cast %527 : vector<1x33x8xf32> to vector<33x8xf32>
    %529 = vector.extract_strided_slice %524 {offsets = [0, 0], sizes = [32, 8], strides = [1, 1]} : vector<33x8xf32> to vector<32x8xf32>
    %cst_185 = arith.constant dense<0.000000e+00> : vector<16x8xf32>
    %530 = tpu.matmul %488, %529, %cst_185 {dimension_numbers = #tpu.dot_dimension_numbers<[1], [0], [0], [1], [0, 0, 1, 1], [], []>} : vector<16x32xf32>, vector<32x8xf32>, vector<16x8xf32> -> vector<16x8xf32>
    %531 = vector.extract_strided_slice %524 {offsets = [32, 0], sizes = [1, 8], strides = [1, 1]} : vector<33x8xf32> to vector<1x8xf32>
    %532 = vector.broadcast %531 : vector<1x8xf32> to vector<16x8xf32>
    %533 = arith.addf %530, %532 : vector<16x8xf32>
    %534 = vector.extract_strided_slice %526 {offsets = [0, 0], sizes = [32, 8], strides = [1, 1]} : vector<33x8xf32> to vector<32x8xf32>
    %cst_186 = arith.constant dense<0.000000e+00> : vector<16x8xf32>
    %535 = tpu.matmul %488, %534, %cst_186 {dimension_numbers = #tpu.dot_dimension_numbers<[1], [0], [0], [1], [0, 0, 1, 1], [], []>} : vector<16x32xf32>, vector<32x8xf32>, vector<16x8xf32> -> vector<16x8xf32>
    %536 = vector.extract_strided_slice %526 {offsets = [32, 0], sizes = [1, 8], strides = [1, 1]} : vector<33x8xf32> to vector<1x8xf32>
    %537 = vector.broadcast %536 : vector<1x8xf32> to vector<16x8xf32>
    %538 = arith.addf %535, %537 : vector<16x8xf32>
    %539 = vector.extract_strided_slice %528 {offsets = [0, 0], sizes = [32, 8], strides = [1, 1]} : vector<33x8xf32> to vector<32x8xf32>
    %cst_187 = arith.constant dense<0.000000e+00> : vector<16x8xf32>
    %540 = tpu.matmul %488, %539, %cst_187 {dimension_numbers = #tpu.dot_dimension_numbers<[1], [0], [0], [1], [0, 0, 1, 1], [], []>} : vector<16x32xf32>, vector<32x8xf32>, vector<16x8xf32> -> vector<16x8xf32>
    %541 = vector.extract_strided_slice %528 {offsets = [32, 0], sizes = [1, 8], strides = [1, 1]} : vector<33x8xf32> to vector<1x8xf32>
    %542 = vector.broadcast %541 : vector<1x8xf32> to vector<16x8xf32>
    %543 = arith.addf %540, %542 : vector<16x8xf32>
    %cst_188 = arith.constant dense<0.000000e+00> : vector<16x16xf32>
    %544 = tpu.matmul %533, %538, %cst_188 {dimension_numbers = #tpu.dot_dimension_numbers<[1], [1], [0], [0], [0, 0, 1, 0], [], []>} : vector<16x8xf32>, vector<16x8xf32>, vector<16x16xf32> -> vector<16x16xf32>
    %545 = arith.addf %544, %15 : vector<16x16xf32>
    %cst_189 = arith.constant dense<0xFF800000> : vector<16xf32>
    %546 = vector.multi_reduction <maximumf>, %545, %cst_189 [1] : vector<16x16xf32> to vector<16xf32>
    %547 = vector.shape_cast %546 : vector<16xf32> to vector<16x1xf32>
    %548 = vector.broadcast %547 : vector<16x1xf32> to vector<16x16xf32>
    %549 = arith.subf %545, %548 : vector<16x16xf32>
    %550 = math.exp %549 : vector<16x16xf32>
    %cst_190 = arith.constant dense<0.000000e+00> : vector<16xf32>
    %551 = vector.multi_reduction <add>, %550, %cst_190 [1] : vector<16x16xf32> to vector<16xf32>
    %552 = vector.shape_cast %551 : vector<16xf32> to vector<16x1xf32>
    %553 = tpu.reciprocal %552 {approx = true} : vector<16x1xf32> -> vector<16x1xf32>
    %554 = vector.broadcast %553 : vector<16x1xf32> to vector<16x16xf32>
    %555 = arith.mulf %550, %554 : vector<16x16xf32>
    %cst_191 = arith.constant dense<0.000000e+00> : vector<16x8xf32>
    %556 = tpu.matmul %555, %543, %cst_191 {dimension_numbers = #tpu.dot_dimension_numbers<[1], [0], [0], [1], [0, 0, 1, 1], [], []>} : vector<16x16xf32>, vector<16x8xf32>, vector<16x8xf32> -> vector<16x8xf32>
    %c26 = arith.constant 26 : index
    %c0_192 = arith.constant 0 : index
    %c0_193 = arith.constant 0 : index
    %557 = vector.load %arg3[%c26, %c0_192, %c0_193] : memref<60x33x8xf32, #tpu.memory_space<vmem>>, vector<1x33x8xf32>
    %558 = vector.shape_cast %557 : vector<1x33x8xf32> to vector<33x8xf32>
    %c30 = arith.constant 30 : index
    %c0_194 = arith.constant 0 : index
    %c0_195 = arith.constant 0 : index
    %559 = vector.load %arg3[%c30, %c0_194, %c0_195] : memref<60x33x8xf32, #tpu.memory_space<vmem>>, vector<1x33x8xf32>
    %560 = vector.shape_cast %559 : vector<1x33x8xf32> to vector<33x8xf32>
    %c34 = arith.constant 34 : index
    %c0_196 = arith.constant 0 : index
    %c0_197 = arith.constant 0 : index
    %561 = vector.load %arg3[%c34, %c0_196, %c0_197] : memref<60x33x8xf32, #tpu.memory_space<vmem>>, vector<1x33x8xf32>
    %562 = vector.shape_cast %561 : vector<1x33x8xf32> to vector<33x8xf32>
    %563 = vector.extract_strided_slice %558 {offsets = [0, 0], sizes = [32, 8], strides = [1, 1]} : vector<33x8xf32> to vector<32x8xf32>
    %cst_198 = arith.constant dense<0.000000e+00> : vector<16x8xf32>
    %564 = tpu.matmul %488, %563, %cst_198 {dimension_numbers = #tpu.dot_dimension_numbers<[1], [0], [0], [1], [0, 0, 1, 1], [], []>} : vector<16x32xf32>, vector<32x8xf32>, vector<16x8xf32> -> vector<16x8xf32>
    %565 = vector.extract_strided_slice %558 {offsets = [32, 0], sizes = [1, 8], strides = [1, 1]} : vector<33x8xf32> to vector<1x8xf32>
    %566 = vector.broadcast %565 : vector<1x8xf32> to vector<16x8xf32>
    %567 = arith.addf %564, %566 : vector<16x8xf32>
    %568 = vector.extract_strided_slice %560 {offsets = [0, 0], sizes = [32, 8], strides = [1, 1]} : vector<33x8xf32> to vector<32x8xf32>
    %cst_199 = arith.constant dense<0.000000e+00> : vector<16x8xf32>
    %569 = tpu.matmul %488, %568, %cst_199 {dimension_numbers = #tpu.dot_dimension_numbers<[1], [0], [0], [1], [0, 0, 1, 1], [], []>} : vector<16x32xf32>, vector<32x8xf32>, vector<16x8xf32> -> vector<16x8xf32>
    %570 = vector.extract_strided_slice %560 {offsets = [32, 0], sizes = [1, 8], strides = [1, 1]} : vector<33x8xf32> to vector<1x8xf32>
    %571 = vector.broadcast %570 : vector<1x8xf32> to vector<16x8xf32>
    %572 = arith.addf %569, %571 : vector<16x8xf32>
    %573 = vector.extract_strided_slice %562 {offsets = [0, 0], sizes = [32, 8], strides = [1, 1]} : vector<33x8xf32> to vector<32x8xf32>
    %cst_200 = arith.constant dense<0.000000e+00> : vector<16x8xf32>
    %574 = tpu.matmul %488, %573, %cst_200 {dimension_numbers = #tpu.dot_dimension_numbers<[1], [0], [0], [1], [0, 0, 1, 1], [], []>} : vector<16x32xf32>, vector<32x8xf32>, vector<16x8xf32> -> vector<16x8xf32>
    %575 = vector.extract_strided_slice %562 {offsets = [32, 0], sizes = [1, 8], strides = [1, 1]} : vector<33x8xf32> to vector<1x8xf32>
    %576 = vector.broadcast %575 : vector<1x8xf32> to vector<16x8xf32>
    %577 = arith.addf %574, %576 : vector<16x8xf32>
    %cst_201 = arith.constant dense<0.000000e+00> : vector<16x16xf32>
    %578 = tpu.matmul %567, %572, %cst_201 {dimension_numbers = #tpu.dot_dimension_numbers<[1], [1], [0], [0], [0, 0, 1, 0], [], []>} : vector<16x8xf32>, vector<16x8xf32>, vector<16x16xf32> -> vector<16x16xf32>
    %579 = arith.addf %578, %15 : vector<16x16xf32>
    %cst_202 = arith.constant dense<0xFF800000> : vector<16xf32>
    %580 = vector.multi_reduction <maximumf>, %579, %cst_202 [1] : vector<16x16xf32> to vector<16xf32>
    %581 = vector.shape_cast %580 : vector<16xf32> to vector<16x1xf32>
    %582 = vector.broadcast %581 : vector<16x1xf32> to vector<16x16xf32>
    %583 = arith.subf %579, %582 : vector<16x16xf32>
    %584 = math.exp %583 : vector<16x16xf32>
    %cst_203 = arith.constant dense<0.000000e+00> : vector<16xf32>
    %585 = vector.multi_reduction <add>, %584, %cst_203 [1] : vector<16x16xf32> to vector<16xf32>
    %586 = vector.shape_cast %585 : vector<16xf32> to vector<16x1xf32>
    %587 = tpu.reciprocal %586 {approx = true} : vector<16x1xf32> -> vector<16x1xf32>
    %588 = vector.broadcast %587 : vector<16x1xf32> to vector<16x16xf32>
    %589 = arith.mulf %584, %588 : vector<16x16xf32>
    %cst_204 = arith.constant dense<0.000000e+00> : vector<16x8xf32>
    %590 = tpu.matmul %589, %577, %cst_204 {dimension_numbers = #tpu.dot_dimension_numbers<[1], [0], [0], [1], [0, 0, 1, 1], [], []>} : vector<16x16xf32>, vector<16x8xf32>, vector<16x8xf32> -> vector<16x8xf32>
    %c27 = arith.constant 27 : index
    %c0_205 = arith.constant 0 : index
    %c0_206 = arith.constant 0 : index
    %591 = vector.load %arg3[%c27, %c0_205, %c0_206] : memref<60x33x8xf32, #tpu.memory_space<vmem>>, vector<1x33x8xf32>
    %592 = vector.shape_cast %591 : vector<1x33x8xf32> to vector<33x8xf32>
    %c31 = arith.constant 31 : index
    %c0_207 = arith.constant 0 : index
    %c0_208 = arith.constant 0 : index
    %593 = vector.load %arg3[%c31, %c0_207, %c0_208] : memref<60x33x8xf32, #tpu.memory_space<vmem>>, vector<1x33x8xf32>
    %594 = vector.shape_cast %593 : vector<1x33x8xf32> to vector<33x8xf32>
    %c35 = arith.constant 35 : index
    %c0_209 = arith.constant 0 : index
    %c0_210 = arith.constant 0 : index
    %595 = vector.load %arg3[%c35, %c0_209, %c0_210] : memref<60x33x8xf32, #tpu.memory_space<vmem>>, vector<1x33x8xf32>
    %596 = vector.shape_cast %595 : vector<1x33x8xf32> to vector<33x8xf32>
    %597 = vector.extract_strided_slice %592 {offsets = [0, 0], sizes = [32, 8], strides = [1, 1]} : vector<33x8xf32> to vector<32x8xf32>
    %cst_211 = arith.constant dense<0.000000e+00> : vector<16x8xf32>
    %598 = tpu.matmul %488, %597, %cst_211 {dimension_numbers = #tpu.dot_dimension_numbers<[1], [0], [0], [1], [0, 0, 1, 1], [], []>} : vector<16x32xf32>, vector<32x8xf32>, vector<16x8xf32> -> vector<16x8xf32>
    %599 = vector.extract_strided_slice %592 {offsets = [32, 0], sizes = [1, 8], strides = [1, 1]} : vector<33x8xf32> to vector<1x8xf32>
    %600 = vector.broadcast %599 : vector<1x8xf32> to vector<16x8xf32>
    %601 = arith.addf %598, %600 : vector<16x8xf32>
    %602 = vector.extract_strided_slice %594 {offsets = [0, 0], sizes = [32, 8], strides = [1, 1]} : vector<33x8xf32> to vector<32x8xf32>
    %cst_212 = arith.constant dense<0.000000e+00> : vector<16x8xf32>
    %603 = tpu.matmul %488, %602, %cst_212 {dimension_numbers = #tpu.dot_dimension_numbers<[1], [0], [0], [1], [0, 0, 1, 1], [], []>} : vector<16x32xf32>, vector<32x8xf32>, vector<16x8xf32> -> vector<16x8xf32>
    %604 = vector.extract_strided_slice %594 {offsets = [32, 0], sizes = [1, 8], strides = [1, 1]} : vector<33x8xf32> to vector<1x8xf32>
    %605 = vector.broadcast %604 : vector<1x8xf32> to vector<16x8xf32>
    %606 = arith.addf %603, %605 : vector<16x8xf32>
    %607 = vector.extract_strided_slice %596 {offsets = [0, 0], sizes = [32, 8], strides = [1, 1]} : vector<33x8xf32> to vector<32x8xf32>
    %cst_213 = arith.constant dense<0.000000e+00> : vector<16x8xf32>
    %608 = tpu.matmul %488, %607, %cst_213 {dimension_numbers = #tpu.dot_dimension_numbers<[1], [0], [0], [1], [0, 0, 1, 1], [], []>} : vector<16x32xf32>, vector<32x8xf32>, vector<16x8xf32> -> vector<16x8xf32>
    %609 = vector.extract_strided_slice %596 {offsets = [32, 0], sizes = [1, 8], strides = [1, 1]} : vector<33x8xf32> to vector<1x8xf32>
    %610 = vector.broadcast %609 : vector<1x8xf32> to vector<16x8xf32>
    %611 = arith.addf %608, %610 : vector<16x8xf32>
    %cst_214 = arith.constant dense<0.000000e+00> : vector<16x16xf32>
    %612 = tpu.matmul %601, %606, %cst_214 {dimension_numbers = #tpu.dot_dimension_numbers<[1], [1], [0], [0], [0, 0, 1, 0], [], []>} : vector<16x8xf32>, vector<16x8xf32>, vector<16x16xf32> -> vector<16x16xf32>
    %613 = arith.addf %612, %15 : vector<16x16xf32>
    %cst_215 = arith.constant dense<0xFF800000> : vector<16xf32>
    %614 = vector.multi_reduction <maximumf>, %613, %cst_215 [1] : vector<16x16xf32> to vector<16xf32>
    %615 = vector.shape_cast %614 : vector<16xf32> to vector<16x1xf32>
    %616 = vector.broadcast %615 : vector<16x1xf32> to vector<16x16xf32>
    %617 = arith.subf %613, %616 : vector<16x16xf32>
    %618 = math.exp %617 : vector<16x16xf32>
    %cst_216 = arith.constant dense<0.000000e+00> : vector<16xf32>
    %619 = vector.multi_reduction <add>, %618, %cst_216 [1] : vector<16x16xf32> to vector<16xf32>
    %620 = vector.shape_cast %619 : vector<16xf32> to vector<16x1xf32>
    %621 = tpu.reciprocal %620 {approx = true} : vector<16x1xf32> -> vector<16x1xf32>
    %622 = vector.broadcast %621 : vector<16x1xf32> to vector<16x16xf32>
    %623 = arith.mulf %618, %622 : vector<16x16xf32>
    %cst_217 = arith.constant dense<0.000000e+00> : vector<16x8xf32>
    %624 = tpu.matmul %623, %611, %cst_217 {dimension_numbers = #tpu.dot_dimension_numbers<[1], [0], [0], [1], [0, 0, 1, 1], [], []>} : vector<16x16xf32>, vector<16x8xf32>, vector<16x8xf32> -> vector<16x8xf32>
    %625 = tpu.concatenate %522, %556, %590, %624 in 1 : vector<16x8xf32>, vector<16x8xf32>, vector<16x8xf32>, vector<16x8xf32> -> vector<16x32xf32>
    %c2_218 = arith.constant 2 : index
    %c0_219 = arith.constant 0 : index
    %c0_220 = arith.constant 0 : index
    %626 = vector.load %arg4[%c2_218, %c0_219, %c0_220] : memref<5x104x32xf32, #tpu.memory_space<vmem>>, vector<1x104x32xf32>
    %627 = vector.shape_cast %626 : vector<1x104x32xf32> to vector<104x32xf32>
    %c2_221 = arith.constant 2 : index
    %c0_222 = arith.constant 0 : index
    %c0_223 = arith.constant 0 : index
    %628 = vector.load %arg5[%c2_221, %c0_222, %c0_223] : memref<5x33x64xf32, #tpu.memory_space<vmem>>, vector<1x33x64xf32>
    %629 = vector.shape_cast %628 : vector<1x33x64xf32> to vector<33x64xf32>
    %630 = vector.extract_strided_slice %627 {offsets = [0, 0], sizes = [32, 32], strides = [1, 1]} : vector<104x32xf32> to vector<32x32xf32>
    %cst_224 = arith.constant dense<0.000000e+00> : vector<16x32xf32>
    %631 = tpu.matmul %625, %630, %cst_224 {dimension_numbers = #tpu.dot_dimension_numbers<[1], [0], [0], [1], [0, 0, 1, 1], [], []>} : vector<16x32xf32>, vector<32x32xf32>, vector<16x32xf32> -> vector<16x32xf32>
    %632 = vector.extract_strided_slice %627 {offsets = [96, 0], sizes = [1, 32], strides = [1, 1]} : vector<104x32xf32> to vector<1x32xf32>
    %633 = vector.broadcast %632 : vector<1x32xf32> to vector<16x32xf32>
    %634 = arith.addf %631, %633 : vector<16x32xf32>
    %635 = arith.addf %634, %488 : vector<16x32xf32>
    %636 = vector.extract_strided_slice %627 {offsets = [97, 0], sizes = [1, 32], strides = [1, 1]} : vector<104x32xf32> to vector<1x32xf32>
    %637 = vector.extract_strided_slice %627 {offsets = [98, 0], sizes = [1, 32], strides = [1, 1]} : vector<104x32xf32> to vector<1x32xf32>
    %cst_225 = arith.constant dense<0.000000e+00> : vector<16xf32>
    %638 = vector.multi_reduction <add>, %635, %cst_225 [1] : vector<16x32xf32> to vector<16xf32>
    %639 = vector.shape_cast %638 : vector<16xf32> to vector<16x1xf32>
    %cst_226 = arith.constant 3.200000e+01 : f32
    %640 = vector.broadcast %cst_226 : f32 to vector<16x1xf32>
    %641 = arith.divf %639, %640 : vector<16x1xf32>
    %642 = vector.broadcast %641 : vector<16x1xf32> to vector<16x32xf32>
    %643 = arith.subf %635, %642 : vector<16x32xf32>
    %644 = arith.mulf %643, %643 : vector<16x32xf32>
    %cst_227 = arith.constant dense<0.000000e+00> : vector<16xf32>
    %645 = vector.multi_reduction <add>, %644, %cst_227 [1] : vector<16x32xf32> to vector<16xf32>
    %646 = vector.shape_cast %645 : vector<16xf32> to vector<16x1xf32>
    %cst_228 = arith.constant 3.200000e+01 : f32
    %647 = vector.broadcast %cst_228 : f32 to vector<16x1xf32>
    %648 = arith.divf %646, %647 : vector<16x1xf32>
    %649 = vector.broadcast %641 : vector<16x1xf32> to vector<16x32xf32>
    %650 = arith.subf %635, %649 : vector<16x32xf32>
    %cst_229 = arith.constant 9.99999974E-6 : f32
    %651 = vector.broadcast %cst_229 : f32 to vector<16x1xf32>
    %652 = arith.addf %648, %651 : vector<16x1xf32>
    %653 = math.rsqrt %652 : vector<16x1xf32>
    %654 = vector.broadcast %653 : vector<16x1xf32> to vector<16x32xf32>
    %655 = arith.mulf %650, %654 : vector<16x32xf32>
    %656 = vector.broadcast %636 : vector<1x32xf32> to vector<16x32xf32>
    %657 = arith.mulf %655, %656 : vector<16x32xf32>
    %658 = vector.broadcast %637 : vector<1x32xf32> to vector<16x32xf32>
    %659 = arith.addf %657, %658 : vector<16x32xf32>
    %660 = vector.extract_strided_slice %629 {offsets = [0, 0], sizes = [32, 64], strides = [1, 1]} : vector<33x64xf32> to vector<32x64xf32>
    %cst_230 = arith.constant dense<0.000000e+00> : vector<16x64xf32>
    %661 = tpu.matmul %659, %660, %cst_230 {dimension_numbers = #tpu.dot_dimension_numbers<[1], [0], [0], [1], [0, 0, 1, 1], [], []>} : vector<16x32xf32>, vector<32x64xf32>, vector<16x64xf32> -> vector<16x64xf32>
    %662 = vector.extract_strided_slice %629 {offsets = [32, 0], sizes = [1, 64], strides = [1, 1]} : vector<33x64xf32> to vector<1x64xf32>
    %663 = vector.broadcast %662 : vector<1x64xf32> to vector<16x64xf32>
    %664 = arith.addf %661, %663 : vector<16x64xf32>
    %cst_231 = arith.constant 5.000000e-01 : f32
    %665 = vector.broadcast %cst_231 : f32 to vector<16x64xf32>
    %666 = arith.mulf %665, %664 : vector<16x64xf32>
    %cst_232 = arith.constant 4.471500e-02 : f32
    %667 = vector.broadcast %cst_232 : f32 to vector<16x64xf32>
    %668 = arith.mulf %667, %664 : vector<16x64xf32>
    %669 = arith.mulf %668, %664 : vector<16x64xf32>
    %670 = arith.mulf %669, %664 : vector<16x64xf32>
    %671 = arith.addf %664, %670 : vector<16x64xf32>
    %cst_233 = arith.constant 0.797884583 : f32
    %672 = vector.broadcast %cst_233 : f32 to vector<16x64xf32>
    %673 = arith.mulf %672, %671 : vector<16x64xf32>
    %674 = math.tanh %673 : vector<16x64xf32>
    %cst_234 = arith.constant 1.000000e+00 : f32
    %675 = vector.broadcast %cst_234 : f32 to vector<16x64xf32>
    %676 = arith.addf %675, %674 : vector<16x64xf32>
    %677 = arith.mulf %666, %676 : vector<16x64xf32>
    %678 = vector.extract_strided_slice %627 {offsets = [32, 0], sizes = [64, 32], strides = [1, 1]} : vector<104x32xf32> to vector<64x32xf32>
    %cst_235 = arith.constant dense<0.000000e+00> : vector<16x32xf32>
    %679 = tpu.matmul %677, %678, %cst_235 {dimension_numbers = #tpu.dot_dimension_numbers<[1], [0], [0], [1], [0, 0, 1, 1], [], []>} : vector<16x64xf32>, vector<64x32xf32>, vector<16x32xf32> -> vector<16x32xf32>
    %680 = vector.extract_strided_slice %627 {offsets = [99, 0], sizes = [1, 32], strides = [1, 1]} : vector<104x32xf32> to vector<1x32xf32>
    %681 = vector.broadcast %680 : vector<1x32xf32> to vector<16x32xf32>
    %682 = arith.addf %679, %681 : vector<16x32xf32>
    %683 = arith.addf %682, %659 : vector<16x32xf32>
    %684 = vector.extract_strided_slice %627 {offsets = [100, 0], sizes = [1, 32], strides = [1, 1]} : vector<104x32xf32> to vector<1x32xf32>
    %685 = vector.extract_strided_slice %627 {offsets = [101, 0], sizes = [1, 32], strides = [1, 1]} : vector<104x32xf32> to vector<1x32xf32>
    %cst_236 = arith.constant dense<0.000000e+00> : vector<16xf32>
    %686 = vector.multi_reduction <add>, %683, %cst_236 [1] : vector<16x32xf32> to vector<16xf32>
    %687 = vector.shape_cast %686 : vector<16xf32> to vector<16x1xf32>
    %cst_237 = arith.constant 3.200000e+01 : f32
    %688 = vector.broadcast %cst_237 : f32 to vector<16x1xf32>
    %689 = arith.divf %687, %688 : vector<16x1xf32>
    %690 = vector.broadcast %689 : vector<16x1xf32> to vector<16x32xf32>
    %691 = arith.subf %683, %690 : vector<16x32xf32>
    %692 = arith.mulf %691, %691 : vector<16x32xf32>
    %cst_238 = arith.constant dense<0.000000e+00> : vector<16xf32>
    %693 = vector.multi_reduction <add>, %692, %cst_238 [1] : vector<16x32xf32> to vector<16xf32>
    %694 = vector.shape_cast %693 : vector<16xf32> to vector<16x1xf32>
    %cst_239 = arith.constant 3.200000e+01 : f32
    %695 = vector.broadcast %cst_239 : f32 to vector<16x1xf32>
    %696 = arith.divf %694, %695 : vector<16x1xf32>
    %697 = vector.broadcast %689 : vector<16x1xf32> to vector<16x32xf32>
    %698 = arith.subf %683, %697 : vector<16x32xf32>
    %cst_240 = arith.constant 9.99999974E-6 : f32
    %699 = vector.broadcast %cst_240 : f32 to vector<16x1xf32>
    %700 = arith.addf %696, %699 : vector<16x1xf32>
    %701 = math.rsqrt %700 : vector<16x1xf32>
    %702 = vector.broadcast %701 : vector<16x1xf32> to vector<16x32xf32>
    %703 = arith.mulf %698, %702 : vector<16x32xf32>
    %704 = vector.broadcast %684 : vector<1x32xf32> to vector<16x32xf32>
    %705 = arith.mulf %703, %704 : vector<16x32xf32>
    %706 = vector.broadcast %685 : vector<1x32xf32> to vector<16x32xf32>
    %707 = arith.addf %705, %706 : vector<16x32xf32>
    %cst_241 = arith.constant dense<0.000000e+00> : vector<2x32xf32>
    %708 = tpu.matmul %23, %707, %cst_241 {dimension_numbers = #tpu.dot_dimension_numbers<[1], [0], [0], [1], [0, 0, 1, 1], [], []>} : vector<2x16xf32>, vector<16x32xf32>, vector<2x32xf32> -> vector<2x32xf32>
    %c0_242 = arith.constant 0 : index
    %c0_243 = arith.constant 0 : index
    %c0_244 = arith.constant 0 : index
    %709 = vector.load %arg6[%c0_242, %c0_243, %c0_244] : memref<3x33x32xf32, #tpu.memory_space<vmem>>, vector<1x33x32xf32>
    %710 = vector.shape_cast %709 : vector<1x33x32xf32> to vector<33x32xf32>
    %711 = vector.extract_strided_slice %710 {offsets = [0, 0], sizes = [32, 32], strides = [1, 1]} : vector<33x32xf32> to vector<32x32xf32>
    %cst_245 = arith.constant dense<0.000000e+00> : vector<2x32xf32>
    %712 = tpu.matmul %708, %711, %cst_245 {dimension_numbers = #tpu.dot_dimension_numbers<[1], [0], [0], [1], [0, 0, 1, 1], [], []>} : vector<2x32xf32>, vector<32x32xf32>, vector<2x32xf32> -> vector<2x32xf32>
    %713 = vector.extract_strided_slice %710 {offsets = [32, 0], sizes = [1, 32], strides = [1, 1]} : vector<33x32xf32> to vector<1x32xf32>
    %714 = vector.broadcast %713 : vector<1x32xf32> to vector<2x32xf32>
    %715 = arith.addf %712, %714 : vector<2x32xf32>
    %716 = math.tanh %715 : vector<2x32xf32>
    %c0_246 = arith.constant 0 : index
    %c0_247 = arith.constant 0 : index
    %717 = vector.load %arg7[%c0_246, %c0_247] : memref<33x2xf32, #tpu.memory_space<vmem>>, vector<33x2xf32>
    %718 = vector.extract_strided_slice %717 {offsets = [0, 0], sizes = [32, 2], strides = [1, 1]} : vector<33x2xf32> to vector<32x2xf32>
    %cst_248 = arith.constant dense<0.000000e+00> : vector<2x2xf32>
    %719 = tpu.matmul %716, %718, %cst_248 {dimension_numbers = #tpu.dot_dimension_numbers<[1], [0], [0], [1], [0, 0, 1, 1], [], []>} : vector<2x32xf32>, vector<32x2xf32>, vector<2x2xf32> -> vector<2x2xf32>
    %720 = vector.extract_strided_slice %717 {offsets = [32, 0], sizes = [1, 2], strides = [1, 1]} : vector<33x2xf32> to vector<1x2xf32>
    %721 = vector.broadcast %720 : vector<1x2xf32> to vector<2x2xf32>
    %722 = arith.addf %719, %721 : vector<2x2xf32>
    %c0_249 = arith.constant 0 : index
    %c0_250 = arith.constant 0 : index
    %723 = vector.load %arg11[%c0_249, %c0_250] : memref<2x2xf32, #tpu.memory_space<vmem>>, vector<2x2xf32>
    tpu.vector_store %arg11[%c0_249, %c0_250], %722 {strides = array<i32>} : memref<2x2xf32, #tpu.memory_space<vmem>>, vector<2x2xf32>,
    %cst_251 = arith.constant dense<0xFF800000> : vector<2xf32>
    %724 = vector.multi_reduction <maximumf>, %722, %cst_251 [1] : vector<2x2xf32> to vector<2xf32>
    %725 = vector.shape_cast %724 : vector<2xf32> to vector<2x1xf32>
    %726 = vector.broadcast %725 : vector<2x1xf32> to vector<2x2xf32>
    %727 = arith.subf %722, %726 : vector<2x2xf32>
    %728 = math.exp %727 : vector<2x2xf32>
    %cst_252 = arith.constant dense<0.000000e+00> : vector<2xf32>
    %729 = vector.multi_reduction <add>, %728, %cst_252 [1] : vector<2x2xf32> to vector<2xf32>
    %730 = vector.shape_cast %729 : vector<2xf32> to vector<2x1xf32>
    %731 = tpu.reciprocal %730 {approx = true} : vector<2x1xf32> -> vector<2x1xf32>
    %732 = vector.broadcast %731 : vector<2x1xf32> to vector<2x2xf32>
    %733 = arith.mulf %728, %732 : vector<2x2xf32>
    %734 = tpu.iota {dimensions = array<i32: 1>} : vector<2x3xi32>
    %c0_253 = arith.constant 0 : index
    %c0_254 = arith.constant 0 : index
    %735 = vector.load %arg2[%c0_253, %c0_254] : memref<2x1xi32, #tpu.memory_space<vmem>>, vector<2x1xi32>
    %736 = vector.broadcast %735 : vector<2x1xi32> to vector<2x3xi32>
    %737 = arith.cmpi eq, %734, %736 : vector<2x3xi32>
    %cst_255 = arith.constant 1.000000e+00 : f32
    %cst_256 = arith.constant 0.000000e+00 : f32
    %738 = vector.broadcast %cst_255 : f32 to vector<2x3xf32>
    %739 = vector.broadcast %cst_256 : f32 to vector<2x3xf32>
    %740 = arith.select %737, %738, %739 : vector<2x3xi1>, vector<2x3xf32>
    %cst_257 = arith.constant 0.000000e+00 : f32
    %741 = vector.broadcast %cst_257 : f32 to vector<2x3xf32>
    %cst_258 = arith.constant 0.000000e+00 : f32
    %742 = vector.broadcast %cst_258 : f32 to vector<2x1xf32>
    %c36 = arith.constant 36 : index
    %c0_259 = arith.constant 0 : index
    %c0_260 = arith.constant 0 : index
    %743 = vector.load %arg3[%c36, %c0_259, %c0_260] : memref<60x33x8xf32, #tpu.memory_space<vmem>>, vector<1x33x8xf32>
    %744 = vector.shape_cast %743 : vector<1x33x8xf32> to vector<33x8xf32>
    %c40 = arith.constant 40 : index
    %c0_261 = arith.constant 0 : index
    %c0_262 = arith.constant 0 : index
    %745 = vector.load %arg3[%c40, %c0_261, %c0_262] : memref<60x33x8xf32, #tpu.memory_space<vmem>>, vector<1x33x8xf32>
    %746 = vector.shape_cast %745 : vector<1x33x8xf32> to vector<33x8xf32>
    %c44 = arith.constant 44 : index
    %c0_263 = arith.constant 0 : index
    %c0_264 = arith.constant 0 : index
    %747 = vector.load %arg3[%c44, %c0_263, %c0_264] : memref<60x33x8xf32, #tpu.memory_space<vmem>>, vector<1x33x8xf32>
    %748 = vector.shape_cast %747 : vector<1x33x8xf32> to vector<33x8xf32>
    %749 = vector.extract_strided_slice %744 {offsets = [0, 0], sizes = [32, 8], strides = [1, 1]} : vector<33x8xf32> to vector<32x8xf32>
    %cst_265 = arith.constant dense<0.000000e+00> : vector<16x8xf32>
    %750 = tpu.matmul %488, %749, %cst_265 {dimension_numbers = #tpu.dot_dimension_numbers<[1], [0], [0], [1], [0, 0, 1, 1], [], []>} : vector<16x32xf32>, vector<32x8xf32>, vector<16x8xf32> -> vector<16x8xf32>
    %751 = vector.extract_strided_slice %744 {offsets = [32, 0], sizes = [1, 8], strides = [1, 1]} : vector<33x8xf32> to vector<1x8xf32>
    %752 = vector.broadcast %751 : vector<1x8xf32> to vector<16x8xf32>
    %753 = arith.addf %750, %752 : vector<16x8xf32>
    %754 = vector.extract_strided_slice %746 {offsets = [0, 0], sizes = [32, 8], strides = [1, 1]} : vector<33x8xf32> to vector<32x8xf32>
    %cst_266 = arith.constant dense<0.000000e+00> : vector<16x8xf32>
    %755 = tpu.matmul %488, %754, %cst_266 {dimension_numbers = #tpu.dot_dimension_numbers<[1], [0], [0], [1], [0, 0, 1, 1], [], []>} : vector<16x32xf32>, vector<32x8xf32>, vector<16x8xf32> -> vector<16x8xf32>
    %756 = vector.extract_strided_slice %746 {offsets = [32, 0], sizes = [1, 8], strides = [1, 1]} : vector<33x8xf32> to vector<1x8xf32>
    %757 = vector.broadcast %756 : vector<1x8xf32> to vector<16x8xf32>
    %758 = arith.addf %755, %757 : vector<16x8xf32>
    %759 = vector.extract_strided_slice %748 {offsets = [0, 0], sizes = [32, 8], strides = [1, 1]} : vector<33x8xf32> to vector<32x8xf32>
    %cst_267 = arith.constant dense<0.000000e+00> : vector<16x8xf32>
    %760 = tpu.matmul %488, %759, %cst_267 {dimension_numbers = #tpu.dot_dimension_numbers<[1], [0], [0], [1], [0, 0, 1, 1], [], []>} : vector<16x32xf32>, vector<32x8xf32>, vector<16x8xf32> -> vector<16x8xf32>
    %761 = vector.extract_strided_slice %748 {offsets = [32, 0], sizes = [1, 8], strides = [1, 1]} : vector<33x8xf32> to vector<1x8xf32>
    %762 = vector.broadcast %761 : vector<1x8xf32> to vector<16x8xf32>
    %763 = arith.addf %760, %762 : vector<16x8xf32>
    %cst_268 = arith.constant dense<0.000000e+00> : vector<16x16xf32>
    %764 = tpu.matmul %753, %758, %cst_268 {dimension_numbers = #tpu.dot_dimension_numbers<[1], [1], [0], [0], [0, 0, 1, 0], [], []>} : vector<16x8xf32>, vector<16x8xf32>, vector<16x16xf32> -> vector<16x16xf32>
    %765 = arith.addf %764, %15 : vector<16x16xf32>
    %cst_269 = arith.constant dense<0xFF800000> : vector<16xf32>
    %766 = vector.multi_reduction <maximumf>, %765, %cst_269 [1] : vector<16x16xf32> to vector<16xf32>
    %767 = vector.shape_cast %766 : vector<16xf32> to vector<16x1xf32>
    %768 = vector.broadcast %767 : vector<16x1xf32> to vector<16x16xf32>
    %769 = arith.subf %765, %768 : vector<16x16xf32>
    %770 = math.exp %769 : vector<16x16xf32>
    %cst_270 = arith.constant dense<0.000000e+00> : vector<16xf32>
    %771 = vector.multi_reduction <add>, %770, %cst_270 [1] : vector<16x16xf32> to vector<16xf32>
    %772 = vector.shape_cast %771 : vector<16xf32> to vector<16x1xf32>
    %773 = tpu.reciprocal %772 {approx = true} : vector<16x1xf32> -> vector<16x1xf32>
    %774 = vector.broadcast %773 : vector<16x1xf32> to vector<16x16xf32>
    %775 = arith.mulf %770, %774 : vector<16x16xf32>
    %cst_271 = arith.constant dense<0.000000e+00> : vector<16x8xf32>
    %776 = tpu.matmul %775, %763, %cst_271 {dimension_numbers = #tpu.dot_dimension_numbers<[1], [0], [0], [1], [0, 0, 1, 1], [], []>} : vector<16x16xf32>, vector<16x8xf32>, vector<16x8xf32> -> vector<16x8xf32>
    %c37 = arith.constant 37 : index
    %c0_272 = arith.constant 0 : index
    %c0_273 = arith.constant 0 : index
    %777 = vector.load %arg3[%c37, %c0_272, %c0_273] : memref<60x33x8xf32, #tpu.memory_space<vmem>>, vector<1x33x8xf32>
    %778 = vector.shape_cast %777 : vector<1x33x8xf32> to vector<33x8xf32>
    %c41 = arith.constant 41 : index
    %c0_274 = arith.constant 0 : index
    %c0_275 = arith.constant 0 : index
    %779 = vector.load %arg3[%c41, %c0_274, %c0_275] : memref<60x33x8xf32, #tpu.memory_space<vmem>>, vector<1x33x8xf32>
    %780 = vector.shape_cast %779 : vector<1x33x8xf32> to vector<33x8xf32>
    %c45 = arith.constant 45 : index
    %c0_276 = arith.constant 0 : index
    %c0_277 = arith.constant 0 : index
    %781 = vector.load %arg3[%c45, %c0_276, %c0_277] : memref<60x33x8xf32, #tpu.memory_space<vmem>>, vector<1x33x8xf32>
    %782 = vector.shape_cast %781 : vector<1x33x8xf32> to vector<33x8xf32>
    %783 = vector.extract_strided_slice %778 {offsets = [0, 0], sizes = [32, 8], strides = [1, 1]} : vector<33x8xf32> to vector<32x8xf32>
    %cst_278 = arith.constant dense<0.000000e+00> : vector<16x8xf32>
    %784 = tpu.matmul %488, %783, %cst_278 {dimension_numbers = #tpu.dot_dimension_numbers<[1], [0], [0], [1], [0, 0, 1, 1], [], []>} : vector<16x32xf32>, vector<32x8xf32>, vector<16x8xf32> -> vector<16x8xf32>
    %785 = vector.extract_strided_slice %778 {offsets = [32, 0], sizes = [1, 8], strides = [1, 1]} : vector<33x8xf32> to vector<1x8xf32>
    %786 = vector.broadcast %785 : vector<1x8xf32> to vector<16x8xf32>
    %787 = arith.addf %784, %786 : vector<16x8xf32>
    %788 = vector.extract_strided_slice %780 {offsets = [0, 0], sizes = [32, 8], strides = [1, 1]} : vector<33x8xf32> to vector<32x8xf32>
    %cst_279 = arith.constant dense<0.000000e+00> : vector<16x8xf32>
    %789 = tpu.matmul %488, %788, %cst_279 {dimension_numbers = #tpu.dot_dimension_numbers<[1], [0], [0], [1], [0, 0, 1, 1], [], []>} : vector<16x32xf32>, vector<32x8xf32>, vector<16x8xf32> -> vector<16x8xf32>
    %790 = vector.extract_strided_slice %780 {offsets = [32, 0], sizes = [1, 8], strides = [1, 1]} : vector<33x8xf32> to vector<1x8xf32>
    %791 = vector.broadcast %790 : vector<1x8xf32> to vector<16x8xf32>
    %792 = arith.addf %789, %791 : vector<16x8xf32>
    %793 = vector.extract_strided_slice %782 {offsets = [0, 0], sizes = [32, 8], strides = [1, 1]} : vector<33x8xf32> to vector<32x8xf32>
    %cst_280 = arith.constant dense<0.000000e+00> : vector<16x8xf32>
    %794 = tpu.matmul %488, %793, %cst_280 {dimension_numbers = #tpu.dot_dimension_numbers<[1], [0], [0], [1], [0, 0, 1, 1], [], []>} : vector<16x32xf32>, vector<32x8xf32>, vector<16x8xf32> -> vector<16x8xf32>
    %795 = vector.extract_strided_slice %782 {offsets = [32, 0], sizes = [1, 8], strides = [1, 1]} : vector<33x8xf32> to vector<1x8xf32>
    %796 = vector.broadcast %795 : vector<1x8xf32> to vector<16x8xf32>
    %797 = arith.addf %794, %796 : vector<16x8xf32>
    %cst_281 = arith.constant dense<0.000000e+00> : vector<16x16xf32>
    %798 = tpu.matmul %787, %792, %cst_281 {dimension_numbers = #tpu.dot_dimension_numbers<[1], [1], [0], [0], [0, 0, 1, 0], [], []>} : vector<16x8xf32>, vector<16x8xf32>, vector<16x16xf32> -> vector<16x16xf32>
    %799 = arith.addf %798, %15 : vector<16x16xf32>
    %cst_282 = arith.constant dense<0xFF800000> : vector<16xf32>
    %800 = vector.multi_reduction <maximumf>, %799, %cst_282 [1] : vector<16x16xf32> to vector<16xf32>
    %801 = vector.shape_cast %800 : vector<16xf32> to vector<16x1xf32>
    %802 = vector.broadcast %801 : vector<16x1xf32> to vector<16x16xf32>
    %803 = arith.subf %799, %802 : vector<16x16xf32>
    %804 = math.exp %803 : vector<16x16xf32>
    %cst_283 = arith.constant dense<0.000000e+00> : vector<16xf32>
    %805 = vector.multi_reduction <add>, %804, %cst_283 [1] : vector<16x16xf32> to vector<16xf32>
    %806 = vector.shape_cast %805 : vector<16xf32> to vector<16x1xf32>
    %807 = tpu.reciprocal %806 {approx = true} : vector<16x1xf32> -> vector<16x1xf32>
    %808 = vector.broadcast %807 : vector<16x1xf32> to vector<16x16xf32>
    %809 = arith.mulf %804, %808 : vector<16x16xf32>
    %cst_284 = arith.constant dense<0.000000e+00> : vector<16x8xf32>
    %810 = tpu.matmul %809, %797, %cst_284 {dimension_numbers = #tpu.dot_dimension_numbers<[1], [0], [0], [1], [0, 0, 1, 1], [], []>} : vector<16x16xf32>, vector<16x8xf32>, vector<16x8xf32> -> vector<16x8xf32>
    %c38 = arith.constant 38 : index
    %c0_285 = arith.constant 0 : index
    %c0_286 = arith.constant 0 : index
    %811 = vector.load %arg3[%c38, %c0_285, %c0_286] : memref<60x33x8xf32, #tpu.memory_space<vmem>>, vector<1x33x8xf32>
    %812 = vector.shape_cast %811 : vector<1x33x8xf32> to vector<33x8xf32>
    %c42 = arith.constant 42 : index
    %c0_287 = arith.constant 0 : index
    %c0_288 = arith.constant 0 : index
    %813 = vector.load %arg3[%c42, %c0_287, %c0_288] : memref<60x33x8xf32, #tpu.memory_space<vmem>>, vector<1x33x8xf32>
    %814 = vector.shape_cast %813 : vector<1x33x8xf32> to vector<33x8xf32>
    %c46 = arith.constant 46 : index
    %c0_289 = arith.constant 0 : index
    %c0_290 = arith.constant 0 : index
    %815 = vector.load %arg3[%c46, %c0_289, %c0_290] : memref<60x33x8xf32, #tpu.memory_space<vmem>>, vector<1x33x8xf32>
    %816 = vector.shape_cast %815 : vector<1x33x8xf32> to vector<33x8xf32>
    %817 = vector.extract_strided_slice %812 {offsets = [0, 0], sizes = [32, 8], strides = [1, 1]} : vector<33x8xf32> to vector<32x8xf32>
    %cst_291 = arith.constant dense<0.000000e+00> : vector<16x8xf32>
    %818 = tpu.matmul %488, %817, %cst_291 {dimension_numbers = #tpu.dot_dimension_numbers<[1], [0], [0], [1], [0, 0, 1, 1], [], []>} : vector<16x32xf32>, vector<32x8xf32>, vector<16x8xf32> -> vector<16x8xf32>
    %819 = vector.extract_strided_slice %812 {offsets = [32, 0], sizes = [1, 8], strides = [1, 1]} : vector<33x8xf32> to vector<1x8xf32>
    %820 = vector.broadcast %819 : vector<1x8xf32> to vector<16x8xf32>
    %821 = arith.addf %818, %820 : vector<16x8xf32>
    %822 = vector.extract_strided_slice %814 {offsets = [0, 0], sizes = [32, 8], strides = [1, 1]} : vector<33x8xf32> to vector<32x8xf32>
    %cst_292 = arith.constant dense<0.000000e+00> : vector<16x8xf32>
    %823 = tpu.matmul %488, %822, %cst_292 {dimension_numbers = #tpu.dot_dimension_numbers<[1], [0], [0], [1], [0, 0, 1, 1], [], []>} : vector<16x32xf32>, vector<32x8xf32>, vector<16x8xf32> -> vector<16x8xf32>
    %824 = vector.extract_strided_slice %814 {offsets = [32, 0], sizes = [1, 8], strides = [1, 1]} : vector<33x8xf32> to vector<1x8xf32>
    %825 = vector.broadcast %824 : vector<1x8xf32> to vector<16x8xf32>
    %826 = arith.addf %823, %825 : vector<16x8xf32>
    %827 = vector.extract_strided_slice %816 {offsets = [0, 0], sizes = [32, 8], strides = [1, 1]} : vector<33x8xf32> to vector<32x8xf32>
    %cst_293 = arith.constant dense<0.000000e+00> : vector<16x8xf32>
    %828 = tpu.matmul %488, %827, %cst_293 {dimension_numbers = #tpu.dot_dimension_numbers<[1], [0], [0], [1], [0, 0, 1, 1], [], []>} : vector<16x32xf32>, vector<32x8xf32>, vector<16x8xf32> -> vector<16x8xf32>
    %829 = vector.extract_strided_slice %816 {offsets = [32, 0], sizes = [1, 8], strides = [1, 1]} : vector<33x8xf32> to vector<1x8xf32>
    %830 = vector.broadcast %829 : vector<1x8xf32> to vector<16x8xf32>
    %831 = arith.addf %828, %830 : vector<16x8xf32>
    %cst_294 = arith.constant dense<0.000000e+00> : vector<16x16xf32>
    %832 = tpu.matmul %821, %826, %cst_294 {dimension_numbers = #tpu.dot_dimension_numbers<[1], [1], [0], [0], [0, 0, 1, 0], [], []>} : vector<16x8xf32>, vector<16x8xf32>, vector<16x16xf32> -> vector<16x16xf32>
    %833 = arith.addf %832, %15 : vector<16x16xf32>
    %cst_295 = arith.constant dense<0xFF800000> : vector<16xf32>
    %834 = vector.multi_reduction <maximumf>, %833, %cst_295 [1] : vector<16x16xf32> to vector<16xf32>
    %835 = vector.shape_cast %834 : vector<16xf32> to vector<16x1xf32>
    %836 = vector.broadcast %835 : vector<16x1xf32> to vector<16x16xf32>
    %837 = arith.subf %833, %836 : vector<16x16xf32>
    %838 = math.exp %837 : vector<16x16xf32>
    %cst_296 = arith.constant dense<0.000000e+00> : vector<16xf32>
    %839 = vector.multi_reduction <add>, %838, %cst_296 [1] : vector<16x16xf32> to vector<16xf32>
    %840 = vector.shape_cast %839 : vector<16xf32> to vector<16x1xf32>
    %841 = tpu.reciprocal %840 {approx = true} : vector<16x1xf32> -> vector<16x1xf32>
    %842 = vector.broadcast %841 : vector<16x1xf32> to vector<16x16xf32>
    %843 = arith.mulf %838, %842 : vector<16x16xf32>
    %cst_297 = arith.constant dense<0.000000e+00> : vector<16x8xf32>
    %844 = tpu.matmul %843, %831, %cst_297 {dimension_numbers = #tpu.dot_dimension_numbers<[1], [0], [0], [1], [0, 0, 1, 1], [], []>} : vector<16x16xf32>, vector<16x8xf32>, vector<16x8xf32> -> vector<16x8xf32>
    %c39 = arith.constant 39 : index
    %c0_298 = arith.constant 0 : index
    %c0_299 = arith.constant 0 : index
    %845 = vector.load %arg3[%c39, %c0_298, %c0_299] : memref<60x33x8xf32, #tpu.memory_space<vmem>>, vector<1x33x8xf32>
    %846 = vector.shape_cast %845 : vector<1x33x8xf32> to vector<33x8xf32>
    %c43 = arith.constant 43 : index
    %c0_300 = arith.constant 0 : index
    %c0_301 = arith.constant 0 : index
    %847 = vector.load %arg3[%c43, %c0_300, %c0_301] : memref<60x33x8xf32, #tpu.memory_space<vmem>>, vector<1x33x8xf32>
    %848 = vector.shape_cast %847 : vector<1x33x8xf32> to vector<33x8xf32>
    %c47 = arith.constant 47 : index
    %c0_302 = arith.constant 0 : index
    %c0_303 = arith.constant 0 : index
    %849 = vector.load %arg3[%c47, %c0_302, %c0_303] : memref<60x33x8xf32, #tpu.memory_space<vmem>>, vector<1x33x8xf32>
    %850 = vector.shape_cast %849 : vector<1x33x8xf32> to vector<33x8xf32>
    %851 = vector.extract_strided_slice %846 {offsets = [0, 0], sizes = [32, 8], strides = [1, 1]} : vector<33x8xf32> to vector<32x8xf32>
    %cst_304 = arith.constant dense<0.000000e+00> : vector<16x8xf32>
    %852 = tpu.matmul %488, %851, %cst_304 {dimension_numbers = #tpu.dot_dimension_numbers<[1], [0], [0], [1], [0, 0, 1, 1], [], []>} : vector<16x32xf32>, vector<32x8xf32>, vector<16x8xf32> -> vector<16x8xf32>
    %853 = vector.extract_strided_slice %846 {offsets = [32, 0], sizes = [1, 8], strides = [1, 1]} : vector<33x8xf32> to vector<1x8xf32>
    %854 = vector.broadcast %853 : vector<1x8xf32> to vector<16x8xf32>
    %855 = arith.addf %852, %854 : vector<16x8xf32>
    %856 = vector.extract_strided_slice %848 {offsets = [0, 0], sizes = [32, 8], strides = [1, 1]} : vector<33x8xf32> to vector<32x8xf32>
    %cst_305 = arith.constant dense<0.000000e+00> : vector<16x8xf32>
    %857 = tpu.matmul %488, %856, %cst_305 {dimension_numbers = #tpu.dot_dimension_numbers<[1], [0], [0], [1], [0, 0, 1, 1], [], []>} : vector<16x32xf32>, vector<32x8xf32>, vector<16x8xf32> -> vector<16x8xf32>
    %858 = vector.extract_strided_slice %848 {offsets = [32, 0], sizes = [1, 8], strides = [1, 1]} : vector<33x8xf32> to vector<1x8xf32>
    %859 = vector.broadcast %858 : vector<1x8xf32> to vector<16x8xf32>
    %860 = arith.addf %857, %859 : vector<16x8xf32>
    %861 = vector.extract_strided_slice %850 {offsets = [0, 0], sizes = [32, 8], strides = [1, 1]} : vector<33x8xf32> to vector<32x8xf32>
    %cst_306 = arith.constant dense<0.000000e+00> : vector<16x8xf32>
    %862 = tpu.matmul %488, %861, %cst_306 {dimension_numbers = #tpu.dot_dimension_numbers<[1], [0], [0], [1], [0, 0, 1, 1], [], []>} : vector<16x32xf32>, vector<32x8xf32>, vector<16x8xf32> -> vector<16x8xf32>
    %863 = vector.extract_strided_slice %850 {offsets = [32, 0], sizes = [1, 8], strides = [1, 1]} : vector<33x8xf32> to vector<1x8xf32>
    %864 = vector.broadcast %863 : vector<1x8xf32> to vector<16x8xf32>
    %865 = arith.addf %862, %864 : vector<16x8xf32>
    %cst_307 = arith.constant dense<0.000000e+00> : vector<16x16xf32>
    %866 = tpu.matmul %855, %860, %cst_307 {dimension_numbers = #tpu.dot_dimension_numbers<[1], [1], [0], [0], [0, 0, 1, 0], [], []>} : vector<16x8xf32>, vector<16x8xf32>, vector<16x16xf32> -> vector<16x16xf32>
    %867 = arith.addf %866, %15 : vector<16x16xf32>
    %cst_308 = arith.constant dense<0xFF800000> : vector<16xf32>
    %868 = vector.multi_reduction <maximumf>, %867, %cst_308 [1] : vector<16x16xf32> to vector<16xf32>
    %869 = vector.shape_cast %868 : vector<16xf32> to vector<16x1xf32>
    %870 = vector.broadcast %869 : vector<16x1xf32> to vector<16x16xf32>
    %871 = arith.subf %867, %870 : vector<16x16xf32>
    %872 = math.exp %871 : vector<16x16xf32>
    %cst_309 = arith.constant dense<0.000000e+00> : vector<16xf32>
    %873 = vector.multi_reduction <add>, %872, %cst_309 [1] : vector<16x16xf32> to vector<16xf32>
    %874 = vector.shape_cast %873 : vector<16xf32> to vector<16x1xf32>
    %875 = tpu.reciprocal %874 {approx = true} : vector<16x1xf32> -> vector<16x1xf32>
    %876 = vector.broadcast %875 : vector<16x1xf32> to vector<16x16xf32>
    %877 = arith.mulf %872, %876 : vector<16x16xf32>
    %cst_310 = arith.constant dense<0.000000e+00> : vector<16x8xf32>
    %878 = tpu.matmul %877, %865, %cst_310 {dimension_numbers = #tpu.dot_dimension_numbers<[1], [0], [0], [1], [0, 0, 1, 1], [], []>} : vector<16x16xf32>, vector<16x8xf32>, vector<16x8xf32> -> vector<16x8xf32>
    %879 = tpu.concatenate %776, %810, %844, %878 in 1 : vector<16x8xf32>, vector<16x8xf32>, vector<16x8xf32>, vector<16x8xf32> -> vector<16x32xf32>
    %c3_311 = arith.constant 3 : index
    %c0_312 = arith.constant 0 : index
    %c0_313 = arith.constant 0 : index
    %880 = vector.load %arg4[%c3_311, %c0_312, %c0_313] : memref<5x104x32xf32, #tpu.memory_space<vmem>>, vector<1x104x32xf32>
    %881 = vector.shape_cast %880 : vector<1x104x32xf32> to vector<104x32xf32>
    %c3_314 = arith.constant 3 : index
    %c0_315 = arith.constant 0 : index
    %c0_316 = arith.constant 0 : index
    %882 = vector.load %arg5[%c3_314, %c0_315, %c0_316] : memref<5x33x64xf32, #tpu.memory_space<vmem>>, vector<1x33x64xf32>
    %883 = vector.shape_cast %882 : vector<1x33x64xf32> to vector<33x64xf32>
    %884 = vector.extract_strided_slice %881 {offsets = [0, 0], sizes = [32, 32], strides = [1, 1]} : vector<104x32xf32> to vector<32x32xf32>
    %cst_317 = arith.constant dense<0.000000e+00> : vector<16x32xf32>
    %885 = tpu.matmul %879, %884, %cst_317 {dimension_numbers = #tpu.dot_dimension_numbers<[1], [0], [0], [1], [0, 0, 1, 1], [], []>} : vector<16x32xf32>, vector<32x32xf32>, vector<16x32xf32> -> vector<16x32xf32>
    %886 = vector.extract_strided_slice %881 {offsets = [96, 0], sizes = [1, 32], strides = [1, 1]} : vector<104x32xf32> to vector<1x32xf32>
    %887 = vector.broadcast %886 : vector<1x32xf32> to vector<16x32xf32>
    %888 = arith.addf %885, %887 : vector<16x32xf32>
    %889 = arith.addf %888, %488 : vector<16x32xf32>
    %890 = vector.extract_strided_slice %881 {offsets = [97, 0], sizes = [1, 32], strides = [1, 1]} : vector<104x32xf32> to vector<1x32xf32>
    %891 = vector.extract_strided_slice %881 {offsets = [98, 0], sizes = [1, 32], strides = [1, 1]} : vector<104x32xf32> to vector<1x32xf32>
    %cst_318 = arith.constant dense<0.000000e+00> : vector<16xf32>
    %892 = vector.multi_reduction <add>, %889, %cst_318 [1] : vector<16x32xf32> to vector<16xf32>
    %893 = vector.shape_cast %892 : vector<16xf32> to vector<16x1xf32>
    %cst_319 = arith.constant 3.200000e+01 : f32
    %894 = vector.broadcast %cst_319 : f32 to vector<16x1xf32>
    %895 = arith.divf %893, %894 : vector<16x1xf32>
    %896 = vector.broadcast %895 : vector<16x1xf32> to vector<16x32xf32>
    %897 = arith.subf %889, %896 : vector<16x32xf32>
    %898 = arith.mulf %897, %897 : vector<16x32xf32>
    %cst_320 = arith.constant dense<0.000000e+00> : vector<16xf32>
    %899 = vector.multi_reduction <add>, %898, %cst_320 [1] : vector<16x32xf32> to vector<16xf32>
    %900 = vector.shape_cast %899 : vector<16xf32> to vector<16x1xf32>
    %cst_321 = arith.constant 3.200000e+01 : f32
    %901 = vector.broadcast %cst_321 : f32 to vector<16x1xf32>
    %902 = arith.divf %900, %901 : vector<16x1xf32>
    %903 = vector.broadcast %895 : vector<16x1xf32> to vector<16x32xf32>
    %904 = arith.subf %889, %903 : vector<16x32xf32>
    %cst_322 = arith.constant 9.99999974E-6 : f32
    %905 = vector.broadcast %cst_322 : f32 to vector<16x1xf32>
    %906 = arith.addf %902, %905 : vector<16x1xf32>
    %907 = math.rsqrt %906 : vector<16x1xf32>
    %908 = vector.broadcast %907 : vector<16x1xf32> to vector<16x32xf32>
    %909 = arith.mulf %904, %908 : vector<16x32xf32>
    %910 = vector.broadcast %890 : vector<1x32xf32> to vector<16x32xf32>
    %911 = arith.mulf %909, %910 : vector<16x32xf32>
    %912 = vector.broadcast %891 : vector<1x32xf32> to vector<16x32xf32>
    %913 = arith.addf %911, %912 : vector<16x32xf32>
    %914 = vector.extract_strided_slice %883 {offsets = [0, 0], sizes = [32, 64], strides = [1, 1]} : vector<33x64xf32> to vector<32x64xf32>
    %cst_323 = arith.constant dense<0.000000e+00> : vector<16x64xf32>
    %915 = tpu.matmul %913, %914, %cst_323 {dimension_numbers = #tpu.dot_dimension_numbers<[1], [0], [0], [1], [0, 0, 1, 1], [], []>} : vector<16x32xf32>, vector<32x64xf32>, vector<16x64xf32> -> vector<16x64xf32>
    %916 = vector.extract_strided_slice %883 {offsets = [32, 0], sizes = [1, 64], strides = [1, 1]} : vector<33x64xf32> to vector<1x64xf32>
    %917 = vector.broadcast %916 : vector<1x64xf32> to vector<16x64xf32>
    %918 = arith.addf %915, %917 : vector<16x64xf32>
    %cst_324 = arith.constant 5.000000e-01 : f32
    %919 = vector.broadcast %cst_324 : f32 to vector<16x64xf32>
    %920 = arith.mulf %919, %918 : vector<16x64xf32>
    %cst_325 = arith.constant 4.471500e-02 : f32
    %921 = vector.broadcast %cst_325 : f32 to vector<16x64xf32>
    %922 = arith.mulf %921, %918 : vector<16x64xf32>
    %923 = arith.mulf %922, %918 : vector<16x64xf32>
    %924 = arith.mulf %923, %918 : vector<16x64xf32>
    %925 = arith.addf %918, %924 : vector<16x64xf32>
    %cst_326 = arith.constant 0.797884583 : f32
    %926 = vector.broadcast %cst_326 : f32 to vector<16x64xf32>
    %927 = arith.mulf %926, %925 : vector<16x64xf32>
    %928 = math.tanh %927 : vector<16x64xf32>
    %cst_327 = arith.constant 1.000000e+00 : f32
    %929 = vector.broadcast %cst_327 : f32 to vector<16x64xf32>
    %930 = arith.addf %929, %928 : vector<16x64xf32>
    %931 = arith.mulf %920, %930 : vector<16x64xf32>
    %932 = vector.extract_strided_slice %881 {offsets = [32, 0], sizes = [64, 32], strides = [1, 1]} : vector<104x32xf32> to vector<64x32xf32>
    %cst_328 = arith.constant dense<0.000000e+00> : vector<16x32xf32>
    %933 = tpu.matmul %931, %932, %cst_328 {dimension_numbers = #tpu.dot_dimension_numbers<[1], [0], [0], [1], [0, 0, 1, 1], [], []>} : vector<16x64xf32>, vector<64x32xf32>, vector<16x32xf32> -> vector<16x32xf32>
    %934 = vector.extract_strided_slice %881 {offsets = [99, 0], sizes = [1, 32], strides = [1, 1]} : vector<104x32xf32> to vector<1x32xf32>
    %935 = vector.broadcast %934 : vector<1x32xf32> to vector<16x32xf32>
    %936 = arith.addf %933, %935 : vector<16x32xf32>
    %937 = arith.addf %936, %913 : vector<16x32xf32>
    %938 = vector.extract_strided_slice %881 {offsets = [100, 0], sizes = [1, 32], strides = [1, 1]} : vector<104x32xf32> to vector<1x32xf32>
    %939 = vector.extract_strided_slice %881 {offsets = [101, 0], sizes = [1, 32], strides = [1, 1]} : vector<104x32xf32> to vector<1x32xf32>
    %cst_329 = arith.constant dense<0.000000e+00> : vector<16xf32>
    %940 = vector.multi_reduction <add>, %937, %cst_329 [1] : vector<16x32xf32> to vector<16xf32>
    %941 = vector.shape_cast %940 : vector<16xf32> to vector<16x1xf32>
    %cst_330 = arith.constant 3.200000e+01 : f32
    %942 = vector.broadcast %cst_330 : f32 to vector<16x1xf32>
    %943 = arith.divf %941, %942 : vector<16x1xf32>
    %944 = vector.broadcast %943 : vector<16x1xf32> to vector<16x32xf32>
    %945 = arith.subf %937, %944 : vector<16x32xf32>
    %946 = arith.mulf %945, %945 : vector<16x32xf32>
    %cst_331 = arith.constant dense<0.000000e+00> : vector<16xf32>
    %947 = vector.multi_reduction <add>, %946, %cst_331 [1] : vector<16x32xf32> to vector<16xf32>
    %948 = vector.shape_cast %947 : vector<16xf32> to vector<16x1xf32>
    %cst_332 = arith.constant 3.200000e+01 : f32
    %949 = vector.broadcast %cst_332 : f32 to vector<16x1xf32>
    %950 = arith.divf %948, %949 : vector<16x1xf32>
    %951 = vector.broadcast %943 : vector<16x1xf32> to vector<16x32xf32>
    %952 = arith.subf %937, %951 : vector<16x32xf32>
    %cst_333 = arith.constant 9.99999974E-6 : f32
    %953 = vector.broadcast %cst_333 : f32 to vector<16x1xf32>
    %954 = arith.addf %950, %953 : vector<16x1xf32>
    %955 = math.rsqrt %954 : vector<16x1xf32>
    %956 = vector.broadcast %955 : vector<16x1xf32> to vector<16x32xf32>
    %957 = arith.mulf %952, %956 : vector<16x32xf32>
    %958 = vector.broadcast %938 : vector<1x32xf32> to vector<16x32xf32>
    %959 = arith.mulf %957, %958 : vector<16x32xf32>
    %960 = vector.broadcast %939 : vector<1x32xf32> to vector<16x32xf32>
    %961 = arith.addf %959, %960 : vector<16x32xf32>
    %cst_334 = arith.constant dense<0.000000e+00> : vector<2x32xf32>
    %962 = tpu.matmul %23, %961, %cst_334 {dimension_numbers = #tpu.dot_dimension_numbers<[1], [0], [0], [1], [0, 0, 1, 1], [], []>} : vector<2x16xf32>, vector<16x32xf32>, vector<2x32xf32> -> vector<2x32xf32>
    %c1_335 = arith.constant 1 : index
    %c0_336 = arith.constant 0 : index
    %c0_337 = arith.constant 0 : index
    %963 = vector.load %arg6[%c1_335, %c0_336, %c0_337] : memref<3x33x32xf32, #tpu.memory_space<vmem>>, vector<1x33x32xf32>
    %964 = vector.shape_cast %963 : vector<1x33x32xf32> to vector<33x32xf32>
    %965 = vector.extract_strided_slice %964 {offsets = [0, 0], sizes = [32, 32], strides = [1, 1]} : vector<33x32xf32> to vector<32x32xf32>
    %cst_338 = arith.constant dense<0.000000e+00> : vector<2x32xf32>
    %966 = tpu.matmul %962, %965, %cst_338 {dimension_numbers = #tpu.dot_dimension_numbers<[1], [0], [0], [1], [0, 0, 1, 1], [], []>} : vector<2x32xf32>, vector<32x32xf32>, vector<2x32xf32> -> vector<2x32xf32>
    %967 = vector.extract_strided_slice %964 {offsets = [32, 0], sizes = [1, 32], strides = [1, 1]} : vector<33x32xf32> to vector<1x32xf32>
    %968 = vector.broadcast %967 : vector<1x32xf32> to vector<2x32xf32>
    %969 = arith.addf %966, %968 : vector<2x32xf32>
    %970 = math.tanh %969 : vector<2x32xf32>
    %c0_339 = arith.constant 0 : index
    %c0_340 = arith.constant 0 : index
    %c0_341 = arith.constant 0 : index
    %971 = vector.load %arg8[%c0_339, %c0_340, %c0_341] : memref<2x33x3xf32, #tpu.memory_space<vmem>>, vector<1x33x3xf32>
    %972 = vector.shape_cast %971 : vector<1x33x3xf32> to vector<33x3xf32>
    %973 = vector.extract_strided_slice %972 {offsets = [0, 0], sizes = [32, 3], strides = [1, 1]} : vector<33x3xf32> to vector<32x3xf32>
    %cst_342 = arith.constant dense<0.000000e+00> : vector<2x3xf32>
    %974 = tpu.matmul %970, %973, %cst_342 {dimension_numbers = #tpu.dot_dimension_numbers<[1], [0], [0], [1], [0, 0, 1, 1], [], []>} : vector<2x32xf32>, vector<32x3xf32>, vector<2x3xf32> -> vector<2x3xf32>
    %975 = vector.extract_strided_slice %972 {offsets = [32, 0], sizes = [1, 3], strides = [1, 1]} : vector<33x3xf32> to vector<1x3xf32>
    %976 = vector.broadcast %975 : vector<1x3xf32> to vector<2x3xf32>
    %977 = arith.addf %974, %976 : vector<2x3xf32>
    %c0_343 = arith.constant 0 : index
    %c0_344 = arith.constant 0 : index
    %c0_345 = arith.constant 0 : index
    %978 = vector.load %arg9[%c0_343, %c0_344, %c0_345] : memref<2x2x3xf32, #tpu.memory_space<vmem>>, vector<1x2x3xf32>
    %979 = vector.shape_cast %978 : vector<1x2x3xf32> to vector<2x3xf32>
    %980 = vector.shape_cast %977 : vector<2x3xf32> to vector<1x2x3xf32>
    tpu.vector_store %arg9[%c0_343, %c0_344, %c0_345], %980 {strides = array<i32>} : memref<2x2x3xf32, #tpu.memory_space<vmem>>, vector<1x2x3xf32>,
    %cst_346 = arith.constant dense<0xFF800000> : vector<2xf32>
    %981 = vector.multi_reduction <maximumf>, %977, %cst_346 [1] : vector<2x3xf32> to vector<2xf32>
    %982 = vector.shape_cast %981 : vector<2xf32> to vector<2x1xf32>
    %983 = vector.broadcast %982 : vector<2x1xf32> to vector<2x3xf32>
    %984 = arith.subf %977, %983 : vector<2x3xf32>
    %985 = math.exp %984 : vector<2x3xf32>
    %cst_347 = arith.constant dense<0.000000e+00> : vector<2xf32>
    %986 = vector.multi_reduction <add>, %985, %cst_347 [1] : vector<2x3xf32> to vector<2xf32>
    %987 = vector.shape_cast %986 : vector<2xf32> to vector<2x1xf32>
    %988 = vector.extract_strided_slice %733 {offsets = [0, 0], sizes = [2, 1], strides = [1, 1]} : vector<2x2xf32> to vector<2x1xf32>
    %989 = tpu.reciprocal %987 {approx = true} : vector<2x1xf32> -> vector<2x1xf32>
    %990 = vector.broadcast %989 : vector<2x1xf32> to vector<2x3xf32>
    %991 = arith.mulf %985, %990 : vector<2x3xf32>
    %992 = vector.broadcast %988 : vector<2x1xf32> to vector<2x3xf32>
    %993 = arith.mulf %992, %991 : vector<2x3xf32>
    %994 = arith.addf %741, %993 : vector<2x3xf32>
    %995 = math.log %987 : vector<2x1xf32>
    %996 = arith.addf %995, %982 : vector<2x1xf32>
    %997 = arith.mulf %977, %740 : vector<2x3xf32>
    %cst_348 = arith.constant dense<0.000000e+00> : vector<2xf32>
    %998 = vector.multi_reduction <add>, %997, %cst_348 [1] : vector<2x3xf32> to vector<2xf32>
    %999 = vector.shape_cast %998 : vector<2xf32> to vector<2x1xf32>
    %1000 = arith.subf %996, %999 : vector<2x1xf32>
    %1001 = arith.mulf %988, %1000 : vector<2x1xf32>
    %1002 = arith.addf %742, %1001 : vector<2x1xf32>
    %c48 = arith.constant 48 : index
    %c0_349 = arith.constant 0 : index
    %c0_350 = arith.constant 0 : index
    %1003 = vector.load %arg3[%c48, %c0_349, %c0_350] : memref<60x33x8xf32, #tpu.memory_space<vmem>>, vector<1x33x8xf32>
    %1004 = vector.shape_cast %1003 : vector<1x33x8xf32> to vector<33x8xf32>
    %c52 = arith.constant 52 : index
    %c0_351 = arith.constant 0 : index
    %c0_352 = arith.constant 0 : index
    %1005 = vector.load %arg3[%c52, %c0_351, %c0_352] : memref<60x33x8xf32, #tpu.memory_space<vmem>>, vector<1x33x8xf32>
    %1006 = vector.shape_cast %1005 : vector<1x33x8xf32> to vector<33x8xf32>
    %c56 = arith.constant 56 : index
    %c0_353 = arith.constant 0 : index
    %c0_354 = arith.constant 0 : index
    %1007 = vector.load %arg3[%c56, %c0_353, %c0_354] : memref<60x33x8xf32, #tpu.memory_space<vmem>>, vector<1x33x8xf32>
    %1008 = vector.shape_cast %1007 : vector<1x33x8xf32> to vector<33x8xf32>
    %1009 = vector.extract_strided_slice %1004 {offsets = [0, 0], sizes = [32, 8], strides = [1, 1]} : vector<33x8xf32> to vector<32x8xf32>
    %cst_355 = arith.constant dense<0.000000e+00> : vector<16x8xf32>
    %1010 = tpu.matmul %488, %1009, %cst_355 {dimension_numbers = #tpu.dot_dimension_numbers<[1], [0], [0], [1], [0, 0, 1, 1], [], []>} : vector<16x32xf32>, vector<32x8xf32>, vector<16x8xf32> -> vector<16x8xf32>
    %1011 = vector.extract_strided_slice %1004 {offsets = [32, 0], sizes = [1, 8], strides = [1, 1]} : vector<33x8xf32> to vector<1x8xf32>
    %1012 = vector.broadcast %1011 : vector<1x8xf32> to vector<16x8xf32>
    %1013 = arith.addf %1010, %1012 : vector<16x8xf32>
    %1014 = vector.extract_strided_slice %1006 {offsets = [0, 0], sizes = [32, 8], strides = [1, 1]} : vector<33x8xf32> to vector<32x8xf32>
    %cst_356 = arith.constant dense<0.000000e+00> : vector<16x8xf32>
    %1015 = tpu.matmul %488, %1014, %cst_356 {dimension_numbers = #tpu.dot_dimension_numbers<[1], [0], [0], [1], [0, 0, 1, 1], [], []>} : vector<16x32xf32>, vector<32x8xf32>, vector<16x8xf32> -> vector<16x8xf32>
    %1016 = vector.extract_strided_slice %1006 {offsets = [32, 0], sizes = [1, 8], strides = [1, 1]} : vector<33x8xf32> to vector<1x8xf32>
    %1017 = vector.broadcast %1016 : vector<1x8xf32> to vector<16x8xf32>
    %1018 = arith.addf %1015, %1017 : vector<16x8xf32>
    %1019 = vector.extract_strided_slice %1008 {offsets = [0, 0], sizes = [32, 8], strides = [1, 1]} : vector<33x8xf32> to vector<32x8xf32>
    %cst_357 = arith.constant dense<0.000000e+00> : vector<16x8xf32>
    %1020 = tpu.matmul %488, %1019, %cst_357 {dimension_numbers = #tpu.dot_dimension_numbers<[1], [0], [0], [1], [0, 0, 1, 1], [], []>} : vector<16x32xf32>, vector<32x8xf32>, vector<16x8xf32> -> vector<16x8xf32>
    %1021 = vector.extract_strided_slice %1008 {offsets = [32, 0], sizes = [1, 8], strides = [1, 1]} : vector<33x8xf32> to vector<1x8xf32>
    %1022 = vector.broadcast %1021 : vector<1x8xf32> to vector<16x8xf32>
    %1023 = arith.addf %1020, %1022 : vector<16x8xf32>
    %cst_358 = arith.constant dense<0.000000e+00> : vector<16x16xf32>
    %1024 = tpu.matmul %1013, %1018, %cst_358 {dimension_numbers = #tpu.dot_dimension_numbers<[1], [1], [0], [0], [0, 0, 1, 0], [], []>} : vector<16x8xf32>, vector<16x8xf32>, vector<16x16xf32> -> vector<16x16xf32>
    %1025 = arith.addf %1024, %15 : vector<16x16xf32>
    %cst_359 = arith.constant dense<0xFF800000> : vector<16xf32>
    %1026 = vector.multi_reduction <maximumf>, %1025, %cst_359 [1] : vector<16x16xf32> to vector<16xf32>
    %1027 = vector.shape_cast %1026 : vector<16xf32> to vector<16x1xf32>
    %1028 = vector.broadcast %1027 : vector<16x1xf32> to vector<16x16xf32>
    %1029 = arith.subf %1025, %1028 : vector<16x16xf32>
    %1030 = math.exp %1029 : vector<16x16xf32>
    %cst_360 = arith.constant dense<0.000000e+00> : vector<16xf32>
    %1031 = vector.multi_reduction <add>, %1030, %cst_360 [1] : vector<16x16xf32> to vector<16xf32>
    %1032 = vector.shape_cast %1031 : vector<16xf32> to vector<16x1xf32>
    %1033 = tpu.reciprocal %1032 {approx = true} : vector<16x1xf32> -> vector<16x1xf32>
    %1034 = vector.broadcast %1033 : vector<16x1xf32> to vector<16x16xf32>
    %1035 = arith.mulf %1030, %1034 : vector<16x16xf32>
    %cst_361 = arith.constant dense<0.000000e+00> : vector<16x8xf32>
    %1036 = tpu.matmul %1035, %1023, %cst_361 {dimension_numbers = #tpu.dot_dimension_numbers<[1], [0], [0], [1], [0, 0, 1, 1], [], []>} : vector<16x16xf32>, vector<16x8xf32>, vector<16x8xf32> -> vector<16x8xf32>
    %c49 = arith.constant 49 : index
    %c0_362 = arith.constant 0 : index
    %c0_363 = arith.constant 0 : index
    %1037 = vector.load %arg3[%c49, %c0_362, %c0_363] : memref<60x33x8xf32, #tpu.memory_space<vmem>>, vector<1x33x8xf32>
    %1038 = vector.shape_cast %1037 : vector<1x33x8xf32> to vector<33x8xf32>
    %c53 = arith.constant 53 : index
    %c0_364 = arith.constant 0 : index
    %c0_365 = arith.constant 0 : index
    %1039 = vector.load %arg3[%c53, %c0_364, %c0_365] : memref<60x33x8xf32, #tpu.memory_space<vmem>>, vector<1x33x8xf32>
    %1040 = vector.shape_cast %1039 : vector<1x33x8xf32> to vector<33x8xf32>
    %c57 = arith.constant 57 : index
    %c0_366 = arith.constant 0 : index
    %c0_367 = arith.constant 0 : index
    %1041 = vector.load %arg3[%c57, %c0_366, %c0_367] : memref<60x33x8xf32, #tpu.memory_space<vmem>>, vector<1x33x8xf32>
    %1042 = vector.shape_cast %1041 : vector<1x33x8xf32> to vector<33x8xf32>
    %1043 = vector.extract_strided_slice %1038 {offsets = [0, 0], sizes = [32, 8], strides = [1, 1]} : vector<33x8xf32> to vector<32x8xf32>
    %cst_368 = arith.constant dense<0.000000e+00> : vector<16x8xf32>
    %1044 = tpu.matmul %488, %1043, %cst_368 {dimension_numbers = #tpu.dot_dimension_numbers<[1], [0], [0], [1], [0, 0, 1, 1], [], []>} : vector<16x32xf32>, vector<32x8xf32>, vector<16x8xf32> -> vector<16x8xf32>
    %1045 = vector.extract_strided_slice %1038 {offsets = [32, 0], sizes = [1, 8], strides = [1, 1]} : vector<33x8xf32> to vector<1x8xf32>
    %1046 = vector.broadcast %1045 : vector<1x8xf32> to vector<16x8xf32>
    %1047 = arith.addf %1044, %1046 : vector<16x8xf32>
    %1048 = vector.extract_strided_slice %1040 {offsets = [0, 0], sizes = [32, 8], strides = [1, 1]} : vector<33x8xf32> to vector<32x8xf32>
    %cst_369 = arith.constant dense<0.000000e+00> : vector<16x8xf32>
    %1049 = tpu.matmul %488, %1048, %cst_369 {dimension_numbers = #tpu.dot_dimension_numbers<[1], [0], [0], [1], [0, 0, 1, 1], [], []>} : vector<16x32xf32>, vector<32x8xf32>, vector<16x8xf32> -> vector<16x8xf32>
    %1050 = vector.extract_strided_slice %1040 {offsets = [32, 0], sizes = [1, 8], strides = [1, 1]} : vector<33x8xf32> to vector<1x8xf32>
    %1051 = vector.broadcast %1050 : vector<1x8xf32> to vector<16x8xf32>
    %1052 = arith.addf %1049, %1051 : vector<16x8xf32>
    %1053 = vector.extract_strided_slice %1042 {offsets = [0, 0], sizes = [32, 8], strides = [1, 1]} : vector<33x8xf32> to vector<32x8xf32>
    %cst_370 = arith.constant dense<0.000000e+00> : vector<16x8xf32>
    %1054 = tpu.matmul %488, %1053, %cst_370 {dimension_numbers = #tpu.dot_dimension_numbers<[1], [0], [0], [1], [0, 0, 1, 1], [], []>} : vector<16x32xf32>, vector<32x8xf32>, vector<16x8xf32> -> vector<16x8xf32>
    %1055 = vector.extract_strided_slice %1042 {offsets = [32, 0], sizes = [1, 8], strides = [1, 1]} : vector<33x8xf32> to vector<1x8xf32>
    %1056 = vector.broadcast %1055 : vector<1x8xf32> to vector<16x8xf32>
    %1057 = arith.addf %1054, %1056 : vector<16x8xf32>
    %cst_371 = arith.constant dense<0.000000e+00> : vector<16x16xf32>
    %1058 = tpu.matmul %1047, %1052, %cst_371 {dimension_numbers = #tpu.dot_dimension_numbers<[1], [1], [0], [0], [0, 0, 1, 0], [], []>} : vector<16x8xf32>, vector<16x8xf32>, vector<16x16xf32> -> vector<16x16xf32>
    %1059 = arith.addf %1058, %15 : vector<16x16xf32>
    %cst_372 = arith.constant dense<0xFF800000> : vector<16xf32>
    %1060 = vector.multi_reduction <maximumf>, %1059, %cst_372 [1] : vector<16x16xf32> to vector<16xf32>
    %1061 = vector.shape_cast %1060 : vector<16xf32> to vector<16x1xf32>
    %1062 = vector.broadcast %1061 : vector<16x1xf32> to vector<16x16xf32>
    %1063 = arith.subf %1059, %1062 : vector<16x16xf32>
    %1064 = math.exp %1063 : vector<16x16xf32>
    %cst_373 = arith.constant dense<0.000000e+00> : vector<16xf32>
    %1065 = vector.multi_reduction <add>, %1064, %cst_373 [1] : vector<16x16xf32> to vector<16xf32>
    %1066 = vector.shape_cast %1065 : vector<16xf32> to vector<16x1xf32>
    %1067 = tpu.reciprocal %1066 {approx = true} : vector<16x1xf32> -> vector<16x1xf32>
    %1068 = vector.broadcast %1067 : vector<16x1xf32> to vector<16x16xf32>
    %1069 = arith.mulf %1064, %1068 : vector<16x16xf32>
    %cst_374 = arith.constant dense<0.000000e+00> : vector<16x8xf32>
    %1070 = tpu.matmul %1069, %1057, %cst_374 {dimension_numbers = #tpu.dot_dimension_numbers<[1], [0], [0], [1], [0, 0, 1, 1], [], []>} : vector<16x16xf32>, vector<16x8xf32>, vector<16x8xf32> -> vector<16x8xf32>
    %c50 = arith.constant 50 : index
    %c0_375 = arith.constant 0 : index
    %c0_376 = arith.constant 0 : index
    %1071 = vector.load %arg3[%c50, %c0_375, %c0_376] : memref<60x33x8xf32, #tpu.memory_space<vmem>>, vector<1x33x8xf32>
    %1072 = vector.shape_cast %1071 : vector<1x33x8xf32> to vector<33x8xf32>
    %c54 = arith.constant 54 : index
    %c0_377 = arith.constant 0 : index
    %c0_378 = arith.constant 0 : index
    %1073 = vector.load %arg3[%c54, %c0_377, %c0_378] : memref<60x33x8xf32, #tpu.memory_space<vmem>>, vector<1x33x8xf32>
    %1074 = vector.shape_cast %1073 : vector<1x33x8xf32> to vector<33x8xf32>
    %c58 = arith.constant 58 : index
    %c0_379 = arith.constant 0 : index
    %c0_380 = arith.constant 0 : index
    %1075 = vector.load %arg3[%c58, %c0_379, %c0_380] : memref<60x33x8xf32, #tpu.memory_space<vmem>>, vector<1x33x8xf32>
    %1076 = vector.shape_cast %1075 : vector<1x33x8xf32> to vector<33x8xf32>
    %1077 = vector.extract_strided_slice %1072 {offsets = [0, 0], sizes = [32, 8], strides = [1, 1]} : vector<33x8xf32> to vector<32x8xf32>
    %cst_381 = arith.constant dense<0.000000e+00> : vector<16x8xf32>
    %1078 = tpu.matmul %488, %1077, %cst_381 {dimension_numbers = #tpu.dot_dimension_numbers<[1], [0], [0], [1], [0, 0, 1, 1], [], []>} : vector<16x32xf32>, vector<32x8xf32>, vector<16x8xf32> -> vector<16x8xf32>
    %1079 = vector.extract_strided_slice %1072 {offsets = [32, 0], sizes = [1, 8], strides = [1, 1]} : vector<33x8xf32> to vector<1x8xf32>
    %1080 = vector.broadcast %1079 : vector<1x8xf32> to vector<16x8xf32>
    %1081 = arith.addf %1078, %1080 : vector<16x8xf32>
    %1082 = vector.extract_strided_slice %1074 {offsets = [0, 0], sizes = [32, 8], strides = [1, 1]} : vector<33x8xf32> to vector<32x8xf32>
    %cst_382 = arith.constant dense<0.000000e+00> : vector<16x8xf32>
    %1083 = tpu.matmul %488, %1082, %cst_382 {dimension_numbers = #tpu.dot_dimension_numbers<[1], [0], [0], [1], [0, 0, 1, 1], [], []>} : vector<16x32xf32>, vector<32x8xf32>, vector<16x8xf32> -> vector<16x8xf32>
    %1084 = vector.extract_strided_slice %1074 {offsets = [32, 0], sizes = [1, 8], strides = [1, 1]} : vector<33x8xf32> to vector<1x8xf32>
    %1085 = vector.broadcast %1084 : vector<1x8xf32> to vector<16x8xf32>
    %1086 = arith.addf %1083, %1085 : vector<16x8xf32>
    %1087 = vector.extract_strided_slice %1076 {offsets = [0, 0], sizes = [32, 8], strides = [1, 1]} : vector<33x8xf32> to vector<32x8xf32>
    %cst_383 = arith.constant dense<0.000000e+00> : vector<16x8xf32>
    %1088 = tpu.matmul %488, %1087, %cst_383 {dimension_numbers = #tpu.dot_dimension_numbers<[1], [0], [0], [1], [0, 0, 1, 1], [], []>} : vector<16x32xf32>, vector<32x8xf32>, vector<16x8xf32> -> vector<16x8xf32>
    %1089 = vector.extract_strided_slice %1076 {offsets = [32, 0], sizes = [1, 8], strides = [1, 1]} : vector<33x8xf32> to vector<1x8xf32>
    %1090 = vector.broadcast %1089 : vector<1x8xf32> to vector<16x8xf32>
    %1091 = arith.addf %1088, %1090 : vector<16x8xf32>
    %cst_384 = arith.constant dense<0.000000e+00> : vector<16x16xf32>
    %1092 = tpu.matmul %1081, %1086, %cst_384 {dimension_numbers = #tpu.dot_dimension_numbers<[1], [1], [0], [0], [0, 0, 1, 0], [], []>} : vector<16x8xf32>, vector<16x8xf32>, vector<16x16xf32> -> vector<16x16xf32>
    %1093 = arith.addf %1092, %15 : vector<16x16xf32>
    %cst_385 = arith.constant dense<0xFF800000> : vector<16xf32>
    %1094 = vector.multi_reduction <maximumf>, %1093, %cst_385 [1] : vector<16x16xf32> to vector<16xf32>
    %1095 = vector.shape_cast %1094 : vector<16xf32> to vector<16x1xf32>
    %1096 = vector.broadcast %1095 : vector<16x1xf32> to vector<16x16xf32>
    %1097 = arith.subf %1093, %1096 : vector<16x16xf32>
    %1098 = math.exp %1097 : vector<16x16xf32>
    %cst_386 = arith.constant dense<0.000000e+00> : vector<16xf32>
    %1099 = vector.multi_reduction <add>, %1098, %cst_386 [1] : vector<16x16xf32> to vector<16xf32>
    %1100 = vector.shape_cast %1099 : vector<16xf32> to vector<16x1xf32>
    %1101 = tpu.reciprocal %1100 {approx = true} : vector<16x1xf32> -> vector<16x1xf32>
    %1102 = vector.broadcast %1101 : vector<16x1xf32> to vector<16x16xf32>
    %1103 = arith.mulf %1098, %1102 : vector<16x16xf32>
    %cst_387 = arith.constant dense<0.000000e+00> : vector<16x8xf32>
    %1104 = tpu.matmul %1103, %1091, %cst_387 {dimension_numbers = #tpu.dot_dimension_numbers<[1], [0], [0], [1], [0, 0, 1, 1], [], []>} : vector<16x16xf32>, vector<16x8xf32>, vector<16x8xf32> -> vector<16x8xf32>
    %c51 = arith.constant 51 : index
    %c0_388 = arith.constant 0 : index
    %c0_389 = arith.constant 0 : index
    %1105 = vector.load %arg3[%c51, %c0_388, %c0_389] : memref<60x33x8xf32, #tpu.memory_space<vmem>>, vector<1x33x8xf32>
    %1106 = vector.shape_cast %1105 : vector<1x33x8xf32> to vector<33x8xf32>
    %c55 = arith.constant 55 : index
    %c0_390 = arith.constant 0 : index
    %c0_391 = arith.constant 0 : index
    %1107 = vector.load %arg3[%c55, %c0_390, %c0_391] : memref<60x33x8xf32, #tpu.memory_space<vmem>>, vector<1x33x8xf32>
    %1108 = vector.shape_cast %1107 : vector<1x33x8xf32> to vector<33x8xf32>
    %c59 = arith.constant 59 : index
    %c0_392 = arith.constant 0 : index
    %c0_393 = arith.constant 0 : index
    %1109 = vector.load %arg3[%c59, %c0_392, %c0_393] : memref<60x33x8xf32, #tpu.memory_space<vmem>>, vector<1x33x8xf32>
    %1110 = vector.shape_cast %1109 : vector<1x33x8xf32> to vector<33x8xf32>
    %1111 = vector.extract_strided_slice %1106 {offsets = [0, 0], sizes = [32, 8], strides = [1, 1]} : vector<33x8xf32> to vector<32x8xf32>
    %cst_394 = arith.constant dense<0.000000e+00> : vector<16x8xf32>
    %1112 = tpu.matmul %488, %1111, %cst_394 {dimension_numbers = #tpu.dot_dimension_numbers<[1], [0], [0], [1], [0, 0, 1, 1], [], []>} : vector<16x32xf32>, vector<32x8xf32>, vector<16x8xf32> -> vector<16x8xf32>
    %1113 = vector.extract_strided_slice %1106 {offsets = [32, 0], sizes = [1, 8], strides = [1, 1]} : vector<33x8xf32> to vector<1x8xf32>
    %1114 = vector.broadcast %1113 : vector<1x8xf32> to vector<16x8xf32>
    %1115 = arith.addf %1112, %1114 : vector<16x8xf32>
    %1116 = vector.extract_strided_slice %1108 {offsets = [0, 0], sizes = [32, 8], strides = [1, 1]} : vector<33x8xf32> to vector<32x8xf32>
    %cst_395 = arith.constant dense<0.000000e+00> : vector<16x8xf32>
    %1117 = tpu.matmul %488, %1116, %cst_395 {dimension_numbers = #tpu.dot_dimension_numbers<[1], [0], [0], [1], [0, 0, 1, 1], [], []>} : vector<16x32xf32>, vector<32x8xf32>, vector<16x8xf32> -> vector<16x8xf32>
    %1118 = vector.extract_strided_slice %1108 {offsets = [32, 0], sizes = [1, 8], strides = [1, 1]} : vector<33x8xf32> to vector<1x8xf32>
    %1119 = vector.broadcast %1118 : vector<1x8xf32> to vector<16x8xf32>
    %1120 = arith.addf %1117, %1119 : vector<16x8xf32>
    %1121 = vector.extract_strided_slice %1110 {offsets = [0, 0], sizes = [32, 8], strides = [1, 1]} : vector<33x8xf32> to vector<32x8xf32>
    %cst_396 = arith.constant dense<0.000000e+00> : vector<16x8xf32>
    %1122 = tpu.matmul %488, %1121, %cst_396 {dimension_numbers = #tpu.dot_dimension_numbers<[1], [0], [0], [1], [0, 0, 1, 1], [], []>} : vector<16x32xf32>, vector<32x8xf32>, vector<16x8xf32> -> vector<16x8xf32>
    %1123 = vector.extract_strided_slice %1110 {offsets = [32, 0], sizes = [1, 8], strides = [1, 1]} : vector<33x8xf32> to vector<1x8xf32>
    %1124 = vector.broadcast %1123 : vector<1x8xf32> to vector<16x8xf32>
    %1125 = arith.addf %1122, %1124 : vector<16x8xf32>
    %cst_397 = arith.constant dense<0.000000e+00> : vector<16x16xf32>
    %1126 = tpu.matmul %1115, %1120, %cst_397 {dimension_numbers = #tpu.dot_dimension_numbers<[1], [1], [0], [0], [0, 0, 1, 0], [], []>} : vector<16x8xf32>, vector<16x8xf32>, vector<16x16xf32> -> vector<16x16xf32>
    %1127 = arith.addf %1126, %15 : vector<16x16xf32>
    %cst_398 = arith.constant dense<0xFF800000> : vector<16xf32>
    %1128 = vector.multi_reduction <maximumf>, %1127, %cst_398 [1] : vector<16x16xf32> to vector<16xf32>
    %1129 = vector.shape_cast %1128 : vector<16xf32> to vector<16x1xf32>
    %1130 = vector.broadcast %1129 : vector<16x1xf32> to vector<16x16xf32>
    %1131 = arith.subf %1127, %1130 : vector<16x16xf32>
    %1132 = math.exp %1131 : vector<16x16xf32>
    %cst_399 = arith.constant dense<0.000000e+00> : vector<16xf32>
    %1133 = vector.multi_reduction <add>, %1132, %cst_399 [1] : vector<16x16xf32> to vector<16xf32>
    %1134 = vector.shape_cast %1133 : vector<16xf32> to vector<16x1xf32>
    %1135 = tpu.reciprocal %1134 {approx = true} : vector<16x1xf32> -> vector<16x1xf32>
    %1136 = vector.broadcast %1135 : vector<16x1xf32> to vector<16x16xf32>
    %1137 = arith.mulf %1132, %1136 : vector<16x16xf32>
    %cst_400 = arith.constant dense<0.000000e+00> : vector<16x8xf32>
    %1138 = tpu.matmul %1137, %1125, %cst_400 {dimension_numbers = #tpu.dot_dimension_numbers<[1], [0], [0], [1], [0, 0, 1, 1], [], []>} : vector<16x16xf32>, vector<16x8xf32>, vector<16x8xf32> -> vector<16x8xf32>
    %1139 = tpu.concatenate %1036, %1070, %1104, %1138 in 1 : vector<16x8xf32>, vector<16x8xf32>, vector<16x8xf32>, vector<16x8xf32> -> vector<16x32xf32>
    %c4_401 = arith.constant 4 : index
    %c0_402 = arith.constant 0 : index
    %c0_403 = arith.constant 0 : index
    %1140 = vector.load %arg4[%c4_401, %c0_402, %c0_403] : memref<5x104x32xf32, #tpu.memory_space<vmem>>, vector<1x104x32xf32>
    %1141 = vector.shape_cast %1140 : vector<1x104x32xf32> to vector<104x32xf32>
    %c4_404 = arith.constant 4 : index
    %c0_405 = arith.constant 0 : index
    %c0_406 = arith.constant 0 : index
    %1142 = vector.load %arg5[%c4_404, %c0_405, %c0_406] : memref<5x33x64xf32, #tpu.memory_space<vmem>>, vector<1x33x64xf32>
    %1143 = vector.shape_cast %1142 : vector<1x33x64xf32> to vector<33x64xf32>
    %1144 = vector.extract_strided_slice %1141 {offsets = [0, 0], sizes = [32, 32], strides = [1, 1]} : vector<104x32xf32> to vector<32x32xf32>
    %cst_407 = arith.constant dense<0.000000e+00> : vector<16x32xf32>
    %1145 = tpu.matmul %1139, %1144, %cst_407 {dimension_numbers = #tpu.dot_dimension_numbers<[1], [0], [0], [1], [0, 0, 1, 1], [], []>} : vector<16x32xf32>, vector<32x32xf32>, vector<16x32xf32> -> vector<16x32xf32>
    %1146 = vector.extract_strided_slice %1141 {offsets = [96, 0], sizes = [1, 32], strides = [1, 1]} : vector<104x32xf32> to vector<1x32xf32>
    %1147 = vector.broadcast %1146 : vector<1x32xf32> to vector<16x32xf32>
    %1148 = arith.addf %1145, %1147 : vector<16x32xf32>
    %1149 = arith.addf %1148, %488 : vector<16x32xf32>
    %1150 = vector.extract_strided_slice %1141 {offsets = [97, 0], sizes = [1, 32], strides = [1, 1]} : vector<104x32xf32> to vector<1x32xf32>
    %1151 = vector.extract_strided_slice %1141 {offsets = [98, 0], sizes = [1, 32], strides = [1, 1]} : vector<104x32xf32> to vector<1x32xf32>
    %cst_408 = arith.constant dense<0.000000e+00> : vector<16xf32>
    %1152 = vector.multi_reduction <add>, %1149, %cst_408 [1] : vector<16x32xf32> to vector<16xf32>
    %1153 = vector.shape_cast %1152 : vector<16xf32> to vector<16x1xf32>
    %cst_409 = arith.constant 3.200000e+01 : f32
    %1154 = vector.broadcast %cst_409 : f32 to vector<16x1xf32>
    %1155 = arith.divf %1153, %1154 : vector<16x1xf32>
    %1156 = vector.broadcast %1155 : vector<16x1xf32> to vector<16x32xf32>
    %1157 = arith.subf %1149, %1156 : vector<16x32xf32>
    %1158 = arith.mulf %1157, %1157 : vector<16x32xf32>
    %cst_410 = arith.constant dense<0.000000e+00> : vector<16xf32>
    %1159 = vector.multi_reduction <add>, %1158, %cst_410 [1] : vector<16x32xf32> to vector<16xf32>
    %1160 = vector.shape_cast %1159 : vector<16xf32> to vector<16x1xf32>
    %cst_411 = arith.constant 3.200000e+01 : f32
    %1161 = vector.broadcast %cst_411 : f32 to vector<16x1xf32>
    %1162 = arith.divf %1160, %1161 : vector<16x1xf32>
    %1163 = vector.broadcast %1155 : vector<16x1xf32> to vector<16x32xf32>
    %1164 = arith.subf %1149, %1163 : vector<16x32xf32>
    %cst_412 = arith.constant 9.99999974E-6 : f32
    %1165 = vector.broadcast %cst_412 : f32 to vector<16x1xf32>
    %1166 = arith.addf %1162, %1165 : vector<16x1xf32>
    %1167 = math.rsqrt %1166 : vector<16x1xf32>
    %1168 = vector.broadcast %1167 : vector<16x1xf32> to vector<16x32xf32>
    %1169 = arith.mulf %1164, %1168 : vector<16x32xf32>
    %1170 = vector.broadcast %1150 : vector<1x32xf32> to vector<16x32xf32>
    %1171 = arith.mulf %1169, %1170 : vector<16x32xf32>
    %1172 = vector.broadcast %1151 : vector<1x32xf32> to vector<16x32xf32>
    %1173 = arith.addf %1171, %1172 : vector<16x32xf32>
    %1174 = vector.extract_strided_slice %1143 {offsets = [0, 0], sizes = [32, 64], strides = [1, 1]} : vector<33x64xf32> to vector<32x64xf32>
    %cst_413 = arith.constant dense<0.000000e+00> : vector<16x64xf32>
    %1175 = tpu.matmul %1173, %1174, %cst_413 {dimension_numbers = #tpu.dot_dimension_numbers<[1], [0], [0], [1], [0, 0, 1, 1], [], []>} : vector<16x32xf32>, vector<32x64xf32>, vector<16x64xf32> -> vector<16x64xf32>
    %1176 = vector.extract_strided_slice %1143 {offsets = [32, 0], sizes = [1, 64], strides = [1, 1]} : vector<33x64xf32> to vector<1x64xf32>
    %1177 = vector.broadcast %1176 : vector<1x64xf32> to vector<16x64xf32>
    %1178 = arith.addf %1175, %1177 : vector<16x64xf32>
    %cst_414 = arith.constant 5.000000e-01 : f32
    %1179 = vector.broadcast %cst_414 : f32 to vector<16x64xf32>
    %1180 = arith.mulf %1179, %1178 : vector<16x64xf32>
    %cst_415 = arith.constant 4.471500e-02 : f32
    %1181 = vector.broadcast %cst_415 : f32 to vector<16x64xf32>
    %1182 = arith.mulf %1181, %1178 : vector<16x64xf32>
    %1183 = arith.mulf %1182, %1178 : vector<16x64xf32>
    %1184 = arith.mulf %1183, %1178 : vector<16x64xf32>
    %1185 = arith.addf %1178, %1184 : vector<16x64xf32>
    %cst_416 = arith.constant 0.797884583 : f32
    %1186 = vector.broadcast %cst_416 : f32 to vector<16x64xf32>
    %1187 = arith.mulf %1186, %1185 : vector<16x64xf32>
    %1188 = math.tanh %1187 : vector<16x64xf32>
    %cst_417 = arith.constant 1.000000e+00 : f32
    %1189 = vector.broadcast %cst_417 : f32 to vector<16x64xf32>
    %1190 = arith.addf %1189, %1188 : vector<16x64xf32>
    %1191 = arith.mulf %1180, %1190 : vector<16x64xf32>
    %1192 = vector.extract_strided_slice %1141 {offsets = [32, 0], sizes = [64, 32], strides = [1, 1]} : vector<104x32xf32> to vector<64x32xf32>
    %cst_418 = arith.constant dense<0.000000e+00> : vector<16x32xf32>
    %1193 = tpu.matmul %1191, %1192, %cst_418 {dimension_numbers = #tpu.dot_dimension_numbers<[1], [0], [0], [1], [0, 0, 1, 1], [], []>} : vector<16x64xf32>, vector<64x32xf32>, vector<16x32xf32> -> vector<16x32xf32>
    %1194 = vector.extract_strided_slice %1141 {offsets = [99, 0], sizes = [1, 32], strides = [1, 1]} : vector<104x32xf32> to vector<1x32xf32>
    %1195 = vector.broadcast %1194 : vector<1x32xf32> to vector<16x32xf32>
    %1196 = arith.addf %1193, %1195 : vector<16x32xf32>
    %1197 = arith.addf %1196, %1173 : vector<16x32xf32>
    %1198 = vector.extract_strided_slice %1141 {offsets = [100, 0], sizes = [1, 32], strides = [1, 1]} : vector<104x32xf32> to vector<1x32xf32>
    %1199 = vector.extract_strided_slice %1141 {offsets = [101, 0], sizes = [1, 32], strides = [1, 1]} : vector<104x32xf32> to vector<1x32xf32>
    %cst_419 = arith.constant dense<0.000000e+00> : vector<16xf32>
    %1200 = vector.multi_reduction <add>, %1197, %cst_419 [1] : vector<16x32xf32> to vector<16xf32>
    %1201 = vector.shape_cast %1200 : vector<16xf32> to vector<16x1xf32>
    %cst_420 = arith.constant 3.200000e+01 : f32
    %1202 = vector.broadcast %cst_420 : f32 to vector<16x1xf32>
    %1203 = arith.divf %1201, %1202 : vector<16x1xf32>
    %1204 = vector.broadcast %1203 : vector<16x1xf32> to vector<16x32xf32>
    %1205 = arith.subf %1197, %1204 : vector<16x32xf32>
    %1206 = arith.mulf %1205, %1205 : vector<16x32xf32>
    %cst_421 = arith.constant dense<0.000000e+00> : vector<16xf32>
    %1207 = vector.multi_reduction <add>, %1206, %cst_421 [1] : vector<16x32xf32> to vector<16xf32>
    %1208 = vector.shape_cast %1207 : vector<16xf32> to vector<16x1xf32>
    %cst_422 = arith.constant 3.200000e+01 : f32
    %1209 = vector.broadcast %cst_422 : f32 to vector<16x1xf32>
    %1210 = arith.divf %1208, %1209 : vector<16x1xf32>
    %1211 = vector.broadcast %1203 : vector<16x1xf32> to vector<16x32xf32>
    %1212 = arith.subf %1197, %1211 : vector<16x32xf32>
    %cst_423 = arith.constant 9.99999974E-6 : f32
    %1213 = vector.broadcast %cst_423 : f32 to vector<16x1xf32>
    %1214 = arith.addf %1210, %1213 : vector<16x1xf32>
    %1215 = math.rsqrt %1214 : vector<16x1xf32>
    %1216 = vector.broadcast %1215 : vector<16x1xf32> to vector<16x32xf32>
    %1217 = arith.mulf %1212, %1216 : vector<16x32xf32>
    %1218 = vector.broadcast %1198 : vector<1x32xf32> to vector<16x32xf32>
    %1219 = arith.mulf %1217, %1218 : vector<16x32xf32>
    %1220 = vector.broadcast %1199 : vector<1x32xf32> to vector<16x32xf32>
    %1221 = arith.addf %1219, %1220 : vector<16x32xf32>
    %cst_424 = arith.constant dense<0.000000e+00> : vector<2x32xf32>
    %1222 = tpu.matmul %23, %1221, %cst_424 {dimension_numbers = #tpu.dot_dimension_numbers<[1], [0], [0], [1], [0, 0, 1, 1], [], []>} : vector<2x16xf32>, vector<16x32xf32>, vector<2x32xf32> -> vector<2x32xf32>
    %c2_425 = arith.constant 2 : index
    %c0_426 = arith.constant 0 : index
    %c0_427 = arith.constant 0 : index
    %1223 = vector.load %arg6[%c2_425, %c0_426, %c0_427] : memref<3x33x32xf32, #tpu.memory_space<vmem>>, vector<1x33x32xf32>
    %1224 = vector.shape_cast %1223 : vector<1x33x32xf32> to vector<33x32xf32>
    %1225 = vector.extract_strided_slice %1224 {offsets = [0, 0], sizes = [32, 32], strides = [1, 1]} : vector<33x32xf32> to vector<32x32xf32>
    %cst_428 = arith.constant dense<0.000000e+00> : vector<2x32xf32>
    %1226 = tpu.matmul %1222, %1225, %cst_428 {dimension_numbers = #tpu.dot_dimension_numbers<[1], [0], [0], [1], [0, 0, 1, 1], [], []>} : vector<2x32xf32>, vector<32x32xf32>, vector<2x32xf32> -> vector<2x32xf32>
    %1227 = vector.extract_strided_slice %1224 {offsets = [32, 0], sizes = [1, 32], strides = [1, 1]} : vector<33x32xf32> to vector<1x32xf32>
    %1228 = vector.broadcast %1227 : vector<1x32xf32> to vector<2x32xf32>
    %1229 = arith.addf %1226, %1228 : vector<2x32xf32>
    %1230 = math.tanh %1229 : vector<2x32xf32>
    %c1_429 = arith.constant 1 : index
    %c0_430 = arith.constant 0 : index
    %c0_431 = arith.constant 0 : index
    %1231 = vector.load %arg8[%c1_429, %c0_430, %c0_431] : memref<2x33x3xf32, #tpu.memory_space<vmem>>, vector<1x33x3xf32>
    %1232 = vector.shape_cast %1231 : vector<1x33x3xf32> to vector<33x3xf32>
    %1233 = vector.extract_strided_slice %1232 {offsets = [0, 0], sizes = [32, 3], strides = [1, 1]} : vector<33x3xf32> to vector<32x3xf32>
    %cst_432 = arith.constant dense<0.000000e+00> : vector<2x3xf32>
    %1234 = tpu.matmul %1230, %1233, %cst_432 {dimension_numbers = #tpu.dot_dimension_numbers<[1], [0], [0], [1], [0, 0, 1, 1], [], []>} : vector<2x32xf32>, vector<32x3xf32>, vector<2x3xf32> -> vector<2x3xf32>
    %1235 = vector.extract_strided_slice %1232 {offsets = [32, 0], sizes = [1, 3], strides = [1, 1]} : vector<33x3xf32> to vector<1x3xf32>
    %1236 = vector.broadcast %1235 : vector<1x3xf32> to vector<2x3xf32>
    %1237 = arith.addf %1234, %1236 : vector<2x3xf32>
    %c1_433 = arith.constant 1 : index
    %c0_434 = arith.constant 0 : index
    %c0_435 = arith.constant 0 : index
    %1238 = vector.load %arg9[%c1_433, %c0_434, %c0_435] : memref<2x2x3xf32, #tpu.memory_space<vmem>>, vector<1x2x3xf32>
    %1239 = vector.shape_cast %1238 : vector<1x2x3xf32> to vector<2x3xf32>
    %1240 = vector.shape_cast %1237 : vector<2x3xf32> to vector<1x2x3xf32>
    tpu.vector_store %arg9[%c1_433, %c0_434, %c0_435], %1240 {strides = array<i32>} : memref<2x2x3xf32, #tpu.memory_space<vmem>>, vector<1x2x3xf32>,
    %cst_436 = arith.constant dense<0xFF800000> : vector<2xf32>
    %1241 = vector.multi_reduction <maximumf>, %1237, %cst_436 [1] : vector<2x3xf32> to vector<2xf32>
    %1242 = vector.shape_cast %1241 : vector<2xf32> to vector<2x1xf32>
    %1243 = vector.broadcast %1242 : vector<2x1xf32> to vector<2x3xf32>
    %1244 = arith.subf %1237, %1243 : vector<2x3xf32>
    %1245 = math.exp %1244 : vector<2x3xf32>
    %cst_437 = arith.constant dense<0.000000e+00> : vector<2xf32>
    %1246 = vector.multi_reduction <add>, %1245, %cst_437 [1] : vector<2x3xf32> to vector<2xf32>
    %1247 = vector.shape_cast %1246 : vector<2xf32> to vector<2x1xf32>
    %1248 = vector.extract_strided_slice %733 {offsets = [0, 1], sizes = [2, 1], strides = [1, 1]} : vector<2x2xf32> to vector<2x1xf32>
    %1249 = tpu.reciprocal %1247 {approx = true} : vector<2x1xf32> -> vector<2x1xf32>
    %1250 = vector.broadcast %1249 : vector<2x1xf32> to vector<2x3xf32>
    %1251 = arith.mulf %1245, %1250 : vector<2x3xf32>
    %1252 = vector.broadcast %1248 : vector<2x1xf32> to vector<2x3xf32>
    %1253 = arith.mulf %1252, %1251 : vector<2x3xf32>
    %1254 = arith.addf %994, %1253 : vector<2x3xf32>
    %1255 = math.log %1247 : vector<2x1xf32>
    %1256 = arith.addf %1255, %1242 : vector<2x1xf32>
    %1257 = arith.mulf %1237, %740 : vector<2x3xf32>
    %cst_438 = arith.constant dense<0.000000e+00> : vector<2xf32>
    %1258 = vector.multi_reduction <add>, %1257, %cst_438 [1] : vector<2x3xf32> to vector<2xf32>
    %1259 = vector.shape_cast %1258 : vector<2xf32> to vector<2x1xf32>
    %1260 = arith.subf %1256, %1259 : vector<2x1xf32>
    %1261 = arith.mulf %1248, %1260 : vector<2x1xf32>
    %1262 = arith.addf %1002, %1261 : vector<2x1xf32>
    %c0_439 = arith.constant 0 : index
    %c0_440 = arith.constant 0 : index
    %1263 = vector.load %arg10[%c0_439, %c0_440] : memref<2x3xf32, #tpu.memory_space<vmem>>, vector<2x3xf32>
    tpu.vector_store %arg10[%c0_439, %c0_440], %1254 {strides = array<i32>} : memref<2x3xf32, #tpu.memory_space<vmem>>, vector<2x3xf32>,
    %cst_441 = arith.constant dense<0.000000e+00> : vector<1xf32>
    %1264 = vector.multi_reduction <add>, %1262, %cst_441 [0] : vector<2x1xf32> to vector<1xf32>
    %1265 = vector.shape_cast %1264 : vector<1xf32> to vector<1x1xf32>
    %cst_442 = arith.constant 5.000000e-01 : f32
    %1266 = vector.broadcast %cst_442 : f32 to vector<1x1xf32>
    %1267 = arith.mulf %1265, %1266 : vector<1x1xf32>
    %c0_443 = arith.constant 0 : index
    %c0_444 = arith.constant 0 : index
    %1268 = vector.load %arg12[%c0_443, %c0_444] : memref<1x1xf32, #tpu.memory_space<vmem>>, vector<1x1xf32>
    tpu.vector_store %arg12[%c0_443, %c0_444], %1267 {strides = array<i32>} : memref<1x1xf32, #tpu.memory_space<vmem>>, vector<1x1xf32>,
    return
  }
}

</mosaic_0001>

<bundles_post_ra>
// kernel: forward.1
= control target key start
LH: loop header
LB: loop body
LE: loop exit
PB: predicated region body
PF: predicated region fallthrough
CT: control target
= control target key end

     0   :  { %18 = vsyncpa [#allocation3], 0  ;;  %vm81_vm0 = vcmask 261120   ;;  %s18126_s0 = inlined_call_operand.vmem [shape: f32[16,32], index: 0, kind: input, shape index: {}]   ;;  %s18127_s1 = inlined_call_operand.vmem [shape: f32[1,16], index: 1, kind: input, shape index: {}]   ;;  %s18128_s2 = inlined_call_operand.vmem [shape: s32[2,1], index: 2, kind: input, shape index: {}]   ;;  %s18129_s3 = inlined_call_operand.vmem [shape: f32[60,33,8], index: 3, kind: input, shape index: {}]   ;;  %s18130_s4 = inlined_call_operand.vmem [shape: f32[5,104,32], index: 4, kind: input, shape index: {}]   ;;  %s18131_s5 = inlined_call_operand.vmem [shape: f32[5,33,64], index: 5, kind: input, shape index: {}]   ;;  %s18132_s6 = inlined_call_operand.vmem [shape: f32[3,33,32], index: 6, kind: input, shape index: {}]   ;;  %s18133_s7 = inlined_call_operand.vmem [shape: f32[33,2], index: 7, kind: input, shape index: {}]   ;;  %s18134_s8 = inlined_call_operand.vmem [shape: f32[2,33,3], index: 8, kind: input, shape index: {}]   ;;  %s18135_s9 = inlined_call_operand.vmem [shape: f32[2,2,3], index: 9, kind: output, shape index: {0}]   ;;  %s18136_s10 = inlined_call_operand.hbm [shape: f32[2,3], index: 10, kind: output, shape index: {1}]   ;;  %s18137_s11 = inlined_call_operand.hbm [shape: f32[2,2], index: 11, kind: output, shape index: {2}]   ;;  %s18138_s12 = inlined_call_operand.hbm [shape: f32[1,1], index: 12, kind: output, shape index: {3}]  }
   0x1   :  { %v79_v0 = vld [vmem:[%s18126_s0] sm:$0xff]  ;;  %v80_v1 = vld [vmem:[%s18126_s0 + $0x8] sm:$0xff] }
   0x2   :  { %19 = vsyncpa [#allocation5], 0  ;;  %v82_v2 = vsel %vm81_vm0, %v79_v0, 0.0  ;;  %v85_v3 = vsel %vm81_vm0, %v80_v1, 0.0  ;;  %v121_v14 = vld [vmem:[%s18129_s3] sm:$0xff]  ;;  %v122_v15 = vld [vmem:[%s18129_s3 + $0x8] sm:$0xff]  ;;  %v38_v31 = vlaneseq }
   0x3   :  { %83 = vadd.xlane.f32.xlu0 %v82_v2  ;;  %v14527_v16 = vpack.c.bf16 %v122_v15, %v121_v14  ;;  %v11893_v17 = vld [vmem:[%s18129_s3 + $0xa0] sm:$0xff]  ;;  %v11894_v18 = vld [vmem:[%s18129_s3 + $0xa8] sm:$0xff]  ;;  %v123_v20 = vld [vmem:[%s18129_s3 + $0x10] sm:$0xff]  ;;  %vm381_vm1 = vcmask 64512   ;;  %vm469_vm5 = vcmask 130048   ;;  %s15744_s30 = smov 8  }
   0x4   :  { %v14535_v19 = vpack.c.bf16 %v11894_v18, %v11893_v17  ;;  %v124_v21 = vld [vmem:[%s18129_s3 + $0x18] sm:$0xff]  ;;  %v11895_v23 = vld [vmem:[%s18129_s3 + $0xb0] sm:$0xff]  ;;  %v11898_v26 = vld [vmem:[%s18129_s3 + $0x140] sm:$0xff]  ;;  %v15862_v35 = vshrl.u32 %v38_v31, 7  ;;  %s15745_s13 = smov 16   ;;  %s15746_s21 = smov 24  }
   0x5   :  { %14528 = vmatprep.subr.bf16.mxu0 %v14527_v16  ;;  %v14531_v22 = vpack.c.bf16 %v124_v21, %v123_v20  ;;  %v11896_v24 = vld [vmem:[%s18129_s3 + $0xb8] sm:$0xff]  ;;  %v11899_v27 = vld [vmem:[%s18129_s3 + $0x148] sm:$0xff]  ;;  %v15868_v38 = vld [vmem:[%s18130_s4 + $0x60] sm:$0xff]  ;;  %v15950_v20 = vand.u32 127, %v38_v31  ;;  %vm1936_vm6 = vcmask 195584   ;;  %vm2176_vm7 = vcmask 523264  }
   0x6   :  { %14530 = vmatpush3.bf16.msra.mxu0 %v14527_v16  ;;  %14536 = vmatprep.subr.bf16.mxu1 %v14535_v19  ;;  %v14539_v25 = vpack.c.bf16 %v11896_v24, %v11895_v23  ;;  %v14543_v28 = vpack.c.bf16 %v11899_v27, %v11898_v26  ;;  %v111_v37 = vsub.s32 6, %v15862_v35  ;;  %v117_v39 = vsub.s32 7, %v15862_v35  ;;  %v11900_v48 = vld [vmem:[%s18129_s3 + $0x150] sm:$0xff]  ;;  %v11901_v49 = vld [vmem:[%s18129_s3 + $0x158] sm:$0xff]  ;;  %v11906_v53 = vld [vmem:[%s18129_s3 + $0xc0] ss:$0 sm:$0xff] }
   0x7   :  { %86 = vadd.xlane.f32.xlu0 %v85_v3  ;;  %14538 = vmatpush3.bf16.msra.mxu1 %v14535_v19  ;;  %v14547_v52 = vpack.c.bf16 %v11901_v49, %v11900_v48  ;;  %v11903_v54 = vld [vmem:[%s18129_s3 + $0x20] ss:$0 sm:$0xff]  ;;  %v11918_v60 = vld [vmem:[%s18129_s3 + $0x28] sm:$0xff]  ;;  %v11919_v61 = vld [vmem:[%s18129_s3 + $0x30] sm:$0xff]  ;;  %v40_v19 = vadd.s32 8, %v15862_v35  ;;  %v41_v23 = vcvt.s32.f32 %v15862_v35  ;;  %vm15748_vm8 = vmmov 0  }
   0x8   :  { %14532 = vmatprep.subr.bf16.mxu0 %v14531_v22  ;;  %14540 = vmatprep.subr.bf16.mxu1 %v14539_v25  ;;  %v112_v40 = vrot.slane %v15868_v38, %v111_v37  ;;  %v118_v43 = vrot.slane %v15868_v38, %v117_v39  ;;  %vm15909_vm2 = vmpackc.low %vm381_vm1, %vm381_vm1  ;;  %v14561_v2 = vpack.c.bf16 %v11919_v61, %v11918_v60  ;;  %v11909_v3 = vld [vmem:[%s18129_s3 + $0x160] ss:$0 sm:$0xff]  ;;  %v11929_v14 = vld [vmem:[%s18129_s3 + $0x170] sm:$0xff]  ;;  %vm6914_vm10 = vcmask 9216  }
   0x9   :  { %v11930_v16 = vld [vmem:[%s18129_s3 + $0x178] sm:$0xff]  ;;  %v11931_v17 = vld [vmem:[%s18129_s3 + $0x180] sm:$0xff]  ;;  %v42_v21 = vcvt.s32.f32 %v40_v19  ;;  %v46_v26 = vmul.f32 0.125, %v41_v23  ;;  %v11948_v19 = vld [vmem:[%s18129_s3 + $0x50] sm:$0xff]  ;;  %vm9352_vm11 = vcmask 17408  }
   0xa   :  { %14534 = vmatpush3.bf16.msra.mxu0 %v14531_v22  ;;  %v14581_v18 = vpack.c.bf16 %v11931_v17, %v11930_v16  ;;  %v45_v22 = vcvt.s32.f32 %v15950_v20 }
   0xb   :  { %14542 = vmatpush3.bf16.msra.mxu1 %v14539_v25  ;;  %14544 = vmatprep.subr.bf16.mxu0 %v14543_v28  ;;  %v47_v24 = vmul.f32 0.125, %v42_v21  ;;  %v11949_v21 = vld [vmem:[%s18129_s3 + $0x58] sm:$0xff] }
   0xc   :  { %v50_v25 = vmul.f32 0.125, %v45_v22 }
   0xd   :  { %v49_v27 = vfloor.f32 %v47_v24  ;;  %v14595_v24 = vpack.c.bf16 %v11949_v21, %v11948_v19  ;;  %v11966_v21 = vld [vmem:[%s18129_s3 + $0x110] ss:$0 sm:$0xff] }
  0x90   :  { %v84_v4 = vpop.xlane.xlu0 %83 }
  0x91   :  { %v89_v5 = vmul.f32 0.03125, %v84_v4 }
  0x93   :  { %v91_v6 = vsub.f32 %v79_v0, %v89_v5 }
  0x94   :  { %v87_v7 = vpop.xlane.xlu0 %86 }
  0x95   :  { %v90_v8 = vmul.f32 0.03125, %v87_v7  ;;  %v93_v9 = vmul.f32 %v91_v6, %v91_v6  ;;  %v11920_v7 = vld [vmem:[%s18129_s3 + $0x38] sm:$0xff] }
  0x97   :  { %v92_v10 = vsub.f32 %v80_v1, %v90_v8  ;;  %v95_v11 = vsel %vm81_vm0, %v93_v9, 0.0  ;;  %v11921_v8 = vld [vmem:[%s18129_s3 + $0x40] sm:$0xff] }
  0x98   :  { %96 = vadd.xlane.f32.xlu1 %v95_v11 }
  0x99   :  { %v94_v12 = vmul.f32 %v92_v10, %v92_v10 }
  0x9b   :  { %v98_v13 = vsel %vm81_vm0, %v94_v12, 0.0  ;;  %v14565_v12 = vpack.c.bf16 %v11921_v8, %v11920_v7  ;;  %v11926_v7 = vld [vmem:[%s18129_s3 + $0xe0] sm:$0xff] }
  0x9c   :  { %99 = vadd.xlane.f32.xlu1 %v98_v13  ;;  %v11928_v13 = vld [vmem:[%s18129_s3 + $0x168] sm:$0xff] }
  0x9d   :  { %v14577_v15 = vpack.c.bf16 %v11929_v14, %v11928_v13 }
 0x125   :  { %v97_v29 = vpop.xlane.xlu1 %96 }
 0x126   :  { %v101_v30 = vmul.f32 0.03125, %v97_v29  ;;  %v48_v29 = vfloor.f32 %v46_v26  ;;  %v11951_v26 = vld [vmem:[%s18129_s3 + $0x68] sm:$0xff] }
 0x128   :  { %v103_v32 = vadd.f32 1e-05, %v101_v30  ;;  %v11892_v30 = vld [vmem:[%s18127_s1] ss:$0 sm:$0xff] }
 0x129   :  { %v100_v33 = vpop.xlane.xlu1 %99 }
 0x12a   :  { %15427 = vrsqrt.f32 %v103_v32  ;;  %v102_v34 = vmul.f32 0.03125, %v100_v33 }
 0x12c   :  { %v104_v36 = vadd.f32 1e-05, %v102_v34 }
 0x12e   :  { %15429 = vrsqrt.f32 %v104_v36 }
 0x134   :  { %v15428_v41 = vpop.eup %15427 }
 0x135   :  { %v107_v42 = vmul.f32 %v15428_v41, %v91_v6  ;;  %v11933_v41 = vld [vmem:[%s18129_s3 + $0x48] ss:$0 sm:$0xff] }
 0x137   :  { %v113_v44 = vmul.f32 %v112_v40, %v107_v42 }
 0x138   :  { %v15430_v45 = vpop.eup %15429 }
 0x139   :  { %v15873_v46 = vadd.f32 %v118_v43, %v113_v44  ;;  %v108_v47 = vmul.f32 %v15430_v45, %v92_v10  ;;  %v11939_v45 = vld [vmem:[%s18129_s3 + $0x188] ss:$0 sm:$0xff] }
 0x13b   :  { %v114_v50 = vmul.f32 %v112_v40, %v108_v47  ;;  %13303 = vmatprep.mubr.msk.f32.mxu0 %vm81_vm0, %v15873_v46  ;;  %13314 = vmatprep.mubr.msk.f32.mxu1 %vm81_vm0, %v15873_v46 }
 0x13d   :  { %v15885_v51 = vadd.f32 %v118_v43, %v114_v50 }
 0x13f   :  { %13304 = vmatmul.mubr.msk.f32.vlgmr.msra.gmra.mrb[0].mxu0 %vm81_vm0, %v15885_v51  ;;  %13315 = vmatmul.mubr.msk.f32.vlgmr.msra.gmra.mrb[0].mxu1 %vm81_vm0, %v15885_v51 }
 0x140   :  { %14546 = vmatpush3.bf16.msra.mxu0 %v14543_v28  ;;  %13325 = vmatprep.mubr.msk.f32.mxu0 %vm81_vm0, %v15873_v46  ;;  %v51_v28 = vfloor.f32 %v50_v25  ;;  %v11950_v25 = vld [vmem:[%s18129_s3 + $0x60] sm:$0xff] }
 0x141   :  { %14548 = vmatprep.subr.bf16.mxu0 %v14547_v52 }
 0x142   :  { %vm53_vm3 = vcmp.eq.f32.partialorder %v49_v27, %v51_v28  ;;  %vm52_vm4 = vcmp.eq.f32.partialorder %v48_v29, %v51_v28  ;;  %v14599_v27 = vpack.c.bf16 %v11951_v26, %v11950_v25  ;;  %v11958_v28 = vld [vmem:[%s18129_s3 + $0x190] sm:$0xff]  ;;  %v11959_v29 = vld [vmem:[%s18129_s3 + $0x198] sm:$0xff]  ;;  %v11979_v26 = vld [vmem:[%s18129_s3 + $0x80] sm:$0xff] }
 0x143   :  { %v15957_v32 = vsel %vm53_vm3, %v11892_v30, -1e+09  ;;  %v15959_v31 = vsel %vm52_vm4, %v11892_v30, -1e+09  ;;  %v14611_v30 = vpack.c.bf16 %v11959_v29, %v11958_v28  ;;  %v11978_v25 = vld [vmem:[%s18129_s3 + $0x78] sm:$0xff] }
 0x144   :  { %14550 = vmatpush3.bf16.msra.mxu0 %v14547_v52  ;;  %v14629_v29 = vpack.c.bf16 %v11979_v26, %v11978_v25 }
 0x147   :  { %13326 = vmatmul.mubr.msk.f32.vlgmr.msra.gmra.mrb[2].mxu0 %vm81_vm0, %v15885_v51 }
 0x212   :  { %v13305_v55 = vpop.f32.mrb[0].mxu0  ;;  %v13316_v56 = vpop.f32.mrb[0].mxu1 }
 0x213   :  { %v299_v57 = vadd.f32 %v13316_v56, %v11906_v53  ;;  %v214_v58 = vpop.f32.mrb[1].mxu0  ;;  %v293_v59 = vpop.f32.mrb[1].mxu1  ;;  %v220_v10 = vadd.f32 %v13305_v55, %v11903_v54 }
 0x214   :  { %v215_v62 = vadd.f32 %v11903_v54, %v214_v58  ;;  %v294_v63 = vadd.f32 %v11906_v53, %v293_v59 }
 0x216   :  { %v14551_v1 = vpack.c.bf16 %v299_v57, %v294_v63  ;;  %13332 = vmatprep.mubr.msk.f32.mxu1 %vm381_vm1, %v215_v62  ;;  %v11923_v63 = vld [vmem:[%s18129_s3 + $0xc8] sm:$0xff] }
 0x218   :  { %14553 = vmatprep.subr.msk.bf16.mxu1 %vm15909_vm2, %v14551_v1 }
 0x219   :  { %14556 = vmatpush3.bf16.xpose.msk.msra.mxu1 %vm15909_vm2, %v14551_v1  ;;  %v11924_v1 = vld [vmem:[%s18129_s3 + $0xd0] sm:$0xff] }
 0x21a   :  { %v13327_v4 = vpop.f32.mrb[2].mxu0  ;;  %14562 = vmatprep.subr.bf16.mxu1 %v14561_v2 }
 0x21b   :  { %v378_v5 = vadd.f32 %v13327_v4, %v11909_v3  ;;  %v372_v6 = vpop.f32.mrb[3].mxu0 }
 0x21c   :  { %v373_v9 = vadd.f32 %v11909_v3, %v372_v6  ;;  %v11925_v6 = vld [vmem:[%s18129_s3 + $0xd8] sm:$0xff] }
 0x21e   :  { %v14557_v11 = vpack.c.bf16 %v378_v5, %v373_v9 }
 0x220   :  { %14558 = vmatprep.subr.bf16.mxu0 %v14557_v11  ;;  %13333 = vmatmul.mubr.msk.f32.vlgmr.msra.gmra.mrb[2].mxu1 %vm381_vm1, %v220_v10 }
 0x221   :  { %14560 = vmatpush3.bf16.msra.mxu0 %v14557_v11  ;;  %14564 = vmatpush3.bf16.msra.mxu1 %v14561_v2  ;;  %v14569_v2 = vpack.c.bf16 %v11924_v1, %v11923_v63  ;;  %v14573_v11 = vpack.c.bf16 %v11926_v7, %v11925_v6 }
 0x222   :  { %13350 = vmatprep.mubr.msk.f32.mxu1 %vm81_vm0, %v15873_v46  ;;  %14566 = vmatprep.subr.bf16.mxu1 %v14565_v12 }
 0x223   :  { %14570 = vmatprep.subr.bf16.mxu0 %v14569_v2 }
 0x225   :  { %14568 = vmatpush3.bf16.msra.mxu1 %v14565_v12 }
 0x226   :  { %14578 = vmatprep.subr.bf16.mxu1 %v14577_v15 }
 0x228   :  { %13351 = vmatmul.mubr.msk.f32.vlgmr.msra.gmra.mrb[4].mxu1 %vm81_vm0, %v15885_v51 }
 0x229   :  { %14580 = vmatpush3.bf16.msra.mxu1 %v14577_v15  ;;  %13372 = vmatprep.mubr.msk.f32.mxu1 %vm81_vm0, %v15873_v46  ;;  %v11936_v15 = vld [vmem:[%s18129_s3 + $0xe8] ss:$0 sm:$0xff] }
 0x22a   :  { %14582 = vmatprep.subr.bf16.mxu1 %v14581_v18 }
 0x22d   :  { %14584 = vmatpush3.bf16.msra.mxu1 %v14581_v18 }
 0x230   :  { %13373 = vmatmul.mubr.msk.f32.vlgmr.msra.gmra.mrb[6].mxu1 %vm81_vm0, %v15885_v51 }
 0x2f3   :  { %v13334_v33 = vpop.f32.mrb[2].mxu1 }
 0x2f4   :  { %v466_v34 = vadd.f32 %v13334_v33, %v15957_v32  ;;  %v460_v36 = vpop.f32.mrb[3].mxu1  ;;  %v11960_v33 = vld [vmem:[%s18129_s3 + $0x1a0] sm:$0xff] }
 0x2f5   :  { %v461_v37 = vadd.f32 %v460_v36, %v15959_v31 }
 0x2f6   :  { %v473_v39 = vsel %vm469_vm5, %v466_v34, -inf }
 0x2f7   :  { %474 = vmax.xlane.f32.xlu1 %v473_v39  ;;  %v470_v40 = vsel %vm469_vm5, %v461_v37, -inf }
 0x2f8   :  { %471 = vmax.xlane.f32.xlu0 %v470_v40 }
 0x2fb   :  { %v13352_v42 = vpop.f32.mrb[4].mxu1 }
 0x2fc   :  { %v15968_v43 = vadd.f32 %v13352_v42, %v11933_v41  ;;  %v661_v44 = vpop.f32.mrb[5].mxu1 }
 0x2fd   :  { %v662_v12 = vadd.f32 %v11933_v41, %v661_v44  ;;  %v11963_v44 = vld [vmem:[%s18129_s3 + $0x70] ss:$0 sm:$0xff] }
 0x303   :  { %v13374_v47 = vpop.f32.mrb[6].mxu1 }
 0x304   :  { %v825_v48 = vadd.f32 %v13374_v47, %v11939_v45  ;;  %v819_v49 = vpop.f32.mrb[7].mxu1 }
 0x305   :  { %v820_v50 = vadd.f32 %v11939_v45, %v819_v49  ;;  %v11969_v49 = vld [vmem:[%s18129_s3 + $0x1b0] ss:$0 sm:$0xff] }
 0x307   :  { %v14591_v52 = vpack.c.bf16 %v825_v48, %v820_v50 }
 0x309   :  { %14592 = vmatprep.subr.bf16.mxu1 %v14591_v52 }
 0x30a   :  { %14594 = vmatpush3.bf16.msra.mxu1 %v14591_v52 }
 0x384   :  { %v475_v53 = vpop.xlane.xlu1 %474 }
 0x385   :  { %v477_v54 = vsub.f32 %v466_v34, %v475_v53  ;;  %v472_v55 = vpop.xlane.xlu0 %471  ;;  %v11961_v34 = vld [vmem:[%s18129_s3 + $0x1a8] sm:$0xff] }
 0x386   :  { %v476_v56 = vsub.f32 %v461_v37, %v472_v55  ;;  %v14615_v36 = vpack.c.bf16 %v11961_v34, %v11960_v33  ;;  %v11981_v33 = vld [vmem:[%s18129_s3 + $0x90] sm:$0xff] }
 0x387   :  { %v480_v57 = vmul.f32 1.442695, %v477_v54 }
 0x388   :  { %v478_v58 = vmul.f32 1.442695, %v476_v56 }
 0x389   :  { %15431 = vpow2.f32 %v480_v57 }
 0x38a   :  { %15433 = vpow2.f32 %v478_v58 }
 0x393   :  { %v15432_v59 = vpop.eup %15431 }
 0x394   :  { %v15434_v60 = vpop.eup %15433  ;;  %v485_v61 = vsel %vm469_vm5, %v15432_v59, 0.0 }
 0x395   :  { %486 = vadd.xlane.f32.xlu1 %v485_v61  ;;  %v482_v62 = vsel %vm469_vm5, %v15434_v60, 0.0 }
 0x396   :  { %483 = vadd.xlane.f32.xlu0 %v482_v62 }
 0x422   :  { %v487_v3 = vpop.xlane.xlu1 %486 }
 0x423   :  { %15435 = vrcp.f32 %v487_v3  ;;  %v484_v4 = vpop.xlane.xlu0 %483  ;;  %v11953_v3 = vld [vmem:[%s18129_s3 + $0xf0] sm:$0xff] }
 0x424   :  { %15437 = vrcp.f32 %v484_v4  ;;  %v11954_v4 = vld [vmem:[%s18129_s3 + $0xf8] sm:$0xff] }
 0x42d   :  { %v15436_v5 = vpop.eup %15435 }
 0x42e   :  { %v15438_v8 = vpop.eup %15437  ;;  %v491_v10 = vmul.f32 %v15436_v5, %v15432_v59  ;;  %v14603_v5 = vpack.c.bf16 %v11954_v4, %v11953_v3 }
 0x42f   :  { %v490_v9 = vmul.f32 %v15438_v8, %v15434_v60 }
 0x430   :  { %14604 = vmatprep.subr.bf16.mxu1 %v14603_v5 }
 0x431   :  { %13339 = vmatprep.mubr.msk.f32.mxu0 %vm469_vm5, %v490_v9  ;;  %v11955_v9 = vld [vmem:[%s18129_s3 + $0x100] sm:$0xff] }
 0x432   :  { %13340 = vmatmul.mubr.msk.f32.vlgmr.msra.gmra.mrb[4].mxu0 %vm469_vm5, %v491_v10  ;;  %v11956_v10 = vld [vmem:[%s18129_s3 + $0x108] sm:$0xff] }
 0x433   :  { %14572 = vmatpush3.bf16.msra.mxu0 %v14569_v2  ;;  %13361 = vmatprep.mubr.msk.f32.mxu0 %vm81_vm0, %v15873_v46 }
 0x434   :  { %14574 = vmatprep.subr.bf16.mxu0 %v14573_v11 }
 0x437   :  { %14576 = vmatpush3.bf16.msra.mxu0 %v14573_v11 }
 0x43a   :  { %13362 = vmatmul.mubr.msk.f32.vlgmr.msra.gmra.mrb[6].mxu0 %vm81_vm0, %v15885_v51 }
 0x43b   :  { %13379 = vmatprep.mubr.msk.f32.mxu0 %vm381_vm1, %v662_v12 }
 0x505   :  { %v15994_v13 = vpop.f32.mrb[4].mxu0 }
 0x506   :  { %v15996_v14 = vpop.f32.mrb[5].mxu0 }
 0x50d   :  { %v13363_v16 = vpop.f32.mrb[6].mxu0 }
 0x50e   :  { %v746_v17 = vadd.f32 %v13363_v16, %v11936_v15  ;;  %v740_v18 = vpop.f32.mrb[7].mxu0  ;;  %v14607_v16 = vpack.c.bf16 %v11956_v10, %v11955_v9  ;;  %v11984_v9 = vld [vmem:[%s18129_s3 + $0x120] sm:$0xff] }
 0x50f   :  { %v741_v22 = vadd.f32 %v11936_v15, %v740_v18 }
 0x511   :  { %v14585_v23 = vpack.c.bf16 %v746_v17, %v741_v22 }
 0x513   :  { %14587 = vmatprep.subr.msk.bf16.mxu0 %vm15909_vm2, %v14585_v23 }
 0x514   :  { %14590 = vmatpush3.bf16.xpose.msk.msra.mxu0 %vm15909_vm2, %v14585_v23 }
 0x515   :  { %14596 = vmatprep.subr.bf16.mxu0 %v14595_v24 }
 0x51b   :  { %13380 = vmatmul.mubr.msk.f32.vlgmr.msra.gmra.mrb[8].mxu0 %vm381_vm1, %v15968_v43 }
 0x51c   :  { %14598 = vmatpush3.bf16.msra.mxu0 %v14595_v24  ;;  %13397 = vmatprep.mubr.msk.f32.mxu0 %vm81_vm0, %v15873_v46 }
 0x51d   :  { %14600 = vmatprep.subr.bf16.mxu0 %v14599_v27 }
 0x520   :  { %14602 = vmatpush3.bf16.msra.mxu0 %v14599_v27 }
 0x521   :  { %14612 = vmatprep.subr.bf16.mxu0 %v14611_v30 }
 0x523   :  { %13398 = vmatmul.mubr.msk.f32.vlgmr.msra.gmra.mrb[10].mxu0 %vm81_vm0, %v15885_v51 }
 0x524   :  { %14614 = vmatpush3.bf16.msra.mxu0 %v14611_v30  ;;  %13419 = vmatprep.mubr.msk.f32.mxu0 %vm81_vm0, %v15873_v46  ;;  %v11980_v30 = vld [vmem:[%s18129_s3 + $0x88] sm:$0xff] }
 0x525   :  { %14616 = vmatprep.subr.bf16.mxu0 %v14615_v36  ;;  %v14633_v34 = vpack.c.bf16 %v11981_v33, %v11980_v30 }
 0x528   :  { %14618 = vmatpush3.bf16.msra.mxu0 %v14615_v36  ;;  %v11988_v36 = vld [vmem:[%s18129_s3 + $0x1b8] sm:$0xff] }
 0x52b   :  { %13420 = vmatmul.mubr.msk.f32.vlgmr.msra.gmra.mrb[12].mxu0 %vm81_vm0, %v15885_v51 }
 0x5ee   :  { %v13381_v37 = vpop.f32.mrb[8].mxu0 }
 0x5ef   :  { %v912_v39 = vadd.f32 %v13381_v37, %v15957_v32  ;;  %v906_v40 = vpop.f32.mrb[9].mxu0  ;;  %v11989_v37 = vld [vmem:[%s18129_s3 + $0x1c0] sm:$0xff] }
 0x5f0   :  { %v907_v41 = vadd.f32 %v906_v40, %v15959_v31  ;;  %v11990_v40 = vld [vmem:[%s18129_s3 + $0x1c8] sm:$0xff] }
 0x5f1   :  { %v918_v42 = vsel %vm469_vm5, %v912_v39, -inf }
 0x5f2   :  { %919 = vmax.xlane.f32.xlu1 %v918_v42  ;;  %v915_v43 = vsel %vm469_vm5, %v907_v41, -inf }
 0x5f3   :  { %916 = vmax.xlane.f32.xlu0 %v915_v43 }
 0x5f6   :  { %v13399_v45 = vpop.f32.mrb[10].mxu0 }
 0x5f7   :  { %v16046_v47 = vadd.f32 %v13399_v45, %v11963_v44  ;;  %v1106_v48 = vpop.f32.mrb[11].mxu0 }
 0x5f8   :  { %v1107_v17 = vadd.f32 %v11963_v44, %v1106_v48 }
 0x5fe   :  { %v13421_v50 = vpop.f32.mrb[12].mxu0 }
 0x5ff   :  { %v1270_v52 = vadd.f32 %v13421_v50, %v11969_v49  ;;  %v1264_v53 = vpop.f32.mrb[13].mxu0  ;;  %v11993_v50 = vld [vmem:[%s18129_s3 + $0x98] ss:$0 sm:$0xff] }
 0x600   :  { %v1265_v54 = vadd.f32 %v11969_v49, %v1264_v53 }
 0x602   :  { %v14625_v55 = vpack.c.bf16 %v1270_v52, %v1265_v54 }
 0x604   :  { %14626 = vmatprep.subr.bf16.mxu0 %v14625_v55 }
 0x605   :  { %14628 = vmatpush3.bf16.msra.mxu0 %v14625_v55  ;;  %v11999_v55 = vld [vmem:[%s18129_s3 + $0x1d8] ss:$0 sm:$0xff] }
 0x67f   :  { %v920_v56 = vpop.xlane.xlu1 %919 }
 0x680   :  { %v922_v57 = vsub.f32 %v912_v39, %v920_v56  ;;  %v917_v58 = vpop.xlane.xlu0 %916  ;;  %v14645_v39 = vpack.c.bf16 %v11989_v37, %v11988_v36 }
 0x681   :  { %v921_v59 = vsub.f32 %v907_v41, %v917_v58  ;;  %v11991_v41 = vld [vmem:[%s18129_s3 + $0x1d0] sm:$0xff] }
 0x682   :  { %v925_v60 = vmul.f32 1.442695, %v922_v57  ;;  %v14649_v42 = vpack.c.bf16 %v11991_v41, %v11990_v40 }
 0x683   :  { %v923_v61 = vmul.f32 1.442695, %v921_v59 }
 0x684   :  { %15439 = vpow2.f32 %v925_v60 }
 0x685   :  { %15441 = vpow2.f32 %v923_v61 }
 0x68e   :  { %v15440_v62 = vpop.eup %15439 }
 0x68f   :  { %v15442_v63 = vpop.eup %15441  ;;  %v930_v1 = vsel %vm469_vm5, %v15440_v62, 0.0 }
 0x690   :  { %931 = vadd.xlane.f32.xlu1 %v930_v1  ;;  %v927_v2 = vsel %vm469_vm5, %v15442_v63, 0.0 }
 0x691   :  { %928 = vadd.xlane.f32.xlu0 %v927_v2 }
 0x71d   :  { %v932_v6 = vpop.xlane.xlu1 %931 }
 0x71e   :  { %15443 = vrcp.f32 %v932_v6  ;;  %v929_v7 = vpop.xlane.xlu0 %928 }
 0x71f   :  { %15445 = vrcp.f32 %v929_v7 }
 0x728   :  { %v15444_v8 = vpop.eup %15443 }
 0x729   :  { %v15446_v11 = vpop.eup %15445  ;;  %v936_v15 = vmul.f32 %v15444_v8, %v15440_v62  ;;  %v11983_v8 = vld [vmem:[%s18129_s3 + $0x118] sm:$0xff] }
 0x72a   :  { %v935_v12 = vmul.f32 %v15446_v11, %v15442_v63  ;;  %v14637_v10 = vpack.c.bf16 %v11984_v9, %v11983_v8 }
 0x72c   :  { %13386 = vmatprep.mubr.msk.f32.mxu1 %vm469_vm5, %v935_v12  ;;  %14638 = vmatprep.subr.bf16.mxu0 %v14637_v10 }
 0x72d   :  { %13387 = vmatmul.mubr.msk.f32.vlgmr.msra.gmra.mrb[8].mxu1 %vm469_vm5, %v936_v15 }
 0x72e   :  { %14606 = vmatpush3.bf16.msra.mxu1 %v14603_v5  ;;  %13408 = vmatprep.mubr.msk.f32.mxu1 %vm81_vm0, %v15873_v46 }
 0x72f   :  { %14608 = vmatprep.subr.bf16.mxu1 %v14607_v16 }
 0x732   :  { %14610 = vmatpush3.bf16.msra.mxu1 %v14607_v16  ;;  %v11985_v16 = vld [vmem:[%s18129_s3 + $0x128] sm:$0xff] }
 0x735   :  { %13409 = vmatmul.mubr.msk.f32.vlgmr.msra.gmra.mrb[10].mxu1 %vm81_vm0, %v15885_v51 }
 0x736   :  { %13426 = vmatprep.mubr.msk.f32.mxu1 %vm381_vm1, %v1107_v17  ;;  %v11986_v17 = vld [vmem:[%s18129_s3 + $0x130] sm:$0xff] }
 0x800   :  { %v16072_v18 = vpop.f32.mrb[8].mxu1 }
 0x801   :  { %v16074_v19 = vpop.f32.mrb[9].mxu1 }
 0x808   :  { %v13410_v22 = vpop.f32.mrb[10].mxu1 }
 0x809   :  { %v1191_v23 = vadd.f32 %v13410_v22, %v11966_v21  ;;  %v1185_v24 = vpop.f32.mrb[11].mxu1 }
 0x80a   :  { %v1186_v27 = vadd.f32 %v11966_v21, %v1185_v24  ;;  %v14641_v24 = vpack.c.bf16 %v11986_v17, %v11985_v16 }
 0x80c   :  { %v14619_v28 = vpack.c.bf16 %v1191_v23, %v1186_v27 }
 0x80e   :  { %14621 = vmatprep.subr.msk.bf16.mxu1 %vm15909_vm2, %v14619_v28 }
 0x80f   :  { %14624 = vmatpush3.bf16.xpose.msk.msra.mxu1 %vm15909_vm2, %v14619_v28  ;;  %v11996_v28 = vld [vmem:[%s18129_s3 + $0x138] ss:$0 sm:$0xff] }
 0x810   :  { %14630 = vmatprep.subr.bf16.mxu1 %v14629_v29 }
 0x816   :  { %13427 = vmatmul.mubr.msk.f32.vlgmr.msra.gmra.mrb[12].mxu1 %vm381_vm1, %v16046_v47 }
 0x817   :  { %14632 = vmatpush3.bf16.msra.mxu1 %v14629_v29  ;;  %13444 = vmatprep.mubr.msk.f32.mxu1 %vm81_vm0, %v15873_v46 }
 0x818   :  { %14634 = vmatprep.subr.bf16.mxu1 %v14633_v34 }
 0x81b   :  { %14636 = vmatpush3.bf16.msra.mxu1 %v14633_v34 }
 0x81c   :  { %14646 = vmatprep.subr.bf16.mxu1 %v14645_v39 }
 0x81e   :  { %13445 = vmatmul.mubr.msk.f32.vlgmr.msra.gmra.mrb[14].mxu1 %vm81_vm0, %v15885_v51 }
 0x81f   :  { %14648 = vmatpush3.bf16.msra.mxu1 %v14645_v39  ;;  %13466 = vmatprep.mubr.msk.f32.mxu1 %vm81_vm0, %v15873_v46 }
 0x820   :  { %14650 = vmatprep.subr.bf16.mxu1 %v14649_v42 }
 0x823   :  { %14652 = vmatpush3.bf16.msra.mxu1 %v14649_v42 }
 0x826   :  { %13467 = vmatmul.mubr.msk.f32.vlgmr.msra.gmra.mrb[16].mxu1 %vm81_vm0, %v15885_v51 }
 0x8e9   :  { %v13428_v43 = vpop.f32.mrb[12].mxu1 }
 0x8ea   :  { %v1357_v44 = vadd.f32 %v13428_v43, %v15957_v32  ;;  %v1351_v45 = vpop.f32.mrb[13].mxu1 }
 0x8eb   :  { %v1352_v47 = vadd.f32 %v1351_v45, %v15959_v31 }
 0x8ec   :  { %v1363_v48 = vsel %vm469_vm5, %v1357_v44, -inf }
 0x8ed   :  { %1364 = vmax.xlane.f32.xlu1 %v1363_v48  ;;  %v1360_v49 = vsel %vm469_vm5, %v1352_v47, -inf }
 0x8ee   :  { %1361 = vmax.xlane.f32.xlu0 %v1360_v49 }
 0x8f1   :  { %v13446_v52 = vpop.f32.mrb[14].mxu1 }
 0x8f2   :  { %v1557_v53 = vadd.f32 %v13446_v52, %v11993_v50  ;;  %v1551_v54 = vpop.f32.mrb[15].mxu1 }
 0x8f3   :  { %v1552_v25 = vadd.f32 %v11993_v50, %v1551_v54 }
 0x8f9   :  { %v13468_v56 = vpop.f32.mrb[16].mxu1 }
 0x8fa   :  { %v1715_v57 = vadd.f32 %v13468_v56, %v11999_v55  ;;  %v1709_v58 = vpop.f32.mrb[17].mxu1 }
 0x8fb   :  { %v1710_v59 = vadd.f32 %v11999_v55, %v1709_v58 }
 0x8fd   :  { %v14659_v60 = vpack.c.bf16 %v1715_v57, %v1710_v59 }
 0x8ff   :  { %14660 = vmatprep.subr.bf16.mxu1 %v14659_v60 }
 0x900   :  { %14662 = vmatpush3.bf16.msra.mxu1 %v14659_v60 }
 0x97a   :  { %v1365_v61 = vpop.xlane.xlu1 %1364 }
 0x97b   :  { %v1367_v62 = vsub.f32 %v1357_v44, %v1365_v61  ;;  %v1362_v63 = vpop.xlane.xlu0 %1361 }
 0x97c   :  { %v1366_v1 = vsub.f32 %v1352_v47, %v1362_v63 }
 0x97d   :  { %v1370_v2 = vmul.f32 1.442695, %v1367_v62  ;;  %v68_v62 = vld [vmem:[%s18130_s4 + $0x10] sm:$0xff] }
 0x97e   :  { %v1368_v3 = vmul.f32 1.442695, %v1366_v1  ;;  %v69_v1 = vld [vmem:[%s18130_s4 + $0x18] sm:$0xff] }
 0x97f   :  { %15447 = vpow2.f32 %v1370_v2  ;;  %v14667_v2 = vpack.c.bf16 %v69_v1, %v68_v62 }
 0x980   :  { %15449 = vpow2.f32 %v1368_v3 }
 0x989   :  { %v15448_v4 = vpop.eup %15447 }
 0x98a   :  { %v15450_v5 = vpop.eup %15449  ;;  %v1375_v6 = vsel %vm469_vm5, %v15448_v4, 0.0 }
 0x98b   :  { %1376 = vadd.xlane.f32.xlu1 %v1375_v6  ;;  %v1372_v7 = vsel %vm469_vm5, %v15450_v5, 0.0 }
 0x98c   :  { %1373 = vadd.xlane.f32.xlu0 %v1372_v7 }
 0xa18   :  { %v1377_v11 = vpop.xlane.xlu1 %1376 }
 0xa19   :  { %15451 = vrcp.f32 %v1377_v11  ;;  %v1374_v12 = vpop.xlane.xlu0 %1373 }
 0xa1a   :  { %15453 = vrcp.f32 %v1374_v12 }
 0xa23   :  { %v15452_v15 = vpop.eup %15451 }
 0xa24   :  { %v15454_v21 = vpop.eup %15453  ;;  %v1381_v23 = vmul.f32 %v15452_v15, %v15448_v4 }
 0xa25   :  { %v1380_v22 = vmul.f32 %v15454_v21, %v15450_v5 }
 0xa27   :  { %13433 = vmatprep.mubr.msk.f32.mxu0 %vm469_vm5, %v1380_v22  ;;  %v16195_v22 = vsub.s32 0, %v15862_v35 }
 0xa28   :  { %13434 = vmatmul.mubr.msk.f32.vlgmr.msra.gmra.mrb[14].mxu0 %vm469_vm5, %v1381_v23 }
 0xa29   :  { %14640 = vmatpush3.bf16.msra.mxu0 %v14637_v10  ;;  %13455 = vmatprep.mubr.msk.f32.mxu0 %vm81_vm0, %v15873_v46 }
 0xa2a   :  { %14642 = vmatprep.subr.bf16.mxu0 %v14641_v24 }
 0xa2d   :  { %14644 = vmatpush3.bf16.msra.mxu0 %v14641_v24 }
 0xa30   :  { %13456 = vmatmul.mubr.msk.f32.vlgmr.msra.gmra.mrb[16].mxu0 %vm81_vm0, %v15885_v51 }
 0xa31   :  { %13473 = vmatprep.mubr.msk.f32.mxu0 %vm381_vm1, %v1552_v25 }
 0xafb   :  { %v13435_v26 = vpop.f32.mrb[14].mxu0 }
 0xafc   :  { %v1454_v27 = vpop.f32.mrb[15].mxu0 }
 0xb03   :  { %v13457_v29 = vpop.f32.mrb[16].mxu0 }
 0xb04   :  { %v1636_v30 = vadd.f32 %v13457_v29, %v11996_v28  ;;  %v1630_v33 = vpop.f32.mrb[17].mxu0 }
 0xb05   :  { %v1631_v34 = vadd.f32 %v11996_v28, %v1630_v33 }
 0xb07   :  { %v14653_v36 = vpack.c.bf16 %v1636_v30, %v1631_v34 }
 0xb09   :  { %14655 = vmatprep.subr.msk.bf16.mxu0 %vm15909_vm2, %v14653_v36 }
 0xb0a   :  { %14658 = vmatpush3.bf16.xpose.msk.msra.mxu0 %vm15909_vm2, %v14653_v36 }
 0xb11   :  { %13474 = vmatmul.mubr.msk.f32.vlgmr.msra.gmra.mrb[18].mxu0 %vm381_vm1, %v1557_v53 }
 0xbe4   :  { %v13475_v37 = vpop.f32.mrb[18].mxu0 }
 0xbe5   :  { %v1802_v39 = vadd.f32 %v13475_v37, %v15957_v32  ;;  %v1796_v40 = vpop.f32.mrb[19].mxu0 }
 0xbe6   :  { %v1797_v41 = vadd.f32 %v1796_v40, %v15959_v31 }
 0xbe7   :  { %v1808_v42 = vsel %vm469_vm5, %v1802_v39, -inf }
 0xbe8   :  { %1809 = vmax.xlane.f32.xlu1 %v1808_v42  ;;  %v1805_v43 = vsel %vm469_vm5, %v1797_v41, -inf }
 0xbe9   :  { %1806 = vmax.xlane.f32.xlu0 %v1805_v43  ;;  %v1940_v43 = vld [vmem:[%s18131_s5 + $0x8] sm:$0xff] }
 0xc75   :  { %v1810_v44 = vpop.xlane.xlu1 %1809 }
 0xc76   :  { %v1812_v45 = vsub.f32 %v1802_v39, %v1810_v44  ;;  %v1807_v47 = vpop.xlane.xlu0 %1806 }
 0xc77   :  { %v1811_v48 = vsub.f32 %v1797_v41, %v1807_v47  ;;  %v1942_v47 = vld [vmem:[%s18131_s5 + $0x18] sm:$0xff] }
 0xc78   :  { %v1815_v49 = vmul.f32 1.442695, %v1812_v45  ;;  %v1941_v45 = vld [vmem:[%s18131_s5 + $0x10] sm:$0xff] }
 0xc79   :  { %v1813_v50 = vmul.f32 1.442695, %v1811_v48  ;;  %v14675_v48 = vpack.c.bf16 %v1942_v47, %v1941_v45 }
 0xc7a   :  { %15455 = vpow2.f32 %v1815_v49 }
 0xc7b   :  { %15457 = vpow2.f32 %v1813_v50 }
 0xc84   :  { %v15456_v52 = vpop.eup %15455 }
 0xc85   :  { %v15458_v53 = vpop.eup %15457  ;;  %v1820_v54 = vsel %vm469_vm5, %v15456_v52, 0.0 }
 0xc86   :  { %1821 = vadd.xlane.f32.xlu1 %v1820_v54  ;;  %v1817_v55 = vsel %vm469_vm5, %v15458_v53, 0.0 }
 0xc87   :  { %1818 = vadd.xlane.f32.xlu0 %v1817_v55 }
 0xc97   :  { %1912 = vrot.lane.b32.xlu1 %v16072_v18, %s15744_s30  ;;  %v66_v18 = vld [vmem:[%s18130_s4] sm:$0xff] }
 0xc9b   :  { %1918 = vrot.lane.b32.xlu1 %v1454_v27, %s15745_s13 }
 0xc9d   :  { %1910 = vrot.lane.b32.xlu0 %v16074_v19, %s15744_s30  ;;  %v67_v19 = vld [vmem:[%s18130_s4 + $0x8] sm:$0xff] }
 0xc9e   :  { %v14663_v63 = vpack.c.bf16 %v67_v19, %v66_v18 }
 0xc9f   :  { %1920 = vrot.lane.b32.xlu1 %v13435_v26, %s15745_s13 }
 0xca0   :  { %14664 = vmatprep.subr.bf16.mxu0 %v14663_v63 }
 0xca1   :  { %14666 = vmatpush3.bf16.msra.mxu0 %v14663_v63 }
 0xca2   :  { %14668 = vmatprep.subr.bf16.mxu0 %v14667_v2 }
 0xca5   :  { %14670 = vmatpush3.bf16.msra.mxu0 %v14667_v2 }
 0xd13   :  { %v1822_v56 = vpop.xlane.xlu1 %1821 }
 0xd14   :  { %15459 = vrcp.f32 %v1822_v56  ;;  %v1819_v57 = vpop.xlane.xlu0 %1818  ;;  %v16218_v56 = vsub.s32 1, %v15862_v35 }
 0xd15   :  { %15461 = vrcp.f32 %v1819_v57  ;;  %v16221_v57 = vsub.s32 2, %v15862_v35 }
 0xd17   :  { %v1913_v5 = vpop.permute.xlu1 %1912 }
 0xd18   :  { %v1911_v8 = vpop.permute.xlu0 %1910  ;;  %v1933_v11 = vsel %vm381_vm1, %v15994_v13, %v1913_v5 }
 0xd19   :  { %v1932_v9 = vsel %vm381_vm1, %v15996_v14, %v1911_v8  ;;  %v1947_v14 = vrot.slane %v15868_v38, %v16195_v22 }
 0xd1b   :  { %v1919_v6 = vpop.permute.xlu1 %1918 }
 0xd1c   :  { %v1934_v12 = vsel %vm469_vm5, %v1932_v9, %v1919_v6  ;;  %v73_v6 = vld [vmem:[%s18130_s4 + $0x38] sm:$0xff]  ;;  %v75_v9 = vld [vmem:[%s18130_s4 + $0x48] sm:$0xff] }
 0xd1e   :  { %v15460_v58 = vpop.eup %15459 }
 0xd1f   :  { %v15462_v59 = vpop.eup %15461  ;;  %v1826_v61 = vmul.f32 %v15460_v58, %v15456_v52  ;;  %v1921_v7 = vpop.permute.xlu1 %1920  ;;  %v2060_v58 = vrot.slane %v15868_v38, %v16218_v56 }
 0xd20   :  { %v1825_v60 = vmul.f32 %v15462_v59, %v15458_v53  ;;  %v1935_v16 = vsel %vm469_vm5, %v1933_v11, %v1921_v7  ;;  %v74_v7 = vld [vmem:[%s18130_s4 + $0x40] sm:$0xff]  ;;  %v76_v11 = vld [vmem:[%s18130_s4 + $0x50] sm:$0xff] }
 0xd22   :  { %13480 = vmatprep.mubr.msk.f32.mxu1 %vm469_vm5, %v1825_v60 }
 0xd23   :  { %13481 = vmatmul.mubr.msk.f32.vlgmr.msra.gmra.mrb[18].mxu1 %vm469_vm5, %v1826_v61  ;;  %v2066_v61 = vrot.slane %v15868_v38, %v16221_v57  ;;  %v72_v38 = vld [vmem:[%s18130_s4 + $0x30] sm:$0xff] }
 0xd24   :  { %v14683_v8 = vpack.c.bf16 %v73_v6, %v72_v38  ;;  %v12025_v38 = vld [vmem:[%s18129_s3 + $0x320] sm:$0xff]  ;;  %v12026_v6 = vld [vmem:[%s18129_s3 + $0x328] sm:$0xff] }
 0xdf6   :  { %v13482_v3 = vpop.f32.mrb[18].mxu1 }
 0xdf7   :  { %1928 = vrot.lane.b32.xlu1 %v13482_v3, %s15746_s21  ;;  %v1899_v4 = vpop.f32.mrb[19].mxu1  ;;  %v70_v3 = vld [vmem:[%s18130_s4 + $0x20] sm:$0xff] }
 0xdf8   :  { %1926 = vrot.lane.b32.xlu0 %v1899_v4, %s15746_s21  ;;  %v71_v4 = vld [vmem:[%s18130_s4 + $0x28] sm:$0xff] }
 0xdf9   :  { %v14679_v5 = vpack.c.bf16 %v71_v4, %v70_v3  ;;  %v12016_v4 = vld [vmem:[%s18129_s3 + $0x1e8] sm:$0xff] }
 0xdfb   :  { %14680 = vmatprep.subr.bf16.mxu0 %v14679_v5 }
 0xe69   :  { %v1929_v10 = vpop.permute.xlu1 %1928 }
 0xe6a   :  { %v1927_v15 = vpop.permute.xlu0 %1926  ;;  %v1938_v21 = vsel %vm1936_vm6, %v1935_v16, %v1929_v10  ;;  %v14687_v10 = vpack.c.bf16 %v75_v9, %v74_v7  ;;  %v12010_v16 = vld [vmem:[%s18131_s5 + $0x20] ss:$0 sm:$0xff]  ;;  %v14711_v7 = vpack.c.bf16 %v12026_v6, %v12025_v38  ;;  %v12018_v9 = vld [vmem:[%s18129_s3 + $0x1f8] sm:$0xff]  ;;  %v12055_v6 = vld [vmem:[%s18129_s3 + $0x348] sm:$0xff] }
 0xe6b   :  { %v1937_v17 = vsel %vm1936_vm6, %v1934_v12, %v1927_v15  ;;  %v77_v12 = vld [vmem:[%s18130_s4 + $0x58] sm:$0xff] }
 0xe6c   :  { %13491 = vmatprep.mubr.msk.f32.mxu0 %vm81_vm0, %v1937_v17  ;;  %v14691_v15 = vpack.c.bf16 %v77_v12, %v76_v11  ;;  %v12027_v11 = vld [vmem:[%s18129_s3 + $0x330] sm:$0xff]  ;;  %v12028_v12 = vld [vmem:[%s18129_s3 + $0x338] sm:$0xff] }
 0xe6d   :  { %13492 = vmatmul.mubr.msk.f32.vlgmr.msra.gmra.mrb[20].mxu0 %vm81_vm0, %v1938_v21 }
 0xe6e   :  { %14682 = vmatpush3.bf16.msra.mxu0 %v14679_v5 }
 0xe6f   :  { %14684 = vmatprep.subr.bf16.mxu0 %v14683_v8 }
 0xe72   :  { %14686 = vmatpush3.bf16.msra.mxu0 %v14683_v8  ;;  %v12017_v8 = vld [vmem:[%s18129_s3 + $0x1f0] sm:$0xff] }
 0xe73   :  { %14688 = vmatprep.subr.bf16.mxu0 %v14687_v10 }
 0xe76   :  { %14690 = vmatpush3.bf16.msra.mxu0 %v14687_v10  ;;  %v14699_v10 = vpack.c.bf16 %v12018_v9, %v12017_v8  ;;  %v12057_v9 = vld [vmem:[%s18129_s3 + $0x358] sm:$0xff] }
 0xe77   :  { %14692 = vmatprep.subr.bf16.mxu0 %v14691_v15 }
 0xe7a   :  { %14694 = vmatpush3.bf16.msra.mxu0 %v14691_v15  ;;  %v14715_v15 = vpack.c.bf16 %v12028_v12, %v12027_v11 }
 0xe7b   :  { %14712 = vmatprep.subr.bf16.mxu0 %v14711_v7 }
 0xf40   :  { %v13493_v13 = vpop.f32.mrb[20].mxu0 }
 0xf41   :  { %v2026_v23 = vadd.f32 %v13493_v13, %v1947_v14  ;;  %v2020_v24 = vpop.f32.mrb[21].mxu0 }
 0xf42   :  { %v2021_v25 = vadd.f32 %v2020_v24, %v1947_v14 }
 0xf43   :  { %v2030_v26 = vadd.f32 %v2026_v23, %v15885_v51 }
 0xf44   :  { %v2029_v27 = vadd.f32 %v2021_v25, %v15873_v46  ;;  %v1939_v46 = vld [vmem:[%s18131_s5] sm:$0xff] }
 0xf45   :  { %v2034_v28 = vsel %vm81_vm0, %v2030_v26, 0.0  ;;  %v14671_v44 = vpack.c.bf16 %v1940_v43, %v1939_v46  ;;  %v16259_v43 = vsub.s32 3, %v15862_v35 }
 0xf46   :  { %2035 = vadd.xlane.f32.xlu1 %v2034_v28  ;;  %v2031_v29 = vsel %vm81_vm0, %v2029_v27, 0.0 }
 0xf47   :  { %2032 = vadd.xlane.f32.xlu0 %v2031_v29  ;;  %14672 = vmatprep.subr.bf16.mxu1 %v14671_v44 }
 0xf48   :  { %14674 = vmatpush3.bf16.msra.mxu1 %v14671_v44  ;;  %v15673_v44 = vld [vmem:[%s18130_s4 + $0x60] sm:$0xff] }
 0xf49   :  { %14676 = vmatprep.subr.bf16.mxu1 %v14675_v48  ;;  %v2175_v45 = vrot.slane %v15673_v44, %v16259_v43 }
 0xf4c   :  { %14678 = vmatpush3.bf16.msra.mxu1 %v14675_v48 }
 0xfd3   :  { %v2036_v30 = vpop.xlane.xlu1 %2035 }
 0xfd4   :  { %v2038_v33 = vmul.f32 0.03125, %v2036_v30  ;;  %v2033_v34 = vpop.xlane.xlu0 %2032 }
 0xfd5   :  { %v2037_v36 = vmul.f32 0.03125, %v2033_v34 }
 0xfd6   :  { %v2040_v37 = vsub.f32 %v2030_v26, %v2038_v33 }
 0xfd7   :  { %v2039_v39 = vsub.f32 %v2029_v27, %v2037_v36 }
 0xfd8   :  { %v2042_v42 = vmul.f32 %v2040_v37, %v2040_v37 }
 0xfd9   :  { %v2041_v40 = vmul.f32 %v2039_v39, %v2039_v39 }
 0xfda   :  { %v2046_v51 = vsel %vm81_vm0, %v2042_v42, 0.0 }
 0xfdb   :  { %v2043_v41 = vsel %vm81_vm0, %v2041_v40, 0.0 }
 0xfdc   :  { %2044 = vadd.xlane.f32.xlu0 %v2043_v41 }
 0xfe0   :  { %2047 = vadd.xlane.f32.xlu0 %v2046_v51 }
0x1069   :  { %v2045_v49 = vpop.xlane.xlu0 %2044 }
0x106a   :  { %v2049_v50 = vmul.f32 0.03125, %v2045_v49 }
0x106c   :  { %v2051_v52 = vadd.f32 1e-05, %v2049_v50 }
0x106d   :  { %v2048_v53 = vpop.xlane.xlu0 %2047 }
0x106e   :  { %15463 = vrsqrt.f32 %v2051_v52  ;;  %v2050_v54 = vmul.f32 0.03125, %v2048_v53 }
0x1070   :  { %v2052_v55 = vadd.f32 1e-05, %v2050_v54 }
0x1072   :  { %15465 = vrsqrt.f32 %v2052_v55 }
0x1078   :  { %v15464_v59 = vpop.eup %15463 }
0x1079   :  { %v2055_v60 = vmul.f32 %v15464_v59, %v2039_v39 }
0x107b   :  { %v2061_v18 = vmul.f32 %v2060_v58, %v2055_v60 }
0x107c   :  { %v15466_v19 = vpop.eup %15465 }
0x107d   :  { %v2056_v62 = vmul.f32 %v15466_v19, %v2040_v37  ;;  %v2067_v63 = vadd.f32 %v2066_v61, %v2061_v18 }
0x107f   :  { %v2062_v1 = vmul.f32 %v2060_v58, %v2056_v62  ;;  %13502 = vmatprep.mubr.msk.f32.mxu1 %vm81_vm0, %v2067_v63 }
0x1081   :  { %v2068_v2 = vadd.f32 %v2066_v61, %v2062_v1 }
0x1083   :  { %13503 = vmatmul.mubr.msk.f32.vlgmr.msra.gmra.mrb[20].mxu1 %vm81_vm0, %v2068_v2 }
0x1156   :  { %v13504_v17 = vpop.f32.mrb[20].mxu1 }
0x1157   :  { %v2151_v21 = vadd.f32 %v13504_v17, %v12010_v16  ;;  %v2145_v14 = vpop.f32.mrb[21].mxu1  ;;  %v12021_v17 = vld [vmem:[%s18129_s3 + $0x288] sm:$0xff] }
0x1158   :  { %v2146_v13 = vadd.f32 %v12010_v16, %v2145_v14  ;;  %v12020_v16 = vld [vmem:[%s18129_s3 + $0x280] sm:$0xff] }
0x1159   :  { %v2157_v23 = vmul.f32 0.044715, %v2151_v21  ;;  %v2155_v42 = vmul.f32 0.5, %v2151_v21 }
0x115a   :  { %v2156_v24 = vmul.f32 0.044715, %v2146_v13  ;;  %v2154_v40 = vmul.f32 0.5, %v2146_v13 }
0x115b   :  { %v2159_v25 = vmul.f32 %v2157_v23, %v2151_v21 }
0x115c   :  { %v2158_v26 = vmul.f32 %v2156_v24, %v2146_v13 }
0x115d   :  { %v2161_v27 = vmul.f32 %v2159_v25, %v2151_v21 }
0x115e   :  { %v2160_v28 = vmul.f32 %v2158_v26, %v2146_v13 }
0x115f   :  { %v2163_v29 = vadd.f32 %v2161_v27, %v2151_v21  ;;  %v14703_v21 = vpack.c.bf16 %v12021_v17, %v12020_v16  ;;  %v16300_v27 = vsub.s32 4, %v15862_v35 }
0x1160   :  { %v2162_v30 = vadd.f32 %v2160_v28, %v2146_v13  ;;  %v16303_v28 = vsub.s32 5, %v15862_v35 }
0x1161   :  { %v2165_v33 = vmul.f32 0.7978846, %v2163_v29  ;;  %v2289_v29 = vrot.slane %v15673_v44, %v16300_v27 }
0x1162   :  { %v2164_v34 = vmul.f32 0.7978846, %v2162_v30 }
0x1163   :  { %15467 = vtanh.f32 %v2165_v33 }
0x1164   :  { %15469 = vtanh.f32 %v2164_v34 }
0x116d   :  { %v15468_v36 = vpop.eup %15467 }
0x116e   :  { %v15470_v37 = vpop.eup %15469  ;;  %v2169_v39 = vadd.f32 1.0, %v15468_v36  ;;  %v2295_v36 = vrot.slane %v15673_v44, %v16303_v28  ;;  %v12036_v44 = vld [vmem:[%s18129_s3 + $0x340] ss:$0 sm:$0xff] }
0x116f   :  { %v2168_v41 = vadd.f32 1.0, %v15470_v37 }
0x1170   :  { %v2171_v46 = vmul.f32 %v2169_v39, %v2155_v42  ;;  %v12023_v42 = vld [vmem:[%s18129_s3 + $0x298] sm:$0xff] }
0x1171   :  { %v2170_v51 = vmul.f32 %v2168_v41, %v2154_v40  ;;  %v12022_v41 = vld [vmem:[%s18129_s3 + $0x290] sm:$0xff] }
0x1173   :  { %13521 = vmatprep.mubr.msk.f32.mxu0 %vm2176_vm7, %v2170_v51 }
0x1174   :  { %13522 = vmatmul.mubr.msk.f32.vlgmr.msra.gmra.mrb[22].mxu0 %vm2176_vm7, %v2171_v46 }
0x1175   :  { %14714 = vmatpush3.bf16.msra.mxu0 %v14711_v7  ;;  %v12056_v7 = vld [vmem:[%s18129_s3 + $0x350] sm:$0xff] }
0x1176   :  { %14716 = vmatprep.subr.bf16.mxu0 %v14715_v15  ;;  %v14745_v8 = vpack.c.bf16 %v12056_v7, %v12055_v6  ;;  %v12075_v6 = vld [vmem:[%s18129_s3 + $0x230] sm:$0xff]  ;;  %v12076_v7 = vld [vmem:[%s18129_s3 + $0x238] sm:$0xff] }
0x1179   :  { %14718 = vmatpush3.bf16.msra.mxu0 %v14715_v15 }
0x1247   :  { %v13523_v47 = vpop.f32.mrb[22].mxu0 }
0x1248   :  { %v2255_v48 = vadd.f32 %v13523_v47, %v2175_v45  ;;  %v2249_v49 = vpop.f32.mrb[23].mxu0  ;;  %v12030_v47 = vld [vmem:[%s18129_s3 + $0x200] ss:$0 sm:$0xff] }
0x1249   :  { %v2250_v50 = vadd.f32 %v2249_v49, %v2175_v45  ;;  %v14707_v45 = vpack.c.bf16 %v12023_v42, %v12022_v41 }
0x124a   :  { %v2259_v52 = vadd.f32 %v2255_v48, %v2068_v2 }
0x124b   :  { %v2258_v53 = vadd.f32 %v2250_v50, %v2067_v63  ;;  %v12015_v63 = vld [vmem:[%s18129_s3 + $0x1e0] sm:$0xff] }
0x124c   :  { %v2263_v54 = vsel %vm81_vm0, %v2259_v52, 0.0  ;;  %v14695_v5 = vpack.c.bf16 %v12016_v4, %v12015_v63  ;;  %v12047_v63 = vld [vmem:[%s18129_s3 + $0x218] sm:$0xff]  ;;  %v12048_v4 = vld [vmem:[%s18129_s3 + $0x220] sm:$0xff] }
0x124d   :  { %2264 = vadd.xlane.f32.xlu1 %v2263_v54  ;;  %v2260_v55 = vsel %vm81_vm0, %v2258_v53, 0.0  ;;  %v14733_v38 = vpack.c.bf16 %v12048_v4, %v12047_v63  ;;  %v12063_v63 = vld [vmem:[%s18129_s3 + $0x2c8] ss:$0 sm:$0xff] }
0x124e   :  { %2261 = vadd.xlane.f32.xlu0 %v2260_v55  ;;  %14696 = vmatprep.subr.bf16.mxu1 %v14695_v5 }
0x124f   :  { %14698 = vmatpush3.bf16.msra.mxu1 %v14695_v5 }
0x1250   :  { %14700 = vmatprep.subr.bf16.mxu1 %v14699_v10 }
0x1253   :  { %14702 = vmatpush3.bf16.msra.mxu1 %v14699_v10  ;;  %v12058_v10 = vld [vmem:[%s18129_s3 + $0x360] sm:$0xff] }
0x1254   :  { %14704 = vmatprep.subr.bf16.mxu1 %v14703_v21  ;;  %v14749_v11 = vpack.c.bf16 %v12058_v10, %v12057_v9  ;;  %v14763_v10 = vpack.c.bf16 %v12076_v7, %v12075_v6 }
0x12da   :  { %v2265_v58 = vpop.xlane.xlu1 %2264 }
0x12db   :  { %v2267_v59 = vmul.f32 0.03125, %v2265_v58  ;;  %v2262_v60 = vpop.xlane.xlu0 %2261 }
0x12dc   :  { %v2266_v61 = vmul.f32 0.03125, %v2262_v60 }
0x12dd   :  { %v2269_v18 = vsub.f32 %v2259_v52, %v2267_v59  ;;  %v12033_v59 = vld [vmem:[%s18129_s3 + $0x2a0] ss:$0 sm:$0xff] }
0x12de   :  { %v2268_v19 = vsub.f32 %v2258_v53, %v2266_v61 }
0x12df   :  { %v2271_v62 = vmul.f32 %v2269_v18, %v2269_v18 }
0x12e0   :  { %v2270_v1 = vmul.f32 %v2268_v19, %v2268_v19 }
0x12e1   :  { %v2275_v3 = vsel %vm81_vm0, %v2271_v62, 0.0  ;;  %v12046_v62 = vld [vmem:[%s18129_s3 + $0x210] sm:$0xff] }
0x12e2   :  { %2276 = vadd.xlane.f32.xlu1 %v2275_v3  ;;  %v2272_v2 = vsel %vm81_vm0, %v2270_v1, 0.0 }
0x12e3   :  { %2273 = vadd.xlane.f32.xlu0 %v2272_v2 }
0x136f   :  { %v2277_v14 = vpop.xlane.xlu1 %2276 }
0x1370   :  { %v2279_v13 = vmul.f32 0.03125, %v2277_v14  ;;  %v2274_v23 = vpop.xlane.xlu0 %2273 }
0x1371   :  { %v2278_v24 = vmul.f32 0.03125, %v2274_v23 }
0x1372   :  { %v2281_v25 = vadd.f32 1e-05, %v2279_v13  ;;  %v12060_v13 = vld [vmem:[%s18129_s3 + $0x228] ss:$0 sm:$0xff] }
0x1373   :  { %v2280_v26 = vadd.f32 1e-05, %v2278_v24 }
0x1374   :  { %15471 = vrsqrt.f32 %v2281_v25 }
0x1375   :  { %15473 = vrsqrt.f32 %v2280_v26  ;;  %v12066_v26 = vld [vmem:[%s18129_s3 + $0x368] ss:$0 sm:$0xff] }
0x137e   :  { %v15472_v30 = vpop.eup %15471 }
0x137f   :  { %v15474_v33 = vpop.eup %15473  ;;  %v2285_v34 = vmul.f32 %v15472_v30, %v2269_v18 }
0x1380   :  { %v2284_v37 = vmul.f32 %v15474_v33, %v2268_v19  ;;  %v12045_v19 = vld [vmem:[%s18129_s3 + $0x208] sm:$0xff] }
0x1381   :  { %v2291_v39 = vmul.f32 %v2289_v29, %v2285_v34  ;;  %v14729_v2 = vpack.c.bf16 %v12046_v62, %v12045_v19 }
0x1382   :  { %v2290_v40 = vmul.f32 %v2289_v29, %v2284_v37 }
0x1383   :  { %v16315_v46 = vadd.f32 %v2295_v36, %v2291_v39 }
0x1384   :  { %v16313_v51 = vadd.f32 %v2295_v36, %v2290_v40 }
0x1386   :  { %13532 = vmatprep.mubr.msk.f32.mxu1 %vm81_vm0, %v16313_v51  ;;  %13554 = vmatprep.mubr.msk.f32.mxu0 %vm81_vm0, %v16313_v51 }
0x1387   :  { %13533 = vmatmul.mubr.msk.f32.vlgmr.msra.gmra.mrb[22].mxu1 %vm81_vm0, %v16315_v46  ;;  %13555 = vmatmul.mubr.msk.f32.vlgmr.msra.gmra.mrb[24].mxu0 %vm81_vm0, %v16315_v46 }
0x1388   :  { %14706 = vmatpush3.bf16.msra.mxu1 %v14703_v21  ;;  %13543 = vmatprep.mubr.msk.f32.mxu1 %vm81_vm0, %v16313_v51 }
0x1389   :  { %14708 = vmatprep.subr.bf16.mxu1 %v14707_v45 }
0x138c   :  { %14710 = vmatpush3.bf16.msra.mxu1 %v14707_v45 }
0x138f   :  { %13544 = vmatmul.mubr.msk.f32.vlgmr.msra.gmra.mrb[24].mxu1 %vm81_vm0, %v16315_v46 }
0x145a   :  { %v13534_v48 = vpop.f32.mrb[22].mxu1  ;;  %v13556_v49 = vpop.f32.mrb[24].mxu0 }
0x145b   :  { %v2556_v50 = vadd.f32 %v13556_v49, %v12036_v44  ;;  %v2392_v52 = vpop.f32.mrb[23].mxu1  ;;  %v2550_v53 = vpop.f32.mrb[25].mxu0  ;;  %v2398_v5 = vadd.f32 %v13534_v48, %v12030_v47 }
0x145c   :  { %v2393_v54 = vadd.f32 %v12030_v47, %v2392_v52  ;;  %v2551_v55 = vadd.f32 %v12036_v44, %v2550_v53  ;;  %v12051_v52 = vld [vmem:[%s18129_s3 + $0x2b0] sm:$0xff] }
0x145e   :  { %v14725_v58 = vpack.c.bf16 %v2556_v50, %v2551_v55  ;;  %13561 = vmatprep.mubr.msk.f32.mxu1 %vm381_vm1, %v2393_v54  ;;  %v12050_v50 = vld [vmem:[%s18129_s3 + $0x2a8] sm:$0xff] }
0x145f   :  { %v14737_v53 = vpack.c.bf16 %v12051_v52, %v12050_v50 }
0x1460   :  { %14726 = vmatprep.subr.bf16.mxu0 %v14725_v58 }
0x1461   :  { %14728 = vmatpush3.bf16.msra.mxu0 %v14725_v58 }
0x1462   :  { %v13545_v60 = vpop.f32.mrb[24].mxu1  ;;  %14738 = vmatprep.subr.bf16.mxu0 %v14737_v53 }
0x1463   :  { %v2477_v61 = vadd.f32 %v13545_v60, %v12033_v59  ;;  %v2471_v18 = vpop.f32.mrb[25].mxu1  ;;  %v12053_v60 = vld [vmem:[%s18129_s3 + $0x2c0] sm:$0xff] }
0x1464   :  { %v2472_v1 = vadd.f32 %v12033_v59, %v2471_v18  ;;  %v12052_v59 = vld [vmem:[%s18129_s3 + $0x2b8] sm:$0xff] }
0x1465   :  { %v14741_v62 = vpack.c.bf16 %v12053_v60, %v12052_v59 }
0x1466   :  { %v14719_v3 = vpack.c.bf16 %v2477_v61, %v2472_v1 }
0x1468   :  { %14721 = vmatprep.subr.msk.bf16.mxu1 %vm15909_vm2, %v14719_v3 }
0x1469   :  { %14724 = vmatpush3.bf16.xpose.msk.msra.mxu1 %vm15909_vm2, %v14719_v3 }
0x146a   :  { %14730 = vmatprep.subr.bf16.mxu1 %v14729_v2 }
0x1470   :  { %13562 = vmatmul.mubr.msk.f32.vlgmr.msra.gmra.mrb[26].mxu1 %vm381_vm1, %v2398_v5 }
0x1471   :  { %14732 = vmatpush3.bf16.msra.mxu1 %v14729_v2  ;;  %13579 = vmatprep.mubr.msk.f32.mxu1 %vm81_vm0, %v16313_v51 }
0x1472   :  { %14734 = vmatprep.subr.bf16.mxu1 %v14733_v38 }
0x1475   :  { %14736 = vmatpush3.bf16.msra.mxu1 %v14733_v38 }
0x1476   :  { %14746 = vmatprep.subr.bf16.mxu1 %v14745_v8 }
0x1478   :  { %13580 = vmatmul.mubr.msk.f32.vlgmr.msra.gmra.mrb[28].mxu1 %vm81_vm0, %v16315_v46 }
0x1479   :  { %14748 = vmatpush3.bf16.msra.mxu1 %v14745_v8  ;;  %13601 = vmatprep.mubr.msk.f32.mxu1 %vm81_vm0, %v16313_v51 }
0x147a   :  { %14750 = vmatprep.subr.bf16.mxu1 %v14749_v11 }
0x147d   :  { %14752 = vmatpush3.bf16.msra.mxu1 %v14749_v11  ;;  %v12077_v11 = vld [vmem:[%s18129_s3 + $0x240] sm:$0xff] }
0x1480   :  { %13602 = vmatmul.mubr.msk.f32.vlgmr.msra.gmra.mrb[30].mxu1 %vm81_vm0, %v16315_v46 }
0x1543   :  { %v13563_v12 = vpop.f32.mrb[26].mxu1 }
0x1544   :  { %v2643_v15 = vadd.f32 %v13563_v12, %v15957_v32  ;;  %v2637_v16 = vpop.f32.mrb[27].mxu1  ;;  %v12078_v12 = vld [vmem:[%s18129_s3 + $0x248] sm:$0xff] }
0x1545   :  { %v2638_v17 = vadd.f32 %v2637_v16, %v15959_v31  ;;  %v12085_v16 = vld [vmem:[%s18129_s3 + $0x370] sm:$0xff] }
0x1546   :  { %v2649_v21 = vsel %vm469_vm5, %v2643_v15, -inf }
0x1547   :  { %2650 = vmax.xlane.f32.xlu1 %v2649_v21  ;;  %v2646_v14 = vsel %vm469_vm5, %v2638_v17, -inf }
0x1548   :  { %2647 = vmax.xlane.f32.xlu0 %v2646_v14  ;;  %v12087_v14 = vld [vmem:[%s18129_s3 + $0x380] sm:$0xff] }
0x154b   :  { %v13581_v23 = vpop.f32.mrb[28].mxu1 }
0x154c   :  { %v16383_v24 = vadd.f32 %v13581_v23, %v12060_v13  ;;  %v2837_v25 = vpop.f32.mrb[29].mxu1 }
0x154d   :  { %v2838_v1 = vadd.f32 %v12060_v13, %v2837_v25  ;;  %v12088_v13 = vld [vmem:[%s18129_s3 + $0x388] sm:$0xff] }
0x154e   :  { %v14783_v23 = vpack.c.bf16 %v12088_v13, %v12087_v14  ;;  %v12106_v14 = vld [vmem:[%s18129_s3 + $0x260] sm:$0xff] }
0x1553   :  { %v13603_v29 = vpop.f32.mrb[30].mxu1 }
0x1554   :  { %v3001_v30 = vadd.f32 %v13603_v29, %v12066_v26  ;;  %v2995_v33 = vpop.f32.mrb[31].mxu1 }
0x1555   :  { %v2996_v34 = vadd.f32 %v12066_v26, %v2995_v33 }
0x1557   :  { %v14759_v36 = vpack.c.bf16 %v3001_v30, %v2996_v34  ;;  %v12090_v34 = vld [vmem:[%s18129_s3 + $0x250] ss:$0 sm:$0xff] }
0x1559   :  { %14760 = vmatprep.subr.bf16.mxu1 %v14759_v36 }
0x155a   :  { %14762 = vmatpush3.bf16.msra.mxu1 %v14759_v36 }
0x15d4   :  { %v2651_v37 = vpop.xlane.xlu1 %2650 }
0x15d5   :  { %v2653_v39 = vsub.f32 %v2643_v15, %v2651_v37  ;;  %v2648_v40 = vpop.xlane.xlu0 %2647  ;;  %v14767_v15 = vpack.c.bf16 %v12078_v12, %v12077_v11  ;;  %v12093_v12 = vld [vmem:[%s18129_s3 + $0x2f0] ss:$0 sm:$0xff] }
0x15d6   :  { %v2652_v41 = vsub.f32 %v2638_v17, %v2648_v40  ;;  %v12086_v17 = vld [vmem:[%s18129_s3 + $0x378] sm:$0xff]  ;;  %v12096_v40 = vld [vmem:[%s18129_s3 + $0x390] ss:$0 sm:$0xff] }
0x15d7   :  { %v2656_v42 = vmul.f32 1.442695, %v2653_v39  ;;  %v14779_v21 = vpack.c.bf16 %v12086_v17, %v12085_v16 }
0x15d8   :  { %v2654_v45 = vmul.f32 1.442695, %v2652_v41 }
0x15d9   :  { %15475 = vpow2.f32 %v2656_v42 }
0x15da   :  { %15477 = vpow2.f32 %v2654_v45 }
0x15e3   :  { %v15476_v44 = vpop.eup %15475 }
0x15e4   :  { %v15478_v47 = vpop.eup %15477  ;;  %v2661_v48 = vsel %vm469_vm5, %v15476_v44, 0.0 }
0x15e5   :  { %2662 = vadd.xlane.f32.xlu1 %v2661_v48  ;;  %v2658_v49 = vsel %vm469_vm5, %v15478_v47, 0.0 }
0x15e6   :  { %2659 = vadd.xlane.f32.xlu0 %v2658_v49 }
0x1672   :  { %v2663_v54 = vpop.xlane.xlu1 %2662 }
0x1673   :  { %15479 = vrcp.f32 %v2663_v54  ;;  %v2660_v55 = vpop.xlane.xlu0 %2659 }
0x1674   :  { %15481 = vrcp.f32 %v2660_v55 }
0x167d   :  { %v15480_v58 = vpop.eup %15479 }
0x167e   :  { %v15482_v61 = vpop.eup %15481  ;;  %v2667_v19 = vmul.f32 %v15480_v58, %v15476_v44 }
0x167f   :  { %v2666_v18 = vmul.f32 %v15482_v61, %v15478_v47  ;;  %v12080_v61 = vld [vmem:[%s18129_s3 + $0x2d0] sm:$0xff] }
0x1681   :  { %13568 = vmatprep.mubr.msk.f32.mxu0 %vm469_vm5, %v2666_v18  ;;  %v12081_v18 = vld [vmem:[%s18129_s3 + $0x2d8] sm:$0xff] }
0x1682   :  { %13569 = vmatmul.mubr.msk.f32.vlgmr.msra.gmra.mrb[26].mxu0 %vm469_vm5, %v2667_v19  ;;  %v14771_v19 = vpack.c.bf16 %v12081_v18, %v12080_v61 }
0x1683   :  { %14740 = vmatpush3.bf16.msra.mxu0 %v14737_v53  ;;  %13590 = vmatprep.mubr.msk.f32.mxu0 %vm81_vm0, %v16313_v51 }
0x1684   :  { %14742 = vmatprep.subr.bf16.mxu0 %v14741_v62  ;;  %14772 = vmatprep.subr.bf16.mxu1 %v14771_v19 }
0x1687   :  { %14744 = vmatpush3.bf16.msra.mxu0 %v14741_v62 }
0x168a   :  { %13591 = vmatmul.mubr.msk.f32.vlgmr.msra.gmra.mrb[28].mxu0 %vm81_vm0, %v16315_v46 }
0x168b   :  { %13608 = vmatprep.mubr.msk.f32.mxu0 %vm381_vm1, %v2838_v1 }
0x1755   :  { %v16409_v3 = vpop.f32.mrb[26].mxu0 }
0x1756   :  { %v16411_v2 = vpop.f32.mrb[27].mxu0 }
0x175d   :  { %v13592_v4 = vpop.f32.mrb[28].mxu0 }
0x175e   :  { %v2922_v5 = vadd.f32 %v13592_v4, %v12063_v63  ;;  %v2916_v38 = vpop.f32.mrb[29].mxu0  ;;  %v12082_v4 = vld [vmem:[%s18129_s3 + $0x2e0] sm:$0xff] }
0x175f   :  { %v2917_v8 = vadd.f32 %v12063_v63, %v2916_v38 }
0x1761   :  { %v14753_v9 = vpack.c.bf16 %v2922_v5, %v2917_v8  ;;  %v12083_v5 = vld [vmem:[%s18129_s3 + $0x2e8] sm:$0xff] }
0x1762   :  { %v14775_v8 = vpack.c.bf16 %v12083_v5, %v12082_v4 }
0x1763   :  { %14755 = vmatprep.subr.msk.bf16.mxu0 %vm15909_vm2, %v14753_v9 }
0x1764   :  { %14758 = vmatpush3.bf16.xpose.msk.msra.mxu0 %vm15909_vm2, %v14753_v9 }
0x1765   :  { %14764 = vmatprep.subr.bf16.mxu0 %v14763_v10 }
0x176b   :  { %13609 = vmatmul.mubr.msk.f32.vlgmr.msra.gmra.mrb[30].mxu0 %vm381_vm1, %v16383_v24 }
0x176c   :  { %14766 = vmatpush3.bf16.msra.mxu0 %v14763_v10  ;;  %13626 = vmatprep.mubr.msk.f32.mxu0 %vm81_vm0, %v16313_v51 }
0x176d   :  { %14768 = vmatprep.subr.bf16.mxu0 %v14767_v15 }
0x1770   :  { %14770 = vmatpush3.bf16.msra.mxu0 %v14767_v15 }
0x1771   :  { %14780 = vmatprep.subr.bf16.mxu0 %v14779_v21 }
0x1773   :  { %13627 = vmatmul.mubr.msk.f32.vlgmr.msra.gmra.mrb[32].mxu0 %vm81_vm0, %v16315_v46 }
0x1774   :  { %14782 = vmatpush3.bf16.msra.mxu0 %v14779_v21  ;;  %13648 = vmatprep.mubr.msk.f32.mxu0 %vm81_vm0, %v16313_v51  ;;  %v12105_v21 = vld [vmem:[%s18129_s3 + $0x258] sm:$0xff] }
0x1775   :  { %14784 = vmatprep.subr.bf16.mxu0 %v14783_v23 }
0x1778   :  { %14786 = vmatpush3.bf16.msra.mxu0 %v14783_v23 }
0x177b   :  { %13649 = vmatmul.mubr.msk.f32.vlgmr.msra.gmra.mrb[34].mxu0 %vm81_vm0, %v16315_v46 }
0x183e   :  { %v13610_v24 = vpop.f32.mrb[30].mxu0 }
0x183f   :  { %v3088_v25 = vadd.f32 %v13610_v24, %v15957_v32  ;;  %v3082_v26 = vpop.f32.mrb[31].mxu0  ;;  %v14797_v24 = vpack.c.bf16 %v12106_v14, %v12105_v21  ;;  %v12113_v21 = vld [vmem:[%s18129_s3 + $0x310] sm:$0xff] }
0x1840   :  { %v3083_v29 = vadd.f32 %v3082_v26, %v15959_v31  ;;  %v12108_v26 = vld [vmem:[%s18129_s3 + $0x270] sm:$0xff] }
0x1841   :  { %v3094_v30 = vsel %vm469_vm5, %v3088_v25, -inf }
0x1842   :  { %3095 = vmax.xlane.f32.xlu1 %v3094_v30  ;;  %v3091_v33 = vsel %vm469_vm5, %v3083_v29, -inf  ;;  %v12115_v30 = vld [vmem:[%s18129_s3 + $0x398] sm:$0xff] }
0x1843   :  { %3092 = vmax.xlane.f32.xlu0 %v3091_v33  ;;  %v12116_v33 = vld [vmem:[%s18129_s3 + $0x3a0] sm:$0xff] }
0x1846   :  { %v13628_v36 = vpop.f32.mrb[32].mxu0 }
0x1847   :  { %v16461_v37 = vadd.f32 %v13628_v36, %v12090_v34  ;;  %v3282_v39 = vpop.f32.mrb[33].mxu0  ;;  %v12117_v36 = vld [vmem:[%s18129_s3 + $0x3a8] sm:$0xff] }
0x1848   :  { %v3283_v9 = vadd.f32 %v12090_v34, %v3282_v39  ;;  %v14813_v34 = vpack.c.bf16 %v12116_v33, %v12115_v30  ;;  %v12118_v39 = vld [vmem:[%s18129_s3 + $0x3b0] sm:$0xff]  ;;  %v12123_v30 = vld [vmem:[%s18129_s3 + $0x318] ss:$0 sm:$0xff] }
0x184e   :  { %v13650_v41 = vpop.f32.mrb[34].mxu0 }
0x184f   :  { %v3446_v42 = vadd.f32 %v13650_v41, %v12096_v40  ;;  %v3440_v45 = vpop.f32.mrb[35].mxu0 }
0x1850   :  { %v3441_v44 = vadd.f32 %v12096_v40, %v3440_v45  ;;  %v14817_v40 = vpack.c.bf16 %v12118_v39, %v12117_v36 }
0x1852   :  { %v14793_v47 = vpack.c.bf16 %v3446_v42, %v3441_v44 }
0x1854   :  { %14794 = vmatprep.subr.bf16.mxu0 %v14793_v47 }
0x1855   :  { %14796 = vmatpush3.bf16.msra.mxu0 %v14793_v47 }
0x18cf   :  { %v3096_v48 = vpop.xlane.xlu1 %3095 }
0x18d0   :  { %v3098_v49 = vsub.f32 %v3088_v25, %v3096_v48  ;;  %v3093_v50 = vpop.xlane.xlu0 %3092  ;;  %v12107_v25 = vld [vmem:[%s18129_s3 + $0x268] sm:$0xff]  ;;  %v12120_v48 = vld [vmem:[%s18129_s3 + $0x278] ss:$0 sm:$0xff] }
0x18d1   :  { %v3097_v52 = vsub.f32 %v3083_v29, %v3093_v50  ;;  %v14801_v29 = vpack.c.bf16 %v12108_v26, %v12107_v25 }
0x18d2   :  { %v3101_v53 = vmul.f32 1.442695, %v3098_v49 }
0x18d3   :  { %v3099_v54 = vmul.f32 1.442695, %v3097_v52 }
0x18d4   :  { %15483 = vpow2.f32 %v3101_v53  ;;  %v12126_v53 = vld [vmem:[%s18129_s3 + $0x3b8] ss:$0 sm:$0xff] }
0x18d5   :  { %15485 = vpow2.f32 %v3099_v54 }
0x18de   :  { %v15484_v55 = vpop.eup %15483 }
0x18df   :  { %v15486_v58 = vpop.eup %15485  ;;  %v3106_v59 = vsel %vm469_vm5, %v15484_v55, 0.0 }
0x18e0   :  { %3107 = vadd.xlane.f32.xlu1 %v3106_v59  ;;  %v3103_v60 = vsel %vm469_vm5, %v15486_v58, 0.0 }
0x18e1   :  { %3104 = vadd.xlane.f32.xlu0 %v3103_v60 }
0x196d   :  { %v3108_v62 = vpop.xlane.xlu1 %3107 }
0x196e   :  { %15487 = vrcp.f32 %v3108_v62  ;;  %v3105_v1 = vpop.xlane.xlu0 %3104 }
0x196f   :  { %15489 = vrcp.f32 %v3105_v1 }
0x1978   :  { %v15488_v63 = vpop.eup %15487 }
0x1979   :  { %v15490_v38 = vpop.eup %15489  ;;  %v3112_v7 = vmul.f32 %v15488_v63, %v15484_v55 }
0x197a   :  { %v3111_v6 = vmul.f32 %v15490_v38, %v15486_v58 }
0x197c   :  { %13615 = vmatprep.mubr.msk.f32.mxu1 %vm469_vm5, %v3111_v6 }
0x197d   :  { %13616 = vmatmul.mubr.msk.f32.vlgmr.msra.gmra.mrb[32].mxu1 %vm469_vm5, %v3112_v7  ;;  %v12110_v7 = vld [vmem:[%s18129_s3 + $0x2f8] sm:$0xff] }
0x197e   :  { %14774 = vmatpush3.bf16.msra.mxu1 %v14771_v19  ;;  %13637 = vmatprep.mubr.msk.f32.mxu1 %vm81_vm0, %v16313_v51 }
0x197f   :  { %14776 = vmatprep.subr.bf16.mxu1 %v14775_v8 }
0x1982   :  { %14778 = vmatpush3.bf16.msra.mxu1 %v14775_v8  ;;  %v12111_v8 = vld [vmem:[%s18129_s3 + $0x300] sm:$0xff] }
0x1985   :  { %13638 = vmatmul.mubr.msk.f32.vlgmr.msra.gmra.mrb[34].mxu1 %vm81_vm0, %v16315_v46 }
0x1986   :  { %13655 = vmatprep.mubr.msk.f32.mxu1 %vm381_vm1, %v3283_v9  ;;  %v14805_v9 = vpack.c.bf16 %v12111_v8, %v12110_v7 }
0x1988   :  { %14806 = vmatprep.subr.bf16.mxu0 %v14805_v9 }
0x1a50   :  { %v16487_v10 = vpop.f32.mrb[32].mxu1 }
0x1a51   :  { %v16489_v11 = vpop.f32.mrb[33].mxu1 }
0x1a58   :  { %v13639_v15 = vpop.f32.mrb[34].mxu1 }
0x1a59   :  { %v3367_v16 = vadd.f32 %v13639_v15, %v12093_v12  ;;  %v3361_v17 = vpop.f32.mrb[35].mxu1 }
0x1a5a   :  { %v3362_v13 = vadd.f32 %v12093_v12, %v3361_v17  ;;  %v12112_v17 = vld [vmem:[%s18129_s3 + $0x308] sm:$0xff] }
0x1a5c   :  { %v14787_v23 = vpack.c.bf16 %v3367_v16, %v3362_v13 }
0x1a5e   :  { %14789 = vmatprep.subr.msk.bf16.mxu1 %vm15909_vm2, %v14787_v23 }
0x1a5f   :  { %14792 = vmatpush3.bf16.xpose.msk.msra.mxu1 %vm15909_vm2, %v14787_v23 }
0x1a60   :  { %14798 = vmatprep.subr.bf16.mxu1 %v14797_v24 }
0x1a66   :  { %13656 = vmatmul.mubr.msk.f32.vlgmr.msra.gmra.mrb[36].mxu1 %vm381_vm1, %v16461_v37 }
0x1a67   :  { %14800 = vmatpush3.bf16.msra.mxu1 %v14797_v24  ;;  %13673 = vmatprep.mubr.msk.f32.mxu1 %vm81_vm0, %v16313_v51  ;;  %v14809_v24 = vpack.c.bf16 %v12113_v21, %v12112_v17 }
0x1a68   :  { %14802 = vmatprep.subr.bf16.mxu1 %v14801_v29 }
0x1a6b   :  { %14804 = vmatpush3.bf16.msra.mxu1 %v14801_v29 }
0x1a6c   :  { %14814 = vmatprep.subr.bf16.mxu1 %v14813_v34 }
0x1a6e   :  { %13674 = vmatmul.mubr.msk.f32.vlgmr.msra.gmra.mrb[38].mxu1 %vm81_vm0, %v16315_v46 }
0x1a6f   :  { %14816 = vmatpush3.bf16.msra.mxu1 %v14813_v34  ;;  %13695 = vmatprep.mubr.msk.f32.mxu1 %vm81_vm0, %v16313_v51 }
0x1a70   :  { %14818 = vmatprep.subr.bf16.mxu1 %v14817_v40 }
0x1a73   :  { %14820 = vmatpush3.bf16.msra.mxu1 %v14817_v40 }
0x1a76   :  { %13696 = vmatmul.mubr.msk.f32.vlgmr.msra.gmra.mrb[40].mxu1 %vm81_vm0, %v16315_v46 }
0x1b39   :  { %v13657_v37 = vpop.f32.mrb[36].mxu1 }
0x1b3a   :  { %v3533_v41 = vadd.f32 %v13657_v37, %v15957_v32  ;;  %v3527_v42 = vpop.f32.mrb[37].mxu1 }
0x1b3b   :  { %v3528_v45 = vadd.f32 %v3527_v42, %v15959_v31 }
0x1b3c   :  { %v3539_v44 = vsel %vm469_vm5, %v3533_v41, -inf }
0x1b3d   :  { %3540 = vmax.xlane.f32.xlu1 %v3539_v44  ;;  %v3536_v47 = vsel %vm469_vm5, %v3528_v45, -inf }
0x1b3e   :  { %3537 = vmax.xlane.f32.xlu0 %v3536_v47 }
0x1b41   :  { %v13675_v49 = vpop.f32.mrb[38].mxu1 }
0x1b42   :  { %v3733_v50 = vadd.f32 %v13675_v49, %v12120_v48  ;;  %v3727_v52 = vpop.f32.mrb[39].mxu1 }
0x1b43   :  { %v3728_v25 = vadd.f32 %v12120_v48, %v3727_v52 }
0x1b49   :  { %v13697_v54 = vpop.f32.mrb[40].mxu1 }
0x1b4a   :  { %v3891_v55 = vadd.f32 %v13697_v54, %v12126_v53  ;;  %v3885_v58 = vpop.f32.mrb[41].mxu1 }
0x1b4b   :  { %v3886_v59 = vadd.f32 %v12126_v53, %v3885_v58 }
0x1b4d   :  { %v14827_v60 = vpack.c.bf16 %v3891_v55, %v3886_v59 }
0x1b4f   :  { %14828 = vmatprep.subr.bf16.mxu1 %v14827_v60 }
0x1b50   :  { %14830 = vmatpush3.bf16.msra.mxu1 %v14827_v60 }
0x1bca   :  { %v3541_v61 = vpop.xlane.xlu1 %3540 }
0x1bcb   :  { %v3543_v18 = vsub.f32 %v3533_v41, %v3541_v61  ;;  %v3538_v19 = vpop.xlane.xlu0 %3537 }
0x1bcc   :  { %v3542_v62 = vsub.f32 %v3528_v45, %v3538_v19 }
0x1bcd   :  { %v3546_v1 = vmul.f32 1.442695, %v3543_v18 }
0x1bce   :  { %v3544_v63 = vmul.f32 1.442695, %v3542_v62 }
0x1bcf   :  { %15491 = vpow2.f32 %v3546_v1 }
0x1bd0   :  { %15493 = vpow2.f32 %v3544_v63 }
0x1bd9   :  { %v15492_v4 = vpop.eup %15491 }
0x1bda   :  { %v15494_v5 = vpop.eup %15493  ;;  %v3551_v38 = vsel %vm469_vm5, %v15492_v4, 0.0 }
0x1bdb   :  { %3552 = vadd.xlane.f32.xlu1 %v3551_v38  ;;  %v3548_v6 = vsel %vm469_vm5, %v15494_v5, 0.0  ;;  %v12138_v38 = vld [vmem:[%s18130_s4 + $0x80] sm:$0xff] }
0x1bdc   :  { %3549 = vadd.xlane.f32.xlu0 %v3548_v6 }
0x1c68   :  { %v3553_v12 = vpop.xlane.xlu1 %3552 }
0x1c69   :  { %15495 = vrcp.f32 %v3553_v12  ;;  %v3550_v15 = vpop.xlane.xlu0 %3549 }
0x1c6a   :  { %15497 = vrcp.f32 %v3550_v15 }
0x1c73   :  { %v15496_v16 = vpop.eup %15495 }
0x1c74   :  { %v15498_v14 = vpop.eup %15497  ;;  %v3557_v23 = vmul.f32 %v15496_v16, %v15492_v4  ;;  %v12137_v4 = vld [vmem:[%s18130_s4 + $0x78] sm:$0xff] }
0x1c75   :  { %v3556_v13 = vmul.f32 %v15498_v14, %v15494_v5  ;;  %v14835_v6 = vpack.c.bf16 %v12138_v38, %v12137_v4 }
0x1c77   :  { %13662 = vmatprep.mubr.msk.f32.mxu0 %vm469_vm5, %v3556_v13 }
0x1c78   :  { %13663 = vmatmul.mubr.msk.f32.vlgmr.msra.gmra.mrb[36].mxu0 %vm469_vm5, %v3557_v23 }
0x1c79   :  { %14808 = vmatpush3.bf16.msra.mxu0 %v14805_v9  ;;  %13684 = vmatprep.mubr.msk.f32.mxu0 %vm81_vm0, %v16313_v51 }
0x1c7a   :  { %14810 = vmatprep.subr.bf16.mxu0 %v14809_v24 }
0x1c7d   :  { %14812 = vmatpush3.bf16.msra.mxu0 %v14809_v24 }
0x1c80   :  { %13685 = vmatmul.mubr.msk.f32.vlgmr.msra.gmra.mrb[38].mxu0 %vm81_vm0, %v16315_v46 }
0x1c81   :  { %13702 = vmatprep.mubr.msk.f32.mxu0 %vm381_vm1, %v3728_v25 }
0x1d4b   :  { %v13664_v26 = vpop.f32.mrb[36].mxu0 }
0x1d4c   :  { %v3630_v29 = vpop.f32.mrb[37].mxu0 }
0x1d53   :  { %v13686_v33 = vpop.f32.mrb[38].mxu0 }
0x1d54   :  { %v3812_v34 = vadd.f32 %v13686_v33, %v12123_v30  ;;  %v3806_v36 = vpop.f32.mrb[39].mxu0 }
0x1d55   :  { %v3807_v39 = vadd.f32 %v12123_v30, %v3806_v36 }
0x1d57   :  { %v14821_v40 = vpack.c.bf16 %v3812_v34, %v3807_v39 }
0x1d59   :  { %14823 = vmatprep.subr.msk.bf16.mxu0 %vm15909_vm2, %v14821_v40 }
0x1d5a   :  { %14826 = vmatpush3.bf16.xpose.msk.msra.mxu0 %vm15909_vm2, %v14821_v40 }
0x1d61   :  { %13703 = vmatmul.mubr.msk.f32.vlgmr.msra.gmra.mrb[40].mxu0 %vm381_vm1, %v3733_v50 }
0x1e34   :  { %v13704_v37 = vpop.f32.mrb[40].mxu0 }
0x1e35   :  { %v3978_v41 = vadd.f32 %v13704_v37, %v15957_v32  ;;  %v3972_v42 = vpop.f32.mrb[41].mxu0 }
0x1e36   :  { %v3973_v45 = vadd.f32 %v3972_v42, %v15959_v31 }
0x1e37   :  { %v3984_v44 = vsel %vm469_vm5, %v3978_v41, -inf }
0x1e38   :  { %3985 = vmax.xlane.f32.xlu1 %v3984_v44  ;;  %v3981_v47 = vsel %vm469_vm5, %v3973_v45, -inf }
0x1e39   :  { %3982 = vmax.xlane.f32.xlu0 %v3981_v47 }
0x1ec5   :  { %v3986_v48 = vpop.xlane.xlu1 %3985 }
0x1ec6   :  { %v3988_v49 = vsub.f32 %v3978_v41, %v3986_v48  ;;  %v3983_v52 = vpop.xlane.xlu0 %3982 }
0x1ec7   :  { %v3987_v53 = vsub.f32 %v3973_v45, %v3983_v52 }
0x1ec8   :  { %v3991_v54 = vmul.f32 1.442695, %v3988_v49 }
0x1ec9   :  { %v3989_v55 = vmul.f32 1.442695, %v3987_v53 }
0x1eca   :  { %15499 = vpow2.f32 %v3991_v54  ;;  %v12149_v54 = vld [vmem:[%s18131_s5 + $0x30] sm:$0xff] }
0x1ecb   :  { %15501 = vpow2.f32 %v3989_v55 }
0x1ed4   :  { %v15500_v50 = vpop.eup %15499 }
0x1ed5   :  { %v15502_v58 = vpop.eup %15501  ;;  %v3996_v59 = vsel %vm469_vm5, %v15500_v50, 0.0 }
0x1ed6   :  { %3997 = vadd.xlane.f32.xlu1 %v3996_v59  ;;  %v3993_v60 = vsel %vm469_vm5, %v15502_v58, 0.0 }
0x1ed7   :  { %3994 = vadd.xlane.f32.xlu0 %v3993_v60 }
0x1ee7   :  { %4088 = vrot.lane.b32.xlu1 %v16487_v10, %s15744_s30  ;;  %v12135_v10 = vld [vmem:[%s18130_s4 + $0x68] sm:$0xff] }
0x1eeb   :  { %4094 = vrot.lane.b32.xlu1 %v3630_v29, %s15745_s13 }
0x1eed   :  { %4086 = vrot.lane.b32.xlu0 %v16489_v11, %s15744_s30  ;;  %v12136_v11 = vld [vmem:[%s18130_s4 + $0x70] sm:$0xff] }
0x1eee   :  { %v14831_v5 = vpack.c.bf16 %v12136_v11, %v12135_v10 }
0x1eef   :  { %4096 = vrot.lane.b32.xlu1 %v13664_v26, %s15745_s13 }
0x1ef0   :  { %14832 = vmatprep.subr.bf16.mxu0 %v14831_v5 }
0x1ef1   :  { %14834 = vmatpush3.bf16.msra.mxu0 %v14831_v5 }
0x1ef2   :  { %14836 = vmatprep.subr.bf16.mxu0 %v14835_v6 }
0x1ef5   :  { %14838 = vmatpush3.bf16.msra.mxu0 %v14835_v6 }
0x1f63   :  { %v3998_v61 = vpop.xlane.xlu1 %3997 }
0x1f64   :  { %15503 = vrcp.f32 %v3998_v61  ;;  %v3995_v18 = vpop.xlane.xlu0 %3994 }
0x1f65   :  { %15505 = vrcp.f32 %v3995_v18 }
0x1f67   :  { %v4089_v9 = vpop.permute.xlu1 %4088 }
0x1f68   :  { %v4087_v16 = vpop.permute.xlu0 %4086  ;;  %v4109_v14 = vsel %vm381_vm1, %v16409_v3, %v4089_v9 }
0x1f69   :  { %v4108_v17 = vsel %vm381_vm1, %v16411_v2, %v4087_v16  ;;  %v16612_v2 = vld [vmem:[%s18130_s4 + $0xc8] sm:$0xff] }
0x1f6a   :  { %v4137_v3 = vrot.slane %v16612_v2, %v16195_v22  ;;  %v4256_v4 = vrot.slane %v16612_v2, %v16221_v57 }
0x1f6b   :  { %v4095_v12 = vpop.permute.xlu1 %4094 }
0x1f6c   :  { %v4110_v13 = vsel %vm469_vm5, %v4108_v17, %v4095_v12  ;;  %v12139_v12 = vld [vmem:[%s18130_s4 + $0x88] sm:$0xff]  ;;  %v12141_v17 = vld [vmem:[%s18130_s4 + $0x98] sm:$0xff] }
0x1f6e   :  { %v15504_v19 = vpop.eup %15503 }
0x1f6f   :  { %v15506_v62 = vpop.eup %15505  ;;  %v4002_v63 = vmul.f32 %v15504_v19, %v15500_v50  ;;  %v4097_v15 = vpop.permute.xlu1 %4096  ;;  %v12150_v50 = vld [vmem:[%s18131_s5 + $0x38] sm:$0xff] }
0x1f70   :  { %v4001_v1 = vmul.f32 %v15506_v62, %v15502_v58  ;;  %v4111_v24 = vsel %vm469_vm5, %v4109_v14, %v4097_v15  ;;  %v12151_v58 = vld [vmem:[%s18131_s5 + $0x40] sm:$0xff]  ;;  %v12140_v15 = vld [vmem:[%s18130_s4 + $0x90] sm:$0xff]  ;;  %v12143_v14 = vld [vmem:[%s18130_s4 + $0xa8] sm:$0xff] }
0x1f71   :  { %v14843_v59 = vpack.c.bf16 %v12151_v58, %v12150_v50  ;;  %v14847_v16 = vpack.c.bf16 %v12140_v15, %v12139_v12 }
0x1f72   :  { %13709 = vmatprep.mubr.msk.f32.mxu1 %vm469_vm5, %v4001_v1 }
0x1f73   :  { %13710 = vmatmul.mubr.msk.f32.vlgmr.msra.gmra.mrb[42].mxu1 %vm469_vm5, %v4002_v63  ;;  %v4250_v63 = vrot.slane %v16612_v2, %v16218_v56  ;;  %14848 = vmatprep.subr.bf16.mxu0 %v14847_v16 }
0x2046   :  { %v13711_v7 = vpop.f32.mrb[42].mxu1 }
0x2047   :  { %4104 = vrot.lane.b32.xlu1 %v13711_v7, %s15746_s21  ;;  %v4075_v8 = vpop.f32.mrb[43].mxu1 }
0x2048   :  { %4102 = vrot.lane.b32.xlu0 %v4075_v8, %s15746_s21 }
0x20b9   :  { %v4105_v21 = vpop.permute.xlu1 %4104 }
0x20ba   :  { %v4103_v23 = vpop.permute.xlu0 %4102  ;;  %v4113_v26 = vsel %vm1936_vm6, %v4111_v24, %v4105_v21  ;;  %v12142_v21 = vld [vmem:[%s18130_s4 + $0xa0] sm:$0xff] }
0x20bb   :  { %v4112_v25 = vsel %vm1936_vm6, %v4110_v13, %v4103_v23  ;;  %v14851_v13 = vpack.c.bf16 %v12142_v21, %v12141_v17  ;;  %v12144_v23 = vld [vmem:[%s18130_s4 + $0xb0] sm:$0xff]  ;;  %v12161_v17 = vld [vmem:[%s18129_s3 + $0x3c8] sm:$0xff] }
0x20bc   :  { %13720 = vmatprep.mubr.msk.f32.mxu0 %vm81_vm0, %v4112_v25  ;;  %v14855_v24 = vpack.c.bf16 %v12144_v23, %v12143_v14  ;;  %v12145_v25 = vld [vmem:[%s18130_s4 + $0xb8] sm:$0xff]  ;;  %v12170_v14 = vld [vmem:[%s18129_s3 + $0x500] sm:$0xff] }
0x20bd   :  { %13721 = vmatmul.mubr.msk.f32.vlgmr.msra.gmra.mrb[42].mxu0 %vm81_vm0, %v4113_v26  ;;  %v12146_v26 = vld [vmem:[%s18130_s4 + $0xc0] sm:$0xff] }
0x20be   :  { %14850 = vmatpush3.bf16.msra.mxu0 %v14847_v16 }
0x20bf   :  { %14852 = vmatprep.subr.bf16.mxu0 %v14851_v13 }
0x20c2   :  { %14854 = vmatpush3.bf16.msra.mxu0 %v14851_v13  ;;  %v12171_v13 = vld [vmem:[%s18129_s3 + $0x508] sm:$0xff] }
0x20c3   :  { %14856 = vmatprep.subr.bf16.mxu0 %v14855_v24  ;;  %v14879_v23 = vpack.c.bf16 %v12171_v13, %v12170_v14  ;;  %v12200_v13 = vld [vmem:[%s18129_s3 + $0x528] sm:$0xff] }
0x20c6   :  { %14858 = vmatpush3.bf16.msra.mxu0 %v14855_v24  ;;  %v12162_v24 = vld [vmem:[%s18129_s3 + $0x3d0] sm:$0xff] }
0x2190   :  { %v13722_v29 = vpop.f32.mrb[42].mxu0 }
0x2191   :  { %v4216_v30 = vadd.f32 %v13722_v29, %v4137_v3  ;;  %v4210_v33 = vpop.f32.mrb[43].mxu0  ;;  %v12155_v29 = vld [vmem:[%s18131_s5 + $0x48] ss:$0 sm:$0xff] }
0x2192   :  { %v4211_v34 = vadd.f32 %v4210_v33, %v4137_v3  ;;  %v14859_v3 = vpack.c.bf16 %v12146_v26, %v12145_v25  ;;  %v12163_v25 = vld [vmem:[%s18129_s3 + $0x3d8] sm:$0xff] }
0x2193   :  { %v4220_v36 = vadd.f32 %v4216_v30, %v16315_v46  ;;  %v14867_v26 = vpack.c.bf16 %v12163_v25, %v12162_v24  ;;  %v12202_v25 = vld [vmem:[%s18129_s3 + $0x538] sm:$0xff] }
0x2194   :  { %v4219_v39 = vadd.f32 %v4211_v34, %v16313_v51  ;;  %v12148_v51 = vld [vmem:[%s18131_s5 + $0x28] sm:$0xff]  ;;  %14860 = vmatprep.subr.bf16.mxu0 %v14859_v3 }
0x2195   :  { %v4224_v40 = vsel %vm81_vm0, %v4220_v36, 0.0  ;;  %v14839_v55 = vpack.c.bf16 %v12149_v54, %v12148_v51  ;;  %14862 = vmatpush3.bf16.msra.mxu0 %v14859_v3  ;;  %v12172_v3 = vld [vmem:[%s18129_s3 + $0x510] sm:$0xff] }
0x2196   :  { %4225 = vadd.xlane.f32.xlu1 %v4224_v40  ;;  %v4221_v37 = vsel %vm81_vm0, %v4219_v39, 0.0  ;;  %14880 = vmatprep.subr.bf16.mxu0 %v14879_v23 }
0x2197   :  { %4222 = vadd.xlane.f32.xlu0 %v4221_v37  ;;  %14840 = vmatprep.subr.bf16.mxu1 %v14839_v55 }
0x2198   :  { %14842 = vmatpush3.bf16.msra.mxu1 %v14839_v55 }
0x2199   :  { %14844 = vmatprep.subr.bf16.mxu1 %v14843_v59 }
0x219c   :  { %14846 = vmatpush3.bf16.msra.mxu1 %v14843_v59  ;;  %v4365_v59 = vrot.slane %v16612_v2, %v16259_v43 }
0x2223   :  { %v4226_v41 = vpop.xlane.xlu1 %4225 }
0x2224   :  { %v4228_v42 = vmul.f32 0.03125, %v4226_v41  ;;  %v4223_v45 = vpop.xlane.xlu0 %4222 }
0x2225   :  { %v4227_v44 = vmul.f32 0.03125, %v4223_v45 }
0x2226   :  { %v4230_v47 = vsub.f32 %v4220_v36, %v4228_v42 }
0x2227   :  { %v4229_v48 = vsub.f32 %v4219_v39, %v4227_v44 }
0x2228   :  { %v4232_v53 = vmul.f32 %v4230_v47, %v4230_v47 }
0x2229   :  { %v4231_v49 = vmul.f32 %v4229_v48, %v4229_v48 }
0x222a   :  { %v4236_v46 = vsel %vm81_vm0, %v4232_v53, 0.0 }
0x222b   :  { %v4233_v52 = vsel %vm81_vm0, %v4231_v49, 0.0 }
0x222c   :  { %4234 = vadd.xlane.f32.xlu0 %v4233_v52 }
0x2230   :  { %4237 = vadd.xlane.f32.xlu0 %v4236_v46 }
0x22b9   :  { %v4235_v60 = vpop.xlane.xlu0 %4234 }
0x22ba   :  { %v4239_v61 = vmul.f32 0.03125, %v4235_v60 }
0x22bc   :  { %v4241_v18 = vadd.f32 1e-05, %v4239_v61 }
0x22bd   :  { %v4238_v19 = vpop.xlane.xlu0 %4237 }
0x22be   :  { %15507 = vrsqrt.f32 %v4241_v18  ;;  %v4240_v62 = vmul.f32 0.03125, %v4238_v19 }
0x22c0   :  { %v4242_v1 = vadd.f32 1e-05, %v4240_v62 }
0x22c2   :  { %15509 = vrsqrt.f32 %v4242_v1 }
0x22c8   :  { %v15508_v10 = vpop.eup %15507 }
0x22c9   :  { %v4245_v11 = vmul.f32 %v15508_v10, %v4229_v48 }
0x22cb   :  { %v4251_v5 = vmul.f32 %v4250_v63, %v4245_v11 }
0x22cc   :  { %v15510_v38 = vpop.eup %15509 }
0x22cd   :  { %v4246_v6 = vmul.f32 %v15510_v38, %v4230_v47  ;;  %v4257_v7 = vadd.f32 %v4256_v4, %v4251_v5 }
0x22cf   :  { %v4252_v8 = vmul.f32 %v4250_v63, %v4246_v6  ;;  %13731 = vmatprep.mubr.msk.f32.mxu1 %vm81_vm0, %v4257_v7 }
0x22d1   :  { %v4258_v9 = vadd.f32 %v4256_v4, %v4252_v8 }
0x22d3   :  { %13732 = vmatmul.mubr.msk.f32.vlgmr.msra.gmra.mrb[44].mxu1 %vm81_vm0, %v4258_v9 }
0x23a6   :  { %v13733_v30 = vpop.f32.mrb[44].mxu1 }
0x23a7   :  { %v4341_v33 = vadd.f32 %v13733_v30, %v12155_v29  ;;  %v4335_v34 = vpop.f32.mrb[45].mxu1 }
0x23a8   :  { %v4336_v36 = vadd.f32 %v12155_v29, %v4335_v34  ;;  %v12173_v29 = vld [vmem:[%s18129_s3 + $0x518] sm:$0xff]  ;;  %v12166_v34 = vld [vmem:[%s18129_s3 + $0x468] sm:$0xff] }
0x23a9   :  { %v4347_v39 = vmul.f32 0.044715, %v4341_v33  ;;  %v4345_v55 = vmul.f32 0.5, %v4341_v33  ;;  %v14883_v30 = vpack.c.bf16 %v12173_v29, %v12172_v3 }
0x23aa   :  { %v4346_v40 = vmul.f32 0.044715, %v4336_v36  ;;  %v4344_v51 = vmul.f32 0.5, %v4336_v36 }
0x23ab   :  { %v4349_v37 = vmul.f32 %v4347_v39, %v4341_v33 }
0x23ac   :  { %v4348_v41 = vmul.f32 %v4346_v40, %v4336_v36 }
0x23ad   :  { %v4351_v42 = vmul.f32 %v4349_v37, %v4341_v33 }
0x23ae   :  { %v4350_v45 = vmul.f32 %v4348_v41, %v4336_v36 }
0x23af   :  { %v4353_v44 = vadd.f32 %v4351_v42, %v4341_v33  ;;  %v12165_v33 = vld [vmem:[%s18129_s3 + $0x460] sm:$0xff] }
0x23b0   :  { %v4352_v47 = vadd.f32 %v4350_v45, %v4336_v36  ;;  %v14871_v36 = vpack.c.bf16 %v12166_v34, %v12165_v33 }
0x23b1   :  { %v4355_v48 = vmul.f32 0.7978846, %v4353_v44  ;;  %v4478_v44 = vrot.slane %v16612_v2, %v16300_v27 }
0x23b2   :  { %v4354_v49 = vmul.f32 0.7978846, %v4352_v47 }
0x23b3   :  { %15511 = vtanh.f32 %v4355_v48 }
0x23b4   :  { %15513 = vtanh.f32 %v4354_v49 }
0x23bd   :  { %v15512_v52 = vpop.eup %15511 }
0x23be   :  { %v15514_v53 = vpop.eup %15513  ;;  %v4359_v46 = vadd.f32 1.0, %v15512_v52  ;;  %v4484_v52 = vrot.slane %v16612_v2, %v16303_v28  ;;  %v12181_v2 = vld [vmem:[%s18129_s3 + $0x520] ss:$0 sm:$0xff] }
0x23bf   :  { %v4358_v54 = vadd.f32 1.0, %v15514_v53 }
0x23c0   :  { %v4361_v58 = vmul.f32 %v4359_v46, %v4345_v55  ;;  %v12168_v55 = vld [vmem:[%s18129_s3 + $0x478] sm:$0xff] }
0x23c1   :  { %v4360_v50 = vmul.f32 %v4358_v54, %v4344_v51  ;;  %v12167_v54 = vld [vmem:[%s18129_s3 + $0x470] sm:$0xff] }
0x23c3   :  { %13750 = vmatprep.mubr.msk.f32.mxu0 %vm2176_vm7, %v4360_v50 }
0x23c4   :  { %13751 = vmatmul.mubr.msk.f32.vlgmr.msra.gmra.mrb[44].mxu0 %vm2176_vm7, %v4361_v58 }
0x23c5   :  { %14882 = vmatpush3.bf16.msra.mxu0 %v14879_v23  ;;  %v12201_v23 = vld [vmem:[%s18129_s3 + $0x530] sm:$0xff] }
0x23c6   :  { %14884 = vmatprep.subr.bf16.mxu0 %v14883_v30  ;;  %v14913_v24 = vpack.c.bf16 %v12201_v23, %v12200_v13  ;;  %v12220_v13 = vld [vmem:[%s18129_s3 + $0x410] sm:$0xff]  ;;  %v12221_v23 = vld [vmem:[%s18129_s3 + $0x418] sm:$0xff] }
0x23c9   :  { %14886 = vmatpush3.bf16.msra.mxu0 %v14883_v30 }
0x2497   :  { %v13752_v60 = vpop.f32.mrb[44].mxu0 }
0x2498   :  { %v4444_v61 = vadd.f32 %v13752_v60, %v4365_v59  ;;  %v4438_v18 = vpop.f32.mrb[45].mxu0  ;;  %v12175_v60 = vld [vmem:[%s18129_s3 + $0x3e0] ss:$0 sm:$0xff] }
0x2499   :  { %v4439_v19 = vadd.f32 %v4438_v18, %v4365_v59  ;;  %v14875_v59 = vpack.c.bf16 %v12168_v55, %v12167_v54 }
0x249a   :  { %v4448_v62 = vadd.f32 %v4444_v61, %v4258_v9 }
0x249b   :  { %v4447_v1 = vadd.f32 %v4439_v19, %v4257_v7  ;;  %v12160_v7 = vld [vmem:[%s18129_s3 + $0x3c0] sm:$0xff] }
0x249c   :  { %v4452_v63 = vsel %vm81_vm0, %v4448_v62, 0.0  ;;  %v14863_v21 = vpack.c.bf16 %v12161_v17, %v12160_v7  ;;  %v12192_v7 = vld [vmem:[%s18129_s3 + $0x3f8] sm:$0xff]  ;;  %v12193_v17 = vld [vmem:[%s18129_s3 + $0x400] sm:$0xff] }
0x249d   :  { %4453 = vadd.xlane.f32.xlu1 %v4452_v63  ;;  %v4449_v10 = vsel %vm81_vm0, %v4447_v1, 0.0  ;;  %v14901_v14 = vpack.c.bf16 %v12193_v17, %v12192_v7  ;;  %v12208_v7 = vld [vmem:[%s18129_s3 + $0x4a8] ss:$0 sm:$0xff] }
0x249e   :  { %4450 = vadd.xlane.f32.xlu0 %v4449_v10  ;;  %14864 = vmatprep.subr.bf16.mxu1 %v14863_v21 }
0x249f   :  { %14866 = vmatpush3.bf16.msra.mxu1 %v14863_v21 }
0x24a0   :  { %14868 = vmatprep.subr.bf16.mxu1 %v14867_v26 }
0x24a3   :  { %14870 = vmatpush3.bf16.msra.mxu1 %v14867_v26  ;;  %v12203_v26 = vld [vmem:[%s18129_s3 + $0x540] sm:$0xff] }
0x24a4   :  { %14872 = vmatprep.subr.bf16.mxu1 %v14871_v36  ;;  %v14917_v3 = vpack.c.bf16 %v12203_v26, %v12202_v25  ;;  %v14931_v26 = vpack.c.bf16 %v12221_v23, %v12220_v13 }
0x252a   :  { %v4454_v11 = vpop.xlane.xlu1 %4453 }
0x252b   :  { %v4456_v4 = vmul.f32 0.03125, %v4454_v11  ;;  %v4451_v5 = vpop.xlane.xlu0 %4450 }
0x252c   :  { %v4455_v38 = vmul.f32 0.03125, %v4451_v5 }
0x252d   :  { %v4458_v6 = vsub.f32 %v4448_v62, %v4456_v4  ;;  %v12178_v4 = vld [vmem:[%s18129_s3 + $0x480] ss:$0 sm:$0xff] }
0x252e   :  { %v4457_v8 = vsub.f32 %v4447_v1, %v4455_v38 }
0x252f   :  { %v4460_v12 = vmul.f32 %v4458_v6, %v4458_v6 }
0x2530   :  { %v4459_v15 = vmul.f32 %v4457_v8, %v4457_v8 }
0x2531   :  { %v4464_v16 = vsel %vm81_vm0, %v4460_v12, 0.0  ;;  %v12191_v12 = vld [vmem:[%s18129_s3 + $0x3f0] sm:$0xff] }
0x2532   :  { %4465 = vadd.xlane.f32.xlu1 %v4464_v16  ;;  %v4461_v9 = vsel %vm81_vm0, %v4459_v15, 0.0 }
0x2533   :  { %4462 = vadd.xlane.f32.xlu0 %v4461_v9 }
0x25bf   :  { %v4466_v39 = vpop.xlane.xlu1 %4465 }
0x25c0   :  { %v4468_v40 = vmul.f32 0.03125, %v4466_v39  ;;  %v4463_v37 = vpop.xlane.xlu0 %4462 }
0x25c1   :  { %v4467_v41 = vmul.f32 0.03125, %v4463_v37 }
0x25c2   :  { %v4470_v42 = vadd.f32 1e-05, %v4468_v40  ;;  %v12205_v40 = vld [vmem:[%s18129_s3 + $0x408] ss:$0 sm:$0xff] }
0x25c3   :  { %v4469_v45 = vadd.f32 1e-05, %v4467_v41 }
0x25c4   :  { %15515 = vrsqrt.f32 %v4470_v42 }
0x25c5   :  { %15517 = vrsqrt.f32 %v4469_v45  ;;  %v12211_v45 = vld [vmem:[%s18129_s3 + $0x548] ss:$0 sm:$0xff] }
0x25ce   :  { %v15516_v47 = vpop.eup %15515 }
0x25cf   :  { %v15518_v48 = vpop.eup %15517  ;;  %v4474_v49 = vmul.f32 %v15516_v47, %v4458_v6 }
0x25d0   :  { %v4473_v53 = vmul.f32 %v15518_v48, %v4457_v8  ;;  %v12190_v8 = vld [vmem:[%s18129_s3 + $0x3e8] sm:$0xff] }
0x25d1   :  { %v4480_v46 = vmul.f32 %v4478_v44, %v4474_v49  ;;  %v14897_v9 = vpack.c.bf16 %v12191_v12, %v12190_v8 }
0x25d2   :  { %v4479_v51 = vmul.f32 %v4478_v44, %v4473_v53 }
0x25d3   :  { %v16717_v58 = vadd.f32 %v4484_v52, %v4480_v46 }
0x25d4   :  { %v16715_v50 = vadd.f32 %v4484_v52, %v4479_v51 }
0x25d6   :  { %13761 = vmatprep.mubr.msk.f32.mxu1 %vm81_vm0, %v16715_v50  ;;  %13783 = vmatprep.mubr.msk.f32.mxu0 %vm81_vm0, %v16715_v50 }
0x25d7   :  { %13762 = vmatmul.mubr.msk.f32.vlgmr.msra.gmra.mrb[46].mxu1 %vm81_vm0, %v16717_v58  ;;  %13784 = vmatmul.mubr.msk.f32.vlgmr.msra.gmra.mrb[46].mxu0 %vm81_vm0, %v16717_v58 }
0x25d8   :  { %14874 = vmatpush3.bf16.msra.mxu1 %v14871_v36  ;;  %13772 = vmatprep.mubr.msk.f32.mxu1 %vm81_vm0, %v16715_v50 }
0x25d9   :  { %14876 = vmatprep.subr.bf16.mxu1 %v14875_v59 }
0x25dc   :  { %14878 = vmatpush3.bf16.msra.mxu1 %v14875_v59 }
0x25df   :  { %13773 = vmatmul.mubr.msk.f32.vlgmr.msra.gmra.mrb[48].mxu1 %vm81_vm0, %v16717_v58 }
0x26aa   :  { %v13763_v61 = vpop.f32.mrb[46].mxu1  ;;  %v13785_v18 = vpop.f32.mrb[46].mxu0 }
0x26ab   :  { %v4745_v19 = vadd.f32 %v13785_v18, %v12181_v2  ;;  %v4581_v62 = vpop.f32.mrb[47].mxu1  ;;  %v4739_v1 = vpop.f32.mrb[47].mxu0  ;;  %v4587_v21 = vadd.f32 %v13763_v61, %v12175_v60 }
0x26ac   :  { %v4582_v63 = vadd.f32 %v12175_v60, %v4581_v62  ;;  %v4740_v10 = vadd.f32 %v12181_v2, %v4739_v1  ;;  %v12196_v62 = vld [vmem:[%s18129_s3 + $0x490] sm:$0xff] }
0x26ae   :  { %v14893_v11 = vpack.c.bf16 %v4745_v19, %v4740_v10  ;;  %13790 = vmatprep.mubr.msk.f32.mxu1 %vm381_vm1, %v4582_v63  ;;  %v12195_v19 = vld [vmem:[%s18129_s3 + $0x488] sm:$0xff] }
0x26af   :  { %v14905_v1 = vpack.c.bf16 %v12196_v62, %v12195_v19 }
0x26b0   :  { %14894 = vmatprep.subr.bf16.mxu0 %v14893_v11 }
0x26b1   :  { %14896 = vmatpush3.bf16.msra.mxu0 %v14893_v11 }
0x26b2   :  { %v13774_v5 = vpop.f32.mrb[48].mxu1  ;;  %14906 = vmatprep.subr.bf16.mxu0 %v14905_v1 }
0x26b3   :  { %v4666_v38 = vadd.f32 %v13774_v5, %v12178_v4  ;;  %v4660_v6 = vpop.f32.mrb[49].mxu1  ;;  %v12198_v5 = vld [vmem:[%s18129_s3 + $0x4a0] sm:$0xff] }
0x26b4   :  { %v4661_v15 = vadd.f32 %v12178_v4, %v4660_v6  ;;  %v12197_v4 = vld [vmem:[%s18129_s3 + $0x498] sm:$0xff] }
0x26b5   :  { %v14909_v12 = vpack.c.bf16 %v12198_v5, %v12197_v4 }
0x26b6   :  { %v14887_v16 = vpack.c.bf16 %v4666_v38, %v4661_v15 }
0x26b8   :  { %14889 = vmatprep.subr.msk.bf16.mxu1 %vm15909_vm2, %v14887_v16 }
0x26b9   :  { %14892 = vmatpush3.bf16.xpose.msk.msra.mxu1 %vm15909_vm2, %v14887_v16 }
0x26ba   :  { %14898 = vmatprep.subr.bf16.mxu1 %v14897_v9 }
0x26c0   :  { %13791 = vmatmul.mubr.msk.f32.vlgmr.msra.gmra.mrb[50].mxu1 %vm381_vm1, %v4587_v21 }
0x26c1   :  { %14900 = vmatpush3.bf16.msra.mxu1 %v14897_v9  ;;  %13808 = vmatprep.mubr.msk.f32.mxu1 %vm81_vm0, %v16715_v50 }
0x26c2   :  { %14902 = vmatprep.subr.bf16.mxu1 %v14901_v14 }
0x26c5   :  { %14904 = vmatpush3.bf16.msra.mxu1 %v14901_v14 }
0x26c6   :  { %14914 = vmatprep.subr.bf16.mxu1 %v14913_v24 }
0x26c8   :  { %13809 = vmatmul.mubr.msk.f32.vlgmr.msra.gmra.mrb[52].mxu1 %vm81_vm0, %v16717_v58 }
0x26c9   :  { %14916 = vmatpush3.bf16.msra.mxu1 %v14913_v24  ;;  %13830 = vmatprep.mubr.msk.f32.mxu1 %vm81_vm0, %v16715_v50 }
0x26ca   :  { %14918 = vmatprep.subr.bf16.mxu1 %v14917_v3 }
0x26cd   :  { %14920 = vmatpush3.bf16.msra.mxu1 %v14917_v3  ;;  %v12222_v3 = vld [vmem:[%s18129_s3 + $0x420] sm:$0xff] }
0x26d0   :  { %13831 = vmatmul.mubr.msk.f32.vlgmr.msra.gmra.mrb[54].mxu1 %vm81_vm0, %v16717_v58 }
0x2793   :  { %v13792_v29 = vpop.f32.mrb[50].mxu1 }
0x2794   :  { %v4832_v30 = vadd.f32 %v13792_v29, %v15957_v32  ;;  %v4826_v33 = vpop.f32.mrb[51].mxu1  ;;  %v12223_v29 = vld [vmem:[%s18129_s3 + $0x428] sm:$0xff] }
0x2795   :  { %v4827_v34 = vadd.f32 %v4826_v33, %v15959_v31  ;;  %v12230_v33 = vld [vmem:[%s18129_s3 + $0x550] sm:$0xff] }
0x2796   :  { %v4838_v36 = vsel %vm469_vm5, %v4832_v30, -inf }
0x2797   :  { %4839 = vmax.xlane.f32.xlu1 %v4838_v36  ;;  %v4835_v39 = vsel %vm469_vm5, %v4827_v34, -inf }
0x2798   :  { %4836 = vmax.xlane.f32.xlu0 %v4835_v39  ;;  %v12232_v39 = vld [vmem:[%s18129_s3 + $0x560] sm:$0xff] }
0x279b   :  { %v13810_v37 = vpop.f32.mrb[52].mxu1 }
0x279c   :  { %v16785_v41 = vadd.f32 %v13810_v37, %v12205_v40  ;;  %v5026_v42 = vpop.f32.mrb[53].mxu1 }
0x279d   :  { %v5027_v15 = vadd.f32 %v12205_v40, %v5026_v42  ;;  %v12233_v40 = vld [vmem:[%s18129_s3 + $0x568] sm:$0xff] }
0x279e   :  { %v14951_v37 = vpack.c.bf16 %v12233_v40, %v12232_v39  ;;  %v12251_v39 = vld [vmem:[%s18129_s3 + $0x440] sm:$0xff] }
0x27a3   :  { %v13832_v44 = vpop.f32.mrb[54].mxu1 }
0x27a4   :  { %v5190_v47 = vadd.f32 %v13832_v44, %v12211_v45  ;;  %v5184_v48 = vpop.f32.mrb[55].mxu1 }
0x27a5   :  { %v5185_v49 = vadd.f32 %v12211_v45, %v5184_v48 }
0x27a7   :  { %v14927_v52 = vpack.c.bf16 %v5190_v47, %v5185_v49  ;;  %v12235_v49 = vld [vmem:[%s18129_s3 + $0x430] ss:$0 sm:$0xff] }
0x27a9   :  { %14928 = vmatprep.subr.bf16.mxu1 %v14927_v52 }
0x27aa   :  { %14930 = vmatpush3.bf16.msra.mxu1 %v14927_v52 }
0x2824   :  { %v4840_v53 = vpop.xlane.xlu1 %4839 }
0x2825   :  { %v4842_v46 = vsub.f32 %v4832_v30, %v4840_v53  ;;  %v4837_v51 = vpop.xlane.xlu0 %4836  ;;  %v14935_v30 = vpack.c.bf16 %v12223_v29, %v12222_v3  ;;  %v12238_v29 = vld [vmem:[%s18129_s3 + $0x4d0] ss:$0 sm:$0xff] }
0x2826   :  { %v4841_v54 = vsub.f32 %v4827_v34, %v4837_v51  ;;  %v12231_v34 = vld [vmem:[%s18129_s3 + $0x558] sm:$0xff]  ;;  %v12241_v51 = vld [vmem:[%s18129_s3 + $0x570] ss:$0 sm:$0xff] }
0x2827   :  { %v4845_v55 = vmul.f32 1.442695, %v4842_v46  ;;  %v14947_v36 = vpack.c.bf16 %v12231_v34, %v12230_v33 }
0x2828   :  { %v4843_v59 = vmul.f32 1.442695, %v4841_v54 }
0x2829   :  { %15519 = vpow2.f32 %v4845_v55 }
0x282a   :  { %15521 = vpow2.f32 %v4843_v59 }
0x2833   :  { %v15520_v2 = vpop.eup %15519 }
0x2834   :  { %v15522_v60 = vpop.eup %15521  ;;  %v4850_v61 = vsel %vm469_vm5, %v15520_v2, 0.0 }
0x2835   :  { %4851 = vadd.xlane.f32.xlu1 %v4850_v61  ;;  %v4847_v18 = vsel %vm469_vm5, %v15522_v60, 0.0 }
0x2836   :  { %4848 = vadd.xlane.f32.xlu0 %v4847_v18 }
0x28c2   :  { %v4852_v63 = vpop.xlane.xlu1 %4851 }
0x28c3   :  { %15523 = vrcp.f32 %v4852_v63  ;;  %v4849_v10 = vpop.xlane.xlu0 %4848 }
0x28c4   :  { %15525 = vrcp.f32 %v4849_v10 }
0x28cd   :  { %v15524_v11 = vpop.eup %15523 }
0x28ce   :  { %v15526_v38 = vpop.eup %15525  ;;  %v4856_v8 = vmul.f32 %v15524_v11, %v15520_v2 }
0x28cf   :  { %v4855_v6 = vmul.f32 %v15526_v38, %v15522_v60  ;;  %v12225_v38 = vld [vmem:[%s18129_s3 + $0x4b0] sm:$0xff] }
0x28d1   :  { %13797 = vmatprep.mubr.msk.f32.mxu0 %vm469_vm5, %v4855_v6  ;;  %v12226_v6 = vld [vmem:[%s18129_s3 + $0x4b8] sm:$0xff] }
0x28d2   :  { %13798 = vmatmul.mubr.msk.f32.vlgmr.msra.gmra.mrb[48].mxu0 %vm469_vm5, %v4856_v8  ;;  %v14939_v8 = vpack.c.bf16 %v12226_v6, %v12225_v38 }
0x28d3   :  { %14908 = vmatpush3.bf16.msra.mxu0 %v14905_v1  ;;  %13819 = vmatprep.mubr.msk.f32.mxu0 %vm81_vm0, %v16715_v50 }
0x28d4   :  { %14910 = vmatprep.subr.bf16.mxu0 %v14909_v12  ;;  %14940 = vmatprep.subr.bf16.mxu1 %v14939_v8 }
0x28d7   :  { %14912 = vmatpush3.bf16.msra.mxu0 %v14909_v12 }
0x28da   :  { %13820 = vmatmul.mubr.msk.f32.vlgmr.msra.gmra.mrb[50].mxu0 %vm81_vm0, %v16717_v58 }
0x28db   :  { %13837 = vmatprep.mubr.msk.f32.mxu0 %vm381_vm1, %v5027_v15 }
0x29a5   :  { %v16811_v16 = vpop.f32.mrb[48].mxu0 }
0x29a6   :  { %v16813_v9 = vpop.f32.mrb[49].mxu0 }
0x29ad   :  { %v13821_v17 = vpop.f32.mrb[50].mxu0 }
0x29ae   :  { %v5111_v21 = vadd.f32 %v13821_v17, %v12208_v7  ;;  %v5105_v14 = vpop.f32.mrb[51].mxu0  ;;  %v12227_v17 = vld [vmem:[%s18129_s3 + $0x4c0] sm:$0xff] }
0x29af   :  { %v5106_v24 = vadd.f32 %v12208_v7, %v5105_v14 }
0x29b1   :  { %v14921_v25 = vpack.c.bf16 %v5111_v21, %v5106_v24  ;;  %v12228_v21 = vld [vmem:[%s18129_s3 + $0x4c8] sm:$0xff] }
0x29b2   :  { %v14943_v24 = vpack.c.bf16 %v12228_v21, %v12227_v17 }
0x29b3   :  { %14923 = vmatprep.subr.msk.bf16.mxu0 %vm15909_vm2, %v14921_v25 }
0x29b4   :  { %14926 = vmatpush3.bf16.xpose.msk.msra.mxu0 %vm15909_vm2, %v14921_v25 }
0x29b5   :  { %14932 = vmatprep.subr.bf16.mxu0 %v14931_v26 }
0x29bb   :  { %13838 = vmatmul.mubr.msk.f32.vlgmr.msra.gmra.mrb[52].mxu0 %vm381_vm1, %v16785_v41 }
0x29bc   :  { %14934 = vmatpush3.bf16.msra.mxu0 %v14931_v26  ;;  %13855 = vmatprep.mubr.msk.f32.mxu0 %vm81_vm0, %v16715_v50 }
0x29bd   :  { %14936 = vmatprep.subr.bf16.mxu0 %v14935_v30 }
0x29c0   :  { %14938 = vmatpush3.bf16.msra.mxu0 %v14935_v30 }
0x29c1   :  { %14948 = vmatprep.subr.bf16.mxu0 %v14947_v36 }
0x29c3   :  { %13856 = vmatmul.mubr.msk.f32.vlgmr.msra.gmra.mrb[54].mxu0 %vm81_vm0, %v16717_v58 }
0x29c4   :  { %14950 = vmatpush3.bf16.msra.mxu0 %v14947_v36  ;;  %13877 = vmatprep.mubr.msk.f32.mxu0 %vm81_vm0, %v16715_v50  ;;  %v12250_v36 = vld [vmem:[%s18129_s3 + $0x438] sm:$0xff] }
0x29c5   :  { %14952 = vmatprep.subr.bf16.mxu0 %v14951_v37 }
0x29c8   :  { %14954 = vmatpush3.bf16.msra.mxu0 %v14951_v37 }
0x29cb   :  { %13878 = vmatmul.mubr.msk.f32.vlgmr.msra.gmra.mrb[56].mxu0 %vm81_vm0, %v16717_v58 }
0x2a8e   :  { %v13839_v41 = vpop.f32.mrb[52].mxu0 }
0x2a8f   :  { %v5277_v42 = vadd.f32 %v13839_v41, %v15957_v32  ;;  %v5271_v45 = vpop.f32.mrb[53].mxu0  ;;  %v14965_v41 = vpack.c.bf16 %v12251_v39, %v12250_v36  ;;  %v12258_v36 = vld [vmem:[%s18129_s3 + $0x4f0] sm:$0xff] }
0x2a90   :  { %v5272_v44 = vadd.f32 %v5271_v45, %v15959_v31  ;;  %v12253_v45 = vld [vmem:[%s18129_s3 + $0x450] sm:$0xff] }
0x2a91   :  { %v5283_v47 = vsel %vm469_vm5, %v5277_v42, -inf }
0x2a92   :  { %5284 = vmax.xlane.f32.xlu1 %v5283_v47  ;;  %v5280_v48 = vsel %vm469_vm5, %v5272_v44, -inf  ;;  %v12260_v47 = vld [vmem:[%s18129_s3 + $0x578] sm:$0xff] }
0x2a93   :  { %5281 = vmax.xlane.f32.xlu0 %v5280_v48  ;;  %v12261_v48 = vld [vmem:[%s18129_s3 + $0x580] sm:$0xff] }
0x2a96   :  { %v13857_v52 = vpop.f32.mrb[54].mxu0 }
0x2a97   :  { %v16863_v53 = vadd.f32 %v13857_v52, %v12235_v49  ;;  %v5471_v46 = vpop.f32.mrb[55].mxu0  ;;  %v12262_v52 = vld [vmem:[%s18129_s3 + $0x588] sm:$0xff] }
0x2a98   :  { %v5472_v25 = vadd.f32 %v12235_v49, %v5471_v46  ;;  %v14981_v49 = vpack.c.bf16 %v12261_v48, %v12260_v47  ;;  %v12263_v46 = vld [vmem:[%s18129_s3 + $0x590] sm:$0xff]  ;;  %v12268_v47 = vld [vmem:[%s18129_s3 + $0x4f8] ss:$0 sm:$0xff] }
0x2a9e   :  { %v13879_v54 = vpop.f32.mrb[56].mxu0 }
0x2a9f   :  { %v5635_v55 = vadd.f32 %v13879_v54, %v12241_v51  ;;  %v5629_v59 = vpop.f32.mrb[57].mxu0 }
0x2aa0   :  { %v5630_v2 = vadd.f32 %v12241_v51, %v5629_v59  ;;  %v14985_v51 = vpack.c.bf16 %v12263_v46, %v12262_v52 }
0x2aa2   :  { %v14961_v60 = vpack.c.bf16 %v5635_v55, %v5630_v2 }
0x2aa4   :  { %14962 = vmatprep.subr.bf16.mxu0 %v14961_v60 }
0x2aa5   :  { %14964 = vmatpush3.bf16.msra.mxu0 %v14961_v60 }
0x2b1f   :  { %v5285_v61 = vpop.xlane.xlu1 %5284 }
0x2b20   :  { %v5287_v18 = vsub.f32 %v5277_v42, %v5285_v61  ;;  %v5282_v19 = vpop.xlane.xlu0 %5281  ;;  %v12252_v42 = vld [vmem:[%s18129_s3 + $0x448] sm:$0xff]  ;;  %v12265_v61 = vld [vmem:[%s18129_s3 + $0x458] ss:$0 sm:$0xff] }
0x2b21   :  { %v5286_v62 = vsub.f32 %v5272_v44, %v5282_v19  ;;  %v14969_v44 = vpack.c.bf16 %v12253_v45, %v12252_v42 }
0x2b22   :  { %v5290_v1 = vmul.f32 1.442695, %v5287_v18 }
0x2b23   :  { %v5288_v63 = vmul.f32 1.442695, %v5286_v62 }
0x2b24   :  { %15527 = vpow2.f32 %v5290_v1  ;;  %v12271_v1 = vld [vmem:[%s18129_s3 + $0x598] ss:$0 sm:$0xff] }
0x2b25   :  { %15529 = vpow2.f32 %v5288_v63 }
0x2b2e   :  { %v15528_v10 = vpop.eup %15527 }
0x2b2f   :  { %v15530_v11 = vpop.eup %15529  ;;  %v5295_v4 = vsel %vm469_vm5, %v15528_v10, 0.0 }
0x2b30   :  { %5296 = vadd.xlane.f32.xlu1 %v5295_v4  ;;  %v5292_v5 = vsel %vm469_vm5, %v15530_v11, 0.0 }
0x2b31   :  { %5293 = vadd.xlane.f32.xlu0 %v5292_v5 }
0x2bbd   :  { %v5297_v12 = vpop.xlane.xlu1 %5296 }
0x2bbe   :  { %15531 = vrcp.f32 %v5297_v12  ;;  %v5294_v15 = vpop.xlane.xlu0 %5293 }
0x2bbf   :  { %15533 = vrcp.f32 %v5294_v15 }
0x2bc8   :  { %v15532_v7 = vpop.eup %15531 }
0x2bc9   :  { %v15534_v14 = vpop.eup %15533  ;;  %v5301_v23 = vmul.f32 %v15532_v7, %v15528_v10 }
0x2bca   :  { %v5300_v13 = vmul.f32 %v15534_v14, %v15530_v11 }
0x2bcc   :  { %13844 = vmatprep.mubr.msk.f32.mxu1 %vm469_vm5, %v5300_v13 }
0x2bcd   :  { %13845 = vmatmul.mubr.msk.f32.vlgmr.msra.gmra.mrb[56].mxu1 %vm469_vm5, %v5301_v23  ;;  %v12255_v23 = vld [vmem:[%s18129_s3 + $0x4d8] sm:$0xff] }
0x2bce   :  { %14942 = vmatpush3.bf16.msra.mxu1 %v14939_v8  ;;  %13866 = vmatprep.mubr.msk.f32.mxu1 %vm81_vm0, %v16715_v50 }
0x2bcf   :  { %14944 = vmatprep.subr.bf16.mxu1 %v14943_v24 }
0x2bd2   :  { %14946 = vmatpush3.bf16.msra.mxu1 %v14943_v24  ;;  %v12256_v24 = vld [vmem:[%s18129_s3 + $0x4e0] sm:$0xff] }
0x2bd5   :  { %13867 = vmatmul.mubr.msk.f32.vlgmr.msra.gmra.mrb[58].mxu1 %vm81_vm0, %v16717_v58 }
0x2bd6   :  { %13884 = vmatprep.mubr.msk.f32.mxu1 %vm381_vm1, %v5472_v25  ;;  %v14973_v25 = vpack.c.bf16 %v12256_v24, %v12255_v23 }
0x2bd8   :  { %14974 = vmatprep.subr.bf16.mxu0 %v14973_v25 }
0x2ca0   :  { %v16889_v26 = vpop.f32.mrb[56].mxu1 }
0x2ca1   :  { %v16891_v3 = vpop.f32.mrb[57].mxu1 }
0x2ca8   :  { %v13868_v30 = vpop.f32.mrb[58].mxu1 }
0x2ca9   :  { %v5556_v33 = vadd.f32 %v13868_v30, %v12238_v29  ;;  %v5550_v34 = vpop.f32.mrb[59].mxu1 }
0x2caa   :  { %v5551_v40 = vadd.f32 %v12238_v29, %v5550_v34  ;;  %v12257_v34 = vld [vmem:[%s18129_s3 + $0x4e8] sm:$0xff] }
0x2cac   :  { %v14955_v37 = vpack.c.bf16 %v5556_v33, %v5551_v40 }
0x2cae   :  { %14957 = vmatprep.subr.msk.bf16.mxu1 %vm15909_vm2, %v14955_v37 }
0x2caf   :  { %14960 = vmatpush3.bf16.xpose.msk.msra.mxu1 %vm15909_vm2, %v14955_v37 }
0x2cb0   :  { %14966 = vmatprep.subr.bf16.mxu1 %v14965_v41 }
0x2cb6   :  { %13885 = vmatmul.mubr.msk.f32.vlgmr.msra.gmra.mrb[60].mxu1 %vm381_vm1, %v16863_v53 }
0x2cb7   :  { %14968 = vmatpush3.bf16.msra.mxu1 %v14965_v41  ;;  %13902 = vmatprep.mubr.msk.f32.mxu1 %vm81_vm0, %v16715_v50  ;;  %v14977_v41 = vpack.c.bf16 %v12258_v36, %v12257_v34 }
0x2cb8   :  { %14970 = vmatprep.subr.bf16.mxu1 %v14969_v44 }
0x2cbb   :  { %14972 = vmatpush3.bf16.msra.mxu1 %v14969_v44 }
0x2cbc   :  { %14982 = vmatprep.subr.bf16.mxu1 %v14981_v49 }
0x2cbe   :  { %13903 = vmatmul.mubr.msk.f32.vlgmr.msra.gmra.mrb[62].mxu1 %vm81_vm0, %v16717_v58 }
0x2cbf   :  { %14984 = vmatpush3.bf16.msra.mxu1 %v14981_v49  ;;  %13924 = vmatprep.mubr.msk.f32.mxu1 %vm81_vm0, %v16715_v50 }
0x2cc0   :  { %14986 = vmatprep.subr.bf16.mxu1 %v14985_v51 }
0x2cc3   :  { %14988 = vmatpush3.bf16.msra.mxu1 %v14985_v51 }
0x2cc6   :  { %13925 = vmatmul.mubr.msk.f32.vlgmr.msra.gmra.mrb[64].mxu1 %vm81_vm0, %v16717_v58 }
0x2d89   :  { %v13886_v53 = vpop.f32.mrb[60].mxu1 }
0x2d8a   :  { %v5722_v54 = vadd.f32 %v13886_v53, %v15957_v32  ;;  %v5716_v55 = vpop.f32.mrb[61].mxu1 }
0x2d8b   :  { %v5717_v59 = vadd.f32 %v5716_v55, %v15959_v31 }
0x2d8c   :  { %v5728_v2 = vsel %vm469_vm5, %v5722_v54, -inf }
0x2d8d   :  { %5729 = vmax.xlane.f32.xlu1 %v5728_v2  ;;  %v5725_v60 = vsel %vm469_vm5, %v5717_v59, -inf }
0x2d8e   :  { %5726 = vmax.xlane.f32.xlu0 %v5725_v60 }
0x2d91   :  { %v13904_v18 = vpop.f32.mrb[62].mxu1 }
0x2d92   :  { %v5922_v19 = vadd.f32 %v13904_v18, %v12265_v61  ;;  %v5916_v62 = vpop.f32.mrb[63].mxu1 }
0x2d93   :  { %v5917_v42 = vadd.f32 %v12265_v61, %v5916_v62 }
0x2d99   :  { %v13926_v63 = vpop.f32.mrb[64].mxu1 }
0x2d9a   :  { %v6080_v10 = vadd.f32 %v13926_v63, %v12271_v1  ;;  %v6074_v11 = vpop.f32.mrb[65].mxu1 }
0x2d9b   :  { %v6075_v4 = vadd.f32 %v12271_v1, %v6074_v11 }
0x2d9d   :  { %v14995_v5 = vpack.c.bf16 %v6080_v10, %v6075_v4 }
0x2d9f   :  { %14996 = vmatprep.subr.bf16.mxu1 %v14995_v5 }
0x2da0   :  { %14998 = vmatpush3.bf16.msra.mxu1 %v14995_v5 }
0x2e1a   :  { %v5730_v38 = vpop.xlane.xlu1 %5729 }
0x2e1b   :  { %v5732_v6 = vsub.f32 %v5722_v54, %v5730_v38  ;;  %v5727_v8 = vpop.xlane.xlu0 %5726 }
0x2e1c   :  { %v5731_v12 = vsub.f32 %v5717_v59, %v5727_v8 }
0x2e1d   :  { %v5735_v15 = vmul.f32 1.442695, %v5732_v6 }
0x2e1e   :  { %v5733_v7 = vmul.f32 1.442695, %v5731_v12 }
0x2e1f   :  { %15535 = vpow2.f32 %v5735_v15 }
0x2e20   :  { %15537 = vpow2.f32 %v5733_v7 }
0x2e29   :  { %v15536_v17 = vpop.eup %15535 }
0x2e2a   :  { %v15538_v21 = vpop.eup %15537  ;;  %v5740_v14 = vsel %vm469_vm5, %v15536_v17, 0.0 }
0x2e2b   :  { %5741 = vadd.xlane.f32.xlu1 %v5740_v14  ;;  %v5737_v13 = vsel %vm469_vm5, %v15538_v21, 0.0  ;;  %v12283_v14 = vld [vmem:[%s18130_s4 + $0xe8] sm:$0xff] }
0x2e2c   :  { %5738 = vadd.xlane.f32.xlu0 %v5737_v13 }
0x2eb8   :  { %v5742_v29 = vpop.xlane.xlu1 %5741 }
0x2eb9   :  { %15539 = vrcp.f32 %v5742_v29  ;;  %v5739_v30 = vpop.xlane.xlu0 %5738 }
0x2eba   :  { %15541 = vrcp.f32 %v5739_v30 }
0x2ec3   :  { %v15540_v33 = vpop.eup %15539 }
0x2ec4   :  { %v15542_v39 = vpop.eup %15541  ;;  %v5746_v37 = vmul.f32 %v15540_v33, %v15536_v17  ;;  %v12282_v17 = vld [vmem:[%s18130_s4 + $0xe0] sm:$0xff] }
0x2ec5   :  { %v5745_v40 = vmul.f32 %v15542_v39, %v15538_v21  ;;  %v15003_v13 = vpack.c.bf16 %v12283_v14, %v12282_v17 }
0x2ec7   :  { %13891 = vmatprep.mubr.msk.f32.mxu0 %vm469_vm5, %v5745_v40 }
0x2ec8   :  { %13892 = vmatmul.mubr.msk.f32.vlgmr.msra.gmra.mrb[58].mxu0 %vm469_vm5, %v5746_v37 }
0x2ec9   :  { %14976 = vmatpush3.bf16.msra.mxu0 %v14973_v25  ;;  %13913 = vmatprep.mubr.msk.f32.mxu0 %vm81_vm0, %v16715_v50 }
0x2eca   :  { %14978 = vmatprep.subr.bf16.mxu0 %v14977_v41 }
0x2ecd   :  { %14980 = vmatpush3.bf16.msra.mxu0 %v14977_v41 }
0x2ed0   :  { %13914 = vmatmul.mubr.msk.f32.vlgmr.msra.gmra.mrb[60].mxu0 %vm81_vm0, %v16717_v58 }
0x2ed1   :  { %13931 = vmatprep.mubr.msk.f32.mxu0 %vm381_vm1, %v5917_v42 }
0x2f9b   :  { %v13893_v45 = vpop.f32.mrb[58].mxu0 }
0x2f9c   :  { %v5819_v44 = vpop.f32.mrb[59].mxu0 }
0x2fa3   :  { %v13915_v48 = vpop.f32.mrb[60].mxu0 }
0x2fa4   :  { %v6001_v49 = vadd.f32 %v13915_v48, %v12268_v47  ;;  %v5995_v52 = vpop.f32.mrb[61].mxu0 }
0x2fa5   :  { %v5996_v46 = vadd.f32 %v12268_v47, %v5995_v52 }
0x2fa7   :  { %v14989_v51 = vpack.c.bf16 %v6001_v49, %v5996_v46 }
0x2fa9   :  { %14991 = vmatprep.subr.msk.bf16.mxu0 %vm15909_vm2, %v14989_v51 }
0x2faa   :  { %14994 = vmatpush3.bf16.xpose.msk.msra.mxu0 %vm15909_vm2, %v14989_v51 }
0x2fb1   :  { %13932 = vmatmul.mubr.msk.f32.vlgmr.msra.gmra.mrb[62].mxu0 %vm381_vm1, %v5922_v19 }
0x3084   :  { %v13933_v53 = vpop.f32.mrb[62].mxu0 }
0x3085   :  { %v6167_v54 = vadd.f32 %v13933_v53, %v15957_v32  ;;  %v6161_v55 = vpop.f32.mrb[63].mxu0 }
0x3086   :  { %v6162_v59 = vadd.f32 %v6161_v55, %v15959_v31 }
0x3087   :  { %v6173_v2 = vsel %vm469_vm5, %v6167_v54, -inf }
0x3088   :  { %6174 = vmax.xlane.f32.xlu1 %v6173_v2  ;;  %v6170_v60 = vsel %vm469_vm5, %v6162_v59, -inf }
0x3089   :  { %6171 = vmax.xlane.f32.xlu0 %v6170_v60 }
0x3115   :  { %v6175_v61 = vpop.xlane.xlu1 %6174 }
0x3116   :  { %v6177_v18 = vsub.f32 %v6167_v54, %v6175_v61  ;;  %v6172_v62 = vpop.xlane.xlu0 %6171 }
0x3117   :  { %v6176_v1 = vsub.f32 %v6162_v59, %v6172_v62 }
0x3118   :  { %v6180_v63 = vmul.f32 1.442695, %v6177_v18 }
0x3119   :  { %v6178_v10 = vmul.f32 1.442695, %v6176_v1 }
0x311a   :  { %15543 = vpow2.f32 %v6180_v63 }
0x311b   :  { %15545 = vpow2.f32 %v6178_v10  ;;  %v12293_v10 = vld [vmem:[%s18131_s5 + $0x50] sm:$0xff] }
0x3124   :  { %v15544_v19 = vpop.eup %15543 }
0x3125   :  { %v15546_v11 = vpop.eup %15545  ;;  %v6185_v4 = vsel %vm469_vm5, %v15544_v19, 0.0 }
0x3126   :  { %6186 = vadd.xlane.f32.xlu1 %v6185_v4  ;;  %v6182_v5 = vsel %vm469_vm5, %v15546_v11, 0.0  ;;  %v12295_v4 = vld [vmem:[%s18131_s5 + $0x60] sm:$0xff] }
0x3127   :  { %6183 = vadd.xlane.f32.xlu0 %v6182_v5  ;;  %v12296_v5 = vld [vmem:[%s18131_s5 + $0x68] sm:$0xff] }
0x3137   :  { %6277 = vrot.lane.b32.xlu1 %v16889_v26, %s15744_s30  ;;  %v12280_v26 = vld [vmem:[%s18130_s4 + $0xd0] sm:$0xff] }
0x313b   :  { %6283 = vrot.lane.b32.xlu1 %v5819_v44, %s15745_s13 }
0x313d   :  { %6275 = vrot.lane.b32.xlu0 %v16891_v3, %s15744_s30  ;;  %v12281_v3 = vld [vmem:[%s18130_s4 + $0xd8] sm:$0xff] }
0x313e   :  { %v14999_v21 = vpack.c.bf16 %v12281_v3, %v12280_v26 }
0x313f   :  { %6285 = vrot.lane.b32.xlu1 %v13893_v45, %s15745_s13 }
0x3140   :  { %15000 = vmatprep.subr.bf16.mxu0 %v14999_v21 }
0x3141   :  { %15002 = vmatpush3.bf16.msra.mxu0 %v14999_v21 }
0x3142   :  { %15004 = vmatprep.subr.bf16.mxu0 %v15003_v13 }
0x3145   :  { %15006 = vmatpush3.bf16.msra.mxu0 %v15003_v13 }
0x31b3   :  { %v6187_v38 = vpop.xlane.xlu1 %6186 }
0x31b4   :  { %15547 = vrcp.f32 %v6187_v38  ;;  %v6184_v6 = vpop.xlane.xlu0 %6183  ;;  %v15011_v38 = vpack.c.bf16 %v12296_v5, %v12295_v4 }
0x31b5   :  { %15549 = vrcp.f32 %v6184_v6 }
0x31b7   :  { %v6278_v25 = vpop.permute.xlu1 %6277 }
0x31b8   :  { %v6276_v33 = vpop.permute.xlu0 %6275  ;;  %v6298_v39 = vsel %vm381_vm1, %v16811_v16, %v6278_v25 }
0x31b9   :  { %v6297_v34 = vsel %vm381_vm1, %v16813_v9, %v6276_v33  ;;  %v17014_v9 = vld [vmem:[%s18130_s4 + $0x130] sm:$0xff] }
0x31ba   :  { %v6326_v16 = vrot.slane %v17014_v9, %v16195_v22  ;;  %v6439_v3 = vrot.slane %v17014_v9, %v16218_v56  ;;  %v6445_v14 = vrot.slane %v17014_v9, %v16221_v57  ;;  %v12284_v33 = vld [vmem:[%s18130_s4 + $0xf0] sm:$0xff] }
0x31bb   :  { %v6284_v29 = vpop.permute.xlu1 %6283 }
0x31bc   :  { %v6299_v40 = vsel %vm469_vm5, %v6297_v34, %v6284_v29  ;;  %v12285_v34 = vld [vmem:[%s18130_s4 + $0xf8] sm:$0xff] }
0x31be   :  { %v15548_v8 = vpop.eup %15547 }
0x31bf   :  { %v15550_v12 = vpop.eup %15549  ;;  %v6191_v7 = vmul.f32 %v15548_v8, %v15544_v19  ;;  %v6286_v30 = vpop.permute.xlu1 %6285  ;;  %v12294_v19 = vld [vmem:[%s18131_s5 + $0x58] sm:$0xff] }
0x31c0   :  { %v6190_v15 = vmul.f32 %v15550_v12, %v15546_v11  ;;  %v6300_v41 = vsel %vm469_vm5, %v6298_v39, %v6286_v30  ;;  %v15007_v11 = vpack.c.bf16 %v12294_v19, %v12293_v10  ;;  %v12286_v39 = vld [vmem:[%s18130_s4 + $0x100] sm:$0xff] }
0x31c2   :  { %13938 = vmatprep.mubr.msk.f32.mxu1 %vm469_vm5, %v6190_v15  ;;  %15008 = vmatprep.subr.bf16.mxu1 %v15007_v11 }
0x31c3   :  { %13939 = vmatmul.mubr.msk.f32.vlgmr.msra.gmra.mrb[66].mxu1 %vm469_vm5, %v6191_v7 }
0x31c4   :  { %15010 = vmatpush3.bf16.msra.mxu1 %v15007_v11 }
0x31c5   :  { %15012 = vmatprep.subr.bf16.mxu1 %v15011_v38 }
0x31c8   :  { %15014 = vmatpush3.bf16.msra.mxu1 %v15011_v38 }
0x3296   :  { %v13940_v23 = vpop.f32.mrb[66].mxu1 }
0x3297   :  { %6293 = vrot.lane.b32.xlu1 %v13940_v23, %s15746_s21  ;;  %v6264_v24 = vpop.f32.mrb[67].mxu1 }
0x3298   :  { %6291 = vrot.lane.b32.xlu0 %v6264_v24, %s15746_s21 }
0x3309   :  { %v6294_v36 = vpop.permute.xlu1 %6293 }
0x330a   :  { %v6292_v37 = vpop.permute.xlu0 %6291  ;;  %v6302_v45 = vsel %vm1936_vm6, %v6300_v41, %v6294_v36  ;;  %v15015_v36 = vpack.c.bf16 %v12285_v34, %v12284_v33 }
0x330b   :  { %v6301_v42 = vsel %vm1936_vm6, %v6299_v40, %v6292_v37  ;;  %v12287_v40 = vld [vmem:[%s18130_s4 + $0x108] sm:$0xff]  ;;  %v12288_v37 = vld [vmem:[%s18130_s4 + $0x110] sm:$0xff] }
0x330c   :  { %13949 = vmatprep.mubr.msk.f32.mxu0 %vm81_vm0, %v6301_v42  ;;  %15016 = vmatprep.subr.bf16.mxu0 %v15015_v36  ;;  %v15019_v41 = vpack.c.bf16 %v12287_v40, %v12286_v39  ;;  %v12289_v42 = vld [vmem:[%s18130_s4 + $0x118] sm:$0xff] }
0x330d   :  { %13950 = vmatmul.mubr.msk.f32.vlgmr.msra.gmra.mrb[64].mxu0 %vm81_vm0, %v6302_v45  ;;  %v15023_v45 = vpack.c.bf16 %v12289_v42, %v12288_v37  ;;  %v17117_v42 = vld [vmem:[%s18129_s3 + $0x5c0] ss:$0 sm:$0xff] }
0x330e   :  { %15018 = vmatpush3.bf16.msra.mxu0 %v15015_v36 }
0x330f   :  { %15020 = vmatprep.subr.bf16.mxu0 %v15019_v41 }
0x3312   :  { %15022 = vmatpush3.bf16.msra.mxu0 %v15019_v41 }
0x3313   :  { %15024 = vmatprep.subr.bf16.mxu0 %v15023_v45 }
0x3316   :  { %15026 = vmatpush3.bf16.msra.mxu0 %v15023_v45 }
0x33e0   :  { %v13951_v44 = vpop.f32.mrb[64].mxu0 }
0x33e1   :  { %v6405_v47 = vadd.f32 %v13951_v44, %v6326_v16  ;;  %v6399_v48 = vpop.f32.mrb[65].mxu0  ;;  %v12291_v44 = vld [vmem:[%s18130_s4 + $0x128] sm:$0xff] }
0x33e2   :  { %v6400_v49 = vadd.f32 %v6399_v48, %v6326_v16  ;;  %v12290_v16 = vld [vmem:[%s18130_s4 + $0x120] sm:$0xff] }
0x33e3   :  { %v6409_v52 = vadd.f32 %v6405_v47, %v16717_v58  ;;  %v15027_v47 = vpack.c.bf16 %v12291_v44, %v12290_v16  ;;  %v12310_v48 = vld [vmem:[%s18129_s3 + $0x5a0] sm:$0xff] }
0x33e4   :  { %v6408_v46 = vadd.f32 %v6400_v49, %v16715_v50  ;;  %v12311_v49 = vld [vmem:[%s18129_s3 + $0x5a8] sm:$0xff] }
0x33e5   :  { %v6413_v51 = vsel %vm81_vm0, %v6409_v52, 0.0  ;;  %15028 = vmatprep.subr.bf16.mxu0 %v15027_v47 }
0x33e6   :  { %6414 = vadd.xlane.f32.xlu1 %v6413_v51  ;;  %v6410_v53 = vsel %vm81_vm0, %v6408_v46, 0.0  ;;  %15030 = vmatpush3.bf16.msra.mxu0 %v15027_v47 }
0x33e7   :  { %6411 = vadd.xlane.f32.xlu0 %v6410_v53 }
0x3473   :  { %v6415_v54 = vpop.xlane.xlu1 %6414 }
0x3474   :  { %v6417_v55 = vmul.f32 0.03125, %v6415_v54  ;;  %v6412_v59 = vpop.xlane.xlu0 %6411 }
0x3475   :  { %v6416_v2 = vmul.f32 0.03125, %v6412_v59 }
0x3476   :  { %v6419_v60 = vsub.f32 %v6409_v52, %v6417_v55  ;;  %v15046_v52 = vpack.c.bf16 %v12311_v49, %v12310_v48 }
0x3477   :  { %v6418_v61 = vsub.f32 %v6408_v46, %v6416_v2  ;;  %v12300_v46 = vld [vmem:[%s18131_s5 + $0x70] ss:$0 sm:$0xff] }
0x3478   :  { %v6421_v1 = vmul.f32 %v6419_v60, %v6419_v60  ;;  %15047 = vmatprep.subr.bf16.mxu0 %v15046_v52 }
0x3479   :  { %v6420_v18 = vmul.f32 %v6418_v61, %v6418_v61 }
0x347a   :  { %v6425_v63 = vsel %vm81_vm0, %v6421_v1, 0.0 }
0x347b   :  { %v6422_v62 = vsel %vm81_vm0, %v6420_v18, 0.0 }
0x347c   :  { %6423 = vadd.xlane.f32.xlu0 %v6422_v62 }
0x3480   :  { %6426 = vadd.xlane.f32.xlu0 %v6425_v63 }
0x3509   :  { %v6424_v6 = vpop.xlane.xlu0 %6423 }
0x350a   :  { %v6428_v8 = vmul.f32 0.03125, %v6424_v6 }
0x350c   :  { %v6430_v12 = vadd.f32 1e-05, %v6428_v8  ;;  %v12312_v8 = vld [vmem:[%s18129_s3 + $0x5b0] sm:$0xff] }
0x350d   :  { %v6427_v15 = vpop.xlane.xlu0 %6426 }
0x350e   :  { %15551 = vrsqrt.f32 %v6430_v12  ;;  %v6429_v7 = vmul.f32 0.03125, %v6427_v15  ;;  %v12313_v12 = vld [vmem:[%s18129_s3 + $0x5b8] sm:$0xff] }
0x3510   :  { %v6431_v26 = vadd.f32 1e-05, %v6429_v7 }
0x3512   :  { %15553 = vrsqrt.f32 %v6431_v26 }
0x3518   :  { %v15552_v17 = vpop.eup %15551 }
0x3519   :  { %v6434_v21 = vmul.f32 %v15552_v17, %v6418_v61  ;;  %v12320_v17 = vld [vmem:[%s18129_s3 + $0x6e0] sm:$0xff] }
0x351b   :  { %v6440_v13 = vmul.f32 %v6439_v3, %v6434_v21  ;;  %v12321_v21 = vld [vmem:[%s18129_s3 + $0x6e8] sm:$0xff] }
0x351c   :  { %v15554_v23 = vpop.eup %15553 }
0x351d   :  { %v6435_v24 = vmul.f32 %v15554_v23, %v6419_v60  ;;  %v17040_v25 = vadd.f32 %v6445_v14, %v6440_v13  ;;  %v12322_v13 = vld [vmem:[%s18129_s3 + $0x6f0] sm:$0xff]  ;;  %v12323_v23 = vld [vmem:[%s18129_s3 + $0x6f8] sm:$0xff] }
0x351f   :  { %v6441_v29 = vmul.f32 %v6439_v3, %v6435_v24  ;;  %13960 = vmatprep.mubr.msk.f32.mxu1 %vm81_vm0, %v17040_v25  ;;  %v15050_v3 = vpack.c.bf16 %v12313_v12, %v12312_v8  ;;  %v15066_v24 = vpack.c.bf16 %v12323_v23, %v12322_v13  ;;  %v6749_v23 = vld [vmem:[%s18132_s6] sm:$0xff] }
0x3521   :  { %v17044_v30 = vadd.f32 %v6445_v14, %v6441_v29  ;;  %v15062_v14 = vpack.c.bf16 %v12321_v21, %v12320_v17  ;;  %v6554_v29 = vrot.slane %v17014_v9, %v16259_v43  ;;  %v63_v17 = vmul.u32 8, %v15862_v35  ;;  %v6751_v35 = vld [vmem:[%s18132_s6 + $0x10] sm:$0xff] }
0x3523   :  { %13961 = vmatmul.mubr.msk.f32.vlgmr.msra.gmra.mrb[68].mxu1 %vm81_vm0, %v17044_v30  ;;  %vm64_vm9 = vcmp.eq.s32.totalorder %v15950_v20, %v63_v17 }
0x35f6   :  { %v13962_v51 = vpop.f32.mrb[68].mxu1 }
0x35f7   :  { %v6530_v53 = vadd.f32 %v13962_v51, %v12300_v46  ;;  %v6524_v54 = vpop.f32.mrb[69].mxu1 }
0x35f8   :  { %v6525_v55 = vadd.f32 %v12300_v46, %v6524_v54 }
0x35f9   :  { %v6536_v59 = vmul.f32 0.044715, %v6530_v53  ;;  %v6534_v15 = vmul.f32 0.5, %v6530_v53 }
0x35fa   :  { %v6535_v2 = vmul.f32 0.044715, %v6525_v55  ;;  %v6533_v38 = vmul.f32 0.5, %v6525_v55 }
0x35fb   :  { %v6538_v60 = vmul.f32 %v6536_v59, %v6530_v53 }
0x35fc   :  { %v6537_v61 = vmul.f32 %v6535_v2, %v6525_v55 }
0x35fd   :  { %v6540_v18 = vmul.f32 %v6538_v60, %v6530_v53 }
0x35fe   :  { %v6539_v62 = vmul.f32 %v6537_v61, %v6525_v55 }
0x35ff   :  { %v6542_v1 = vadd.f32 %v6540_v18, %v6530_v53 }
0x3600   :  { %v6541_v63 = vadd.f32 %v6539_v62, %v6525_v55 }
0x3601   :  { %v6544_v10 = vmul.f32 0.7978846, %v6542_v1  ;;  %v15747_v1 = vmov 0.0|0.0  }
0x3602   :  { %v6543_v19 = vmul.f32 0.7978846, %v6541_v63  ;;  %15031 = vmatprep.subr.bf16.mxu1 %v15747_v1  ;;  %v15749_v63 = vmov 0.0  }
0x3603   :  { %15555 = vtanh.f32 %v6544_v10  ;;  %13986 = vmatprep.mubr.msk.f32.mxu1 %vm15748_vm8, %v15749_v63 }
0x3604   :  { %15557 = vtanh.f32 %v6543_v19 }
0x360d   :  { %v15556_v11 = vpop.eup %15555 }
0x360e   :  { %v15558_v4 = vpop.eup %15557  ;;  %v6548_v5 = vadd.f32 1.0, %v15556_v11 }
0x360f   :  { %v6547_v6 = vadd.f32 1.0, %v15558_v4 }
0x3610   :  { %v6550_v26 = vmul.f32 %v6548_v5, %v6534_v15 }
0x3611   :  { %v6549_v7 = vmul.f32 %v6547_v6, %v6533_v38  ;;  %v6667_v6 = vrot.slane %v17014_v9, %v16300_v27 }
0x3613   :  { %13979 = vmatprep.mubr.msk.f32.mxu0 %vm2176_vm7, %v6549_v7  ;;  %v6673_v7 = vrot.slane %v17014_v9, %v16303_v28  ;;  %v17146_v9 = vsel %vm64_vm9, 1.0, %v15749_v63 }
0x3614   :  { %13980 = vmatmul.mubr.msk.f32.vlgmr.msra.gmra.mrb[66].mxu0 %vm2176_vm7, %v6550_v26 }
0x3615   :  { %15049 = vmatpush3.bf16.msra.mxu0 %v15046_v52  ;;  %14019 = vmatprep.mubr.msk.f32.mxu0 %vm81_vm0, %v16715_v50 }
0x3616   :  { %15051 = vmatprep.subr.bf16.mxu0 %v15050_v3 }
0x3619   :  { %15053 = vmatpush3.bf16.msra.mxu0 %v15050_v3 }
0x361a   :  { %15063 = vmatprep.subr.bf16.mxu0 %v15062_v14 }
0x361c   :  { %14020 = vmatmul.mubr.msk.f32.vlgmr.msra.gmra.mrb[68].mxu0 %vm81_vm0, %v16717_v58 }
0x361d   :  { %15065 = vmatpush3.bf16.msra.mxu0 %v15062_v14  ;;  %14041 = vmatprep.mubr.msk.f32.mxu0 %vm81_vm0, %v16715_v50 }
0x361e   :  { %15067 = vmatprep.subr.bf16.mxu0 %v15066_v24 }
0x3621   :  { %15069 = vmatpush3.bf16.msra.mxu0 %v15066_v24  ;;  %v6750_v24 = vld [vmem:[%s18132_s6 + $0x8] sm:$0xff] }
0x3624   :  { %14042 = vmatmul.mubr.msk.f32.vlgmr.msra.gmra.mrb[70].mxu0 %vm81_vm0, %v16717_v58 }
0x36e7   :  { %v13981_v33 = vpop.f32.mrb[66].mxu0 }
0x36e8   :  { %v6633_v34 = vadd.f32 %v13981_v33, %v6554_v29  ;;  %v6627_v36 = vpop.f32.mrb[67].mxu0  ;;  %v15035_v33 = vpack.c.bf16 %v6750_v24, %v6749_v23  ;;  %v12358_v23 = vld [vmem:[%s18129_s3 + $0x688] ss:$0 sm:$0xff] }
0x36e9   :  { %v6628_v39 = vadd.f32 %v6627_v36, %v6554_v29 }
0x36ea   :  { %v6637_v40 = vadd.f32 %v6633_v34, %v17044_v30  ;;  %v6752_v34 = vld [vmem:[%s18132_s6 + $0x18] sm:$0xff] }
0x36eb   :  { %v6636_v37 = vadd.f32 %v6628_v39, %v17040_v25  ;;  %v12331_v25 = vld [vmem:[%s18129_s3 + $0x700] ss:$0 sm:$0xff]  ;;  %v15038_v36 = vpack.c.bf16 %v6752_v34, %v6751_v35 }
0x36ec   :  { %v6641_v41 = vsel %vm81_vm0, %v6637_v40, 0.0 }
0x36ed   :  { %6642 = vadd.xlane.f32.xlu1 %v6641_v41  ;;  %v6638_v45 = vsel %vm81_vm0, %v6636_v37, 0.0  ;;  %v6833_v41 = vld [vmem:[%s18133_s7 + $0x8] sm:$0xff] }
0x36ee   :  { %6639 = vadd.xlane.f32.xlu0 %v6638_v45  ;;  %v6834_v45 = vld [vmem:[%s18133_s7 + $0x10] sm:$0xff] }
0x36ef   :  { %v14021_v16 = vpop.f32.mrb[68].mxu0 }
0x36f0   :  { %v17121_v44 = vadd.f32 %v14021_v16, %v17117_v42  ;;  %v17123_v47 = vpop.f32.mrb[69].mxu0 }
0x36f7   :  { %v14043_v30 = vpop.f32.mrb[70].mxu0 }
0x36f8   :  { %v7185_v48 = vadd.f32 %v14043_v30, %v12331_v25  ;;  %v7179_v49 = vpop.f32.mrb[71].mxu0  ;;  %v12315_v30 = vld [vmem:[%s18129_s3 + $0x640] sm:$0xff] }
0x36f9   :  { %v7180_v52 = vadd.f32 %v12331_v25, %v7179_v49  ;;  %v6835_v25 = vld [vmem:[%s18133_s7 + $0x18] sm:$0xff] }
0x36fa   :  { %v15044_v49 = vpack.c.bf16 %v6835_v25, %v6834_v45 }
0x36fb   :  { %v15076_v46 = vpack.c.bf16 %v7185_v48, %v7180_v52  ;;  %v12316_v48 = vld [vmem:[%s18129_s3 + $0x648] sm:$0xff] }
0x36fc   :  { %v15054_v52 = vpack.c.bf16 %v12316_v48, %v12315_v30 }
0x36fd   :  { %15077 = vmatprep.subr.bf16.mxu0 %v15076_v46 }
0x36fe   :  { %15079 = vmatpush3.bf16.msra.mxu0 %v15076_v46  ;;  %v12306_v46 = vld [vmem:[%s18132_s6 + $0x20] ss:$0 sm:$0xff] }
0x377a   :  { %v6643_v51 = vpop.xlane.xlu1 %6642 }
0x377b   :  { %v6645_v53 = vmul.f32 0.03125, %v6643_v51  ;;  %v6640_v54 = vpop.xlane.xlu0 %6639 }
0x377c   :  { %v6644_v55 = vmul.f32 0.03125, %v6640_v54 }
0x377d   :  { %v6647_v59 = vsub.f32 %v6637_v40, %v6645_v53 }
0x377e   :  { %v6646_v2 = vsub.f32 %v6636_v37, %v6644_v55  ;;  %v6832_v37 = vld [vmem:[%s18133_s7] sm:$0xff]  ;;  %v12317_v55 = vld [vmem:[%s18129_s3 + $0x650] sm:$0xff] }
0x377f   :  { %v6649_v60 = vmul.f32 %v6647_v59, %v6647_v59  ;;  %v15041_v16 = vpack.c.bf16 %v6833_v41, %v6832_v37 }
0x3780   :  { %v6648_v61 = vmul.f32 %v6646_v2, %v6646_v2 }
0x3781   :  { %v6653_v18 = vsel %vm81_vm0, %v6649_v60, 0.0 }
0x3782   :  { %6654 = vadd.xlane.f32.xlu1 %v6653_v18  ;;  %v6650_v62 = vsel %vm81_vm0, %v6648_v61, 0.0  ;;  %v7022_v61 = vadd.f32 %v17117_v42, %v17123_v47  ;;  %v12308_v18 = vld [vmem:[%s18133_s7 + $0x20] ss:$0 sm:$0xff] }
0x3783   :  { %6651 = vadd.xlane.f32.xlu0 %v6650_v62  ;;  %v12328_v42 = vld [vmem:[%s18129_s3 + $0x660] ss:$0 sm:$0xff] }
0x380f   :  { %v6655_v10 = vpop.xlane.xlu1 %6654 }
0x3810   :  { %v6657_v19 = vmul.f32 0.03125, %v6655_v10  ;;  %v6652_v11 = vpop.xlane.xlu0 %6651 }
0x3811   :  { %v6656_v4 = vmul.f32 0.03125, %v6652_v11 }
0x3812   :  { %v6659_v5 = vadd.f32 1e-05, %v6657_v19 }
0x3813   :  { %v6658_v38 = vadd.f32 1e-05, %v6656_v4 }
0x3814   :  { %15559 = vrsqrt.f32 %v6659_v5  ;;  %v12345_v5 = vld [vmem:[%s18129_s3 + $0x668] sm:$0xff] }
0x3815   :  { %15561 = vrsqrt.f32 %v6658_v38  ;;  %v12346_v38 = vld [vmem:[%s18129_s3 + $0x670] sm:$0xff] }
0x381e   :  { %v15560_v8 = vpop.eup %15559 }
0x381f   :  { %v15562_v12 = vpop.eup %15561  ;;  %v6663_v15 = vmul.f32 %v15560_v8, %v6647_v59  ;;  %v12318_v59 = vld [vmem:[%s18129_s3 + $0x658] sm:$0xff] }
0x3820   :  { %v6662_v26 = vmul.f32 %v15562_v12, %v6646_v2  ;;  %v15058_v2 = vpack.c.bf16 %v12318_v59, %v12317_v55  ;;  %v15088_v12 = vpack.c.bf16 %v12346_v38, %v12345_v5  ;;  %v12342_v55 = vld [vmem:[%s18129_s3 + $0x5d8] sm:$0xff]  ;;  %v12343_v59 = vld [vmem:[%s18129_s3 + $0x5e0] sm:$0xff]  ;;  %v12370_v5 = vld [vmem:[%s18129_s3 + $0x5f0] sm:$0xff] }
0x3821   :  { %v6669_v3 = vmul.f32 %v6667_v6, %v6663_v15  ;;  %v12347_v15 = vld [vmem:[%s18129_s3 + $0x678] sm:$0xff] }
0x3822   :  { %v6668_v21 = vmul.f32 %v6667_v6, %v6662_v26  ;;  %v12371_v38 = vld [vmem:[%s18129_s3 + $0x5f8] sm:$0xff] }
0x3823   :  { %v6675_v14 = vadd.f32 %v6673_v7, %v6669_v3 }
0x3824   :  { %v6674_v13 = vadd.f32 %v6673_v7, %v6668_v21  ;;  %v12348_v7 = vld [vmem:[%s18129_s3 + $0x680] sm:$0xff] }
0x3825   :  { %v15092_v26 = vpack.c.bf16 %v12348_v7, %v12347_v15  ;;  %v12355_v15 = vld [vmem:[%s18129_s3 + $0x5e8] ss:$0 sm:$0xff] }
0x3826   :  { %v15032_v29 = vpack.c.bf16 %v6675_v14, %v6674_v13 }
0x3828   :  { %15033 = vmatpush3.bf16.msra.mxu1 %v15032_v29 }
0x3829   :  { %15034 = vmatprep.subr.bf16.mxu1 %v15747_v1 }
0x382b   :  { %13987 = vmatmul.mubr.msk.f32.vlgmr.msra.gmra.mrb[70].mxu1 %vm469_vm5, %v17146_v9 }
0x382c   :  { %15036 = vmatpush3.bf16.msra.mxu1 %v15035_v33  ;;  %13997 = vmatprep.mubr.msk.f32.mxu1 %vm15748_vm8, %v15749_v63 }
0x382d   :  { %15037 = vmatprep.subr.bf16.mxu1 %v15747_v1 }
0x3830   :  { %15039 = vmatpush3.bf16.msra.mxu1 %v15038_v36 }
0x3831   :  { %15040 = vmatprep.subr.bf16.mxu1 %v15747_v1 }
0x38fe   :  { %v6745_v39 = vpop.f32.mrb[70].mxu1 }
0x38ff   :  { %v13988_v40 = vpop.f32.mrb[71].mxu1  ;;  %13998 = vmatmul.mubr.msk.f32.vlgmr.msra.gmra.mrb[72].mxu1 %vm81_vm0, %v6745_v39 }
0x3900   :  { %14008 = vmatprep.mubr.msk.f32.mxu1 %vm15748_vm8, %v15749_v63  ;;  %15042 = vmatpush3.bf16.msra.mxu1 %v15041_v16 }
0x3901   :  { %15043 = vmatprep.subr.bf16.mxu1 %v15747_v1 }
0x3904   :  { %15045 = vmatpush3.bf16.msra.mxu1 %v15044_v49  ;;  %v12340_v49 = vld [vmem:[%s18129_s3 + $0x5c8] sm:$0xff] }
0x3905   :  { %15055 = vmatprep.subr.bf16.mxu1 %v15054_v52 }
0x39d2   :  { %v6827_v51 = vpop.f32.mrb[72].mxu1 }
0x39d3   :  { %v6828_v53 = vadd.f32 %v12306_v46, %v6827_v51  ;;  %v13999_v54 = vpop.f32.mrb[73].mxu1 }
0x39d5   :  { %15563 = vtanh.f32 %v6828_v53 }
0x39df   :  { %v15564_v60 = vpop.eup %15563 }
0x39e0   :  { %14009 = vmatmul.mubr.msk.f32.vlgmr.msra.gmra.mrb[74].mxu1 %vm81_vm0, %v15564_v60 }
0x39e1   :  { %15057 = vmatpush3.bf16.msra.mxu1 %v15054_v52  ;;  %14030 = vmatprep.mubr.msk.f32.mxu1 %vm81_vm0, %v16715_v50  ;;  %v12341_v52 = vld [vmem:[%s18129_s3 + $0x5d0] sm:$0xff] }
0x39e2   :  { %15059 = vmatprep.subr.bf16.mxu1 %v15058_v2  ;;  %v15080_v46 = vpack.c.bf16 %v12341_v52, %v12340_v49  ;;  %v12385_v52 = vld [vmem:[%s18129_s3 + $0x610] ss:$0 sm:$0xff] }
0x39e4   :  { %15081 = vmatprep.subr.bf16.mxu0 %v15080_v46 }
0x39e5   :  { %15061 = vmatpush3.bf16.msra.mxu1 %v15058_v2 }
0x39e8   :  { %14031 = vmatmul.mubr.msk.f32.vlgmr.msra.gmra.mrb[76].mxu1 %vm81_vm0, %v16717_v58 }
0x39e9   :  { %14048 = vmatprep.mubr.msk.f32.mxu1 %vm381_vm1, %v7022_v61 }
0x3ab3   :  { %v6910_v62 = vpop.f32.mrb[74].mxu1 }
0x3ab4   :  { %v17203_v10 = vadd.f32 %v12308_v18, %v6910_v62  ;;  %v14010_v19 = vpop.f32.mrb[75].mxu1  ;;  %v15084_v18 = vpack.c.bf16 %v12343_v59, %v12342_v55  ;;  %v12350_v62 = vld [vmem:[%s18129_s3 + $0x708] sm:$0xff] }
0x3ab5   :  { %v12351_v19 = vld [vmem:[%s18129_s3 + $0x710] sm:$0xff] }
0x3ab6   :  { %6915 = vst.msk [vmem:[#allocation4] sm:$0x3] %vm6914_vm10, %v17203_v10 }
0x3abb   :  { %v14032_v47 = vpop.f32.mrb[76].mxu1 }
0x3abc   :  { %v7106_v11 = vadd.f32 %v14032_v47, %v12328_v42  ;;  %v7100_v4 = vpop.f32.mrb[77].mxu1  ;;  %v12352_v47 = vld [vmem:[%s18129_s3 + $0x718] sm:$0xff] }
0x3abd   :  { %v7101_v6 = vadd.f32 %v12328_v42, %v7100_v4  ;;  %v15096_v42 = vpack.c.bf16 %v12351_v19, %v12350_v62 }
0x3abf   :  { %v15070_v8 = vpack.c.bf16 %v7106_v11, %v7101_v6  ;;  %v12353_v11 = vld [vmem:[%s18129_s3 + $0x720] sm:$0xff]  ;;  %v15114_v6 = vpack.c.bf16 %v12371_v38, %v12370_v5 }
0x3ac0   :  { %v15100_v4 = vpack.c.bf16 %v12353_v11, %v12352_v47 }
0x3ac1   :  { %15072 = vmatprep.subr.msk.bf16.mxu1 %vm15909_vm2, %v15070_v8 }
0x3ac2   :  { %15075 = vmatpush3.bf16.xpose.msk.msra.mxu1 %vm15909_vm2, %v15070_v8 }
0x3ac3   :  { %15089 = vmatprep.subr.bf16.mxu1 %v15088_v12 }
0x3ac9   :  { %14049 = vmatmul.mubr.msk.f32.vlgmr.msra.gmra.mrb[78].mxu1 %vm381_vm1, %v17121_v44 }
0x3aca   :  { %15091 = vmatpush3.bf16.msra.mxu1 %v15088_v12  ;;  %14077 = vmatprep.mubr.msk.f32.mxu1 %vm81_vm0, %v16715_v50 }
0x3acb   :  { %15093 = vmatprep.subr.bf16.mxu1 %v15092_v26 }
0x3ace   :  { %15095 = vmatpush3.bf16.msra.mxu1 %v15092_v26  ;;  %v12372_v26 = vld [vmem:[%s18129_s3 + $0x600] sm:$0xff] }
0x3ad1   :  { %14078 = vmatmul.mubr.msk.f32.vlgmr.msra.gmra.mrb[80].mxu1 %vm81_vm0, %v16717_v58 }
0x3b9c   :  { %v14050_v3 = vpop.f32.mrb[78].mxu1 }
0x3b9d   :  { %v7272_v17 = vadd.f32 %v14050_v3, %v15957_v32  ;;  %v7266_v21 = vpop.f32.mrb[79].mxu1  ;;  %v12373_v3 = vld [vmem:[%s18129_s3 + $0x608] sm:$0xff] }
0x3b9e   :  { %v7267_v14 = vadd.f32 %v7266_v21, %v15959_v31 }
0x3b9f   :  { %v7278_v13 = vsel %vm469_vm5, %v7272_v17, -inf }
0x3ba0   :  { %7279 = vmax.xlane.f32.xlu1 %v7278_v13  ;;  %v7275_v44 = vsel %vm469_vm5, %v7267_v14, -inf  ;;  %v15118_v13 = vpack.c.bf16 %v12373_v3, %v12372_v26 }
0x3ba1   :  { %7276 = vmax.xlane.f32.xlu0 %v7275_v44  ;;  %v12380_v44 = vld [vmem:[%s18129_s3 + $0x730] sm:$0xff] }
0x3ba4   :  { %v14079_v24 = vpop.f32.mrb[80].mxu1 }
0x3ba5   :  { %v7551_v29 = vadd.f32 %v14079_v24, %v12358_v23  ;;  %v7545_v33 = vpop.f32.mrb[81].mxu1  ;;  %v12361_v24 = vld [vmem:[%s18129_s3 + $0x728] ss:$0 sm:$0xff] }
0x3ba6   :  { %v7546_v35 = vadd.f32 %v12358_v23, %v7545_v33  ;;  %v12381_v23 = vld [vmem:[%s18129_s3 + $0x738] sm:$0xff] }
0x3ba8   :  { %v15104_v34 = vpack.c.bf16 %v7551_v29, %v7546_v35  ;;  %v15130_v29 = vpack.c.bf16 %v12381_v23, %v12380_v44  ;;  %v12382_v35 = vld [vmem:[%s18129_s3 + $0x740] sm:$0xff] }
0x3baa   :  { %15106 = vmatprep.subr.msk.bf16.mxu1 %vm15909_vm2, %v15104_v34 }
0x3bab   :  { %15109 = vmatpush3.bf16.xpose.msk.msra.mxu1 %vm15909_vm2, %v15104_v34  ;;  %v12383_v34 = vld [vmem:[%s18129_s3 + $0x748] sm:$0xff] }
0x3bac   :  { %15115 = vmatprep.subr.bf16.mxu1 %v15114_v6 }
0x3c2d   :  { %v7280_v36 = vpop.xlane.xlu1 %7279 }
0x3c2e   :  { %v7282_v39 = vsub.f32 %v7272_v17, %v7280_v36  ;;  %v7277_v40 = vpop.xlane.xlu0 %7276 }
0x3c2f   :  { %v7281_v37 = vsub.f32 %v7267_v14, %v7277_v40 }
0x3c30   :  { %v7285_v41 = vmul.f32 1.442695, %v7282_v39 }
0x3c31   :  { %v7283_v45 = vmul.f32 1.442695, %v7281_v37  ;;  %v15134_v37 = vpack.c.bf16 %v12383_v34, %v12382_v35 }
0x3c32   :  { %15565 = vpow2.f32 %v7285_v41 }
0x3c33   :  { %15567 = vpow2.f32 %v7283_v45 }
0x3c3c   :  { %v15566_v16 = vpop.eup %15565 }
0x3c3d   :  { %v15568_v25 = vpop.eup %15567  ;;  %v7290_v30 = vsel %vm469_vm5, %v15566_v16, 0.0 }
0x3c3e   :  { %7291 = vadd.xlane.f32.xlu1 %v7290_v30  ;;  %v7287_v48 = vsel %vm469_vm5, %v15568_v25, 0.0 }
0x3c3f   :  { %7288 = vadd.xlane.f32.xlu0 %v7287_v48 }
0x3ccb   :  { %v7292_v51 = vpop.xlane.xlu1 %7291 }
0x3ccc   :  { %15569 = vrcp.f32 %v7292_v51  ;;  %v7289_v53 = vpop.xlane.xlu0 %7288 }
0x3ccd   :  { %15571 = vrcp.f32 %v7289_v53 }
0x3cd6   :  { %v15570_v54 = vpop.eup %15569 }
0x3cd7   :  { %v15572_v2 = vpop.eup %15571  ;;  %v7296_v61 = vmul.f32 %v15570_v54, %v15566_v16  ;;  %v12391_v54 = vld [vmem:[%s18129_s3 + $0x750] ss:$0 sm:$0xff] }
0x3cd8   :  { %v7295_v60 = vmul.f32 %v15572_v2, %v15568_v25 }
0x3cda   :  { %14055 = vmatprep.mubr.msk.f32.mxu0 %vm469_vm5, %v7295_v60 }
0x3cdb   :  { %14056 = vmatmul.mubr.msk.f32.vlgmr.msra.gmra.mrb[72].mxu0 %vm469_vm5, %v7296_v61 }
0x3cdc   :  { %15083 = vmatpush3.bf16.msra.mxu0 %v15080_v46  ;;  %14066 = vmatprep.mubr.msk.f32.mxu0 %vm81_vm0, %v16715_v50 }
0x3cdd   :  { %15085 = vmatprep.subr.bf16.mxu0 %v15084_v18 }
0x3ce0   :  { %15087 = vmatpush3.bf16.msra.mxu0 %v15084_v18 }
0x3ce1   :  { %15097 = vmatprep.subr.bf16.mxu0 %v15096_v42 }
0x3ce3   :  { %14067 = vmatmul.mubr.msk.f32.vlgmr.msra.gmra.mrb[74].mxu0 %vm81_vm0, %v16717_v58 }
0x3ce4   :  { %15099 = vmatpush3.bf16.msra.mxu0 %v15096_v42  ;;  %14088 = vmatprep.mubr.msk.f32.mxu0 %vm81_vm0, %v16715_v50 }
0x3ce5   :  { %15101 = vmatprep.subr.bf16.mxu0 %v15100_v4 }
0x3ce8   :  { %15103 = vmatpush3.bf16.msra.mxu0 %v15100_v4 }
0x3ceb   :  { %14089 = vmatmul.mubr.msk.f32.vlgmr.msra.gmra.mrb[76].mxu0 %vm81_vm0, %v16717_v58 }
0x3dae   :  { %v17285_v8 = vpop.f32.mrb[72].mxu0 }
0x3daf   :  { %v17287_v12 = vpop.f32.mrb[73].mxu0 }
0x3db6   :  { %v14068_v7 = vpop.f32.mrb[74].mxu0 }
0x3db7   :  { %v7466_v17 = vpop.f32.mrb[75].mxu0  ;;  %v7472_v14 = vadd.f32 %v14068_v7, %v12355_v15  ;;  %v12376_v7 = vld [vmem:[%s18129_s3 + $0x698] sm:$0xff] }
0x3db8   :  { %v7467_v21 = vadd.f32 %v12355_v15, %v7466_v17  ;;  %v12375_v15 = vld [vmem:[%s18129_s3 + $0x690] sm:$0xff] }
0x3db9   :  { %v15122_v26 = vpack.c.bf16 %v12376_v7, %v12375_v15 }
0x3dba   :  { %14095 = vmatprep.mubr.msk.f32.mxu1 %vm381_vm1, %v7467_v21 }
0x3dbb   :  { %14096 = vmatmul.mubr.msk.f32.vlgmr.msra.gmra.mrb[82].mxu1 %vm381_vm1, %v7472_v14  ;;  %v12377_v14 = vld [vmem:[%s18129_s3 + $0x6a0] sm:$0xff] }
0x3dbc   :  { %15117 = vmatpush3.bf16.msra.mxu1 %v15114_v6  ;;  %14113 = vmatprep.mubr.msk.f32.mxu1 %vm81_vm0, %v16715_v50 }
0x3dbd   :  { %15119 = vmatprep.subr.bf16.mxu1 %v15118_v13 }
0x3dbe   :  { %v14090_v33 = vpop.f32.mrb[76].mxu0 }
0x3dbf   :  { %v7630_v36 = vadd.f32 %v14090_v33, %v12361_v24  ;;  %v7624_v39 = vpop.f32.mrb[77].mxu0 }
0x3dc0   :  { %v7625_v40 = vadd.f32 %v12361_v24, %v7624_v39  ;;  %15121 = vmatpush3.bf16.msra.mxu1 %v15118_v13  ;;  %v12378_v13 = vld [vmem:[%s18129_s3 + $0x6a8] sm:$0xff] }
0x3dc1   :  { %15131 = vmatprep.subr.bf16.mxu1 %v15130_v29 }
0x3dc2   :  { %v15110_v41 = vpack.c.bf16 %v7630_v36, %v7625_v40  ;;  %v12388_v36 = vld [vmem:[%s18129_s3 + $0x6b0] ss:$0 sm:$0xff] }
0x3dc3   :  { %14114 = vmatmul.mubr.msk.f32.vlgmr.msra.gmra.mrb[84].mxu1 %vm81_vm0, %v16717_v58 }
0x3dc4   :  { %15133 = vmatpush3.bf16.msra.mxu1 %v15130_v29  ;;  %14135 = vmatprep.mubr.msk.f32.mxu1 %vm81_vm0, %v16715_v50  ;;  %v15126_v29 = vpack.c.bf16 %v12378_v13, %v12377_v14 }
0x3dc5   :  { %15111 = vmatprep.subr.bf16.mxu0 %v15110_v41  ;;  %15135 = vmatprep.subr.bf16.mxu1 %v15134_v37 }
0x3dc6   :  { %15113 = vmatpush3.bf16.msra.mxu0 %v15110_v41  ;;  %v12400_v41 = vld [vmem:[%s18129_s3 + $0x618] sm:$0xff] }
0x3dc7   :  { %15123 = vmatprep.subr.bf16.mxu0 %v15122_v26 }
0x3dc8   :  { %15137 = vmatpush3.bf16.msra.mxu1 %v15134_v37 }
0x3dcb   :  { %14136 = vmatmul.mubr.msk.f32.vlgmr.msra.gmra.mrb[86].mxu1 %vm81_vm0, %v16717_v58 }
0x3e8e   :  { %v14097_v45 = vpop.f32.mrb[82].mxu1 }
0x3e8f   :  { %v7717_v16 = vadd.f32 %v14097_v45, %v15957_v32  ;;  %v7711_v25 = vpop.f32.mrb[83].mxu1  ;;  %v12401_v45 = vld [vmem:[%s18129_s3 + $0x620] sm:$0xff] }
0x3e90   :  { %v7712_v30 = vadd.f32 %v7711_v25, %v15959_v31 }
0x3e91   :  { %v7723_v48 = vsel %vm469_vm5, %v7717_v16, -inf }
0x3e92   :  { %7724 = vmax.xlane.f32.xlu1 %v7723_v48  ;;  %v7720_v49 = vsel %vm469_vm5, %v7712_v30, -inf  ;;  %v12402_v48 = vld [vmem:[%s18129_s3 + $0x628] sm:$0xff] }
0x3e93   :  { %7721 = vmax.xlane.f32.xlu0 %v7720_v49  ;;  %v12403_v49 = vld [vmem:[%s18129_s3 + $0x630] sm:$0xff] }
0x3e96   :  { %v14115_v46 = vpop.f32.mrb[84].mxu1 }
0x3e97   :  { %v17330_v51 = vadd.f32 %v14115_v46, %v12385_v52  ;;  %v7911_v53 = vpop.f32.mrb[85].mxu1  ;;  %v12410_v46 = vld [vmem:[%s18129_s3 + $0x758] sm:$0xff] }
0x3e98   :  { %v7912_v33 = vadd.f32 %v12385_v52, %v7911_v53  ;;  %v15152_v52 = vpack.c.bf16 %v12403_v49, %v12402_v48  ;;  %v12411_v53 = vld [vmem:[%s18129_s3 + $0x760] sm:$0xff] }
0x3e9e   :  { %v14137_v55 = vpop.f32.mrb[86].mxu1 }
0x3e9f   :  { %v8075_v59 = vadd.f32 %v14137_v55, %v12391_v54  ;;  %v8069_v2 = vpop.f32.mrb[87].mxu1  ;;  %v12412_v55 = vld [vmem:[%s18129_s3 + $0x768] sm:$0xff] }
0x3ea0   :  { %v8070_v60 = vadd.f32 %v12391_v54, %v8069_v2  ;;  %v15164_v54 = vpack.c.bf16 %v12411_v53, %v12410_v46 }
0x3ea2   :  { %v15144_v61 = vpack.c.bf16 %v8075_v59, %v8070_v60  ;;  %v12413_v59 = vld [vmem:[%s18129_s3 + $0x770] sm:$0xff] }
0x3ea3   :  { %v15168_v2 = vpack.c.bf16 %v12413_v59, %v12412_v55  ;;  %v12418_v55 = vld [vmem:[%s18129_s3 + $0x6d8] ss:$0 sm:$0xff] }
0x3ea4   :  { %15145 = vmatprep.subr.bf16.mxu1 %v15144_v61 }
0x3ea5   :  { %15147 = vmatpush3.bf16.msra.mxu1 %v15144_v61 }
0x3f1f   :  { %v7725_v18 = vpop.xlane.xlu1 %7724 }
0x3f20   :  { %v7727_v62 = vsub.f32 %v7717_v16, %v7725_v18  ;;  %v7722_v19 = vpop.xlane.xlu0 %7721 }
0x3f21   :  { %v7726_v42 = vsub.f32 %v7712_v30, %v7722_v19  ;;  %v15148_v30 = vpack.c.bf16 %v12401_v45, %v12400_v41 }
0x3f22   :  { %v7730_v47 = vmul.f32 1.442695, %v7727_v62 }
0x3f23   :  { %v7728_v11 = vmul.f32 1.442695, %v7726_v42  ;;  %v12415_v42 = vld [vmem:[%s18129_s3 + $0x638] ss:$0 sm:$0xff] }
0x3f24   :  { %15573 = vpow2.f32 %v7730_v47 }
0x3f25   :  { %15575 = vpow2.f32 %v7728_v11 }
0x3f2e   :  { %v15574_v4 = vpop.eup %15573 }
0x3f2f   :  { %v15576_v5 = vpop.eup %15575  ;;  %v7735_v38 = vsel %vm469_vm5, %v15574_v4, 0.0 }
0x3f30   :  { %7736 = vadd.xlane.f32.xlu1 %v7735_v38  ;;  %v7732_v6 = vsel %vm469_vm5, %v15576_v5, 0.0 }
0x3f31   :  { %7733 = vadd.xlane.f32.xlu0 %v7732_v6 }
0x3fbd   :  { %v7737_v3 = vpop.xlane.xlu1 %7736 }
0x3fbe   :  { %15577 = vrcp.f32 %v7737_v3  ;;  %v7734_v17 = vpop.xlane.xlu0 %7733 }
0x3fbf   :  { %15579 = vrcp.f32 %v7734_v17 }
0x3fc8   :  { %v15578_v21 = vpop.eup %15577 }
0x3fc9   :  { %v15580_v44 = vpop.eup %15579  ;;  %v7741_v24 = vmul.f32 %v15578_v21, %v15574_v4 }
0x3fca   :  { %v7740_v23 = vmul.f32 %v15580_v44, %v15576_v5  ;;  %v12421_v5 = vld [vmem:[%s18129_s3 + $0x778] ss:$0 sm:$0xff] }
0x3fcc   :  { %14102 = vmatprep.mubr.msk.f32.mxu0 %vm469_vm5, %v7740_v23 }
0x3fcd   :  { %14103 = vmatmul.mubr.msk.f32.vlgmr.msra.gmra.mrb[78].mxu0 %vm469_vm5, %v7741_v24 }
0x3fce   :  { %15125 = vmatpush3.bf16.msra.mxu0 %v15122_v26  ;;  %14124 = vmatprep.mubr.msk.f32.mxu0 %vm81_vm0, %v16715_v50 }
0x3fcf   :  { %15127 = vmatprep.subr.bf16.mxu0 %v15126_v29 }
0x3fd2   :  { %15129 = vmatpush3.bf16.msra.mxu0 %v15126_v29 }
0x3fd5   :  { %14125 = vmatmul.mubr.msk.f32.vlgmr.msra.gmra.mrb[80].mxu0 %vm81_vm0, %v16717_v58 }
0x3fd6   :  { %14142 = vmatprep.mubr.msk.f32.mxu0 %vm381_vm1, %v7912_v33 }
0x40a0   :  { %v17356_v35 = vpop.f32.mrb[78].mxu0 }
0x40a1   :  { %v17358_v34 = vpop.f32.mrb[79].mxu0 }
0x40a8   :  { %v14126_v39 = vpop.f32.mrb[80].mxu0 }
0x40a9   :  { %v7996_v40 = vadd.f32 %v14126_v39, %v12388_v36  ;;  %v7990_v37 = vpop.f32.mrb[81].mxu0  ;;  %v12406_v39 = vld [vmem:[%s18129_s3 + $0x6c0] sm:$0xff] }
0x40aa   :  { %v7991_v16 = vadd.f32 %v12388_v36, %v7990_v37  ;;  %v12405_v36 = vld [vmem:[%s18129_s3 + $0x6b8] sm:$0xff] }
0x40ac   :  { %v15138_v25 = vpack.c.bf16 %v7996_v40, %v7991_v16  ;;  %v15156_v40 = vpack.c.bf16 %v12406_v39, %v12405_v36  ;;  %v12407_v16 = vld [vmem:[%s18129_s3 + $0x6c8] sm:$0xff]  ;;  %v12433_v39 = vld [vmem:[%s18130_s4 + $0x150] sm:$0xff] }
0x40ae   :  { %15140 = vmatprep.subr.msk.bf16.mxu0 %vm15909_vm2, %v15138_v25  ;;  %15157 = vmatprep.subr.bf16.mxu1 %v15156_v40 }
0x40af   :  { %15143 = vmatpush3.bf16.xpose.msk.msra.mxu0 %vm15909_vm2, %v15138_v25  ;;  %v12408_v25 = vld [vmem:[%s18129_s3 + $0x6d0] sm:$0xff] }
0x40b0   :  { %15149 = vmatprep.subr.bf16.mxu0 %v15148_v30 }
0x40b6   :  { %14143 = vmatmul.mubr.msk.f32.vlgmr.msra.gmra.mrb[82].mxu0 %vm381_vm1, %v17330_v51 }
0x40b7   :  { %15151 = vmatpush3.bf16.msra.mxu0 %v15148_v30  ;;  %14160 = vmatprep.mubr.msk.f32.mxu0 %vm81_vm0, %v16715_v50 }
0x40b8   :  { %15153 = vmatprep.subr.bf16.mxu0 %v15152_v52 }
0x40bb   :  { %15155 = vmatpush3.bf16.msra.mxu0 %v15152_v52  ;;  %v15160_v52 = vpack.c.bf16 %v12408_v25, %v12407_v16 }
0x40bc   :  { %15165 = vmatprep.subr.bf16.mxu0 %v15164_v54 }
0x40be   :  { %14161 = vmatmul.mubr.msk.f32.vlgmr.msra.gmra.mrb[84].mxu0 %vm81_vm0, %v16717_v58 }
0x40bf   :  { %15167 = vmatpush3.bf16.msra.mxu0 %v15164_v54  ;;  %14182 = vmatprep.mubr.msk.f32.mxu0 %vm81_vm0, %v16715_v50 }
0x40c0   :  { %15169 = vmatprep.subr.bf16.mxu0 %v15168_v2 }
0x40c3   :  { %15171 = vmatpush3.bf16.msra.mxu0 %v15168_v2 }
0x40c6   :  { %14183 = vmatmul.mubr.msk.f32.vlgmr.msra.gmra.mrb[86].mxu0 %vm81_vm0, %v16717_v58 }
0x4189   :  { %v14144_v51 = vpop.f32.mrb[82].mxu0 }
0x418a   :  { %v8162_v60 = vadd.f32 %v14144_v51, %v15957_v32  ;;  %v8156_v61 = vpop.f32.mrb[83].mxu0 }
0x418b   :  { %v8157_v18 = vadd.f32 %v8156_v61, %v15959_v31 }
0x418c   :  { %v8168_v62 = vsel %vm469_vm5, %v8162_v60, -inf }
0x418d   :  { %8169 = vmax.xlane.f32.xlu1 %v8168_v62  ;;  %v8165_v19 = vsel %vm469_vm5, %v8157_v18, -inf }
0x418e   :  { %8166 = vmax.xlane.f32.xlu0 %v8165_v19 }
0x4191   :  { %v14162_v47 = vpop.f32.mrb[84].mxu0 }
0x4192   :  { %v8362_v11 = vadd.f32 %v14162_v47, %v12415_v42  ;;  %v8356_v4 = vpop.f32.mrb[85].mxu0 }
0x4193   :  { %v8357_v46 = vadd.f32 %v12415_v42, %v8356_v4 }
0x4199   :  { %v14184_v38 = vpop.f32.mrb[86].mxu0 }
0x419a   :  { %v8520_v6 = vadd.f32 %v14184_v38, %v12421_v5  ;;  %v8514_v15 = vpop.f32.mrb[87].mxu0 }
0x419b   :  { %v8515_v7 = vadd.f32 %v12421_v5, %v8514_v15 }
0x419d   :  { %v15178_v26 = vpack.c.bf16 %v8520_v6, %v8515_v7 }
0x419f   :  { %15179 = vmatprep.subr.bf16.mxu0 %v15178_v26 }
0x41a0   :  { %15181 = vmatpush3.bf16.msra.mxu0 %v15178_v26 }
0x421a   :  { %v8170_v3 = vpop.xlane.xlu1 %8169 }
0x421b   :  { %v8172_v17 = vsub.f32 %v8162_v60, %v8170_v3  ;;  %v8167_v21 = vpop.xlane.xlu0 %8166 }
0x421c   :  { %v8171_v14 = vsub.f32 %v8157_v18, %v8167_v21 }
0x421d   :  { %v8175_v13 = vmul.f32 1.442695, %v8172_v17 }
0x421e   :  { %v8173_v44 = vmul.f32 1.442695, %v8171_v14 }
0x421f   :  { %15581 = vpow2.f32 %v8175_v13 }
0x4220   :  { %15583 = vpow2.f32 %v8173_v44 }
0x4229   :  { %v15582_v23 = vpop.eup %15581 }
0x422a   :  { %v15584_v24 = vpop.eup %15583  ;;  %v8180_v29 = vsel %vm469_vm5, %v15582_v23, 0.0 }
0x422b   :  { %8181 = vadd.xlane.f32.xlu1 %v8180_v29  ;;  %v8177_v33 = vsel %vm469_vm5, %v15584_v24, 0.0 }
0x422c   :  { %8178 = vadd.xlane.f32.xlu0 %v8177_v33  ;;  %v12432_v33 = vld [vmem:[%s18130_s4 + $0x148] sm:$0xff] }
0x42b8   :  { %v8182_v37 = vpop.xlane.xlu1 %8181 }
0x42b9   :  { %15585 = vrcp.f32 %v8182_v37  ;;  %v8179_v41 = vpop.xlane.xlu0 %8178 }
0x42ba   :  { %15587 = vrcp.f32 %v8179_v41 }
0x42c3   :  { %v15586_v45 = vpop.eup %15585 }
0x42c4   :  { %v15588_v30 = vpop.eup %15587  ;;  %v8186_v49 = vmul.f32 %v15586_v45, %v15582_v23 }
0x42c5   :  { %v8185_v48 = vmul.f32 %v15588_v30, %v15584_v24 }
0x42c7   :  { %14149 = vmatprep.mubr.msk.f32.mxu1 %vm469_vm5, %v8185_v48 }
0x42c8   :  { %14150 = vmatmul.mubr.msk.f32.vlgmr.msra.gmra.mrb[88].mxu1 %vm469_vm5, %v8186_v49 }
0x42c9   :  { %15159 = vmatpush3.bf16.msra.mxu1 %v15156_v40  ;;  %14171 = vmatprep.mubr.msk.f32.mxu1 %vm81_vm0, %v16715_v50  ;;  %v15186_v40 = vpack.c.bf16 %v12433_v39, %v12432_v33 }
0x42ca   :  { %15161 = vmatprep.subr.bf16.mxu1 %v15160_v52 }
0x42cd   :  { %15163 = vmatpush3.bf16.msra.mxu1 %v15160_v52 }
0x42d0   :  { %14172 = vmatmul.mubr.msk.f32.vlgmr.msra.gmra.mrb[90].mxu1 %vm81_vm0, %v16717_v58 }
0x42d1   :  { %14189 = vmatprep.mubr.msk.f32.mxu1 %vm381_vm1, %v8357_v46 }
0x439b   :  { %v14151_v53 = vpop.f32.mrb[88].mxu1 }
0x439c   :  { %v8259_v54 = vpop.f32.mrb[89].mxu1 }
0x43a3   :  { %v14173_v59 = vpop.f32.mrb[90].mxu1 }
0x43a4   :  { %v8441_v2 = vadd.f32 %v14173_v59, %v12418_v55  ;;  %v8435_v51 = vpop.f32.mrb[91].mxu1 }
0x43a5   :  { %v8436_v60 = vadd.f32 %v12418_v55, %v8435_v51 }
0x43a7   :  { %v15172_v61 = vpack.c.bf16 %v8441_v2, %v8436_v60 }
0x43a9   :  { %15174 = vmatprep.subr.msk.bf16.mxu1 %vm15909_vm2, %v15172_v61 }
0x43aa   :  { %15177 = vmatpush3.bf16.xpose.msk.msra.mxu1 %vm15909_vm2, %v15172_v61 }
0x43b1   :  { %14190 = vmatmul.mubr.msk.f32.vlgmr.msra.gmra.mrb[92].mxu1 %vm381_vm1, %v8362_v11 }
0x4484   :  { %v14191_v18 = vpop.f32.mrb[92].mxu1 }
0x4485   :  { %v8607_v62 = vadd.f32 %v14191_v18, %v15957_v32  ;;  %v8601_v19 = vpop.f32.mrb[93].mxu1 }
0x4486   :  { %v8602_v42 = vadd.f32 %v8601_v19, %v15959_v31 }
0x4487   :  { %v8613_v47 = vsel %vm469_vm5, %v8607_v62, -inf }
0x4488   :  { %8614 = vmax.xlane.f32.xlu1 %v8613_v47  ;;  %v8610_v4 = vsel %vm469_vm5, %v8602_v42, -inf }
0x4489   :  { %8611 = vmax.xlane.f32.xlu0 %v8610_v4 }
0x4515   :  { %v8615_v5 = vpop.xlane.xlu1 %8614 }
0x4516   :  { %v8617_v38 = vsub.f32 %v8607_v62, %v8615_v5  ;;  %v8612_v6 = vpop.xlane.xlu0 %8611 }
0x4517   :  { %v8616_v15 = vsub.f32 %v8602_v42, %v8612_v6 }
0x4518   :  { %v8620_v7 = vmul.f32 1.442695, %v8617_v38 }
0x4519   :  { %v8618_v26 = vmul.f32 1.442695, %v8616_v15 }
0x451a   :  { %15589 = vpow2.f32 %v8620_v7 }
0x451b   :  { %15591 = vpow2.f32 %v8618_v26 }
0x4524   :  { %v15590_v11 = vpop.eup %15589 }
0x4525   :  { %v15592_v3 = vpop.eup %15591  ;;  %v8625_v17 = vsel %vm469_vm5, %v15590_v11, 0.0 }
0x4526   :  { %8626 = vadd.xlane.f32.xlu1 %v8625_v17  ;;  %v8622_v21 = vsel %vm469_vm5, %v15592_v3, 0.0  ;;  %v12443_v17 = vld [vmem:[%s18131_s5 + $0x78] sm:$0xff] }
0x4527   :  { %8623 = vadd.xlane.f32.xlu0 %v8622_v21  ;;  %v12444_v21 = vld [vmem:[%s18131_s5 + $0x80] sm:$0xff] }
0x4537   :  { %8717 = vrot.lane.b32.xlu1 %v17356_v35, %s15744_s30  ;;  %v12430_v35 = vld [vmem:[%s18130_s4 + $0x138] sm:$0xff] }
0x453b   :  { %8723 = vrot.lane.b32.xlu1 %v8259_v54, %s15745_s13 }
0x453d   :  { %8715 = vrot.lane.b32.xlu0 %v17358_v34, %s15744_s30  ;;  %v12431_v34 = vld [vmem:[%s18130_s4 + $0x140] sm:$0xff] }
0x453e   :  { %v15182_v36 = vpack.c.bf16 %v12431_v34, %v12430_v35 }
0x453f   :  { %8725 = vrot.lane.b32.xlu1 %v14151_v53, %s15745_s13 }
0x4540   :  { %15183 = vmatprep.subr.bf16.mxu1 %v15182_v36 }
0x4541   :  { %15185 = vmatpush3.bf16.msra.mxu1 %v15182_v36 }
0x4542   :  { %15187 = vmatprep.subr.bf16.mxu1 %v15186_v40 }
0x4545   :  { %15189 = vmatpush3.bf16.msra.mxu1 %v15186_v40 }
0x45b3   :  { %v8627_v14 = vpop.xlane.xlu1 %8626 }
0x45b4   :  { %15593 = vrcp.f32 %v8627_v14  ;;  %v8624_v13 = vpop.xlane.xlu0 %8623  ;;  %v15190_v14 = vpack.c.bf16 %v12444_v21, %v12443_v17 }
0x45b5   :  { %15595 = vrcp.f32 %v8624_v13  ;;  %v12445_v13 = vld [vmem:[%s18131_s5 + $0x88] sm:$0xff] }
0x45b6   :  { %15191 = vmatprep.subr.bf16.mxu0 %v15190_v14 }
0x45b7   :  { %v8718_v45 = vpop.permute.xlu1 %8717 }
0x45b8   :  { %v8716_v30 = vpop.permute.xlu0 %8715  ;;  %v8738_v52 = vsel %vm381_vm1, %v17285_v8, %v8718_v45 }
0x45b9   :  { %v8737_v48 = vsel %vm381_vm1, %v17287_v12, %v8716_v30  ;;  %v17481_v12 = vld [vmem:[%s18130_s4 + $0x198] sm:$0xff] }
0x45ba   :  { %v8766_v8 = vrot.slane %v17481_v12, %v16195_v22  ;;  %v8879_v39 = vrot.slane %v17481_v12, %v16218_v56 }
0x45bb   :  { %v8724_v16 = vpop.permute.xlu1 %8723 }
0x45bc   :  { %v8739_v46 = vsel %vm469_vm5, %v8737_v48, %v8724_v16 }
0x45be   :  { %v15594_v44 = vpop.eup %15593 }
0x45bf   :  { %v15596_v23 = vpop.eup %15595  ;;  %v8631_v29 = vmul.f32 %v15594_v44, %v15590_v11  ;;  %v8726_v25 = vpop.permute.xlu1 %8725  ;;  %v12446_v44 = vld [vmem:[%s18131_s5 + $0x90] sm:$0xff] }
0x45c0   :  { %v8630_v24 = vmul.f32 %v15596_v23, %v15592_v3  ;;  %v8740_v54 = vsel %vm469_vm5, %v8738_v52, %v8726_v25  ;;  %v15194_v23 = vpack.c.bf16 %v12446_v44, %v12445_v13  ;;  %v12434_v52 = vld [vmem:[%s18130_s4 + $0x158] sm:$0xff] }
0x45c2   :  { %14196 = vmatprep.mubr.msk.f32.mxu0 %vm469_vm5, %v8630_v24 }
0x45c3   :  { %14197 = vmatmul.mubr.msk.f32.vlgmr.msra.gmra.mrb[88].mxu0 %vm469_vm5, %v8631_v29 }
0x45c4   :  { %15193 = vmatpush3.bf16.msra.mxu0 %v15190_v14 }
0x45c5   :  { %15195 = vmatprep.subr.bf16.mxu0 %v15194_v23 }
0x45c8   :  { %15197 = vmatpush3.bf16.msra.mxu0 %v15194_v23 }
0x45c9   :  { %15214 = vmatprep.subr.bf16.mxu0 %v15747_v1 }
0x4696   :  { %v14198_v37 = vpop.f32.mrb[88].mxu0 }
0x4697   :  { %8733 = vrot.lane.b32.xlu1 %v14198_v37, %s15746_s21  ;;  %v8704_v41 = vpop.f32.mrb[89].mxu0 }
0x4698   :  { %8731 = vrot.lane.b32.xlu0 %v8704_v41, %s15746_s21  ;;  %v8885_v41 = vrot.slane %v17481_v12, %v16221_v57 }
0x4709   :  { %v8734_v49 = vpop.permute.xlu1 %8733 }
0x470a   :  { %v8732_v53 = vpop.permute.xlu0 %8731  ;;  %v8742_v59 = vsel %vm1936_vm6, %v8740_v54, %v8734_v49  ;;  %v12436_v54 = vld [vmem:[%s18130_s4 + $0x168] sm:$0xff] }
0x470b   :  { %v8741_v55 = vsel %vm1936_vm6, %v8739_v46, %v8732_v53  ;;  %v12435_v46 = vld [vmem:[%s18130_s4 + $0x160] sm:$0xff] }
0x470c   :  { %14207 = vmatprep.mubr.msk.f32.mxu1 %vm81_vm0, %v8741_v55  ;;  %v15198_v53 = vpack.c.bf16 %v12435_v46, %v12434_v52  ;;  %v12437_v55 = vld [vmem:[%s18130_s4 + $0x170] sm:$0xff]  ;;  %v12478_v52 = vld [vmem:[%s18129_s3 + $0x8d8] sm:$0xff] }
0x470d   :  { %14208 = vmatmul.mubr.msk.f32.vlgmr.msra.gmra.mrb[94].mxu1 %vm81_vm0, %v8742_v59  ;;  %v12438_v59 = vld [vmem:[%s18130_s4 + $0x178] sm:$0xff] }
0x470e   :  { %15199 = vmatprep.subr.bf16.mxu1 %v15198_v53 }
0x470f   :  { %15201 = vmatpush3.bf16.msra.mxu1 %v15198_v53  ;;  %v8994_v53 = vrot.slane %v17481_v12, %v16259_v43 }
0x47e0   :  { %v14209_v2 = vpop.f32.mrb[94].mxu1 }
0x47e1   :  { %v8845_v51 = vadd.f32 %v14209_v2, %v8766_v8  ;;  %v8839_v60 = vpop.f32.mrb[95].mxu1  ;;  %v12439_v2 = vld [vmem:[%s18130_s4 + $0x180] sm:$0xff] }
0x47e2   :  { %v8840_v61 = vadd.f32 %v8839_v60, %v8766_v8  ;;  %v15202_v8 = vpack.c.bf16 %v12437_v55, %v12436_v54  ;;  %v12440_v60 = vld [vmem:[%s18130_s4 + $0x188] sm:$0xff] }
0x47e3   :  { %v8849_v18 = vadd.f32 %v8845_v51, %v16717_v58  ;;  %v15206_v51 = vpack.c.bf16 %v12439_v2, %v12438_v59 }
0x47e4   :  { %v8848_v62 = vadd.f32 %v8840_v61, %v16715_v50  ;;  %15203 = vmatprep.subr.bf16.mxu1 %v15202_v8  ;;  %v12441_v61 = vld [vmem:[%s18130_s4 + $0x190] sm:$0xff] }
0x47e5   :  { %v8853_v19 = vsel %vm81_vm0, %v8849_v18, 0.0  ;;  %15205 = vmatpush3.bf16.msra.mxu1 %v15202_v8 }
0x47e6   :  { %8854 = vadd.xlane.f32.xlu1 %v8853_v19  ;;  %v8850_v42 = vsel %vm81_vm0, %v8848_v62, 0.0  ;;  %15207 = vmatprep.subr.bf16.mxu1 %v15206_v51  ;;  %v12466_v19 = vld [vmem:[%s18129_s3 + $0x788] sm:$0xff] }
0x47e7   :  { %8851 = vadd.xlane.f32.xlu0 %v8850_v42 }
0x47e9   :  { %15209 = vmatpush3.bf16.msra.mxu1 %v15206_v51 }
0x4873   :  { %v8855_v47 = vpop.xlane.xlu1 %8854 }
0x4874   :  { %v8857_v4 = vmul.f32 0.03125, %v8855_v47  ;;  %v8852_v5 = vpop.xlane.xlu0 %8851  ;;  %v12450_v47 = vld [vmem:[%s18131_s5 + $0x98] ss:$0 sm:$0xff] }
0x4875   :  { %v8856_v38 = vmul.f32 0.03125, %v8852_v5 }
0x4876   :  { %v8859_v6 = vsub.f32 %v8849_v18, %v8857_v4  ;;  %v15210_v18 = vpack.c.bf16 %v12441_v61, %v12440_v60  ;;  %v17587_v61 = vld [vmem:[%s18129_s3 + $0x7a0] ss:$0 sm:$0xff] }
0x4877   :  { %v8858_v15 = vsub.f32 %v8848_v62, %v8856_v38  ;;  %v12465_v62 = vld [vmem:[%s18129_s3 + $0x780] sm:$0xff] }
0x4878   :  { %v8861_v11 = vmul.f32 %v8859_v6, %v8859_v6  ;;  %15211 = vmatprep.subr.bf16.mxu1 %v15210_v18  ;;  %v15229_v42 = vpack.c.bf16 %v12466_v19, %v12465_v62 }
0x4879   :  { %v8860_v7 = vmul.f32 %v8858_v15, %v8858_v15  ;;  %15213 = vmatpush3.bf16.msra.mxu1 %v15210_v18 }
0x487a   :  { %v8865_v3 = vsel %vm81_vm0, %v8861_v11, 0.0  ;;  %15230 = vmatprep.subr.bf16.mxu1 %v15229_v42 }
0x487b   :  { %v8862_v26 = vsel %vm81_vm0, %v8860_v7, 0.0 }
0x487c   :  { %8863 = vadd.xlane.f32.xlu0 %v8862_v26 }
0x4880   :  { %8866 = vadd.xlane.f32.xlu0 %v8865_v3 }
0x4909   :  { %v8864_v24 = vpop.xlane.xlu0 %8863 }
0x490a   :  { %v8868_v29 = vmul.f32 0.03125, %v8864_v24 }
0x490c   :  { %v8870_v35 = vadd.f32 1e-05, %v8868_v29 }
0x490d   :  { %v8867_v34 = vpop.xlane.xlu0 %8866 }
0x490e   :  { %15597 = vrsqrt.f32 %v8870_v35  ;;  %v8869_v33 = vmul.f32 0.03125, %v8867_v34 }
0x4910   :  { %v8871_v36 = vadd.f32 1e-05, %v8869_v33  ;;  %v12467_v33 = vld [vmem:[%s18129_s3 + $0x790] sm:$0xff] }
0x4912   :  { %15599 = vrsqrt.f32 %v8871_v36  ;;  %v12468_v36 = vld [vmem:[%s18129_s3 + $0x798] sm:$0xff] }
0x4918   :  { %v15598_v40 = vpop.eup %15597 }
0x4919   :  { %v8874_v37 = vmul.f32 %v15598_v40, %v8858_v15 }
0x491b   :  { %v8880_v45 = vmul.f32 %v8879_v39, %v8874_v37 }
0x491c   :  { %v15600_v16 = vpop.eup %15599 }
0x491d   :  { %v8875_v25 = vmul.f32 %v15600_v16, %v8859_v6  ;;  %v17508_v30 = vadd.f32 %v8885_v41, %v8880_v45  ;;  %v12475_v45 = vld [vmem:[%s18129_s3 + $0x8c0] sm:$0xff]  ;;  %v12476_v16 = vld [vmem:[%s18129_s3 + $0x8c8] sm:$0xff] }
0x491f   :  { %v8881_v48 = vmul.f32 %v8879_v39, %v8875_v25  ;;  %14218 = vmatprep.mubr.msk.f32.mxu0 %vm81_vm0, %v17508_v30  ;;  %v15245_v25 = vpack.c.bf16 %v12476_v16, %v12475_v45 }
0x4921   :  { %v17512_v49 = vadd.f32 %v8885_v41, %v8881_v48  ;;  %v15233_v41 = vpack.c.bf16 %v12468_v36, %v12467_v33  ;;  %v12477_v48 = vld [vmem:[%s18129_s3 + $0x8d0] sm:$0xff]  ;;  %v9107_v33 = vrot.slane %v17481_v12, %v16300_v27 }
0x4922   :  { %v15249_v46 = vpack.c.bf16 %v12478_v52, %v12477_v48  ;;  %v12456_v52 = vld [vmem:[%s18132_s6 + $0x28] sm:$0xff] }
0x4923   :  { %14219 = vmatmul.mubr.msk.f32.vlgmr.msra.gmra.mrb[90].mxu0 %vm81_vm0, %v17512_v49 }
0x4924   :  { %14244 = vmatprep.mubr.msk.f32.mxu0 %vm15748_vm8, %v15749_v63 }
0x49f6   :  { %v14220_v4 = vpop.f32.mrb[90].mxu0 }
0x49f7   :  { %v8970_v5 = vadd.f32 %v14220_v4, %v12450_v47  ;;  %v8964_v38 = vpop.f32.mrb[91].mxu0 }
0x49f8   :  { %v8965_v6 = vadd.f32 %v12450_v47, %v8964_v38 }
0x49f9   :  { %v8976_v15 = vmul.f32 0.044715, %v8970_v5  ;;  %v8974_v39 = vmul.f32 0.5, %v8970_v5 }
0x49fa   :  { %v8975_v7 = vmul.f32 0.044715, %v8965_v6  ;;  %v8973_v35 = vmul.f32 0.5, %v8965_v6 }
0x49fb   :  { %v8978_v26 = vmul.f32 %v8976_v15, %v8970_v5 }
0x49fc   :  { %v8977_v11 = vmul.f32 %v8975_v7, %v8965_v6 }
0x49fd   :  { %v8980_v3 = vmul.f32 %v8978_v26, %v8970_v5 }
0x49fe   :  { %v8979_v17 = vmul.f32 %v8977_v11, %v8965_v6 }
0x49ff   :  { %v8982_v21 = vadd.f32 %v8980_v3, %v8970_v5 }
0x4a00   :  { %v8981_v14 = vadd.f32 %v8979_v17, %v8965_v6 }
0x4a01   :  { %v8984_v13 = vmul.f32 0.7978846, %v8982_v21 }
0x4a02   :  { %v8983_v44 = vmul.f32 0.7978846, %v8981_v14 }
0x4a03   :  { %15601 = vtanh.f32 %v8984_v13 }
0x4a04   :  { %15603 = vtanh.f32 %v8983_v44 }
0x4a0d   :  { %v15602_v23 = vpop.eup %15601 }
0x4a0e   :  { %v15604_v24 = vpop.eup %15603  ;;  %v8988_v29 = vadd.f32 1.0, %v15602_v23 }
0x4a0f   :  { %v8987_v34 = vadd.f32 1.0, %v15604_v24 }
0x4a10   :  { %v8990_v37 = vmul.f32 %v8988_v29, %v8974_v39 }
0x4a11   :  { %v8989_v40 = vmul.f32 %v8987_v34, %v8973_v35 }
0x4a13   :  { %14237 = vmatprep.mubr.msk.f32.mxu1 %vm2176_vm7, %v8989_v40 }
0x4a14   :  { %14238 = vmatmul.mubr.msk.f32.vlgmr.msra.gmra.mrb[96].mxu1 %vm2176_vm7, %v8990_v37  ;;  %v9113_v37 = vrot.slane %v17481_v12, %v16303_v28  ;;  %v12458_v12 = vld [vmem:[%s18132_s6 + $0x38] sm:$0xff] }
0x4a15   :  { %15232 = vmatpush3.bf16.msra.mxu1 %v15229_v42  ;;  %14277 = vmatprep.mubr.msk.f32.mxu1 %vm81_vm0, %v16715_v50 }
0x4a16   :  { %15234 = vmatprep.subr.bf16.mxu1 %v15233_v41 }
0x4a19   :  { %15236 = vmatpush3.bf16.msra.mxu1 %v15233_v41 }
0x4a1a   :  { %15246 = vmatprep.subr.bf16.mxu1 %v15245_v25 }
0x4a1c   :  { %14278 = vmatmul.mubr.msk.f32.vlgmr.msra.gmra.mrb[98].mxu1 %vm81_vm0, %v16717_v58 }
0x4a1d   :  { %15248 = vmatpush3.bf16.msra.mxu1 %v15245_v25  ;;  %14299 = vmatprep.mubr.msk.f32.mxu1 %vm81_vm0, %v16715_v50 }
0x4a1e   :  { %15250 = vmatprep.subr.bf16.mxu1 %v15249_v46 }
0x4a21   :  { %15252 = vmatpush3.bf16.msra.mxu1 %v15249_v46  ;;  %v12457_v46 = vld [vmem:[%s18132_s6 + $0x30] sm:$0xff] }
0x4a24   :  { %14300 = vmatmul.mubr.msk.f32.vlgmr.msra.gmra.mrb[100].mxu1 %vm81_vm0, %v16717_v58 }
0x4ae7   :  { %v14239_v54 = vpop.f32.mrb[96].mxu1 }
0x4ae8   :  { %v9073_v55 = vadd.f32 %v14239_v54, %v8994_v53  ;;  %v9067_v59 = vpop.f32.mrb[97].mxu1  ;;  %v15218_v54 = vpack.c.bf16 %v12457_v46, %v12456_v52  ;;  %v12513_v46 = vld [vmem:[%s18129_s3 + $0x868] ss:$0 sm:$0xff] }
0x4ae9   :  { %v9068_v8 = vadd.f32 %v9067_v59, %v8994_v53 }
0x4aea   :  { %v9077_v2 = vadd.f32 %v9073_v55, %v17512_v49  ;;  %v12459_v55 = vld [vmem:[%s18132_s6 + $0x40] sm:$0xff] }
0x4aeb   :  { %v9076_v51 = vadd.f32 %v9068_v8, %v17508_v30  ;;  %v12486_v30 = vld [vmem:[%s18129_s3 + $0x8e0] ss:$0 sm:$0xff]  ;;  %v15221_v59 = vpack.c.bf16 %v12459_v55, %v12458_v12 }
0x4aec   :  { %v9081_v60 = vsel %vm81_vm0, %v9077_v2, 0.0 }
0x4aed   :  { %9082 = vadd.xlane.f32.xlu1 %v9081_v60  ;;  %v9078_v18 = vsel %vm81_vm0, %v9076_v51, 0.0  ;;  %v9271_v60 = vld [vmem:[%s18134_s8 + $0x8] sm:$0xff] }
0x4aee   :  { %9079 = vadd.xlane.f32.xlu0 %v9078_v18  ;;  %v9272_v18 = vld [vmem:[%s18134_s8 + $0x10] sm:$0xff] }
0x4aef   :  { %v14279_v62 = vpop.f32.mrb[98].mxu1 }
0x4af0   :  { %v17591_v19 = vadd.f32 %v14279_v62, %v17587_v61  ;;  %v17593_v42 = vpop.f32.mrb[99].mxu1 }
0x4af7   :  { %v14301_v49 = vpop.f32.mrb[100].mxu1 }
0x4af8   :  { %v9634_v47 = vadd.f32 %v14301_v49, %v12486_v30  ;;  %v9628_v4 = vpop.f32.mrb[101].mxu1  ;;  %v12470_v49 = vld [vmem:[%s18129_s3 + $0x820] sm:$0xff] }
0x4af9   :  { %v9629_v5 = vadd.f32 %v12486_v30, %v9628_v4  ;;  %v9273_v30 = vld [vmem:[%s18134_s8 + $0x18] sm:$0xff] }
0x4afa   :  { %v15227_v4 = vpack.c.bf16 %v9273_v30, %v9272_v18 }
0x4afb   :  { %v15259_v38 = vpack.c.bf16 %v9634_v47, %v9629_v5  ;;  %v12471_v47 = vld [vmem:[%s18129_s3 + $0x828] sm:$0xff] }
0x4afc   :  { %v15237_v5 = vpack.c.bf16 %v12471_v47, %v12470_v49 }
0x4afd   :  { %15260 = vmatprep.subr.bf16.mxu1 %v15259_v38 }
0x4afe   :  { %15262 = vmatpush3.bf16.msra.mxu1 %v15259_v38  ;;  %v12461_v38 = vld [vmem:[%s18132_s6 + $0x48] ss:$0 sm:$0xff] }
0x4b7a   :  { %v9083_v6 = vpop.xlane.xlu1 %9082 }
0x4b7b   :  { %v9085_v15 = vmul.f32 0.03125, %v9083_v6  ;;  %v9080_v7 = vpop.xlane.xlu0 %9079 }
0x4b7c   :  { %v9084_v26 = vmul.f32 0.03125, %v9080_v7 }
0x4b7d   :  { %v9087_v11 = vsub.f32 %v9077_v2, %v9085_v15 }
0x4b7e   :  { %v9086_v3 = vsub.f32 %v9076_v51, %v9084_v26  ;;  %v9270_v51 = vld [vmem:[%s18134_s8] sm:$0xff]  ;;  %v12472_v26 = vld [vmem:[%s18129_s3 + $0x830] sm:$0xff] }
0x4b7f   :  { %v9089_v17 = vmul.f32 %v9087_v11, %v9087_v11  ;;  %v15224_v62 = vpack.c.bf16 %v9271_v60, %v9270_v51 }
0x4b80   :  { %v9088_v21 = vmul.f32 %v9086_v3, %v9086_v3 }
0x4b81   :  { %v9093_v14 = vsel %vm81_vm0, %v9089_v17, 0.0 }
0x4b82   :  { %9094 = vadd.xlane.f32.xlu1 %v9093_v14  ;;  %v9090_v13 = vsel %vm81_vm0, %v9088_v21, 0.0  ;;  %v9471_v21 = vadd.f32 %v17587_v61, %v17593_v42  ;;  %v12463_v14 = vld [vmem:[%s18134_s8 + $0x20] ss:$0 sm:$0xff] }
0x4b83   :  { %9091 = vadd.xlane.f32.xlu0 %v9090_v13  ;;  %v12483_v61 = vld [vmem:[%s18129_s3 + $0x840] ss:$0 sm:$0xff] }
0x4c0f   :  { %v9095_v44 = vpop.xlane.xlu1 %9094 }
0x4c10   :  { %v9097_v23 = vmul.f32 0.03125, %v9095_v44  ;;  %v9092_v24 = vpop.xlane.xlu0 %9091 }
0x4c11   :  { %v9096_v29 = vmul.f32 0.03125, %v9092_v24 }
0x4c12   :  { %v9099_v35 = vadd.f32 1e-05, %v9097_v23 }
0x4c13   :  { %v9098_v34 = vadd.f32 1e-05, %v9096_v29 }
0x4c14   :  { %15605 = vrsqrt.f32 %v9099_v35  ;;  %v12500_v35 = vld [vmem:[%s18129_s3 + $0x848] sm:$0xff] }
0x4c15   :  { %15607 = vrsqrt.f32 %v9098_v34  ;;  %v12501_v34 = vld [vmem:[%s18129_s3 + $0x850] sm:$0xff] }
0x4c1e   :  { %v15606_v36 = vpop.eup %15605 }
0x4c1f   :  { %v15608_v39 = vpop.eup %15607  ;;  %v9103_v40 = vmul.f32 %v15606_v36, %v9087_v11  ;;  %v12473_v11 = vld [vmem:[%s18129_s3 + $0x838] sm:$0xff] }
0x4c20   :  { %v9102_v41 = vmul.f32 %v15608_v39, %v9086_v3  ;;  %v15241_v3 = vpack.c.bf16 %v12473_v11, %v12472_v26  ;;  %v15271_v39 = vpack.c.bf16 %v12501_v34, %v12500_v35  ;;  %v12497_v11 = vld [vmem:[%s18129_s3 + $0x7b8] sm:$0xff]  ;;  %v12525_v34 = vld [vmem:[%s18129_s3 + $0x7d0] sm:$0xff] }
0x4c21   :  { %v9109_v45 = vmul.f32 %v9107_v33, %v9103_v40  ;;  %v12502_v40 = vld [vmem:[%s18129_s3 + $0x858] sm:$0xff] }
0x4c22   :  { %v9108_v16 = vmul.f32 %v9107_v33, %v9102_v41 }
0x4c23   :  { %v9115_v25 = vadd.f32 %v9113_v37, %v9109_v45 }
0x4c24   :  { %v9114_v48 = vadd.f32 %v9113_v37, %v9108_v16  ;;  %v12503_v37 = vld [vmem:[%s18129_s3 + $0x860] sm:$0xff] }
0x4c25   :  { %v15275_v41 = vpack.c.bf16 %v12503_v37, %v12502_v40  ;;  %v12510_v37 = vld [vmem:[%s18129_s3 + $0x7c8] ss:$0 sm:$0xff] }
0x4c26   :  { %v15215_v53 = vpack.c.bf16 %v9115_v25, %v9114_v48 }
0x4c28   :  { %15216 = vmatpush3.bf16.msra.mxu0 %v15215_v53 }
0x4c29   :  { %15217 = vmatprep.subr.bf16.mxu0 %v15747_v1 }
0x4c2b   :  { %14245 = vmatmul.mubr.msk.f32.vlgmr.msra.gmra.mrb[92].mxu0 %vm469_vm5, %v17146_v9 }
0x4c2c   :  { %15219 = vmatpush3.bf16.msra.mxu0 %v15218_v54  ;;  %14255 = vmatprep.mubr.msk.f32.mxu0 %vm15748_vm8, %v15749_v63 }
0x4c2d   :  { %15220 = vmatprep.subr.bf16.mxu0 %v15747_v1 }
0x4c30   :  { %15222 = vmatpush3.bf16.msra.mxu0 %v15221_v59 }
0x4c31   :  { %15223 = vmatprep.subr.bf16.mxu0 %v15747_v1 }
0x4cfe   :  { %v9182_v8 = vpop.f32.mrb[92].mxu0 }
0x4cff   :  { %v14246_v2 = vpop.f32.mrb[93].mxu0  ;;  %14256 = vmatmul.mubr.msk.f32.vlgmr.msra.gmra.mrb[94].mxu0 %vm81_vm0, %v9182_v8 }
0x4d00   :  { %14266 = vmatprep.mubr.msk.f32.mxu0 %vm15748_vm8, %v15749_v63  ;;  %15225 = vmatpush3.bf16.msra.mxu0 %v15224_v62 }
0x4d01   :  { %15226 = vmatprep.subr.bf16.mxu0 %v15747_v1 }
0x4d04   :  { %15228 = vmatpush3.bf16.msra.mxu0 %v15227_v4 }
0x4d05   :  { %15238 = vmatprep.subr.bf16.mxu0 %v15237_v5 }
0x4dd2   :  { %v9265_v6 = vpop.f32.mrb[94].mxu0 }
0x4dd3   :  { %v9266_v15 = vadd.f32 %v12461_v38, %v9265_v6  ;;  %v14257_v7 = vpop.f32.mrb[95].mxu0  ;;  %v12496_v38 = vld [vmem:[%s18129_s3 + $0x7b0] sm:$0xff] }
0x4dd5   :  { %15609 = vtanh.f32 %v9266_v15 }
0x4ddf   :  { %v15610_v17 = vpop.eup %15609 }
0x4de0   :  { %14267 = vmatmul.mubr.msk.f32.vlgmr.msra.gmra.mrb[96].mxu0 %vm81_vm0, %v15610_v17 }
0x4de1   :  { %15240 = vmatpush3.bf16.msra.mxu0 %v15237_v5  ;;  %14288 = vmatprep.mubr.msk.f32.mxu0 %vm81_vm0, %v16715_v50  ;;  %v12495_v5 = vld [vmem:[%s18129_s3 + $0x7a8] sm:$0xff] }
0x4de2   :  { %15242 = vmatprep.subr.bf16.mxu0 %v15241_v3  ;;  %v15263_v6 = vpack.c.bf16 %v12496_v38, %v12495_v5 }
0x4de4   :  { %15264 = vmatprep.subr.bf16.mxu1 %v15263_v6 }
0x4de5   :  { %15244 = vmatpush3.bf16.msra.mxu0 %v15241_v3  ;;  %v12498_v3 = vld [vmem:[%s18129_s3 + $0x7c0] sm:$0xff] }
0x4de8   :  { %14289 = vmatmul.mubr.msk.f32.vlgmr.msra.gmra.mrb[98].mxu0 %vm81_vm0, %v16717_v58 }
0x4de9   :  { %14306 = vmatprep.mubr.msk.f32.mxu0 %vm381_vm1, %v9471_v21 }
0x4eb3   :  { %v9348_v13 = vpop.f32.mrb[96].mxu0 }
0x4eb4   :  { %v17665_v44 = vadd.f32 %v12463_v14, %v9348_v13  ;;  %v14268_v23 = vpop.f32.mrb[97].mxu0  ;;  %v15267_v13 = vpack.c.bf16 %v12498_v3, %v12497_v11  ;;  %v12546_v11 = vld [vmem:[%s18129_s3 + $0x930] ss:$0 sm:$0xff] }
0x4eb5   :  { %v12505_v23 = vld [vmem:[%s18129_s3 + $0x8e8] sm:$0xff] }
0x4eb6   :  { %9353 = vst.msk [vmem:[%s18135_s9] sm:$0x3] %vm9352_vm11, %v17665_v44 }
0x4ebb   :  { %v14290_v42 = vpop.f32.mrb[98].mxu0 }
0x4ebc   :  { %v9555_v24 = vadd.f32 %v14290_v42, %v12483_v61  ;;  %v9549_v29 = vpop.f32.mrb[99].mxu0 }
0x4ebd   :  { %v9550_v33 = vadd.f32 %v12483_v61, %v9549_v29  ;;  %v12506_v61 = vld [vmem:[%s18129_s3 + $0x8f0] sm:$0xff]  ;;  %v12508_v29 = vld [vmem:[%s18129_s3 + $0x900] sm:$0xff] }
0x4ebe   :  { %v15279_v42 = vpack.c.bf16 %v12506_v61, %v12505_v23 }
0x4ebf   :  { %v15253_v36 = vpack.c.bf16 %v9555_v24, %v9550_v33  ;;  %v12507_v24 = vld [vmem:[%s18129_s3 + $0x8f8] sm:$0xff] }
0x4ec0   :  { %v15283_v35 = vpack.c.bf16 %v12508_v29, %v12507_v24  ;;  %v12526_v33 = vld [vmem:[%s18129_s3 + $0x7d8] sm:$0xff] }
0x4ec1   :  { %15255 = vmatprep.subr.msk.bf16.mxu0 %vm15909_vm2, %v15253_v36 }
0x4ec2   :  { %15258 = vmatpush3.bf16.xpose.msk.msra.mxu0 %vm15909_vm2, %v15253_v36  ;;  %v15297_v36 = vpack.c.bf16 %v12526_v33, %v12525_v34 }
0x4ec3   :  { %15272 = vmatprep.subr.bf16.mxu0 %v15271_v39 }
0x4ec9   :  { %14307 = vmatmul.mubr.msk.f32.vlgmr.msra.gmra.mrb[100].mxu0 %vm381_vm1, %v17591_v19 }
0x4eca   :  { %15274 = vmatpush3.bf16.msra.mxu0 %v15271_v39  ;;  %14335 = vmatprep.mubr.msk.f32.mxu0 %vm81_vm0, %v16715_v50 }
0x4ecb   :  { %15276 = vmatprep.subr.bf16.mxu0 %v15275_v41 }
0x4ece   :  { %15278 = vmatpush3.bf16.msra.mxu0 %v15275_v41 }
0x4ed1   :  { %14336 = vmatmul.mubr.msk.f32.vlgmr.msra.gmra.mrb[102].mxu0 %vm81_vm0, %v16717_v58 }
0x4f9c   :  { %v14308_v45 = vpop.f32.mrb[100].mxu0 }
0x4f9d   :  { %v9721_v16 = vadd.f32 %v14308_v45, %v15957_v32  ;;  %v9715_v25 = vpop.f32.mrb[101].mxu0  ;;  %v12527_v45 = vld [vmem:[%s18129_s3 + $0x7e0] sm:$0xff] }
0x4f9e   :  { %v9716_v48 = vadd.f32 %v9715_v25, %v15959_v31 }
0x4f9f   :  { %v9727_v52 = vsel %vm469_vm5, %v9721_v16, -inf }
0x4fa0   :  { %9728 = vmax.xlane.f32.xlu1 %v9727_v52  ;;  %v9724_v19 = vsel %vm469_vm5, %v9716_v48, -inf }
0x4fa1   :  { %9725 = vmax.xlane.f32.xlu0 %v9724_v19 }
0x4fa4   :  { %v14337_v53 = vpop.f32.mrb[102].mxu0 }
0x4fa5   :  { %v10000_v54 = vadd.f32 %v14337_v53, %v12513_v46  ;;  %v9994_v12 = vpop.f32.mrb[103].mxu0  ;;  %v12536_v53 = vld [vmem:[%s18129_s3 + $0x918] sm:$0xff] }
0x4fa6   :  { %v9995_v55 = vadd.f32 %v12513_v46, %v9994_v12  ;;  %v12535_v46 = vld [vmem:[%s18129_s3 + $0x910] sm:$0xff] }
0x4fa7   :  { %v15313_v12 = vpack.c.bf16 %v12536_v53, %v12535_v46  ;;  %v12533_v46 = vld [vmem:[%s18129_s3 + $0x888] sm:$0xff] }
0x4fa8   :  { %v15287_v59 = vpack.c.bf16 %v10000_v54, %v9995_v55  ;;  %v12516_v54 = vld [vmem:[%s18129_s3 + $0x908] ss:$0 sm:$0xff] }
0x4faa   :  { %15289 = vmatprep.subr.msk.bf16.mxu0 %vm15909_vm2, %v15287_v59 }
0x4fab   :  { %15292 = vmatpush3.bf16.xpose.msk.msra.mxu0 %vm15909_vm2, %v15287_v59  ;;  %v12537_v59 = vld [vmem:[%s18129_s3 + $0x920] sm:$0xff] }
0x4fac   :  { %15298 = vmatprep.subr.bf16.mxu0 %v15297_v36 }
0x502d   :  { %v9729_v8 = vpop.xlane.xlu1 %9728 }
0x502e   :  { %v9731_v2 = vsub.f32 %v9721_v16, %v9729_v8  ;;  %v9726_v51 = vpop.xlane.xlu0 %9725  ;;  %v12528_v16 = vld [vmem:[%s18129_s3 + $0x7e8] sm:$0xff] }
0x502f   :  { %v9730_v60 = vsub.f32 %v9716_v48, %v9726_v51  ;;  %v15301_v19 = vpack.c.bf16 %v12528_v16, %v12527_v45  ;;  %v12538_v8 = vld [vmem:[%s18129_s3 + $0x928] sm:$0xff]  ;;  %v12531_v45 = vld [vmem:[%s18129_s3 + $0x878] sm:$0xff] }
0x5030   :  { %v9734_v18 = vmul.f32 1.442695, %v9731_v2 }
0x5031   :  { %v9732_v62 = vmul.f32 1.442695, %v9730_v60 }
0x5032   :  { %15611 = vpow2.f32 %v9734_v18  ;;  %v15317_v18 = vpack.c.bf16 %v12538_v8, %v12537_v59 }
0x5033   :  { %15613 = vpow2.f32 %v9732_v62 }
0x503c   :  { %v15612_v30 = vpop.eup %15611 }
0x503d   :  { %v15614_v49 = vpop.eup %15613  ;;  %v9739_v47 = vsel %vm469_vm5, %v15612_v30, 0.0 }
0x503e   :  { %9740 = vadd.xlane.f32.xlu1 %v9739_v47  ;;  %v9736_v4 = vsel %vm469_vm5, %v15614_v49, 0.0 }
0x503f   :  { %9737 = vadd.xlane.f32.xlu0 %v9736_v4 }
0x50cb   :  { %v9741_v15 = vpop.xlane.xlu1 %9740 }
0x50cc   :  { %15615 = vrcp.f32 %v9741_v15  ;;  %v9738_v7 = vpop.xlane.xlu0 %9737 }
0x50cd   :  { %15617 = vrcp.f32 %v9738_v7 }
0x50d6   :  { %v15616_v26 = vpop.eup %15615 }
0x50d7   :  { %v15618_v17 = vpop.eup %15617  ;;  %v9745_v14 = vmul.f32 %v15616_v26, %v15612_v30 }
0x50d8   :  { %v9744_v21 = vmul.f32 %v15618_v17, %v15614_v49 }
0x50da   :  { %14313 = vmatprep.mubr.msk.f32.mxu1 %vm469_vm5, %v9744_v21 }
0x50db   :  { %14314 = vmatmul.mubr.msk.f32.vlgmr.msra.gmra.mrb[102].mxu1 %vm469_vm5, %v9745_v14 }
0x50dc   :  { %15266 = vmatpush3.bf16.msra.mxu1 %v15263_v6  ;;  %14324 = vmatprep.mubr.msk.f32.mxu1 %vm81_vm0, %v16715_v50  ;;  %v12540_v6 = vld [vmem:[%s18129_s3 + $0x7f0] ss:$0 sm:$0xff] }
0x50dd   :  { %15268 = vmatprep.subr.bf16.mxu1 %v15267_v13 }
0x50e0   :  { %15270 = vmatpush3.bf16.msra.mxu1 %v15267_v13 }
0x50e1   :  { %15280 = vmatprep.subr.bf16.mxu1 %v15279_v42 }
0x50e3   :  { %14325 = vmatmul.mubr.msk.f32.vlgmr.msra.gmra.mrb[104].mxu1 %vm81_vm0, %v16717_v58 }
0x50e4   :  { %15282 = vmatpush3.bf16.msra.mxu1 %v15279_v42  ;;  %14346 = vmatprep.mubr.msk.f32.mxu1 %vm81_vm0, %v16715_v50 }
0x50e5   :  { %15284 = vmatprep.subr.bf16.mxu1 %v15283_v35 }
0x50e8   :  { %15286 = vmatpush3.bf16.msra.mxu1 %v15283_v35 }
0x50eb   :  { %14347 = vmatmul.mubr.msk.f32.vlgmr.msra.gmra.mrb[106].mxu1 %vm81_vm0, %v16717_v58 }
0x51ae   :  { %v17750_v39 = vpop.f32.mrb[102].mxu1 }
0x51af   :  { %v17752_v40 = vpop.f32.mrb[103].mxu1 }
0x51b6   :  { %v14326_v41 = vpop.f32.mrb[104].mxu1 }
0x51b7   :  { %v9915_v25 = vpop.f32.mrb[105].mxu1  ;;  %v9921_v52 = vadd.f32 %v14326_v41, %v12510_v37  ;;  %v12530_v41 = vld [vmem:[%s18129_s3 + $0x870] sm:$0xff] }
0x51b8   :  { %v9916_v48 = vadd.f32 %v12510_v37, %v9915_v25  ;;  %v15305_v16 = vpack.c.bf16 %v12531_v45, %v12530_v41 }
0x51ba   :  { %14353 = vmatprep.mubr.msk.f32.mxu0 %vm381_vm1, %v9916_v48 }
0x51bb   :  { %14354 = vmatmul.mubr.msk.f32.vlgmr.msra.gmra.mrb[104].mxu0 %vm381_vm1, %v9921_v52 }
0x51bc   :  { %15300 = vmatpush3.bf16.msra.mxu0 %v15297_v36  ;;  %14371 = vmatprep.mubr.msk.f32.mxu0 %vm81_vm0, %v16715_v50 }
0x51bd   :  { %15302 = vmatprep.subr.bf16.mxu0 %v15301_v19 }
0x51be   :  { %v14348_v55 = vpop.f32.mrb[106].mxu1 }
0x51bf   :  { %v10079_v2 = vadd.f32 %v14348_v55, %v12516_v54  ;;  %v10073_v51 = vpop.f32.mrb[107].mxu1 }
0x51c0   :  { %v10074_v60 = vadd.f32 %v12516_v54, %v10073_v51  ;;  %15304 = vmatpush3.bf16.msra.mxu0 %v15301_v19  ;;  %v12532_v19 = vld [vmem:[%s18129_s3 + $0x880] sm:$0xff]  ;;  %v12543_v51 = vld [vmem:[%s18129_s3 + $0x890] ss:$0 sm:$0xff] }
0x51c1   :  { %15314 = vmatprep.subr.bf16.mxu0 %v15313_v12  ;;  %v15309_v55 = vpack.c.bf16 %v12533_v46, %v12532_v19 }
0x51c2   :  { %v15293_v62 = vpack.c.bf16 %v10079_v2, %v10074_v60 }
0x51c3   :  { %14372 = vmatmul.mubr.msk.f32.vlgmr.msra.gmra.mrb[106].mxu0 %vm81_vm0, %v16717_v58 }
0x51c4   :  { %15316 = vmatpush3.bf16.msra.mxu0 %v15313_v12  ;;  %14393 = vmatprep.mubr.msk.f32.mxu0 %vm81_vm0, %v16715_v50 }
0x51c5   :  { %15294 = vmatprep.subr.bf16.mxu1 %v15293_v62  ;;  %15318 = vmatprep.subr.bf16.mxu0 %v15317_v18 }
0x51c6   :  { %15296 = vmatpush3.bf16.msra.mxu1 %v15293_v62 }
0x51c7   :  { %15306 = vmatprep.subr.bf16.mxu1 %v15305_v16 }
0x51c8   :  { %15320 = vmatpush3.bf16.msra.mxu0 %v15317_v18 }
0x51cb   :  { %14394 = vmatmul.mubr.msk.f32.vlgmr.msra.gmra.mrb[108].mxu0 %vm81_vm0, %v16717_v58 }
0x528e   :  { %v14355_v30 = vpop.f32.mrb[104].mxu0 }
0x528f   :  { %v10166_v49 = vadd.f32 %v14355_v30, %v15957_v32  ;;  %v10160_v47 = vpop.f32.mrb[105].mxu0  ;;  %v12555_v30 = vld [vmem:[%s18129_s3 + $0x7f8] sm:$0xff] }
0x5290   :  { %v10161_v4 = vadd.f32 %v10160_v47, %v15959_v31 }
0x5291   :  { %v10172_v5 = vsel %vm469_vm5, %v10166_v49, -inf }
0x5292   :  { %10173 = vmax.xlane.f32.xlu1 %v10172_v5  ;;  %v10169_v38 = vsel %vm469_vm5, %v10161_v4, -inf }
0x5293   :  { %10170 = vmax.xlane.f32.xlu0 %v10169_v38  ;;  %v12557_v38 = vld [vmem:[%s18129_s3 + $0x808] sm:$0xff] }
0x5296   :  { %v14373_v15 = vpop.f32.mrb[106].mxu0 }
0x5297   :  { %v17795_v7 = vadd.f32 %v14373_v15, %v12540_v6  ;;  %v10360_v26 = vpop.f32.mrb[107].mxu0 }
0x5298   :  { %v10361_v59 = vadd.f32 %v12540_v6, %v10360_v26  ;;  %v12558_v6 = vld [vmem:[%s18129_s3 + $0x810] sm:$0xff]  ;;  %v12565_v26 = vld [vmem:[%s18129_s3 + $0x938] sm:$0xff] }
0x5299   :  { %v15335_v15 = vpack.c.bf16 %v12558_v6, %v12557_v38 }
0x529e   :  { %v14395_v3 = vpop.f32.mrb[108].mxu0 }
0x529f   :  { %v10524_v17 = vadd.f32 %v14395_v3, %v12546_v11  ;;  %v10518_v21 = vpop.f32.mrb[109].mxu0 }
0x52a0   :  { %v10519_v14 = vadd.f32 %v12546_v11, %v10518_v21  ;;  %v12566_v11 = vld [vmem:[%s18129_s3 + $0x940] sm:$0xff]  ;;  %v12568_v21 = vld [vmem:[%s18129_s3 + $0x950] sm:$0xff] }
0x52a1   :  { %v15347_v3 = vpack.c.bf16 %v12566_v11, %v12565_v26 }
0x52a2   :  { %v15327_v13 = vpack.c.bf16 %v10524_v17, %v10519_v14  ;;  %v12567_v17 = vld [vmem:[%s18129_s3 + $0x948] sm:$0xff] }
0x52a3   :  { %v15351_v14 = vpack.c.bf16 %v12568_v21, %v12567_v17  ;;  %v12573_v21 = vld [vmem:[%s18129_s3 + $0x8b8] ss:$0 sm:$0xff] }
0x52a4   :  { %15328 = vmatprep.subr.bf16.mxu0 %v15327_v13 }
0x52a5   :  { %15330 = vmatpush3.bf16.msra.mxu0 %v15327_v13 }
0x531f   :  { %v10174_v23 = vpop.xlane.xlu1 %10173 }
0x5320   :  { %v10176_v61 = vsub.f32 %v10166_v49, %v10174_v23  ;;  %v10171_v42 = vpop.xlane.xlu0 %10170  ;;  %v12556_v49 = vld [vmem:[%s18129_s3 + $0x800] sm:$0xff] }
0x5321   :  { %v10175_v24 = vsub.f32 %v10161_v4, %v10171_v42  ;;  %v15331_v5 = vpack.c.bf16 %v12556_v49, %v12555_v30 }
0x5322   :  { %v10179_v29 = vmul.f32 1.442695, %v10176_v61 }
0x5323   :  { %v10177_v35 = vmul.f32 1.442695, %v10175_v24 }
0x5324   :  { %15619 = vpow2.f32 %v10179_v29  ;;  %v12570_v29 = vld [vmem:[%s18129_s3 + $0x818] ss:$0 sm:$0xff] }
0x5325   :  { %15621 = vpow2.f32 %v10177_v35 }
0x532e   :  { %v15620_v34 = vpop.eup %15619 }
0x532f   :  { %v15622_v33 = vpop.eup %15621  ;;  %v10184_v36 = vsel %vm469_vm5, %v15620_v34, 0.0 }
0x5330   :  { %10185 = vadd.xlane.f32.xlu1 %v10184_v36  ;;  %v10181_v37 = vsel %vm469_vm5, %v15622_v33, 0.0  ;;  %v12576_v36 = vld [vmem:[%s18129_s3 + $0x958] ss:$0 sm:$0xff] }
0x5331   :  { %10182 = vadd.xlane.f32.xlu0 %v10181_v37 }
0x53bd   :  { %v10186_v25 = vpop.xlane.xlu1 %10185 }
0x53be   :  { %15623 = vrcp.f32 %v10186_v25  ;;  %v10183_v48 = vpop.xlane.xlu0 %10182 }
0x53bf   :  { %15625 = vrcp.f32 %v10183_v48 }
0x53c8   :  { %v15624_v52 = vpop.eup %15623 }
0x53c9   :  { %v15626_v53 = vpop.eup %15625  ;;  %v10190_v12 = vmul.f32 %v15624_v52, %v15620_v34 }
0x53ca   :  { %v10189_v54 = vmul.f32 %v15626_v53, %v15622_v33 }
0x53cc   :  { %14360 = vmatprep.mubr.msk.f32.mxu1 %vm469_vm5, %v10189_v54 }
0x53cd   :  { %14361 = vmatmul.mubr.msk.f32.vlgmr.msra.gmra.mrb[108].mxu1 %vm469_vm5, %v10190_v12 }
0x53ce   :  { %15308 = vmatpush3.bf16.msra.mxu1 %v15305_v16  ;;  %14382 = vmatprep.mubr.msk.f32.mxu1 %vm81_vm0, %v16715_v50 }
0x53cf   :  { %15310 = vmatprep.subr.bf16.mxu1 %v15309_v55 }
0x53d2   :  { %15312 = vmatpush3.bf16.msra.mxu1 %v15309_v55 }
0x53d5   :  { %14383 = vmatmul.mubr.msk.f32.vlgmr.msra.gmra.mrb[110].mxu1 %vm81_vm0, %v16717_v58 }
0x53d6   :  { %14400 = vmatprep.mubr.msk.f32.mxu1 %vm381_vm1, %v10361_v59 }
0x54a0   :  { %v17821_v8 = vpop.f32.mrb[108].mxu1 }
0x54a1   :  { %v17823_v2 = vpop.f32.mrb[109].mxu1 }
0x54a8   :  { %v14384_v60 = vpop.f32.mrb[110].mxu1 }
0x54a9   :  { %v10445_v18 = vadd.f32 %v14384_v60, %v12543_v51  ;;  %v10439_v62 = vpop.f32.mrb[111].mxu1  ;;  %v12560_v60 = vld [vmem:[%s18129_s3 + $0x898] sm:$0xff] }
0x54aa   :  { %v10440_v47 = vadd.f32 %v12543_v51, %v10439_v62 }
0x54ac   :  { %v15321_v4 = vpack.c.bf16 %v10445_v18, %v10440_v47  ;;  %v12561_v18 = vld [vmem:[%s18129_s3 + $0x8a0] sm:$0xff] }
0x54ad   :  { %v15339_v62 = vpack.c.bf16 %v12561_v18, %v12560_v60 }
0x54ae   :  { %15323 = vmatprep.subr.msk.bf16.mxu1 %vm15909_vm2, %v15321_v4 }
0x54af   :  { %15326 = vmatpush3.bf16.xpose.msk.msra.mxu1 %vm15909_vm2, %v15321_v4  ;;  %15340 = vmatprep.subr.bf16.mxu0 %v15339_v62  ;;  %v12562_v4 = vld [vmem:[%s18129_s3 + $0x8a8] sm:$0xff] }
0x54b0   :  { %15332 = vmatprep.subr.bf16.mxu1 %v15331_v5 }
0x54b6   :  { %14401 = vmatmul.mubr.msk.f32.vlgmr.msra.gmra.mrb[112].mxu1 %vm381_vm1, %v17795_v7 }
0x54b7   :  { %15334 = vmatpush3.bf16.msra.mxu1 %v15331_v5  ;;  %14418 = vmatprep.mubr.msk.f32.mxu1 %vm81_vm0, %v16715_v50  ;;  %v12563_v5 = vld [vmem:[%s18129_s3 + $0x8b0] sm:$0xff] }
0x54b8   :  { %15336 = vmatprep.subr.bf16.mxu1 %v15335_v15  ;;  %v15343_v26 = vpack.c.bf16 %v12563_v5, %v12562_v4 }
0x54bb   :  { %15338 = vmatpush3.bf16.msra.mxu1 %v15335_v15 }
0x54bc   :  { %15348 = vmatprep.subr.bf16.mxu1 %v15347_v3 }
0x54be   :  { %14419 = vmatmul.mubr.msk.f32.vlgmr.msra.gmra.mrb[114].mxu1 %vm81_vm0, %v16717_v58 }
0x54bf   :  { %15350 = vmatpush3.bf16.msra.mxu1 %v15347_v3  ;;  %14440 = vmatprep.mubr.msk.f32.mxu1 %vm81_vm0, %v16715_v50 }
0x54c0   :  { %15352 = vmatprep.subr.bf16.mxu1 %v15351_v14 }
0x54c3   :  { %15354 = vmatpush3.bf16.msra.mxu1 %v15351_v14 }
0x54c6   :  { %14441 = vmatmul.mubr.msk.f32.vlgmr.msra.gmra.mrb[116].mxu1 %vm81_vm0, %v16717_v58 }
0x5589   :  { %v14402_v7 = vpop.f32.mrb[112].mxu1 }
0x558a   :  { %v10611_v13 = vadd.f32 %v14402_v7, %v15957_v32  ;;  %v10605_v23 = vpop.f32.mrb[113].mxu1 }
0x558b   :  { %v10606_v61 = vadd.f32 %v10605_v23, %v15959_v31 }
0x558c   :  { %v10617_v42 = vsel %vm469_vm5, %v10611_v13, -inf }
0x558d   :  { %10618 = vmax.xlane.f32.xlu1 %v10617_v42  ;;  %v10614_v24 = vsel %vm469_vm5, %v10606_v61, -inf }
0x558e   :  { %10615 = vmax.xlane.f32.xlu0 %v10614_v24 }
0x5591   :  { %v14420_v35 = vpop.f32.mrb[114].mxu1 }
0x5592   :  { %v10811_v34 = vadd.f32 %v14420_v35, %v12570_v29  ;;  %v10805_v33 = vpop.f32.mrb[115].mxu1 }
0x5593   :  { %v10806_v11 = vadd.f32 %v12570_v29, %v10805_v33 }
0x5599   :  { %v14442_v37 = vpop.f32.mrb[116].mxu1 }
0x559a   :  { %v10969_v41 = vadd.f32 %v14442_v37, %v12576_v36  ;;  %v10963_v45 = vpop.f32.mrb[117].mxu1 }
0x559b   :  { %v10964_v16 = vadd.f32 %v12576_v36, %v10963_v45 }
0x559d   :  { %v15361_v25 = vpack.c.bf16 %v10969_v41, %v10964_v16 }
0x559f   :  { %15362 = vmatprep.subr.bf16.mxu1 %v15361_v25 }
0x55a0   :  { %15364 = vmatpush3.bf16.msra.mxu1 %v15361_v25 }
0x561a   :  { %v10619_v48 = vpop.xlane.xlu1 %10618 }
0x561b   :  { %v10621_v52 = vsub.f32 %v10611_v13, %v10619_v48  ;;  %v10616_v19 = vpop.xlane.xlu0 %10615 }
0x561c   :  { %v10620_v46 = vsub.f32 %v10606_v61, %v10616_v19 }
0x561d   :  { %v10624_v53 = vmul.f32 1.442695, %v10621_v52 }
0x561e   :  { %v10622_v54 = vmul.f32 1.442695, %v10620_v46 }
0x561f   :  { %15627 = vpow2.f32 %v10624_v53 }
0x5620   :  { %15629 = vpow2.f32 %v10622_v54 }
0x5629   :  { %v15628_v12 = vpop.eup %15627 }
0x562a   :  { %v15630_v55 = vpop.eup %15629  ;;  %v10629_v59 = vsel %vm469_vm5, %v15628_v12, 0.0 }
0x562b   :  { %10630 = vadd.xlane.f32.xlu1 %v10629_v59  ;;  %v10626_v51 = vsel %vm469_vm5, %v15630_v55, 0.0 }
0x562c   :  { %10627 = vadd.xlane.f32.xlu0 %v10626_v51  ;;  %v12588_v51 = vld [vmem:[%s18130_s4 + $0x1b8] sm:$0xff] }
0x56b8   :  { %v10631_v30 = vpop.xlane.xlu1 %10630 }
0x56b9   :  { %15631 = vrcp.f32 %v10631_v30  ;;  %v10628_v49 = vpop.xlane.xlu0 %10627 }
0x56ba   :  { %15633 = vrcp.f32 %v10628_v49 }
0x56c3   :  { %v15632_v47 = vpop.eup %15631 }
0x56c4   :  { %v15634_v38 = vpop.eup %15633  ;;  %v10635_v15 = vmul.f32 %v15632_v47, %v15628_v12 }
0x56c5   :  { %v10634_v6 = vmul.f32 %v15634_v38, %v15630_v55  ;;  %v12587_v55 = vld [vmem:[%s18130_s4 + $0x1b0] sm:$0xff] }
0x56c6   :  { %v15369_v60 = vpack.c.bf16 %v12588_v51, %v12587_v55 }
0x56c7   :  { %14407 = vmatprep.mubr.msk.f32.mxu0 %vm469_vm5, %v10634_v6 }
0x56c8   :  { %14408 = vmatmul.mubr.msk.f32.vlgmr.msra.gmra.mrb[110].mxu0 %vm469_vm5, %v10635_v15 }
0x56c9   :  { %15342 = vmatpush3.bf16.msra.mxu0 %v15339_v62  ;;  %14429 = vmatprep.mubr.msk.f32.mxu0 %vm81_vm0, %v16715_v50 }
0x56ca   :  { %15344 = vmatprep.subr.bf16.mxu0 %v15343_v26 }
0x56cd   :  { %15346 = vmatpush3.bf16.msra.mxu0 %v15343_v26 }
0x56d0   :  { %14430 = vmatmul.mubr.msk.f32.vlgmr.msra.gmra.mrb[112].mxu0 %vm81_vm0, %v16717_v58 }
0x56d1   :  { %14447 = vmatprep.mubr.msk.f32.mxu0 %vm381_vm1, %v10806_v11 }
0x579b   :  { %v14409_v3 = vpop.f32.mrb[110].mxu0 }
0x579c   :  { %v10708_v17 = vpop.f32.mrb[111].mxu0 }
0x57a3   :  { %v14431_v14 = vpop.f32.mrb[112].mxu0 }
0x57a4   :  { %v10890_v7 = vadd.f32 %v14431_v14, %v12573_v21  ;;  %v10884_v13 = vpop.f32.mrb[113].mxu0 }
0x57a5   :  { %v10885_v23 = vadd.f32 %v12573_v21, %v10884_v13 }
0x57a7   :  { %v15355_v61 = vpack.c.bf16 %v10890_v7, %v10885_v23 }
0x57a9   :  { %15357 = vmatprep.subr.msk.bf16.mxu0 %vm15909_vm2, %v15355_v61 }
0x57aa   :  { %15360 = vmatpush3.bf16.xpose.msk.msra.mxu0 %vm15909_vm2, %v15355_v61 }
0x57b1   :  { %14448 = vmatmul.mubr.msk.f32.vlgmr.msra.gmra.mrb[114].mxu0 %vm381_vm1, %v10811_v34 }
0x5884   :  { %v14449_v42 = vpop.f32.mrb[114].mxu0 }
0x5885   :  { %v11056_v24 = vadd.f32 %v14449_v42, %v15957_v32  ;;  %v11050_v29 = vpop.f32.mrb[115].mxu0 }
0x5886   :  { %v11051_v35 = vadd.f32 %v11050_v29, %v15959_v31 }
0x5887   :  { %v11062_v33 = vsel %vm469_vm5, %v11056_v24, -inf }
0x5888   :  { %11063 = vmax.xlane.f32.xlu1 %v11062_v33  ;;  %v11059_v36 = vsel %vm469_vm5, %v11051_v35, -inf }
0x5889   :  { %11060 = vmax.xlane.f32.xlu0 %v11059_v36 }
0x5915   :  { %v11064_v37 = vpop.xlane.xlu1 %11063 }
0x5916   :  { %v11066_v41 = vsub.f32 %v11056_v24, %v11064_v37  ;;  %v11061_v45 = vpop.xlane.xlu0 %11060 }
0x5917   :  { %v11065_v16 = vsub.f32 %v11051_v35, %v11061_v45 }
0x5918   :  { %v11069_v0 = vmul.f32 1.442695, %v11066_v41 }
0x5919   :  { %v11067_v25 = vmul.f32 1.442695, %v11065_v16 }
0x591a   :  { %15635 = vpow2.f32 %v11069_v0  ;;  %v12599_v0 = vld [vmem:[%s18131_s5 + $0xa8] sm:$0xff] }
0x591b   :  { %15637 = vpow2.f32 %v11067_v25 }
0x5924   :  { %v15636_v34 = vpop.eup %15635 }
0x5925   :  { %v15638_v48 = vpop.eup %15637  ;;  %v11074_v32 = vsel %vm469_vm5, %v15636_v34, 0.0 }
0x5926   :  { %11075 = vadd.xlane.f32.xlu1 %v11074_v32  ;;  %v11071_v31 = vsel %vm469_vm5, %v15638_v48, 0.0 }
0x5927   :  { %11072 = vadd.xlane.f32.xlu0 %v11071_v31 }
0x5937   :  { %11166 = vrot.lane.b32.xlu1 %v17821_v8, %s15744_s30  ;;  %v12585_v8 = vld [vmem:[%s18130_s4 + $0x1a0] sm:$0xff] }
0x593b   :  { %11172 = vrot.lane.b32.xlu1 %v10708_v17, %s15745_s13 }
0x593d   :  { %11164 = vrot.lane.b32.xlu0 %v17823_v2, %s15744_s30  ;;  %v12586_v2 = vld [vmem:[%s18130_s4 + $0x1a8] sm:$0xff] }
0x593e   :  { %v15365_v59 = vpack.c.bf16 %v12586_v2, %v12585_v8 }
0x593f   :  { %11174 = vrot.lane.b32.xlu1 %v14409_v3, %s15745_s13 }
0x5940   :  { %15366 = vmatprep.subr.bf16.mxu0 %v15365_v59 }
0x5941   :  { %15368 = vmatpush3.bf16.msra.mxu0 %v15365_v59 }
0x5942   :  { %15370 = vmatprep.subr.bf16.mxu0 %v15369_v60 }
0x5945   :  { %15372 = vmatpush3.bf16.msra.mxu0 %v15369_v60 }
0x59b3   :  { %v11076_v52 = vpop.xlane.xlu1 %11075 }
0x59b4   :  { %15639 = vrcp.f32 %v11076_v52  ;;  %v11073_v19 = vpop.xlane.xlu0 %11072 }
0x59b5   :  { %15641 = vrcp.f32 %v11073_v19 }
0x59b7   :  { %v11167_v30 = vpop.permute.xlu1 %11166 }
0x59b8   :  { %v11165_v4 = vpop.permute.xlu0 %11164  ;;  %v11187_v6 = vsel %vm381_vm1, %v17750_v39, %v11167_v30 }
0x59b9   :  { %v11186_v5 = vsel %vm381_vm1, %v17752_v40, %v11165_v4  ;;  %v17946_v40 = vld [vmem:[%s18130_s4 + $0x200] sm:$0xff]  ;;  %v12592_v4 = vld [vmem:[%s18130_s4 + $0x1d8] sm:$0xff] }
0x59ba   :  { %v11215_v39 = vrot.slane %v17946_v40, %v16195_v22  ;;  %v11334_v55 = vrot.slane %v17946_v40, %v16221_v57  ;;  %v12590_v57 = vld [vmem:[%s18130_s4 + $0x1c8] sm:$0xff] }
0x59bb   :  { %v11173_v49 = vpop.permute.xlu1 %11172 }
0x59bc   :  { %v11188_v15 = vsel %vm469_vm5, %v11186_v5, %v11173_v49  ;;  %v12593_v5 = vld [vmem:[%s18130_s4 + $0x1e0] sm:$0xff] }
0x59be   :  { %v15640_v46 = vpop.eup %15639 }
0x59bf   :  { %v15642_v53 = vpop.eup %15641  ;;  %v11080_v12 = vmul.f32 %v15640_v46, %v15636_v34  ;;  %v11175_v47 = vpop.permute.xlu1 %11174  ;;  %v12600_v34 = vld [vmem:[%s18131_s5 + $0xb0] sm:$0xff] }
0x59c0   :  { %v11079_v54 = vmul.f32 %v15642_v53, %v15638_v48  ;;  %v11189_v11 = vsel %vm469_vm5, %v11187_v6, %v11175_v47  ;;  %v12601_v48 = vld [vmem:[%s18131_s5 + $0xb8] sm:$0xff]  ;;  %v12591_v47 = vld [vmem:[%s18130_s4 + $0x1d0] sm:$0xff]  ;;  %v12594_v6 = vld [vmem:[%s18130_s4 + $0x1e8] sm:$0xff] }
0x59c1   :  { %v15377_v32 = vpack.c.bf16 %v12601_v48, %v12600_v34  ;;  %v11443_v34 = vrot.slane %v17946_v40, %v16259_v43 }
0x59c2   :  { %14454 = vmatprep.mubr.msk.f32.mxu1 %vm469_vm5, %v11079_v54 }
0x59c3   :  { %14455 = vmatmul.mubr.msk.f32.vlgmr.msra.gmra.mrb[118].mxu1 %vm469_vm5, %v11080_v12  ;;  %v11328_v12 = vrot.slane %v17946_v40, %v16218_v56  ;;  %v12589_v56 = vld [vmem:[%s18130_s4 + $0x1c0] sm:$0xff] }
0x59c4   :  { %v15381_v49 = vpack.c.bf16 %v12590_v57, %v12589_v56  ;;  %v9354_v56 = vsel %vm9352_vm11, %v17665_v44, -inf }
0x59c6   :  { %15382 = vmatprep.subr.bf16.mxu0 %v15381_v49 }
0x5a96   :  { %v14456_v18 = vpop.f32.mrb[118].mxu1 }
0x5a97   :  { %11182 = vrot.lane.b32.xlu1 %v14456_v18, %s15746_s21  ;;  %v11153_v62 = vpop.f32.mrb[119].mxu1 }
0x5a98   :  { %11180 = vrot.lane.b32.xlu0 %v11153_v62, %s15746_s21 }
0x5b09   :  { %v11183_v38 = vpop.permute.xlu1 %11182 }
0x5b0a   :  { %v11181_v26 = vpop.permute.xlu0 %11180  ;;  %v11191_v17 = vsel %vm1936_vm6, %v11189_v11, %v11183_v38  ;;  %v15385_v38 = vpack.c.bf16 %v12592_v4, %v12591_v47  ;;  %v12596_v11 = vld [vmem:[%s18130_s4 + $0x1f8] sm:$0xff] }
0x5b0b   :  { %v11190_v3 = vsel %vm1936_vm6, %v11188_v15, %v11181_v26  ;;  %v15389_v15 = vpack.c.bf16 %v12594_v6, %v12593_v5  ;;  %v12595_v26 = vld [vmem:[%s18130_s4 + $0x1f0] sm:$0xff]  ;;  %v11556_v6 = vrot.slane %v17946_v40, %v16300_v27 }
0x5b0c   :  { %14465 = vmatprep.mubr.msk.f32.mxu0 %vm81_vm0, %v11190_v3  ;;  %v15393_v3 = vpack.c.bf16 %v12596_v11, %v12595_v26 }
0x5b0d   :  { %14466 = vmatmul.mubr.msk.f32.vlgmr.msra.gmra.mrb[116].mxu0 %vm81_vm0, %v11191_v17  ;;  %v12605_v17 = vld [vmem:[%s18131_s5 + $0xc0] ss:$0 sm:$0xff] }
0x5b0e   :  { %15384 = vmatpush3.bf16.msra.mxu0 %v15381_v49 }
0x5b0f   :  { %15386 = vmatprep.subr.bf16.mxu0 %v15385_v38 }
0x5b12   :  { %15388 = vmatpush3.bf16.msra.mxu0 %v15385_v38 }
0x5b13   :  { %15390 = vmatprep.subr.bf16.mxu0 %v15389_v15 }
0x5b16   :  { %15392 = vmatpush3.bf16.msra.mxu0 %v15389_v15 }
0x5b17   :  { %15394 = vmatprep.subr.bf16.mxu0 %v15393_v3 }
0x5b1a   :  { %15396 = vmatpush3.bf16.msra.mxu0 %v15393_v3  ;;  %v11562_v3 = vrot.slane %v17946_v40, %v16303_v28  ;;  %v12613_v28 = vld [vmem:[%s18132_s6 + $0x60] sm:$0xff]  ;;  %v12614_v40 = vld [vmem:[%s18132_s6 + $0x68] sm:$0xff] }
0x5be0   :  { %v14467_v21 = vpop.f32.mrb[116].mxu0 }
0x5be1   :  { %v11294_v14 = vadd.f32 %v14467_v21, %v11215_v39  ;;  %v11288_v7 = vpop.f32.mrb[117].mxu0 }
0x5be2   :  { %v11289_v13 = vadd.f32 %v11288_v7, %v11215_v39 }
0x5be3   :  { %v11298_v23 = vadd.f32 %v11294_v14, %v16717_v58 }
0x5be4   :  { %v11297_v61 = vadd.f32 %v11289_v13, %v16715_v50  ;;  %v12598_v50 = vld [vmem:[%s18131_s5 + $0xa0] sm:$0xff] }
0x5be5   :  { %v11302_v42 = vsel %vm81_vm0, %v11298_v23, 0.0  ;;  %v15373_v25 = vpack.c.bf16 %v12599_v0, %v12598_v50 }
0x5be6   :  { %11303 = vadd.xlane.f32.xlu1 %v11302_v42  ;;  %v11299_v24 = vsel %vm81_vm0, %v11297_v61, 0.0 }
0x5be7   :  { %11300 = vadd.xlane.f32.xlu0 %v11299_v24  ;;  %15374 = vmatprep.subr.bf16.mxu1 %v15373_v25 }
0x5be8   :  { %15376 = vmatpush3.bf16.msra.mxu1 %v15373_v25 }
0x5be9   :  { %15378 = vmatprep.subr.bf16.mxu1 %v15377_v32 }
0x5bec   :  { %15380 = vmatpush3.bf16.msra.mxu1 %v15377_v32 }
0x5bed   :  { %15397 = vmatprep.subr.bf16.mxu1 %v15747_v1 }
0x5c73   :  { %v11304_v29 = vpop.xlane.xlu1 %11303 }
0x5c74   :  { %v11306_v35 = vmul.f32 0.03125, %v11304_v29  ;;  %v11301_v33 = vpop.xlane.xlu0 %11300 }
0x5c75   :  { %v11305_v36 = vmul.f32 0.03125, %v11301_v33 }
0x5c76   :  { %v11308_v37 = vsub.f32 %v11298_v23, %v11306_v35 }
0x5c77   :  { %v11307_v22 = vsub.f32 %v11297_v61, %v11305_v36 }
0x5c78   :  { %v11310_v16 = vmul.f32 %v11308_v37, %v11308_v37 }
0x5c79   :  { %v11309_v41 = vmul.f32 %v11307_v22, %v11307_v22 }
0x5c7a   :  { %v11314_v58 = vsel %vm81_vm0, %v11310_v16, 0.0 }
0x5c7b   :  { %v11311_v45 = vsel %vm81_vm0, %v11309_v41, 0.0 }
0x5c7c   :  { %11312 = vadd.xlane.f32.xlu0 %v11311_v45 }
0x5c80   :  { %11315 = vadd.xlane.f32.xlu0 %v11314_v58 }
0x5d09   :  { %v11313_v31 = vpop.xlane.xlu0 %11312 }
0x5d0a   :  { %v11317_v52 = vmul.f32 0.03125, %v11313_v31 }
0x5d0c   :  { %v11319_v19 = vadd.f32 1e-05, %v11317_v52 }
0x5d0d   :  { %v11316_v46 = vpop.xlane.xlu0 %11315 }
0x5d0e   :  { %15643 = vrsqrt.f32 %v11319_v19  ;;  %v11318_v53 = vmul.f32 0.03125, %v11316_v46 }
0x5d10   :  { %v11320_v54 = vadd.f32 1e-05, %v11318_v53 }
0x5d12   :  { %15645 = vrsqrt.f32 %v11320_v54 }
0x5d18   :  { %v15644_v8 = vpop.eup %15643 }
0x5d19   :  { %v11323_v2 = vmul.f32 %v15644_v8, %v11307_v22 }
0x5d1b   :  { %v11329_v59 = vmul.f32 %v11328_v12, %v11323_v2 }
0x5d1c   :  { %v15646_v51 = vpop.eup %15645 }
0x5d1d   :  { %v11324_v60 = vmul.f32 %v15646_v51, %v11308_v37  ;;  %v11335_v18 = vadd.f32 %v11334_v55, %v11329_v59 }
0x5d1f   :  { %v11330_v62 = vmul.f32 %v11328_v12, %v11324_v60  ;;  %14476 = vmatprep.mubr.msk.f32.mxu1 %vm81_vm0, %v11335_v18 }
0x5d21   :  { %v11336_v30 = vadd.f32 %v11334_v55, %v11330_v62 }
0x5d23   :  { %14477 = vmatmul.mubr.msk.f32.vlgmr.msra.gmra.mrb[120].mxu1 %vm81_vm0, %v11336_v30 }
0x5d24   :  { %14502 = vmatprep.mubr.msk.f32.mxu1 %vm15748_vm8, %v15749_v63 }
0x5df6   :  { %v14478_v39 = vpop.f32.mrb[120].mxu1 }
0x5df7   :  { %v11419_v21 = vadd.f32 %v14478_v39, %v12605_v17  ;;  %v11413_v14 = vpop.f32.mrb[121].mxu1 }
0x5df8   :  { %v11414_v7 = vadd.f32 %v12605_v17, %v11413_v14 }
0x5df9   :  { %v11425_v13 = vmul.f32 0.044715, %v11419_v21  ;;  %v11423_v50 = vmul.f32 0.5, %v11419_v21 }
0x5dfa   :  { %v11424_v23 = vmul.f32 0.044715, %v11414_v7  ;;  %v11422_v16 = vmul.f32 0.5, %v11414_v7 }
0x5dfb   :  { %v11427_v61 = vmul.f32 %v11425_v13, %v11419_v21  ;;  %v12611_v13 = vld [vmem:[%s18132_s6 + $0x50] sm:$0xff] }
0x5dfc   :  { %v11426_v42 = vmul.f32 %v11424_v23, %v11414_v7  ;;  %v12612_v23 = vld [vmem:[%s18132_s6 + $0x58] sm:$0xff] }
0x5dfd   :  { %v11429_v24 = vmul.f32 %v11427_v61, %v11419_v21  ;;  %v15401_v61 = vpack.c.bf16 %v12612_v23, %v12611_v13 }
0x5dfe   :  { %v11428_v29 = vmul.f32 %v11426_v42, %v11414_v7  ;;  %v15404_v42 = vpack.c.bf16 %v12614_v40, %v12613_v28 }
0x5dff   :  { %v11431_v35 = vadd.f32 %v11429_v24, %v11419_v21 }
0x5e00   :  { %v11430_v33 = vadd.f32 %v11428_v29, %v11414_v7 }
0x5e01   :  { %v11433_v36 = vmul.f32 0.7978846, %v11431_v35  ;;  %v12619_v35 = vld [vmem:[%s18134_s8 + $0x30] sm:$0xff] }
0x5e02   :  { %v11432_v37 = vmul.f32 0.7978846, %v11430_v33  ;;  %v12620_v33 = vld [vmem:[%s18134_s8 + $0x38] sm:$0xff] }
0x5e03   :  { %15647 = vtanh.f32 %v11433_v36 }
0x5e04   :  { %15649 = vtanh.f32 %v11432_v37  ;;  %v12621_v37 = vld [vmem:[%s18134_s8 + $0x40] sm:$0xff] }
0x5e0d   :  { %v15648_v22 = vpop.eup %15647 }
0x5e0e   :  { %v15650_v41 = vpop.eup %15649  ;;  %v11437_v45 = vadd.f32 1.0, %v15648_v22  ;;  %v15410_v22 = vpack.c.bf16 %v12621_v37, %v12620_v33 }
0x5e0f   :  { %v11436_v58 = vadd.f32 1.0, %v15650_v41  ;;  %v12616_v41 = vld [vmem:[%s18132_s6 + $0x70] ss:$0 sm:$0xff] }
0x5e10   :  { %v11439_v25 = vmul.f32 %v11437_v45, %v11423_v50 }
0x5e11   :  { %v11438_v0 = vmul.f32 %v11436_v58, %v11422_v16 }
0x5e13   :  { %14495 = vmatprep.mubr.msk.f32.mxu0 %vm2176_vm7, %v11438_v0  ;;  %v15750_v0 = vmov 0  }
0x5e14   :  { %14496 = vmatmul.mubr.msk.f32.vlgmr.msra.gmra.mrb[118].mxu0 %vm2176_vm7, %v11439_v25  ;;  %15424 = vset.pattern.permute.xlu0 %v15750_v0  ;;  %v12623_v25 = vld [vmem:[%s18134_s8 + $0x48] ss:$0 sm:$0xff] }
0x5e15   :  { %15425 = vset.pattern.permute.xlu1 %v15750_v0 }
0x5ee7   :  { %v14497_v48 = vpop.f32.mrb[118].mxu0 }
0x5ee8   :  { %v11522_v32 = vadd.f32 %v14497_v48, %v11443_v34  ;;  %v11516_v31 = vpop.f32.mrb[119].mxu0 }
0x5ee9   :  { %v11517_v52 = vadd.f32 %v11516_v31, %v11443_v34  ;;  %v6927_v31 = vld [vmem:[%s18128_s2] sm:$0x3]  ;;  %s15752_s2 = smov 127  }
0x5eea   :  { %v11526_v19 = vadd.f32 %v11522_v32, %v11336_v30 }
0x5eeb   :  { %v11525_v46 = vadd.f32 %v11517_v52, %v11335_v18  ;;  %v6916_v18 = vsel %vm6914_vm10, %v17203_v10, -inf }
0x5eec   :  { %v11530_v53 = vsel %vm81_vm0, %v11526_v19, 0.0 }
0x5eed   :  { %11531 = vadd.xlane.f32.xlu1 %v11530_v53  ;;  %v11527_v54 = vsel %vm81_vm0, %v11525_v46, 0.0 }
0x5eee   :  { %11528 = vadd.xlane.f32.xlu0 %v11527_v54 }
0x5f7a   :  { %v11532_v12 = vpop.xlane.xlu1 %11531 }
0x5f7b   :  { %v11534_v8 = vmul.f32 0.03125, %v11532_v12  ;;  %v11529_v2 = vpop.xlane.xlu0 %11528 }
0x5f7c   :  { %v11533_v55 = vmul.f32 0.03125, %v11529_v2 }
0x5f7d   :  { %v11536_v59 = vsub.f32 %v11526_v19, %v11534_v8 }
0x5f7e   :  { %v11535_v51 = vsub.f32 %v11525_v46, %v11533_v55 }
0x5f7f   :  { %v11538_v60 = vmul.f32 %v11536_v59, %v11536_v59 }
0x5f80   :  { %v11537_v43 = vmul.f32 %v11535_v51, %v11535_v51 }
0x5f81   :  { %v11542_v62 = vsel %vm81_vm0, %v11538_v60, 0.0 }
0x5f82   :  { %11543 = vadd.xlane.f32.xlu1 %v11542_v62  ;;  %v11539_v30 = vsel %vm81_vm0, %v11537_v43, 0.0 }
0x5f83   :  { %11540 = vadd.xlane.f32.xlu0 %v11539_v30 }
0x5f86   :  { %6917 = vmax.xlane.f32.xlu1 %v6916_v18 }
0x5f8a   :  { %9355 = vmax.xlane.f32.xlu1 %v9354_v56 }
0x600f   :  { %v11544_v57 = vpop.xlane.xlu1 %11543 }
0x6010   :  { %v11546_v49 = vmul.f32 0.03125, %v11544_v57  ;;  %v11541_v47 = vpop.xlane.xlu0 %11540 }
0x6011   :  { %v11545_v4 = vmul.f32 0.03125, %v11541_v47  ;;  %v15751_v47 = vmov 1  }
0x6012   :  { %v11548_v5 = vadd.f32 1e-05, %v11546_v49 }
0x6013   :  { %v11547_v38 = vadd.f32 1e-05, %v11545_v4  ;;  %v6918_v52 = vpop.xlane.xlu1 %6917 }
0x6014   :  { %15651 = vrsqrt.f32 %v11548_v5  ;;  %v6919_v19 = vsub.f32 %v17203_v10, %v6918_v52 }
0x6015   :  { %15653 = vrsqrt.f32 %v11547_v38 }
0x6016   :  { %v6920_v54 = vmul.f32 1.442695, %v6919_v19 }
0x6017   :  { %v18071_v8 = vpop.xlane.xlu1 %9355 }
0x6018   :  { %v9357_v2 = vsub.f32 %v17665_v44, %v18071_v8 }
0x601a   :  { %v9358_v55 = vmul.f32 1.442695, %v9357_v2 }
0x601e   :  { %v15652_v15 = vpop.eup %15651 }
0x601f   :  { %v15654_v26 = vpop.eup %15653  ;;  %v11552_v11 = vmul.f32 %v15652_v15, %v11536_v59 }
0x6020   :  { %v11551_v17 = vmul.f32 %v15654_v26, %v11535_v51 }
0x6021   :  { %v11558_v39 = vmul.f32 %v11556_v6, %v11552_v11 }
0x6022   :  { %v11557_v21 = vmul.f32 %v11556_v6, %v11551_v17 }
0x6023   :  { %v11564_v14 = vadd.f32 %v11562_v3, %v11558_v39 }
0x6024   :  { %v11563_v7 = vadd.f32 %v11562_v3, %v11557_v21 }
0x6026   :  { %v15398_v27 = vpack.c.bf16 %v11564_v14, %v11563_v7 }
0x6028   :  { %15399 = vmatpush3.bf16.msra.mxu1 %v15398_v27 }
0x6029   :  { %15400 = vmatprep.subr.bf16.mxu1 %v15747_v1 }
0x602b   :  { %14503 = vmatmul.mubr.msk.f32.vlgmr.msra.gmra.mrb[122].mxu1 %vm469_vm5, %v17146_v9  ;;  %v12618_v9 = vld [vmem:[%s18134_s8 + $0x28] sm:$0xff]  ;;  %s15753_s8 = smov [#allocation4]  }
0x602c   :  { %15402 = vmatpush3.bf16.msra.mxu1 %v15401_v61  ;;  %14513 = vmatprep.mubr.msk.f32.mxu1 %vm15748_vm8, %v15749_v63  ;;  %v15407_v36 = vpack.c.bf16 %v12619_v35, %v12618_v9 }
0x602d   :  { %15403 = vmatprep.subr.bf16.mxu1 %v15747_v1 }
0x6030   :  { %15405 = vmatpush3.bf16.msra.mxu1 %v15404_v42 }
0x6031   :  { %15406 = vmatprep.subr.bf16.mxu1 %v15747_v1 }
0x60fe   :  { %v11631_v24 = vpop.f32.mrb[122].mxu1 }
0x60ff   :  { %v14504_v29 = vpop.f32.mrb[123].mxu1  ;;  %14514 = vmatmul.mubr.msk.f32.vlgmr.msra.gmra.mrb[124].mxu1 %vm81_vm0, %v11631_v24 }
0x6100   :  { %14524 = vmatprep.mubr.msk.f32.mxu1 %vm15748_vm8, %v15749_v63  ;;  %15408 = vmatpush3.bf16.msra.mxu1 %v15407_v36 }
0x6101   :  { %15409 = vmatprep.subr.bf16.mxu1 %v15747_v1 }
0x6104   :  { %15411 = vmatpush3.bf16.msra.mxu1 %v15410_v22 }
0x61d2   :  { %v11714_v45 = vpop.f32.mrb[124].mxu1 }
0x61d3   :  { %v11715_v16 = vadd.f32 %v12616_v41, %v11714_v45  ;;  %v14515_v58 = vpop.f32.mrb[125].mxu1 }
0x61d5   :  { %15655 = vtanh.f32 %v11715_v16 }
0x61df   :  { %v15656_v50 = vpop.eup %15655 }
0x61e0   :  { %14525 = vmatmul.mubr.msk.f32.vlgmr.msra.gmra.mrb[126].mxu1 %vm81_vm0, %v15656_v50 }
0x62b3   :  { %v11798_v1 = vpop.f32.mrb[126].mxu1 }
0x62b4   :  { %v11799_v34 = vadd.f32 %v12623_v25, %v11798_v1  ;;  %v14526_v48 = vpop.f32.mrb[127].mxu1 }
0x62b6   :  { %12625 = vst.msk [vmem:[%s18135_s9 + $0x2] sm:$0x3] %vm9352_vm11, %v11799_v34  ;;  %v11804_v32 = vsel %vm9352_vm11, %v11799_v34, -inf  ;;  %s11865_s9 = sshll.u32 %s15753_s8, 4  ;;  %s11866_s9 = int_to_ptr.vmem [resolvable:$true] %s11865_s9 }
0x62b7   :  { %11805 = vmax.xlane.f32.xlu0 %v11804_v32  ;;  %s15674_s26 = scalar_lea.vmem %s11866_s9, 32  ;;  %p15679_p1 = scmp.lt.s32.totalorder %s11866_s9, %s11866_s9 }
0x62b8   :  { %p15675_p0 = scmp.ne.s32.totalorder %s11866_s9, %s15674_s26  ;;  %p15680_p2 = scmp.lt.s32.totalorder %s15674_s26, %s15674_s26 }
0x62ba   :  { %p15681_p3 = por %p15680_p2, %p15679_p1 }
0x62bc   :  { %p15682_p4 = pnand %p15681_p3, %p15675_p0 }
0x62cd   :  { %6929 = vperm.xlu0 %15424, %v6927_v31  }
0x62d1   :  { %15426 = vset.pattern.permute.xlu0 %v15751_v47 }
0x6344   :  { %v11806_v46 = vpop.xlane.xlu0 %11805 }
0x6345   :  { %v11807_v53 = vsub.f32 %v11799_v34, %v11806_v46 }
0x6347   :  { %v11808_v12 = vmul.f32 1.442695, %v11807_v53 }
0x6349   :  { %15657 = vpow2.f32 %v11808_v12 }
0x634a   :  { %15659 = vpow2.f32 %v6920_v54 }
0x634b   :  { %15661 = vpow2.f32 %v9358_v55 }
0x634c   :  { %v6930_v59 = vpop.permute.xlu0 %6929 }
0x634d   :  { %vm6931_vm12 = vcmp.eq.s32.totalorder %v15950_v20, %v6930_v59 }
0x634e   :  { %v6932_v43 = vsel %vm6931_vm12, 1.0, %v15749_v63 }
0x634f   :  { %v11824_v62 = vmul.f32 %v11799_v34, %v6932_v43  ;;  %v9375_v20 = vmul.f32 %v17665_v44, %v6932_v43 }
0x6351   :  { %v11825_v18 = vsel %vm9352_vm11, %v11824_v62, 0.0  ;;  %v9376_v49 = vsel %vm9352_vm11, %v9375_v20, 0.0 }
0x6353   :  { %v18076_v51 = vpop.eup %15657 }
0x6354   :  { %v11810_v10 = vsel %vm9352_vm11, %v18076_v51, 0.0  ;;  %v15660_v60 = vpop.eup %15659 }
0x6355   :  { %11811 = vadd.xlane.f32.xlu1 %v11810_v10  ;;  %v6922_v30 = vsel %vm6914_vm10, %v15660_v60, 0.0  ;;  %v15662_v56 = vpop.eup %15661 }
0x6356   :  { %v9360_v57 = vsel %vm9352_vm11, %v15662_v56, 0.0 }
0x6359   :  { %6923 = vadd.xlane.f32.xlu1 %v6922_v30 }
0x635d   :  { %11826 = vadd.xlane.f32.xlu1 %v11825_v18 }
0x6361   :  { %9361 = vadd.xlane.f32.xlu1 %v9360_v57 }
0x6365   :  { %9377 = vadd.xlane.f32.xlu1 %v9376_v49 }
0x63e2   :  { %v11812_v63 = vpop.xlane.xlu1 %11811 }
0x63e3   :  { %15663 = vlog2.f32 %v11812_v63 }
0x63e6   :  { %v6924_v4 = vpop.xlane.xlu1 %6923 }
0x63e7   :  { %15665 = vrcp.f32 %v6924_v4 }
0x63ea   :  { %v11827_v11 = vpop.xlane.xlu1 %11826 }
0x63ed   :  { %v15664_v5 = vpop.eup %15663 }
0x63ee   :  { %v11822_v38 = vmul.f32 0.6931472, %v15664_v5 }
0x63f0   :  { %v11823_v15 = vadd.f32 %v11822_v38, %v11806_v46 }
0x63f1   :  { %v15666_v6 = vpop.eup %15665 }
0x63f2   :  { %v6926_v26 = vmul.f32 %v15666_v6, %v15660_v60  ;;  %v11828_v3 = vsub.f32 %v11823_v15, %v11827_v11 }
0x63f4   :  { %11816 = vperm.xlu0 %15426, %v6926_v26   ;;  %9367 = vperm.xlu1 %15425, %v6926_v26   ;;  %v11829_v44 = vmul.f32 %v11828_v3, %v6926_v26 }
0x63f8   :  { %11831 = vrot.lane.b32.xlu1 %v11829_v44, %s15752_s2 }
0x63f9   :  { %15685 = shalt.err (!%p15682_p4)
}
0x63fa   :  { %s15686_s27 = scalar_lea.hbm %s18137_s11, 32 }
0x63fb   :  { %p15687_p5 = scmp.ne.s32.totalorder %s18137_s11, %s15686_s27  ;;  %p15690_p6 = scmp.lt.u32.totalorder %s15686_s27, %s18137_s11 }
0x63fd   :  { %p15692_p7 = pnand %p15690_p6, %p15687_p5 }
0x63ff   :  { %15695 = shalt.err (!%p15692_p7)
}
0x6400   :  { %11868 = dma.vmem_to_hbm [thread:$0]  %s11866_s9, 32, %s18137_s11, [#allocation5]   ;;  %v9362_v17 = vpop.xlane.xlu1 %9361  ;;  %vm11836_vm13 = vcmask 1024  }
0x6401   :  { %15667 = vlog2.f32 %v9362_v17  ;;  %s15754_s18 = smov [#allocation2]  }
0x6402   :  { %15669 = vrcp.f32 %v11812_v63  ;;  %s11855_s3 = sshll.u32 %s15754_s18, 4  ;;  %s11856_s3 = int_to_ptr.vmem [resolvable:$true] %s11855_s3 }
0x6403   :  { %15671 = vrcp.f32 %v9362_v17  ;;  %s15696_s11 = scalar_lea.vmem %s11856_s3, 32  ;;  %p15701_p9 = scmp.lt.s32.totalorder %s11856_s3, %s11856_s3 }
0x6404   :  { %v9378_v23 = vpop.xlane.xlu1 %9377  ;;  %p15697_p8 = scmp.ne.s32.totalorder %s11856_s3, %s15696_s11  ;;  %p15702_p10 = scmp.lt.s32.totalorder %s15696_s11, %s15696_s11 }
0x6406   :  { %p15703_p11 = por %p15702_p10, %p15701_p9 }
0x6408   :  { %p15704_p12 = pnand %p15703_p11, %p15697_p8 }
0x640b   :  { %v15668_v39 = vpop.eup %15667 }
0x640c   :  { %v9373_v21 = vmul.f32 0.6931472, %v15668_v39  ;;  %v15670_v14 = vpop.eup %15669 }
0x640d   :  { %v15672_v13 = vpop.eup %15671  ;;  %v11814_v28 = vmul.f32 %v15670_v14, %v18076_v51 }
0x640e   :  { %v9374_v7 = vadd.f32 %v9373_v21, %v18071_v8  ;;  %v9364_v61 = vmul.f32 %v15672_v13, %v15662_v56 }
0x6410   :  { %v9379_v27 = vsub.f32 %v9374_v7, %v9378_v23 }
0x6412   :  { %v9380_v9 = vmul.f32 %v9379_v27, %v6926_v26 }
0x6473   :  { %v9368_v40 = vpop.permute.xlu1 %9367  ;;  %v11817_v42 = vpop.permute.xlu0 %11816 }
0x6474   :  { %v9370_v24 = vmul.f32 %v9368_v40, %v9364_v61  ;;  %v11819_v29 = vmul.f32 %v11817_v42, %v11814_v28 }
0x6476   :  { %v11820_v35 = vadd.f32 %v11819_v29, %v9370_v24 }
0x6477   :  { %v11832_v33 = vpop.permute.xlu1 %11831 }
0x6478   :  { %v11834_v36 = vadd.f32 %v11832_v33, %v9380_v9  ;;  %11835 = vst.msk [vmem:[#allocation2] sm:$0x3] %vm9352_vm11, %v11820_v35 }
0x6479   :  { %15707 = shalt.err (!%p15704_p12)
}
0x647a   :  { %s15708_s30 = scalar_lea.hbm %s18136_s10, 32 }
0x647b   :  { %p15709_p13 = scmp.ne.s32.totalorder %s18136_s10, %s15708_s30  ;;  %p15712_p0 = scmp.lt.u32.totalorder %s15708_s30, %s18136_s10 }
0x647d   :  { %p15714_p1 = pnand %p15712_p0, %p15709_p13 }
0x647f   :  { %15717 = shalt.err (!%p15714_p1)
}
0x6480   :  { %11858 = dma.vmem_to_hbm [thread:$0]  %s11856_s3, 32, %s18136_s10, [#allocation3]   ;;  %v11837_v37 = vsel %vm11836_vm13, %v11834_v36, 0.0  ;;  %vm11845_vm14 = vcmask 0  }
0x6481   :  { %v11838_v22 = vrot.slane %v11837_v37, 4  ;;  %s15755_s24 = smov [#allocation6]  }
0x6482   :  { %s11875_s6 = sshll.u32 %s15755_s24, 4  ;;  %s11876_s6 = int_to_ptr.vmem [resolvable:$true] %s11875_s6 }
0x6483   :  { %v11839_v41 = vadd.f32 %v11838_v22, %v11837_v37  ;;  %s15718_s0 = scalar_lea.vmem %s11876_s6, 16  ;;  %s15722_s25 = scalar_lea.vmem %s11876_s6, 32 }
0x6484   :  { %p15719_p2 = scmp.ne.s32.totalorder %s11876_s6, %s15718_s0  ;;  %p15723_p3 = scmp.lt.s32.totalorder %s11876_s6, %s11876_s6 }
0x6485   :  { %v11840_v45 = vrot.slane %v11839_v41, 2  ;;  %p15724_p4 = scmp.lt.s32.totalorder %s15722_s25, %s15718_s0 }
0x6487   :  { %v11841_v16 = vadd.f32 %v11840_v45, %v11839_v41  ;;  %p15725_p5 = por %p15724_p4, %p15723_p3 }
0x6489   :  { %v11842_v58 = vrot.slane %v11841_v16, 1  ;;  %p15726_p6 = pnand %p15725_p5, %p15719_p2 }
0x648b   :  { %v11843_v50 = vadd.f32 %v11842_v58, %v11841_v16 }
0x648d   :  { %v11844_v0 = vmul.f32 0.5, %v11843_v50 }
0x648f   :  { %11846 = vst.msk [vmem:[#allocation6] sm:$0x1] %vm11845_vm14, %v11844_v0 }
0x6490   :  { %15729 = shalt.err (!%p15726_p6)
}
0x6491   :  { %s15730_s8 = scalar_lea.hbm %s18138_s12, 16 }
0x6492   :  { %p15731_p7 = scmp.ne.s32.totalorder %s18138_s12, %s15730_s8  ;;  %p15734_p8 = scmp.lt.u32.totalorder %s15730_s8, %s18138_s12 }
0x6494   :  { %p15736_p9 = pnand %p15734_p8, %p15731_p7 }
0x6496   :  { %15739 = shalt.err (!%p15736_p9)
}
0x6497   :  { %11878 = dma.vmem_to_hbm [thread:$0]  %s11876_s6, 16, %s18138_s12, [#allocation5]  }
0x6498   :  { %15740 = dma.done.wait [#allocation3], 32  }
0x6499   :  { %15741 = vsyncadd [#allocation3], 4294967264 }
0x649a   :  { %15742 = dma.done.wait [#allocation5], 48  }
0x649b   :  { %15743 = vsyncadd [#allocation5], 4294967248 }
0x649c   :  { %11890 = vsyncpa [#allocation3], 1 }
0x649d   :  { %11891 = vsyncpa [#allocation5], 1 }

</bundles_post_ra>
